<compile_context>
chip_gen: v5e
topology: v5e:2x2
jax: 0.10.0
libtpu: 0.0.40
codegen_flags: <defaults>
</compile_context>

<pallas_src>
import numpy as np

import jax
import jax.numpy as jnp
from jax.experimental import pallas as pl
from jax.experimental.pallas import tpu as pltpu

_EPS = 1e-5                      # torch.nn.LayerNorm default eps
_INV_SQRT2 = 0.7071067811865475

_VMEM = pl.BlockSpec(memory_space=pltpu.MemorySpace.VMEM)


# ----------------------------------------------------------------------------
# In-kernel math helpers
# ----------------------------------------------------------------------------
def _erf(x):
    # Abramowitz & Stegun 7.1.26 polynomial (|err| < 1.5e-7 vs exact erf).
    # The divide is replaced by an EUP approximate reciprocal + one Newton
    # refinement step (moves the op off the VALU slots, keeps ~1e-6 accuracy).
    p = 0.3275911
    a1, a2, a3, a4, a5 = (0.254829592, -0.284496736, 1.421413741,
                          -1.453152027, 1.061405429)
    ax = jnp.abs(x)
    d = 1.0 + p * ax
    t = pl.reciprocal(d, approx=True)
    t = t * (2.0 - d * t)                       # Newton step: err -> err^2
    poly = ((((a5 * t + a4) * t + a3) * t + a2) * t + a1) * t
    e = 1.0 - poly * jnp.exp(-ax * ax)
    return jnp.where(x >= 0.0, e, -e)


def _gelu(x):
    # Exact (erf-based) GELU, matching torch.nn.GELU() default.  Kept in f32
    # (v5e VPU/EUP have no bf16).
    return 0.5 * x * (1.0 + _erf(x * _INV_SQRT2))


# ----------------------------------------------------------------------------
# The fused kernel: 4 Rebuild branches + final FC, one invocation, no grid.
# ----------------------------------------------------------------------------
def _fused_kernel(xpt_ref, poolt_ref, gt_ref, bc1_ref, w1t_ref, l1_ref,
                  bl1_ref, w2_ref, b2_ref, l2_ref, bl2_ref, fcw_ref, fcb_ref,
                  o_ref):
    # xpt_ref : [32, NP]      transposed im2col patches of the LN-normalized
    #                         input (K padded 27->32), shared by all branches
    # poolt_ref: [NP, BP]     constant avg-pool matrix (1/P per batch column)
    # gt_ref  : [4, 32, NP]   bf16 LayerNorm gamma in transposed patch layout
    # bc1_ref : [4, 32, NP]   bf16 conv1 bias with LN beta folded in
    # w1t_ref : [4, 32, 32]   conv1 weight [Cout, K(pad)]
    # l1_ref  : [4, 32, 64]   lin1 weight,   bl1_ref: [4, 1, 64]
    # w2_ref  : [4, 64, 1024] bf16 conv2 folded over the 2x2 output positions
    # b2_ref  : [4, 1, 1024]  conv2 bias tiled over the 4 positions
    # l2_ref  : [4, 256, 512] bf16 lin2 weight, bl2_ref: [4, 1, 512]
    # fcw_ref : [4, 512, 128] bf16 final-FC slab for each branch (101 -> 128)
    # fcb_ref : [1, 128]      final-FC bias (padded)
    # o_ref   : [BP, 128]     logits (batch padded to 8 rows, cols padded 128)
    f32, bf16 = jnp.float32, jnp.bfloat16
    xpt = xpt_ref[...]                                   # [32, NP]
    poolt = poolt_ref[...]                               # [NP, BP]
    acc = fcb_ref[...] + jnp.zeros(o_ref.shape, f32)     # [BP, 128]

    for r in range(4):                                   # unrolled branch loop
        # LayerNorm gamma + conv1 in the transposed (lane-dense) layout.
        xn = xpt * gt_ref[r].astype(f32)                                   # [32, NP]
        h1 = jnp.dot(w1t_ref[r], xn, preferred_element_type=f32)          # [32, NP]
        h1 = _gelu(h1 + bc1_ref[r].astype(f32))                           # GELU on 360 lanes
        a_t = jnp.dot(h1, poolt, preferred_element_type=f32)              # [32, BP] avg pool
        a = jnp.transpose(a_t)                                            # [BP, 32] (tiny XLU transpose)
        a = jnp.dot(a, l1_ref[r], preferred_element_type=f32) + bl1_ref[r]          # [BP, 64]
        h2 = jnp.dot(a.astype(bf16), w2_ref[r],
                     preferred_element_type=f32) + b2_ref[r]              # [BP, 1024]
        h2 = _gelu(h2)
        # Mean over the 2x2 conv2 output positions (4 aligned lane groups).
        c = 0.25 * (h2[:, 0:256] + h2[:, 256:512]
                    + h2[:, 512:768] + h2[:, 768:1024])                   # [BP, 256]
        f = jnp.dot(c.astype(bf16), l2_ref[r],
                    preferred_element_type=f32) + bl2_ref[r]              # [BP, 512]
        # Fused final FC: accumulate this branch's contribution to the logits.
        acc = acc + jnp.dot(f.astype(bf16), fcw_ref[r],
                            preferred_element_type=f32)                   # [BP, 128]

    o_ref[...] = acc


# ----------------------------------------------------------------------------
# Plain-JAX glue (branch-independent, computed once per forward)
# ----------------------------------------------------------------------------
def _im2colT(x):
    # x: [B, C, H, W] -> [C*9, B*(H-2)*(W-2)]; row K = c*9 + i*3 + j (matches
    # torch conv weight .reshape(Cout, Cin*9)), column p = b*(oh*ow) + y*ow + x.
    B, C, H, W = x.shape
    oh, ow = H - 2, W - 2
    cols = [x[:, :, i:i + oh, j:j + ow] for i in range(3) for j in range(3)]
    p = jnp.stack(cols, axis=2)              # [B, C, 9, oh, ow]
    p = p.transpose(1, 2, 0, 3, 4)           # [C, 9, B, oh, ow]
    return p.reshape(C * 9, B * oh * ow)


# ----------------------------------------------------------------------------
# One-time parameter preparation (all reshapes/transposes/foldings hoisted)
# ----------------------------------------------------------------------------
def _fold_conv2(w2):
    # w2: [256, 4, 3, 3] -> [64, 1024].  Column p*256 + co gives the conv2
    # pre-activation at 2x2 output position p when the conv input is the
    # flattened lin1 output a[b, m] with m = c*16 + y*4 + x (torch .view order).
    w2 = np.asarray(w2, np.float32)
    eff = np.zeros((4, 64, 256), np.float32)
    for py in range(2):
        for px in range(2):
            pos = py * 2 + px
            for c in range(4):
                for i in range(3):
                    for j in range(3):
                        m = c * 16 + (py + i) * 4 + (px + j)
                        eff[pos, m, :] += w2[:, c, i, j]
    return jnp.asarray(eff.transpose(1, 0, 2).reshape(64, 4 * 256))


def prepare_params(params, batch, height, width=32):
    """Precompute all weight layouts once (nothing is reshaped per forward)."""
    assert width == 32, "LayerNorm(32) requires W == 32"
    assert params["fc_w"].shape[1] == 4 * 512
    P = (height - 2) * (width - 2)
    NP = batch * P
    BP = ((batch + 7) // 8) * 8              # batch rows padded to a sublane group
    branches = [params[f"rebuild_{n}"] for n in "abcd"]

    def patchT(vec):  # [32] -> [27, NP] transposed patch layout (batch-tiled)
        bc = jnp.broadcast_to(vec.reshape(1, 1, 1, width), (1, 3, height, width))
        return jnp.tile(_im2colT(bc), (1, batch))

    def per_branch(p):
        w1mat = p["conv1_w"].reshape(32, 27)                     # [Cout, Cin*3*3]
        gt = jnp.pad(patchT(p["ln_g"]), ((0, 5), (0, 0)))        # [32, NP]
        # LN beta folded through conv1 into a per-position conv1 bias.
        bc1 = jnp.dot(w1mat, patchT(p["ln_b"])) + p["conv1_b"][:, None]   # [32, NP]
        w1t = jnp.pad(w1mat, ((0, 0), (0, 5)))                   # [32, 32] (K padded)
        return dict(
            gt=gt.astype(jnp.bfloat16),
            bc1=bc1.astype(jnp.bfloat16),
            w1t=w1t,
            l1=p["lin1_w"].T,                                    # [32, 64]
            bl1=p["lin1_b"].reshape(1, 64),
            w2=_fold_conv2(p["conv2_w"]).astype(jnp.bfloat16),   # [64, 1024]
            b2=jnp.tile(p["conv2_b"], 4).reshape(1, 1024),
            l2=p["lin2_w"].T.astype(jnp.bfloat16),               # [256, 512]
            bl2=p["lin2_b"].reshape(1, 512),
        )

    per = [per_branch(p) for p in branches]
    pp = {k: jnp.stack([pb[k] for pb in per], axis=0) for k in per[0]}

    # Constant avg-pool matrix.  NOTE: O(B*P*BP); for large batch this should
    # become an in-kernel per-batch reduction, fine at these sizes.
    poolt = np.zeros((NP, BP), np.float32)
    for b in range(batch):
        poolt[b * P:(b + 1) * P, b] = 1.0 / P

    nc = params["fc_w"].shape[0]
    nc_pad = ((nc + 127) // 128) * 128       # lane-dense fc output (101 -> 128)
    fcw = jnp.pad(params["fc_w"].T, ((0, 0), (0, nc_pad - nc)))  # [2048, 128]
    pp.update(
        poolt=jnp.asarray(poolt),                                # [NP, BP]
        fcw=fcw.reshape(4, 512, nc_pad).astype(jnp.bfloat16),    # [4, 512, 128]
        fcb=jnp.pad(params["fc_b"], (0, nc_pad - nc)).reshape(1, nc_pad),
    )
    return pp


# ----------------------------------------------------------------------------
# pallas_call wrapper + forward
# ----------------------------------------------------------------------------
def _fused_call(xpt, pp):
    bp = pp["poolt"].shape[1]
    nc_pad = pp["fcb"].shape[-1]
    args = (xpt, pp["poolt"], pp["gt"], pp["bc1"], pp["w1t"], pp["l1"],
            pp["bl1"], pp["w2"], pp["b2"], pp["l2"], pp["bl2"], pp["fcw"],
            pp["fcb"])
    return pl.pallas_call(
        _fused_kernel,
        out_shape=jax.ShapeDtypeStruct((bp, nc_pad), jnp.float32),
        in_specs=[_VMEM] * len(args),
        out_specs=_VMEM,
    )(*args)


def quda_rebuild_net(x, pp, *, num_classes=101):
    """x: [B, 3, H, 32] float32 -> [B, num_classes]."""
    B, C, H, W = x.shape
    # Branch-independent part of LayerNorm(32) (biased stats over W) + im2col,
    # shared by all four branches; per-branch gamma/beta live in the kernel.
    # TODO(synk): folding this tiny preamble into the kernel needs odd-shape
    # in-kernel transposes (im2col); kept as one XLA fusion instead.
    mu = jnp.mean(x, axis=-1, keepdims=True)
    var = jnp.mean(jnp.square(x - mu), axis=-1, keepdims=True)
    xhat = (x - mu) * jax.lax.rsqrt(var + _EPS)
    xpt = _im2colT(xhat)                                        # [27, B*P]
    xpt = jnp.pad(xpt, ((0, 32 - xpt.shape[0]), (0, 0)))        # K pad 27 -> 32
    logits = _fused_call(xpt, pp)                               # [BP, 128]
    return logits[:B, :num_classes]


# ----------------------------------------------------------------------------
# Pure-JAX float32 reference of the PyTorch module (for a runtime check)
# ----------------------------------------------------------------------------
def _reference_forward(x, params):
    def rebuild(p, x):
        mu = jnp.mean(x, axis=-1, keepdims=True)
        var = jnp.mean(jnp.square(x - mu), axis=-1, keepdims=True)
        xn = (x - mu) * jax.lax.rsqrt(var + _EPS) * p["ln_g"] + p["ln_b"]
        h = jax.lax.conv_general_dilated(
            xn, p["conv1_w"], (1, 1), "VALID",
            dimension_numbers=("NCHW", "OIHW", "NCHW"))
        h = jax.nn.gelu(h + p["conv1_b"][None, :, None, None], approximate=False)
        a = jnp.mean(h, axis=(2, 3)) @ p["lin1_w"].T + p["lin1_b"]
        v = a.reshape(a.shape[0], 4, 4, 4)
        h2 = jax.lax.conv_general_dilated(
            v, p["conv2_w"], (1, 1), "VALID",
            dimension_numbers=("NCHW", "OIHW", "NCHW"))
        h2 = jax.nn.gelu(h2 + p["conv2_b"][None, :, None, None], approximate=False)
        return jnp.mean(h2, axis=(2, 3)) @ p["lin2_w"].T + p["lin2_b"]

    feats = jnp.concatenate(
        [rebuild(params[f"rebuild_{n}"], x) for n in "abcd"], axis=1)
    return feats @ params["fc_w"].T + params["fc_b"]


# ----------------------------------------------------------------------------
# Deterministic parameter initialization (shapes from the module __init__)
# ----------------------------------------------------------------------------
def _init_rebuild(key):
    ks = jax.random.split(key, 10)
    f32 = jnp.float32
    return dict(
        ln_g=1.0 + 0.1 * jax.random.normal(ks[0], (32,), f32),
        ln_b=0.1 * jax.random.normal(ks[1], (32,), f32),
        conv1_w=0.1 * jax.random.normal(ks[2], (32, 3, 3, 3), f32),
        conv1_b=0.05 * jax.random.normal(ks[3], (32,), f32),
        lin1_w=0.1 * jax.random.normal(ks[4], (64, 32), f32),
        lin1_b=0.05 * jax.random.normal(ks[5], (64,), f32),
        conv2_w=0.1 * jax.random.normal(ks[6], (256, 4, 3, 3), f32),
        conv2_b=0.05 * jax.random.normal(ks[7], (256,), f32),
        lin2_w=0.1 * jax.random.normal(ks[8], (512, 256), f32),
        lin2_b=0.05 * jax.random.normal(ks[9], (512,), f32),
    )


if __name__ == "__main__":
    key = jax.random.PRNGKey(0)
    kx, kp = jax.random.split(key)

    # W must be 32 (LayerNorm(32)); C must be 3 (Conv2d(3, 32, 3)); H small.
    B, C, H, W = 2, 3, 8, 32
    x = jax.random.normal(kx, (B, C, H, W), jnp.float32)

    kparts = jax.random.split(kp, 5)
    params = {f"rebuild_{n}": _init_rebuild(k) for n, k in zip("abcd", kparts[:4])}
    kfw, kfb = jax.random.split(kparts[4])
    params["fc_w"] = 0.05 * jax.random.normal(kfw, (101, 2048), jnp.float32)
    params["fc_b"] = 0.05 * jax.random.normal(kfb, (101,), jnp.float32)

    prepped = prepare_params(params, batch=B, height=H, width=W)

    forward = jax.jit(quda_rebuild_net, static_argnames=("num_classes",))
    out = jax.block_until_ready(forward(x, prepped, num_classes=101))
    assert out.shape == (B, 101), out.shape
    assert bool(jnp.all(jnp.isfinite(out)))

    # Check against a pure-JAX float32 reference of the PyTorch module
    # (loose tolerance: the kernel uses bf16 weights + polynomial erf).
    ref = _reference_forward(x, params)
    np.testing.assert_allclose(np.asarray(out), np.asarray(ref),
                               rtol=0.1, atol=0.1)

    print("KERNEL_OK")
</pallas_src>

<mosaic_0001>
module attributes {stable_mosaic.version = 11 : i64} {
  func.func @_fused_kernel(%arg0: memref<32x360xf32, #tpu.memory_space<vmem>>, %arg1: memref<360x8xf32, #tpu.memory_space<vmem>>, %arg2: memref<4x32x360xbf16, #tpu.memory_space<vmem>>, %arg3: memref<4x32x360xbf16, #tpu.memory_space<vmem>>, %arg4: memref<4x32x32xf32, #tpu.memory_space<vmem>>, %arg5: memref<4x32x64xf32, #tpu.memory_space<vmem>>, %arg6: memref<4x1x64xf32, #tpu.memory_space<vmem>>, %arg7: memref<4x64x1024xbf16, #tpu.memory_space<vmem>>, %arg8: memref<4x1x1024xf32, #tpu.memory_space<vmem>>, %arg9: memref<4x256x512xbf16, #tpu.memory_space<vmem>>, %arg10: memref<4x1x512xf32, #tpu.memory_space<vmem>>, %arg11: memref<4x512x128xbf16, #tpu.memory_space<vmem>>, %arg12: memref<1x128xf32, #tpu.memory_space<vmem>>, %arg13: memref<8x128xf32, #tpu.memory_space<vmem>>) attributes {dimension_semantics = [], scalar_prefetch = 0 : i64, scratch_operands = 0 : i64, tpu.core_type = #tpu.core_type<tc>} {
    %c0 = arith.constant 0 : index
    %c0_0 = arith.constant 0 : index
    %0 = vector.load %arg0[%c0, %c0_0] : memref<32x360xf32, #tpu.memory_space<vmem>>, vector<32x360xf32>
    %c0_1 = arith.constant 0 : index
    %c0_2 = arith.constant 0 : index
    %1 = vector.load %arg1[%c0_1, %c0_2] : memref<360x8xf32, #tpu.memory_space<vmem>>, vector<360x8xf32>
    %c0_3 = arith.constant 0 : index
    %c0_4 = arith.constant 0 : index
    %2 = vector.load %arg12[%c0_3, %c0_4] : memref<1x128xf32, #tpu.memory_space<vmem>>, vector<1x128xf32>
    %cst = arith.constant 0.000000e+00 : f32
    %3 = vector.broadcast %cst : f32 to vector<8x128xf32>
    %4 = vector.broadcast %2 : vector<1x128xf32> to vector<8x128xf32>
    %5 = arith.addf %4, %3 : vector<8x128xf32>
    %c0_5 = arith.constant 0 : index
    %c0_6 = arith.constant 0 : index
    %c0_7 = arith.constant 0 : index
    %6 = vector.load %arg2[%c0_5, %c0_6, %c0_7] : memref<4x32x360xbf16, #tpu.memory_space<vmem>>, vector<1x32x360xbf16>
    %7 = vector.shape_cast %6 : vector<1x32x360xbf16> to vector<32x360xbf16>
    %8 = arith.extf %7 : vector<32x360xbf16> to vector<32x360xf32>
    %9 = arith.mulf %0, %8 : vector<32x360xf32>
    %c0_8 = arith.constant 0 : index
    %c0_9 = arith.constant 0 : index
    %c0_10 = arith.constant 0 : index
    %10 = vector.load %arg4[%c0_8, %c0_9, %c0_10] : memref<4x32x32xf32, #tpu.memory_space<vmem>>, vector<1x32x32xf32>
    %11 = vector.shape_cast %10 : vector<1x32x32xf32> to vector<32x32xf32>
    %cst_11 = arith.constant dense<0.000000e+00> : vector<32x360xf32>
    %12 = tpu.matmul %11, %9, %cst_11 {dimension_numbers = #tpu.dot_dimension_numbers<[1], [0], [0], [1], [0, 0, 1, 1], [], []>} : vector<32x32xf32>, vector<32x360xf32>, vector<32x360xf32> -> vector<32x360xf32>
    %c0_12 = arith.constant 0 : index
    %c0_13 = arith.constant 0 : index
    %c0_14 = arith.constant 0 : index
    %13 = vector.load %arg3[%c0_12, %c0_13, %c0_14] : memref<4x32x360xbf16, #tpu.memory_space<vmem>>, vector<1x32x360xbf16>
    %14 = vector.shape_cast %13 : vector<1x32x360xbf16> to vector<32x360xbf16>
    %15 = arith.extf %14 : vector<32x360xbf16> to vector<32x360xf32>
    %16 = arith.addf %12, %15 : vector<32x360xf32>
    %cst_15 = arith.constant 5.000000e-01 : f32
    %17 = vector.broadcast %cst_15 : f32 to vector<32x360xf32>
    %18 = arith.mulf %17, %16 : vector<32x360xf32>
    %cst_16 = arith.constant 0.707106769 : f32
    %19 = vector.broadcast %cst_16 : f32 to vector<32x360xf32>
    %20 = arith.mulf %16, %19 : vector<32x360xf32>
    %21 = math.absf %20 : vector<32x360xf32>
    %cst_17 = arith.constant 0.327591091 : f32
    %22 = vector.broadcast %cst_17 : f32 to vector<32x360xf32>
    %23 = arith.mulf %22, %21 : vector<32x360xf32>
    %cst_18 = arith.constant 1.000000e+00 : f32
    %24 = vector.broadcast %cst_18 : f32 to vector<32x360xf32>
    %25 = arith.addf %24, %23 : vector<32x360xf32>
    %26 = tpu.reciprocal %25 {approx = true} : vector<32x360xf32> -> vector<32x360xf32>
    %27 = arith.mulf %25, %26 : vector<32x360xf32>
    %cst_19 = arith.constant 2.000000e+00 : f32
    %28 = vector.broadcast %cst_19 : f32 to vector<32x360xf32>
    %29 = arith.subf %28, %27 : vector<32x360xf32>
    %30 = arith.mulf %26, %29 : vector<32x360xf32>
    %cst_20 = arith.constant 1.06140542 : f32
    %31 = vector.broadcast %cst_20 : f32 to vector<32x360xf32>
    %32 = arith.mulf %31, %30 : vector<32x360xf32>
    %cst_21 = arith.constant -1.45315206 : f32
    %33 = vector.broadcast %cst_21 : f32 to vector<32x360xf32>
    %34 = arith.addf %32, %33 : vector<32x360xf32>
    %35 = arith.mulf %34, %30 : vector<32x360xf32>
    %cst_22 = arith.constant 1.42141378 : f32
    %36 = vector.broadcast %cst_22 : f32 to vector<32x360xf32>
    %37 = arith.addf %35, %36 : vector<32x360xf32>
    %38 = arith.mulf %37, %30 : vector<32x360xf32>
    %cst_23 = arith.constant -0.284496725 : f32
    %39 = vector.broadcast %cst_23 : f32 to vector<32x360xf32>
    %40 = arith.addf %38, %39 : vector<32x360xf32>
    %41 = arith.mulf %40, %30 : vector<32x360xf32>
    %cst_24 = arith.constant 0.254829586 : f32
    %42 = vector.broadcast %cst_24 : f32 to vector<32x360xf32>
    %43 = arith.addf %41, %42 : vector<32x360xf32>
    %44 = arith.mulf %43, %30 : vector<32x360xf32>
    %cst_25 = arith.constant 0.000000e+00 : f32
    %45 = vector.broadcast %cst_25 : f32 to vector<32x360xf32>
    %46 = arith.subf %45, %21 : vector<32x360xf32>
    %47 = arith.mulf %46, %21 : vector<32x360xf32>
    %48 = math.exp %47 : vector<32x360xf32>
    %49 = arith.mulf %44, %48 : vector<32x360xf32>
    %cst_26 = arith.constant 1.000000e+00 : f32
    %50 = vector.broadcast %cst_26 : f32 to vector<32x360xf32>
    %51 = arith.subf %50, %49 : vector<32x360xf32>
    %cst_27 = arith.constant 0.000000e+00 : f32
    %52 = vector.broadcast %cst_27 : f32 to vector<32x360xf32>
    %53 = arith.cmpf oge, %20, %52 : vector<32x360xf32>
    %cst_28 = arith.constant 0.000000e+00 : f32
    %54 = vector.broadcast %cst_28 : f32 to vector<32x360xf32>
    %55 = arith.subf %54, %51 : vector<32x360xf32>
    %56 = arith.select %53, %51, %55 : vector<32x360xi1>, vector<32x360xf32>
    %cst_29 = arith.constant 1.000000e+00 : f32
    %57 = vector.broadcast %cst_29 : f32 to vector<32x360xf32>
    %58 = arith.addf %57, %56 : vector<32x360xf32>
    %59 = arith.mulf %18, %58 : vector<32x360xf32>
    %cst_30 = arith.constant dense<0.000000e+00> : vector<32x8xf32>
    %60 = tpu.matmul %59, %1, %cst_30 {dimension_numbers = #tpu.dot_dimension_numbers<[1], [0], [0], [1], [0, 0, 1, 1], [], []>} : vector<32x360xf32>, vector<360x8xf32>, vector<32x8xf32> -> vector<32x8xf32>
    %61 = tpu.transpose %60, [1, 0] : vector<32x8xf32> -> vector<8x32xf32>
    %c0_31 = arith.constant 0 : index
    %c0_32 = arith.constant 0 : index
    %c0_33 = arith.constant 0 : index
    %62 = vector.load %arg5[%c0_31, %c0_32, %c0_33] : memref<4x32x64xf32, #tpu.memory_space<vmem>>, vector<1x32x64xf32>
    %63 = vector.shape_cast %62 : vector<1x32x64xf32> to vector<32x64xf32>
    %cst_34 = arith.constant dense<0.000000e+00> : vector<8x64xf32>
    %64 = tpu.matmul %61, %63, %cst_34 {dimension_numbers = #tpu.dot_dimension_numbers<[1], [0], [0], [1], [0, 0, 1, 1], [], []>} : vector<8x32xf32>, vector<32x64xf32>, vector<8x64xf32> -> vector<8x64xf32>
    %c0_35 = arith.constant 0 : index
    %c0_36 = arith.constant 0 : index
    %c0_37 = arith.constant 0 : index
    %65 = vector.load %arg6[%c0_35, %c0_36, %c0_37] : memref<4x1x64xf32, #tpu.memory_space<vmem>>, vector<1x1x64xf32>
    %66 = vector.shape_cast %65 : vector<1x1x64xf32> to vector<1x64xf32>
    %67 = vector.broadcast %66 : vector<1x64xf32> to vector<8x64xf32>
    %68 = arith.addf %64, %67 : vector<8x64xf32>
    %69 = arith.truncf %68 : vector<8x64xf32> to vector<8x64xbf16>
    %c0_38 = arith.constant 0 : index
    %c0_39 = arith.constant 0 : index
    %c0_40 = arith.constant 0 : index
    %70 = vector.load %arg7[%c0_38, %c0_39, %c0_40] : memref<4x64x1024xbf16, #tpu.memory_space<vmem>>, vector<1x64x1024xbf16>
    %71 = vector.shape_cast %70 : vector<1x64x1024xbf16> to vector<64x1024xbf16>
    %cst_41 = arith.constant dense<0.000000e+00> : vector<8x1024xf32>
    %72 = tpu.matmul %69, %71, %cst_41 {dimension_numbers = #tpu.dot_dimension_numbers<[1], [0], [0], [1], [0, 0, 1, 1], [], []>} : vector<8x64xbf16>, vector<64x1024xbf16>, vector<8x1024xf32> -> vector<8x1024xf32>
    %c0_42 = arith.constant 0 : index
    %c0_43 = arith.constant 0 : index
    %c0_44 = arith.constant 0 : index
    %73 = vector.load %arg8[%c0_42, %c0_43, %c0_44] : memref<4x1x1024xf32, #tpu.memory_space<vmem>>, vector<1x1x1024xf32>
    %74 = vector.shape_cast %73 : vector<1x1x1024xf32> to vector<1x1024xf32>
    %75 = vector.broadcast %74 : vector<1x1024xf32> to vector<8x1024xf32>
    %76 = arith.addf %72, %75 : vector<8x1024xf32>
    %cst_45 = arith.constant 5.000000e-01 : f32
    %77 = vector.broadcast %cst_45 : f32 to vector<8x1024xf32>
    %78 = arith.mulf %77, %76 : vector<8x1024xf32>
    %cst_46 = arith.constant 0.707106769 : f32
    %79 = vector.broadcast %cst_46 : f32 to vector<8x1024xf32>
    %80 = arith.mulf %76, %79 : vector<8x1024xf32>
    %81 = math.absf %80 : vector<8x1024xf32>
    %cst_47 = arith.constant 0.327591091 : f32
    %82 = vector.broadcast %cst_47 : f32 to vector<8x1024xf32>
    %83 = arith.mulf %82, %81 : vector<8x1024xf32>
    %cst_48 = arith.constant 1.000000e+00 : f32
    %84 = vector.broadcast %cst_48 : f32 to vector<8x1024xf32>
    %85 = arith.addf %84, %83 : vector<8x1024xf32>
    %86 = tpu.reciprocal %85 {approx = true} : vector<8x1024xf32> -> vector<8x1024xf32>
    %87 = arith.mulf %85, %86 : vector<8x1024xf32>
    %cst_49 = arith.constant 2.000000e+00 : f32
    %88 = vector.broadcast %cst_49 : f32 to vector<8x1024xf32>
    %89 = arith.subf %88, %87 : vector<8x1024xf32>
    %90 = arith.mulf %86, %89 : vector<8x1024xf32>
    %cst_50 = arith.constant 1.06140542 : f32
    %91 = vector.broadcast %cst_50 : f32 to vector<8x1024xf32>
    %92 = arith.mulf %91, %90 : vector<8x1024xf32>
    %cst_51 = arith.constant -1.45315206 : f32
    %93 = vector.broadcast %cst_51 : f32 to vector<8x1024xf32>
    %94 = arith.addf %92, %93 : vector<8x1024xf32>
    %95 = arith.mulf %94, %90 : vector<8x1024xf32>
    %cst_52 = arith.constant 1.42141378 : f32
    %96 = vector.broadcast %cst_52 : f32 to vector<8x1024xf32>
    %97 = arith.addf %95, %96 : vector<8x1024xf32>
    %98 = arith.mulf %97, %90 : vector<8x1024xf32>
    %cst_53 = arith.constant -0.284496725 : f32
    %99 = vector.broadcast %cst_53 : f32 to vector<8x1024xf32>
    %100 = arith.addf %98, %99 : vector<8x1024xf32>
    %101 = arith.mulf %100, %90 : vector<8x1024xf32>
    %cst_54 = arith.constant 0.254829586 : f32
    %102 = vector.broadcast %cst_54 : f32 to vector<8x1024xf32>
    %103 = arith.addf %101, %102 : vector<8x1024xf32>
    %104 = arith.mulf %103, %90 : vector<8x1024xf32>
    %cst_55 = arith.constant 0.000000e+00 : f32
    %105 = vector.broadcast %cst_55 : f32 to vector<8x1024xf32>
    %106 = arith.subf %105, %81 : vector<8x1024xf32>
    %107 = arith.mulf %106, %81 : vector<8x1024xf32>
    %108 = math.exp %107 : vector<8x1024xf32>
    %109 = arith.mulf %104, %108 : vector<8x1024xf32>
    %cst_56 = arith.constant 1.000000e+00 : f32
    %110 = vector.broadcast %cst_56 : f32 to vector<8x1024xf32>
    %111 = arith.subf %110, %109 : vector<8x1024xf32>
    %cst_57 = arith.constant 0.000000e+00 : f32
    %112 = vector.broadcast %cst_57 : f32 to vector<8x1024xf32>
    %113 = arith.cmpf oge, %80, %112 : vector<8x1024xf32>
    %cst_58 = arith.constant 0.000000e+00 : f32
    %114 = vector.broadcast %cst_58 : f32 to vector<8x1024xf32>
    %115 = arith.subf %114, %111 : vector<8x1024xf32>
    %116 = arith.select %113, %111, %115 : vector<8x1024xi1>, vector<8x1024xf32>
    %cst_59 = arith.constant 1.000000e+00 : f32
    %117 = vector.broadcast %cst_59 : f32 to vector<8x1024xf32>
    %118 = arith.addf %117, %116 : vector<8x1024xf32>
    %119 = arith.mulf %78, %118 : vector<8x1024xf32>
    %120 = vector.extract_strided_slice %119 {offsets = [0, 0], sizes = [8, 256], strides = [1, 1]} : vector<8x1024xf32> to vector<8x256xf32>
    %121 = vector.extract_strided_slice %119 {offsets = [0, 256], sizes = [8, 256], strides = [1, 1]} : vector<8x1024xf32> to vector<8x256xf32>
    %122 = arith.addf %120, %121 : vector<8x256xf32>
    %123 = vector.extract_strided_slice %119 {offsets = [0, 512], sizes = [8, 256], strides = [1, 1]} : vector<8x1024xf32> to vector<8x256xf32>
    %124 = arith.addf %122, %123 : vector<8x256xf32>
    %125 = vector.extract_strided_slice %119 {offsets = [0, 768], sizes = [8, 256], strides = [1, 1]} : vector<8x1024xf32> to vector<8x256xf32>
    %126 = arith.addf %124, %125 : vector<8x256xf32>
    %cst_60 = arith.constant 2.500000e-01 : f32
    %127 = vector.broadcast %cst_60 : f32 to vector<8x256xf32>
    %128 = arith.mulf %127, %126 : vector<8x256xf32>
    %129 = arith.truncf %128 : vector<8x256xf32> to vector<8x256xbf16>
    %c0_61 = arith.constant 0 : index
    %c0_62 = arith.constant 0 : index
    %c0_63 = arith.constant 0 : index
    %130 = vector.load %arg9[%c0_61, %c0_62, %c0_63] : memref<4x256x512xbf16, #tpu.memory_space<vmem>>, vector<1x256x512xbf16>
    %131 = vector.shape_cast %130 : vector<1x256x512xbf16> to vector<256x512xbf16>
    %cst_64 = arith.constant dense<0.000000e+00> : vector<8x512xf32>
    %132 = tpu.matmul %129, %131, %cst_64 {dimension_numbers = #tpu.dot_dimension_numbers<[1], [0], [0], [1], [0, 0, 1, 1], [], []>} : vector<8x256xbf16>, vector<256x512xbf16>, vector<8x512xf32> -> vector<8x512xf32>
    %c0_65 = arith.constant 0 : index
    %c0_66 = arith.constant 0 : index
    %c0_67 = arith.constant 0 : index
    %133 = vector.load %arg10[%c0_65, %c0_66, %c0_67] : memref<4x1x512xf32, #tpu.memory_space<vmem>>, vector<1x1x512xf32>
    %134 = vector.shape_cast %133 : vector<1x1x512xf32> to vector<1x512xf32>
    %135 = vector.broadcast %134 : vector<1x512xf32> to vector<8x512xf32>
    %136 = arith.addf %132, %135 : vector<8x512xf32>
    %137 = arith.truncf %136 : vector<8x512xf32> to vector<8x512xbf16>
    %c0_68 = arith.constant 0 : index
    %c0_69 = arith.constant 0 : index
    %c0_70 = arith.constant 0 : index
    %138 = vector.load %arg11[%c0_68, %c0_69, %c0_70] : memref<4x512x128xbf16, #tpu.memory_space<vmem>>, vector<1x512x128xbf16>
    %139 = vector.shape_cast %138 : vector<1x512x128xbf16> to vector<512x128xbf16>
    %cst_71 = arith.constant dense<0.000000e+00> : vector<8x128xf32>
    %140 = tpu.matmul %137, %139, %cst_71 {dimension_numbers = #tpu.dot_dimension_numbers<[1], [0], [0], [1], [0, 0, 1, 1], [], []>} : vector<8x512xbf16>, vector<512x128xbf16>, vector<8x128xf32> -> vector<8x128xf32>
    %141 = arith.addf %5, %140 : vector<8x128xf32>
    %c1 = arith.constant 1 : index
    %c0_72 = arith.constant 0 : index
    %c0_73 = arith.constant 0 : index
    %142 = vector.load %arg2[%c1, %c0_72, %c0_73] : memref<4x32x360xbf16, #tpu.memory_space<vmem>>, vector<1x32x360xbf16>
    %143 = vector.shape_cast %142 : vector<1x32x360xbf16> to vector<32x360xbf16>
    %144 = arith.extf %143 : vector<32x360xbf16> to vector<32x360xf32>
    %145 = arith.mulf %0, %144 : vector<32x360xf32>
    %c1_74 = arith.constant 1 : index
    %c0_75 = arith.constant 0 : index
    %c0_76 = arith.constant 0 : index
    %146 = vector.load %arg4[%c1_74, %c0_75, %c0_76] : memref<4x32x32xf32, #tpu.memory_space<vmem>>, vector<1x32x32xf32>
    %147 = vector.shape_cast %146 : vector<1x32x32xf32> to vector<32x32xf32>
    %cst_77 = arith.constant dense<0.000000e+00> : vector<32x360xf32>
    %148 = tpu.matmul %147, %145, %cst_77 {dimension_numbers = #tpu.dot_dimension_numbers<[1], [0], [0], [1], [0, 0, 1, 1], [], []>} : vector<32x32xf32>, vector<32x360xf32>, vector<32x360xf32> -> vector<32x360xf32>
    %c1_78 = arith.constant 1 : index
    %c0_79 = arith.constant 0 : index
    %c0_80 = arith.constant 0 : index
    %149 = vector.load %arg3[%c1_78, %c0_79, %c0_80] : memref<4x32x360xbf16, #tpu.memory_space<vmem>>, vector<1x32x360xbf16>
    %150 = vector.shape_cast %149 : vector<1x32x360xbf16> to vector<32x360xbf16>
    %151 = arith.extf %150 : vector<32x360xbf16> to vector<32x360xf32>
    %152 = arith.addf %148, %151 : vector<32x360xf32>
    %cst_81 = arith.constant 5.000000e-01 : f32
    %153 = vector.broadcast %cst_81 : f32 to vector<32x360xf32>
    %154 = arith.mulf %153, %152 : vector<32x360xf32>
    %cst_82 = arith.constant 0.707106769 : f32
    %155 = vector.broadcast %cst_82 : f32 to vector<32x360xf32>
    %156 = arith.mulf %152, %155 : vector<32x360xf32>
    %157 = math.absf %156 : vector<32x360xf32>
    %cst_83 = arith.constant 0.327591091 : f32
    %158 = vector.broadcast %cst_83 : f32 to vector<32x360xf32>
    %159 = arith.mulf %158, %157 : vector<32x360xf32>
    %cst_84 = arith.constant 1.000000e+00 : f32
    %160 = vector.broadcast %cst_84 : f32 to vector<32x360xf32>
    %161 = arith.addf %160, %159 : vector<32x360xf32>
    %162 = tpu.reciprocal %161 {approx = true} : vector<32x360xf32> -> vector<32x360xf32>
    %163 = arith.mulf %161, %162 : vector<32x360xf32>
    %cst_85 = arith.constant 2.000000e+00 : f32
    %164 = vector.broadcast %cst_85 : f32 to vector<32x360xf32>
    %165 = arith.subf %164, %163 : vector<32x360xf32>
    %166 = arith.mulf %162, %165 : vector<32x360xf32>
    %cst_86 = arith.constant 1.06140542 : f32
    %167 = vector.broadcast %cst_86 : f32 to vector<32x360xf32>
    %168 = arith.mulf %167, %166 : vector<32x360xf32>
    %cst_87 = arith.constant -1.45315206 : f32
    %169 = vector.broadcast %cst_87 : f32 to vector<32x360xf32>
    %170 = arith.addf %168, %169 : vector<32x360xf32>
    %171 = arith.mulf %170, %166 : vector<32x360xf32>
    %cst_88 = arith.constant 1.42141378 : f32
    %172 = vector.broadcast %cst_88 : f32 to vector<32x360xf32>
    %173 = arith.addf %171, %172 : vector<32x360xf32>
    %174 = arith.mulf %173, %166 : vector<32x360xf32>
    %cst_89 = arith.constant -0.284496725 : f32
    %175 = vector.broadcast %cst_89 : f32 to vector<32x360xf32>
    %176 = arith.addf %174, %175 : vector<32x360xf32>
    %177 = arith.mulf %176, %166 : vector<32x360xf32>
    %cst_90 = arith.constant 0.254829586 : f32
    %178 = vector.broadcast %cst_90 : f32 to vector<32x360xf32>
    %179 = arith.addf %177, %178 : vector<32x360xf32>
    %180 = arith.mulf %179, %166 : vector<32x360xf32>
    %cst_91 = arith.constant 0.000000e+00 : f32
    %181 = vector.broadcast %cst_91 : f32 to vector<32x360xf32>
    %182 = arith.subf %181, %157 : vector<32x360xf32>
    %183 = arith.mulf %182, %157 : vector<32x360xf32>
    %184 = math.exp %183 : vector<32x360xf32>
    %185 = arith.mulf %180, %184 : vector<32x360xf32>
    %cst_92 = arith.constant 1.000000e+00 : f32
    %186 = vector.broadcast %cst_92 : f32 to vector<32x360xf32>
    %187 = arith.subf %186, %185 : vector<32x360xf32>
    %cst_93 = arith.constant 0.000000e+00 : f32
    %188 = vector.broadcast %cst_93 : f32 to vector<32x360xf32>
    %189 = arith.cmpf oge, %156, %188 : vector<32x360xf32>
    %cst_94 = arith.constant 0.000000e+00 : f32
    %190 = vector.broadcast %cst_94 : f32 to vector<32x360xf32>
    %191 = arith.subf %190, %187 : vector<32x360xf32>
    %192 = arith.select %189, %187, %191 : vector<32x360xi1>, vector<32x360xf32>
    %cst_95 = arith.constant 1.000000e+00 : f32
    %193 = vector.broadcast %cst_95 : f32 to vector<32x360xf32>
    %194 = arith.addf %193, %192 : vector<32x360xf32>
    %195 = arith.mulf %154, %194 : vector<32x360xf32>
    %cst_96 = arith.constant dense<0.000000e+00> : vector<32x8xf32>
    %196 = tpu.matmul %195, %1, %cst_96 {dimension_numbers = #tpu.dot_dimension_numbers<[1], [0], [0], [1], [0, 0, 1, 1], [], []>} : vector<32x360xf32>, vector<360x8xf32>, vector<32x8xf32> -> vector<32x8xf32>
    %197 = tpu.transpose %196, [1, 0] : vector<32x8xf32> -> vector<8x32xf32>
    %c1_97 = arith.constant 1 : index
    %c0_98 = arith.constant 0 : index
    %c0_99 = arith.constant 0 : index
    %198 = vector.load %arg5[%c1_97, %c0_98, %c0_99] : memref<4x32x64xf32, #tpu.memory_space<vmem>>, vector<1x32x64xf32>
    %199 = vector.shape_cast %198 : vector<1x32x64xf32> to vector<32x64xf32>
    %cst_100 = arith.constant dense<0.000000e+00> : vector<8x64xf32>
    %200 = tpu.matmul %197, %199, %cst_100 {dimension_numbers = #tpu.dot_dimension_numbers<[1], [0], [0], [1], [0, 0, 1, 1], [], []>} : vector<8x32xf32>, vector<32x64xf32>, vector<8x64xf32> -> vector<8x64xf32>
    %c1_101 = arith.constant 1 : index
    %c0_102 = arith.constant 0 : index
    %c0_103 = arith.constant 0 : index
    %201 = vector.load %arg6[%c1_101, %c0_102, %c0_103] : memref<4x1x64xf32, #tpu.memory_space<vmem>>, vector<1x1x64xf32>
    %202 = vector.shape_cast %201 : vector<1x1x64xf32> to vector<1x64xf32>
    %203 = vector.broadcast %202 : vector<1x64xf32> to vector<8x64xf32>
    %204 = arith.addf %200, %203 : vector<8x64xf32>
    %205 = arith.truncf %204 : vector<8x64xf32> to vector<8x64xbf16>
    %c1_104 = arith.constant 1 : index
    %c0_105 = arith.constant 0 : index
    %c0_106 = arith.constant 0 : index
    %206 = vector.load %arg7[%c1_104, %c0_105, %c0_106] : memref<4x64x1024xbf16, #tpu.memory_space<vmem>>, vector<1x64x1024xbf16>
    %207 = vector.shape_cast %206 : vector<1x64x1024xbf16> to vector<64x1024xbf16>
    %cst_107 = arith.constant dense<0.000000e+00> : vector<8x1024xf32>
    %208 = tpu.matmul %205, %207, %cst_107 {dimension_numbers = #tpu.dot_dimension_numbers<[1], [0], [0], [1], [0, 0, 1, 1], [], []>} : vector<8x64xbf16>, vector<64x1024xbf16>, vector<8x1024xf32> -> vector<8x1024xf32>
    %c1_108 = arith.constant 1 : index
    %c0_109 = arith.constant 0 : index
    %c0_110 = arith.constant 0 : index
    %209 = vector.load %arg8[%c1_108, %c0_109, %c0_110] : memref<4x1x1024xf32, #tpu.memory_space<vmem>>, vector<1x1x1024xf32>
    %210 = vector.shape_cast %209 : vector<1x1x1024xf32> to vector<1x1024xf32>
    %211 = vector.broadcast %210 : vector<1x1024xf32> to vector<8x1024xf32>
    %212 = arith.addf %208, %211 : vector<8x1024xf32>
    %cst_111 = arith.constant 5.000000e-01 : f32
    %213 = vector.broadcast %cst_111 : f32 to vector<8x1024xf32>
    %214 = arith.mulf %213, %212 : vector<8x1024xf32>
    %cst_112 = arith.constant 0.707106769 : f32
    %215 = vector.broadcast %cst_112 : f32 to vector<8x1024xf32>
    %216 = arith.mulf %212, %215 : vector<8x1024xf32>
    %217 = math.absf %216 : vector<8x1024xf32>
    %cst_113 = arith.constant 0.327591091 : f32
    %218 = vector.broadcast %cst_113 : f32 to vector<8x1024xf32>
    %219 = arith.mulf %218, %217 : vector<8x1024xf32>
    %cst_114 = arith.constant 1.000000e+00 : f32
    %220 = vector.broadcast %cst_114 : f32 to vector<8x1024xf32>
    %221 = arith.addf %220, %219 : vector<8x1024xf32>
    %222 = tpu.reciprocal %221 {approx = true} : vector<8x1024xf32> -> vector<8x1024xf32>
    %223 = arith.mulf %221, %222 : vector<8x1024xf32>
    %cst_115 = arith.constant 2.000000e+00 : f32
    %224 = vector.broadcast %cst_115 : f32 to vector<8x1024xf32>
    %225 = arith.subf %224, %223 : vector<8x1024xf32>
    %226 = arith.mulf %222, %225 : vector<8x1024xf32>
    %cst_116 = arith.constant 1.06140542 : f32
    %227 = vector.broadcast %cst_116 : f32 to vector<8x1024xf32>
    %228 = arith.mulf %227, %226 : vector<8x1024xf32>
    %cst_117 = arith.constant -1.45315206 : f32
    %229 = vector.broadcast %cst_117 : f32 to vector<8x1024xf32>
    %230 = arith.addf %228, %229 : vector<8x1024xf32>
    %231 = arith.mulf %230, %226 : vector<8x1024xf32>
    %cst_118 = arith.constant 1.42141378 : f32
    %232 = vector.broadcast %cst_118 : f32 to vector<8x1024xf32>
    %233 = arith.addf %231, %232 : vector<8x1024xf32>
    %234 = arith.mulf %233, %226 : vector<8x1024xf32>
    %cst_119 = arith.constant -0.284496725 : f32
    %235 = vector.broadcast %cst_119 : f32 to vector<8x1024xf32>
    %236 = arith.addf %234, %235 : vector<8x1024xf32>
    %237 = arith.mulf %236, %226 : vector<8x1024xf32>
    %cst_120 = arith.constant 0.254829586 : f32
    %238 = vector.broadcast %cst_120 : f32 to vector<8x1024xf32>
    %239 = arith.addf %237, %238 : vector<8x1024xf32>
    %240 = arith.mulf %239, %226 : vector<8x1024xf32>
    %cst_121 = arith.constant 0.000000e+00 : f32
    %241 = vector.broadcast %cst_121 : f32 to vector<8x1024xf32>
    %242 = arith.subf %241, %217 : vector<8x1024xf32>
    %243 = arith.mulf %242, %217 : vector<8x1024xf32>
    %244 = math.exp %243 : vector<8x1024xf32>
    %245 = arith.mulf %240, %244 : vector<8x1024xf32>
    %cst_122 = arith.constant 1.000000e+00 : f32
    %246 = vector.broadcast %cst_122 : f32 to vector<8x1024xf32>
    %247 = arith.subf %246, %245 : vector<8x1024xf32>
    %cst_123 = arith.constant 0.000000e+00 : f32
    %248 = vector.broadcast %cst_123 : f32 to vector<8x1024xf32>
    %249 = arith.cmpf oge, %216, %248 : vector<8x1024xf32>
    %cst_124 = arith.constant 0.000000e+00 : f32
    %250 = vector.broadcast %cst_124 : f32 to vector<8x1024xf32>
    %251 = arith.subf %250, %247 : vector<8x1024xf32>
    %252 = arith.select %249, %247, %251 : vector<8x1024xi1>, vector<8x1024xf32>
    %cst_125 = arith.constant 1.000000e+00 : f32
    %253 = vector.broadcast %cst_125 : f32 to vector<8x1024xf32>
    %254 = arith.addf %253, %252 : vector<8x1024xf32>
    %255 = arith.mulf %214, %254 : vector<8x1024xf32>
    %256 = vector.extract_strided_slice %255 {offsets = [0, 0], sizes = [8, 256], strides = [1, 1]} : vector<8x1024xf32> to vector<8x256xf32>
    %257 = vector.extract_strided_slice %255 {offsets = [0, 256], sizes = [8, 256], strides = [1, 1]} : vector<8x1024xf32> to vector<8x256xf32>
    %258 = arith.addf %256, %257 : vector<8x256xf32>
    %259 = vector.extract_strided_slice %255 {offsets = [0, 512], sizes = [8, 256], strides = [1, 1]} : vector<8x1024xf32> to vector<8x256xf32>
    %260 = arith.addf %258, %259 : vector<8x256xf32>
    %261 = vector.extract_strided_slice %255 {offsets = [0, 768], sizes = [8, 256], strides = [1, 1]} : vector<8x1024xf32> to vector<8x256xf32>
    %262 = arith.addf %260, %261 : vector<8x256xf32>
    %cst_126 = arith.constant 2.500000e-01 : f32
    %263 = vector.broadcast %cst_126 : f32 to vector<8x256xf32>
    %264 = arith.mulf %263, %262 : vector<8x256xf32>
    %265 = arith.truncf %264 : vector<8x256xf32> to vector<8x256xbf16>
    %c1_127 = arith.constant 1 : index
    %c0_128 = arith.constant 0 : index
    %c0_129 = arith.constant 0 : index
    %266 = vector.load %arg9[%c1_127, %c0_128, %c0_129] : memref<4x256x512xbf16, #tpu.memory_space<vmem>>, vector<1x256x512xbf16>
    %267 = vector.shape_cast %266 : vector<1x256x512xbf16> to vector<256x512xbf16>
    %cst_130 = arith.constant dense<0.000000e+00> : vector<8x512xf32>
    %268 = tpu.matmul %265, %267, %cst_130 {dimension_numbers = #tpu.dot_dimension_numbers<[1], [0], [0], [1], [0, 0, 1, 1], [], []>} : vector<8x256xbf16>, vector<256x512xbf16>, vector<8x512xf32> -> vector<8x512xf32>
    %c1_131 = arith.constant 1 : index
    %c0_132 = arith.constant 0 : index
    %c0_133 = arith.constant 0 : index
    %269 = vector.load %arg10[%c1_131, %c0_132, %c0_133] : memref<4x1x512xf32, #tpu.memory_space<vmem>>, vector<1x1x512xf32>
    %270 = vector.shape_cast %269 : vector<1x1x512xf32> to vector<1x512xf32>
    %271 = vector.broadcast %270 : vector<1x512xf32> to vector<8x512xf32>
    %272 = arith.addf %268, %271 : vector<8x512xf32>
    %273 = arith.truncf %272 : vector<8x512xf32> to vector<8x512xbf16>
    %c1_134 = arith.constant 1 : index
    %c0_135 = arith.constant 0 : index
    %c0_136 = arith.constant 0 : index
    %274 = vector.load %arg11[%c1_134, %c0_135, %c0_136] : memref<4x512x128xbf16, #tpu.memory_space<vmem>>, vector<1x512x128xbf16>
    %275 = vector.shape_cast %274 : vector<1x512x128xbf16> to vector<512x128xbf16>
    %cst_137 = arith.constant dense<0.000000e+00> : vector<8x128xf32>
    %276 = tpu.matmul %273, %275, %cst_137 {dimension_numbers = #tpu.dot_dimension_numbers<[1], [0], [0], [1], [0, 0, 1, 1], [], []>} : vector<8x512xbf16>, vector<512x128xbf16>, vector<8x128xf32> -> vector<8x128xf32>
    %277 = arith.addf %141, %276 : vector<8x128xf32>
    %c2 = arith.constant 2 : index
    %c0_138 = arith.constant 0 : index
    %c0_139 = arith.constant 0 : index
    %278 = vector.load %arg2[%c2, %c0_138, %c0_139] : memref<4x32x360xbf16, #tpu.memory_space<vmem>>, vector<1x32x360xbf16>
    %279 = vector.shape_cast %278 : vector<1x32x360xbf16> to vector<32x360xbf16>
    %280 = arith.extf %279 : vector<32x360xbf16> to vector<32x360xf32>
    %281 = arith.mulf %0, %280 : vector<32x360xf32>
    %c2_140 = arith.constant 2 : index
    %c0_141 = arith.constant 0 : index
    %c0_142 = arith.constant 0 : index
    %282 = vector.load %arg4[%c2_140, %c0_141, %c0_142] : memref<4x32x32xf32, #tpu.memory_space<vmem>>, vector<1x32x32xf32>
    %283 = vector.shape_cast %282 : vector<1x32x32xf32> to vector<32x32xf32>
    %cst_143 = arith.constant dense<0.000000e+00> : vector<32x360xf32>
    %284 = tpu.matmul %283, %281, %cst_143 {dimension_numbers = #tpu.dot_dimension_numbers<[1], [0], [0], [1], [0, 0, 1, 1], [], []>} : vector<32x32xf32>, vector<32x360xf32>, vector<32x360xf32> -> vector<32x360xf32>
    %c2_144 = arith.constant 2 : index
    %c0_145 = arith.constant 0 : index
    %c0_146 = arith.constant 0 : index
    %285 = vector.load %arg3[%c2_144, %c0_145, %c0_146] : memref<4x32x360xbf16, #tpu.memory_space<vmem>>, vector<1x32x360xbf16>
    %286 = vector.shape_cast %285 : vector<1x32x360xbf16> to vector<32x360xbf16>
    %287 = arith.extf %286 : vector<32x360xbf16> to vector<32x360xf32>
    %288 = arith.addf %284, %287 : vector<32x360xf32>
    %cst_147 = arith.constant 5.000000e-01 : f32
    %289 = vector.broadcast %cst_147 : f32 to vector<32x360xf32>
    %290 = arith.mulf %289, %288 : vector<32x360xf32>
    %cst_148 = arith.constant 0.707106769 : f32
    %291 = vector.broadcast %cst_148 : f32 to vector<32x360xf32>
    %292 = arith.mulf %288, %291 : vector<32x360xf32>
    %293 = math.absf %292 : vector<32x360xf32>
    %cst_149 = arith.constant 0.327591091 : f32
    %294 = vector.broadcast %cst_149 : f32 to vector<32x360xf32>
    %295 = arith.mulf %294, %293 : vector<32x360xf32>
    %cst_150 = arith.constant 1.000000e+00 : f32
    %296 = vector.broadcast %cst_150 : f32 to vector<32x360xf32>
    %297 = arith.addf %296, %295 : vector<32x360xf32>
    %298 = tpu.reciprocal %297 {approx = true} : vector<32x360xf32> -> vector<32x360xf32>
    %299 = arith.mulf %297, %298 : vector<32x360xf32>
    %cst_151 = arith.constant 2.000000e+00 : f32
    %300 = vector.broadcast %cst_151 : f32 to vector<32x360xf32>
    %301 = arith.subf %300, %299 : vector<32x360xf32>
    %302 = arith.mulf %298, %301 : vector<32x360xf32>
    %cst_152 = arith.constant 1.06140542 : f32
    %303 = vector.broadcast %cst_152 : f32 to vector<32x360xf32>
    %304 = arith.mulf %303, %302 : vector<32x360xf32>
    %cst_153 = arith.constant -1.45315206 : f32
    %305 = vector.broadcast %cst_153 : f32 to vector<32x360xf32>
    %306 = arith.addf %304, %305 : vector<32x360xf32>
    %307 = arith.mulf %306, %302 : vector<32x360xf32>
    %cst_154 = arith.constant 1.42141378 : f32
    %308 = vector.broadcast %cst_154 : f32 to vector<32x360xf32>
    %309 = arith.addf %307, %308 : vector<32x360xf32>
    %310 = arith.mulf %309, %302 : vector<32x360xf32>
    %cst_155 = arith.constant -0.284496725 : f32
    %311 = vector.broadcast %cst_155 : f32 to vector<32x360xf32>
    %312 = arith.addf %310, %311 : vector<32x360xf32>
    %313 = arith.mulf %312, %302 : vector<32x360xf32>
    %cst_156 = arith.constant 0.254829586 : f32
    %314 = vector.broadcast %cst_156 : f32 to vector<32x360xf32>
    %315 = arith.addf %313, %314 : vector<32x360xf32>
    %316 = arith.mulf %315, %302 : vector<32x360xf32>
    %cst_157 = arith.constant 0.000000e+00 : f32
    %317 = vector.broadcast %cst_157 : f32 to vector<32x360xf32>
    %318 = arith.subf %317, %293 : vector<32x360xf32>
    %319 = arith.mulf %318, %293 : vector<32x360xf32>
    %320 = math.exp %319 : vector<32x360xf32>
    %321 = arith.mulf %316, %320 : vector<32x360xf32>
    %cst_158 = arith.constant 1.000000e+00 : f32
    %322 = vector.broadcast %cst_158 : f32 to vector<32x360xf32>
    %323 = arith.subf %322, %321 : vector<32x360xf32>
    %cst_159 = arith.constant 0.000000e+00 : f32
    %324 = vector.broadcast %cst_159 : f32 to vector<32x360xf32>
    %325 = arith.cmpf oge, %292, %324 : vector<32x360xf32>
    %cst_160 = arith.constant 0.000000e+00 : f32
    %326 = vector.broadcast %cst_160 : f32 to vector<32x360xf32>
    %327 = arith.subf %326, %323 : vector<32x360xf32>
    %328 = arith.select %325, %323, %327 : vector<32x360xi1>, vector<32x360xf32>
    %cst_161 = arith.constant 1.000000e+00 : f32
    %329 = vector.broadcast %cst_161 : f32 to vector<32x360xf32>
    %330 = arith.addf %329, %328 : vector<32x360xf32>
    %331 = arith.mulf %290, %330 : vector<32x360xf32>
    %cst_162 = arith.constant dense<0.000000e+00> : vector<32x8xf32>
    %332 = tpu.matmul %331, %1, %cst_162 {dimension_numbers = #tpu.dot_dimension_numbers<[1], [0], [0], [1], [0, 0, 1, 1], [], []>} : vector<32x360xf32>, vector<360x8xf32>, vector<32x8xf32> -> vector<32x8xf32>
    %333 = tpu.transpose %332, [1, 0] : vector<32x8xf32> -> vector<8x32xf32>
    %c2_163 = arith.constant 2 : index
    %c0_164 = arith.constant 0 : index
    %c0_165 = arith.constant 0 : index
    %334 = vector.load %arg5[%c2_163, %c0_164, %c0_165] : memref<4x32x64xf32, #tpu.memory_space<vmem>>, vector<1x32x64xf32>
    %335 = vector.shape_cast %334 : vector<1x32x64xf32> to vector<32x64xf32>
    %cst_166 = arith.constant dense<0.000000e+00> : vector<8x64xf32>
    %336 = tpu.matmul %333, %335, %cst_166 {dimension_numbers = #tpu.dot_dimension_numbers<[1], [0], [0], [1], [0, 0, 1, 1], [], []>} : vector<8x32xf32>, vector<32x64xf32>, vector<8x64xf32> -> vector<8x64xf32>
    %c2_167 = arith.constant 2 : index
    %c0_168 = arith.constant 0 : index
    %c0_169 = arith.constant 0 : index
    %337 = vector.load %arg6[%c2_167, %c0_168, %c0_169] : memref<4x1x64xf32, #tpu.memory_space<vmem>>, vector<1x1x64xf32>
    %338 = vector.shape_cast %337 : vector<1x1x64xf32> to vector<1x64xf32>
    %339 = vector.broadcast %338 : vector<1x64xf32> to vector<8x64xf32>
    %340 = arith.addf %336, %339 : vector<8x64xf32>
    %341 = arith.truncf %340 : vector<8x64xf32> to vector<8x64xbf16>
    %c2_170 = arith.constant 2 : index
    %c0_171 = arith.constant 0 : index
    %c0_172 = arith.constant 0 : index
    %342 = vector.load %arg7[%c2_170, %c0_171, %c0_172] : memref<4x64x1024xbf16, #tpu.memory_space<vmem>>, vector<1x64x1024xbf16>
    %343 = vector.shape_cast %342 : vector<1x64x1024xbf16> to vector<64x1024xbf16>
    %cst_173 = arith.constant dense<0.000000e+00> : vector<8x1024xf32>
    %344 = tpu.matmul %341, %343, %cst_173 {dimension_numbers = #tpu.dot_dimension_numbers<[1], [0], [0], [1], [0, 0, 1, 1], [], []>} : vector<8x64xbf16>, vector<64x1024xbf16>, vector<8x1024xf32> -> vector<8x1024xf32>
    %c2_174 = arith.constant 2 : index
    %c0_175 = arith.constant 0 : index
    %c0_176 = arith.constant 0 : index
    %345 = vector.load %arg8[%c2_174, %c0_175, %c0_176] : memref<4x1x1024xf32, #tpu.memory_space<vmem>>, vector<1x1x1024xf32>
    %346 = vector.shape_cast %345 : vector<1x1x1024xf32> to vector<1x1024xf32>
    %347 = vector.broadcast %346 : vector<1x1024xf32> to vector<8x1024xf32>
    %348 = arith.addf %344, %347 : vector<8x1024xf32>
    %cst_177 = arith.constant 5.000000e-01 : f32
    %349 = vector.broadcast %cst_177 : f32 to vector<8x1024xf32>
    %350 = arith.mulf %349, %348 : vector<8x1024xf32>
    %cst_178 = arith.constant 0.707106769 : f32
    %351 = vector.broadcast %cst_178 : f32 to vector<8x1024xf32>
    %352 = arith.mulf %348, %351 : vector<8x1024xf32>
    %353 = math.absf %352 : vector<8x1024xf32>
    %cst_179 = arith.constant 0.327591091 : f32
    %354 = vector.broadcast %cst_179 : f32 to vector<8x1024xf32>
    %355 = arith.mulf %354, %353 : vector<8x1024xf32>
    %cst_180 = arith.constant 1.000000e+00 : f32
    %356 = vector.broadcast %cst_180 : f32 to vector<8x1024xf32>
    %357 = arith.addf %356, %355 : vector<8x1024xf32>
    %358 = tpu.reciprocal %357 {approx = true} : vector<8x1024xf32> -> vector<8x1024xf32>
    %359 = arith.mulf %357, %358 : vector<8x1024xf32>
    %cst_181 = arith.constant 2.000000e+00 : f32
    %360 = vector.broadcast %cst_181 : f32 to vector<8x1024xf32>
    %361 = arith.subf %360, %359 : vector<8x1024xf32>
    %362 = arith.mulf %358, %361 : vector<8x1024xf32>
    %cst_182 = arith.constant 1.06140542 : f32
    %363 = vector.broadcast %cst_182 : f32 to vector<8x1024xf32>
    %364 = arith.mulf %363, %362 : vector<8x1024xf32>
    %cst_183 = arith.constant -1.45315206 : f32
    %365 = vector.broadcast %cst_183 : f32 to vector<8x1024xf32>
    %366 = arith.addf %364, %365 : vector<8x1024xf32>
    %367 = arith.mulf %366, %362 : vector<8x1024xf32>
    %cst_184 = arith.constant 1.42141378 : f32
    %368 = vector.broadcast %cst_184 : f32 to vector<8x1024xf32>
    %369 = arith.addf %367, %368 : vector<8x1024xf32>
    %370 = arith.mulf %369, %362 : vector<8x1024xf32>
    %cst_185 = arith.constant -0.284496725 : f32
    %371 = vector.broadcast %cst_185 : f32 to vector<8x1024xf32>
    %372 = arith.addf %370, %371 : vector<8x1024xf32>
    %373 = arith.mulf %372, %362 : vector<8x1024xf32>
    %cst_186 = arith.constant 0.254829586 : f32
    %374 = vector.broadcast %cst_186 : f32 to vector<8x1024xf32>
    %375 = arith.addf %373, %374 : vector<8x1024xf32>
    %376 = arith.mulf %375, %362 : vector<8x1024xf32>
    %cst_187 = arith.constant 0.000000e+00 : f32
    %377 = vector.broadcast %cst_187 : f32 to vector<8x1024xf32>
    %378 = arith.subf %377, %353 : vector<8x1024xf32>
    %379 = arith.mulf %378, %353 : vector<8x1024xf32>
    %380 = math.exp %379 : vector<8x1024xf32>
    %381 = arith.mulf %376, %380 : vector<8x1024xf32>
    %cst_188 = arith.constant 1.000000e+00 : f32
    %382 = vector.broadcast %cst_188 : f32 to vector<8x1024xf32>
    %383 = arith.subf %382, %381 : vector<8x1024xf32>
    %cst_189 = arith.constant 0.000000e+00 : f32
    %384 = vector.broadcast %cst_189 : f32 to vector<8x1024xf32>
    %385 = arith.cmpf oge, %352, %384 : vector<8x1024xf32>
    %cst_190 = arith.constant 0.000000e+00 : f32
    %386 = vector.broadcast %cst_190 : f32 to vector<8x1024xf32>
    %387 = arith.subf %386, %383 : vector<8x1024xf32>
    %388 = arith.select %385, %383, %387 : vector<8x1024xi1>, vector<8x1024xf32>
    %cst_191 = arith.constant 1.000000e+00 : f32
    %389 = vector.broadcast %cst_191 : f32 to vector<8x1024xf32>
    %390 = arith.addf %389, %388 : vector<8x1024xf32>
    %391 = arith.mulf %350, %390 : vector<8x1024xf32>
    %392 = vector.extract_strided_slice %391 {offsets = [0, 0], sizes = [8, 256], strides = [1, 1]} : vector<8x1024xf32> to vector<8x256xf32>
    %393 = vector.extract_strided_slice %391 {offsets = [0, 256], sizes = [8, 256], strides = [1, 1]} : vector<8x1024xf32> to vector<8x256xf32>
    %394 = arith.addf %392, %393 : vector<8x256xf32>
    %395 = vector.extract_strided_slice %391 {offsets = [0, 512], sizes = [8, 256], strides = [1, 1]} : vector<8x1024xf32> to vector<8x256xf32>
    %396 = arith.addf %394, %395 : vector<8x256xf32>
    %397 = vector.extract_strided_slice %391 {offsets = [0, 768], sizes = [8, 256], strides = [1, 1]} : vector<8x1024xf32> to vector<8x256xf32>
    %398 = arith.addf %396, %397 : vector<8x256xf32>
    %cst_192 = arith.constant 2.500000e-01 : f32
    %399 = vector.broadcast %cst_192 : f32 to vector<8x256xf32>
    %400 = arith.mulf %399, %398 : vector<8x256xf32>
    %401 = arith.truncf %400 : vector<8x256xf32> to vector<8x256xbf16>
    %c2_193 = arith.constant 2 : index
    %c0_194 = arith.constant 0 : index
    %c0_195 = arith.constant 0 : index
    %402 = vector.load %arg9[%c2_193, %c0_194, %c0_195] : memref<4x256x512xbf16, #tpu.memory_space<vmem>>, vector<1x256x512xbf16>
    %403 = vector.shape_cast %402 : vector<1x256x512xbf16> to vector<256x512xbf16>
    %cst_196 = arith.constant dense<0.000000e+00> : vector<8x512xf32>
    %404 = tpu.matmul %401, %403, %cst_196 {dimension_numbers = #tpu.dot_dimension_numbers<[1], [0], [0], [1], [0, 0, 1, 1], [], []>} : vector<8x256xbf16>, vector<256x512xbf16>, vector<8x512xf32> -> vector<8x512xf32>
    %c2_197 = arith.constant 2 : index
    %c0_198 = arith.constant 0 : index
    %c0_199 = arith.constant 0 : index
    %405 = vector.load %arg10[%c2_197, %c0_198, %c0_199] : memref<4x1x512xf32, #tpu.memory_space<vmem>>, vector<1x1x512xf32>
    %406 = vector.shape_cast %405 : vector<1x1x512xf32> to vector<1x512xf32>
    %407 = vector.broadcast %406 : vector<1x512xf32> to vector<8x512xf32>
    %408 = arith.addf %404, %407 : vector<8x512xf32>
    %409 = arith.truncf %408 : vector<8x512xf32> to vector<8x512xbf16>
    %c2_200 = arith.constant 2 : index
    %c0_201 = arith.constant 0 : index
    %c0_202 = arith.constant 0 : index
    %410 = vector.load %arg11[%c2_200, %c0_201, %c0_202] : memref<4x512x128xbf16, #tpu.memory_space<vmem>>, vector<1x512x128xbf16>
    %411 = vector.shape_cast %410 : vector<1x512x128xbf16> to vector<512x128xbf16>
    %cst_203 = arith.constant dense<0.000000e+00> : vector<8x128xf32>
    %412 = tpu.matmul %409, %411, %cst_203 {dimension_numbers = #tpu.dot_dimension_numbers<[1], [0], [0], [1], [0, 0, 1, 1], [], []>} : vector<8x512xbf16>, vector<512x128xbf16>, vector<8x128xf32> -> vector<8x128xf32>
    %413 = arith.addf %277, %412 : vector<8x128xf32>
    %c3 = arith.constant 3 : index
    %c0_204 = arith.constant 0 : index
    %c0_205 = arith.constant 0 : index
    %414 = vector.load %arg2[%c3, %c0_204, %c0_205] : memref<4x32x360xbf16, #tpu.memory_space<vmem>>, vector<1x32x360xbf16>
    %415 = vector.shape_cast %414 : vector<1x32x360xbf16> to vector<32x360xbf16>
    %416 = arith.extf %415 : vector<32x360xbf16> to vector<32x360xf32>
    %417 = arith.mulf %0, %416 : vector<32x360xf32>
    %c3_206 = arith.constant 3 : index
    %c0_207 = arith.constant 0 : index
    %c0_208 = arith.constant 0 : index
    %418 = vector.load %arg4[%c3_206, %c0_207, %c0_208] : memref<4x32x32xf32, #tpu.memory_space<vmem>>, vector<1x32x32xf32>
    %419 = vector.shape_cast %418 : vector<1x32x32xf32> to vector<32x32xf32>
    %cst_209 = arith.constant dense<0.000000e+00> : vector<32x360xf32>
    %420 = tpu.matmul %419, %417, %cst_209 {dimension_numbers = #tpu.dot_dimension_numbers<[1], [0], [0], [1], [0, 0, 1, 1], [], []>} : vector<32x32xf32>, vector<32x360xf32>, vector<32x360xf32> -> vector<32x360xf32>
    %c3_210 = arith.constant 3 : index
    %c0_211 = arith.constant 0 : index
    %c0_212 = arith.constant 0 : index
    %421 = vector.load %arg3[%c3_210, %c0_211, %c0_212] : memref<4x32x360xbf16, #tpu.memory_space<vmem>>, vector<1x32x360xbf16>
    %422 = vector.shape_cast %421 : vector<1x32x360xbf16> to vector<32x360xbf16>
    %423 = arith.extf %422 : vector<32x360xbf16> to vector<32x360xf32>
    %424 = arith.addf %420, %423 : vector<32x360xf32>
    %cst_213 = arith.constant 5.000000e-01 : f32
    %425 = vector.broadcast %cst_213 : f32 to vector<32x360xf32>
    %426 = arith.mulf %425, %424 : vector<32x360xf32>
    %cst_214 = arith.constant 0.707106769 : f32
    %427 = vector.broadcast %cst_214 : f32 to vector<32x360xf32>
    %428 = arith.mulf %424, %427 : vector<32x360xf32>
    %429 = math.absf %428 : vector<32x360xf32>
    %cst_215 = arith.constant 0.327591091 : f32
    %430 = vector.broadcast %cst_215 : f32 to vector<32x360xf32>
    %431 = arith.mulf %430, %429 : vector<32x360xf32>
    %cst_216 = arith.constant 1.000000e+00 : f32
    %432 = vector.broadcast %cst_216 : f32 to vector<32x360xf32>
    %433 = arith.addf %432, %431 : vector<32x360xf32>
    %434 = tpu.reciprocal %433 {approx = true} : vector<32x360xf32> -> vector<32x360xf32>
    %435 = arith.mulf %433, %434 : vector<32x360xf32>
    %cst_217 = arith.constant 2.000000e+00 : f32
    %436 = vector.broadcast %cst_217 : f32 to vector<32x360xf32>
    %437 = arith.subf %436, %435 : vector<32x360xf32>
    %438 = arith.mulf %434, %437 : vector<32x360xf32>
    %cst_218 = arith.constant 1.06140542 : f32
    %439 = vector.broadcast %cst_218 : f32 to vector<32x360xf32>
    %440 = arith.mulf %439, %438 : vector<32x360xf32>
    %cst_219 = arith.constant -1.45315206 : f32
    %441 = vector.broadcast %cst_219 : f32 to vector<32x360xf32>
    %442 = arith.addf %440, %441 : vector<32x360xf32>
    %443 = arith.mulf %442, %438 : vector<32x360xf32>
    %cst_220 = arith.constant 1.42141378 : f32
    %444 = vector.broadcast %cst_220 : f32 to vector<32x360xf32>
    %445 = arith.addf %443, %444 : vector<32x360xf32>
    %446 = arith.mulf %445, %438 : vector<32x360xf32>
    %cst_221 = arith.constant -0.284496725 : f32
    %447 = vector.broadcast %cst_221 : f32 to vector<32x360xf32>
    %448 = arith.addf %446, %447 : vector<32x360xf32>
    %449 = arith.mulf %448, %438 : vector<32x360xf32>
    %cst_222 = arith.constant 0.254829586 : f32
    %450 = vector.broadcast %cst_222 : f32 to vector<32x360xf32>
    %451 = arith.addf %449, %450 : vector<32x360xf32>
    %452 = arith.mulf %451, %438 : vector<32x360xf32>
    %cst_223 = arith.constant 0.000000e+00 : f32
    %453 = vector.broadcast %cst_223 : f32 to vector<32x360xf32>
    %454 = arith.subf %453, %429 : vector<32x360xf32>
    %455 = arith.mulf %454, %429 : vector<32x360xf32>
    %456 = math.exp %455 : vector<32x360xf32>
    %457 = arith.mulf %452, %456 : vector<32x360xf32>
    %cst_224 = arith.constant 1.000000e+00 : f32
    %458 = vector.broadcast %cst_224 : f32 to vector<32x360xf32>
    %459 = arith.subf %458, %457 : vector<32x360xf32>
    %cst_225 = arith.constant 0.000000e+00 : f32
    %460 = vector.broadcast %cst_225 : f32 to vector<32x360xf32>
    %461 = arith.cmpf oge, %428, %460 : vector<32x360xf32>
    %cst_226 = arith.constant 0.000000e+00 : f32
    %462 = vector.broadcast %cst_226 : f32 to vector<32x360xf32>
    %463 = arith.subf %462, %459 : vector<32x360xf32>
    %464 = arith.select %461, %459, %463 : vector<32x360xi1>, vector<32x360xf32>
    %cst_227 = arith.constant 1.000000e+00 : f32
    %465 = vector.broadcast %cst_227 : f32 to vector<32x360xf32>
    %466 = arith.addf %465, %464 : vector<32x360xf32>
    %467 = arith.mulf %426, %466 : vector<32x360xf32>
    %cst_228 = arith.constant dense<0.000000e+00> : vector<32x8xf32>
    %468 = tpu.matmul %467, %1, %cst_228 {dimension_numbers = #tpu.dot_dimension_numbers<[1], [0], [0], [1], [0, 0, 1, 1], [], []>} : vector<32x360xf32>, vector<360x8xf32>, vector<32x8xf32> -> vector<32x8xf32>
    %469 = tpu.transpose %468, [1, 0] : vector<32x8xf32> -> vector<8x32xf32>
    %c3_229 = arith.constant 3 : index
    %c0_230 = arith.constant 0 : index
    %c0_231 = arith.constant 0 : index
    %470 = vector.load %arg5[%c3_229, %c0_230, %c0_231] : memref<4x32x64xf32, #tpu.memory_space<vmem>>, vector<1x32x64xf32>
    %471 = vector.shape_cast %470 : vector<1x32x64xf32> to vector<32x64xf32>
    %cst_232 = arith.constant dense<0.000000e+00> : vector<8x64xf32>
    %472 = tpu.matmul %469, %471, %cst_232 {dimension_numbers = #tpu.dot_dimension_numbers<[1], [0], [0], [1], [0, 0, 1, 1], [], []>} : vector<8x32xf32>, vector<32x64xf32>, vector<8x64xf32> -> vector<8x64xf32>
    %c3_233 = arith.constant 3 : index
    %c0_234 = arith.constant 0 : index
    %c0_235 = arith.constant 0 : index
    %473 = vector.load %arg6[%c3_233, %c0_234, %c0_235] : memref<4x1x64xf32, #tpu.memory_space<vmem>>, vector<1x1x64xf32>
    %474 = vector.shape_cast %473 : vector<1x1x64xf32> to vector<1x64xf32>
    %475 = vector.broadcast %474 : vector<1x64xf32> to vector<8x64xf32>
    %476 = arith.addf %472, %475 : vector<8x64xf32>
    %477 = arith.truncf %476 : vector<8x64xf32> to vector<8x64xbf16>
    %c3_236 = arith.constant 3 : index
    %c0_237 = arith.constant 0 : index
    %c0_238 = arith.constant 0 : index
    %478 = vector.load %arg7[%c3_236, %c0_237, %c0_238] : memref<4x64x1024xbf16, #tpu.memory_space<vmem>>, vector<1x64x1024xbf16>
    %479 = vector.shape_cast %478 : vector<1x64x1024xbf16> to vector<64x1024xbf16>
    %cst_239 = arith.constant dense<0.000000e+00> : vector<8x1024xf32>
    %480 = tpu.matmul %477, %479, %cst_239 {dimension_numbers = #tpu.dot_dimension_numbers<[1], [0], [0], [1], [0, 0, 1, 1], [], []>} : vector<8x64xbf16>, vector<64x1024xbf16>, vector<8x1024xf32> -> vector<8x1024xf32>
    %c3_240 = arith.constant 3 : index
    %c0_241 = arith.constant 0 : index
    %c0_242 = arith.constant 0 : index
    %481 = vector.load %arg8[%c3_240, %c0_241, %c0_242] : memref<4x1x1024xf32, #tpu.memory_space<vmem>>, vector<1x1x1024xf32>
    %482 = vector.shape_cast %481 : vector<1x1x1024xf32> to vector<1x1024xf32>
    %483 = vector.broadcast %482 : vector<1x1024xf32> to vector<8x1024xf32>
    %484 = arith.addf %480, %483 : vector<8x1024xf32>
    %cst_243 = arith.constant 5.000000e-01 : f32
    %485 = vector.broadcast %cst_243 : f32 to vector<8x1024xf32>
    %486 = arith.mulf %485, %484 : vector<8x1024xf32>
    %cst_244 = arith.constant 0.707106769 : f32
    %487 = vector.broadcast %cst_244 : f32 to vector<8x1024xf32>
    %488 = arith.mulf %484, %487 : vector<8x1024xf32>
    %489 = math.absf %488 : vector<8x1024xf32>
    %cst_245 = arith.constant 0.327591091 : f32
    %490 = vector.broadcast %cst_245 : f32 to vector<8x1024xf32>
    %491 = arith.mulf %490, %489 : vector<8x1024xf32>
    %cst_246 = arith.constant 1.000000e+00 : f32
    %492 = vector.broadcast %cst_246 : f32 to vector<8x1024xf32>
    %493 = arith.addf %492, %491 : vector<8x1024xf32>
    %494 = tpu.reciprocal %493 {approx = true} : vector<8x1024xf32> -> vector<8x1024xf32>
    %495 = arith.mulf %493, %494 : vector<8x1024xf32>
    %cst_247 = arith.constant 2.000000e+00 : f32
    %496 = vector.broadcast %cst_247 : f32 to vector<8x1024xf32>
    %497 = arith.subf %496, %495 : vector<8x1024xf32>
    %498 = arith.mulf %494, %497 : vector<8x1024xf32>
    %cst_248 = arith.constant 1.06140542 : f32
    %499 = vector.broadcast %cst_248 : f32 to vector<8x1024xf32>
    %500 = arith.mulf %499, %498 : vector<8x1024xf32>
    %cst_249 = arith.constant -1.45315206 : f32
    %501 = vector.broadcast %cst_249 : f32 to vector<8x1024xf32>
    %502 = arith.addf %500, %501 : vector<8x1024xf32>
    %503 = arith.mulf %502, %498 : vector<8x1024xf32>
    %cst_250 = arith.constant 1.42141378 : f32
    %504 = vector.broadcast %cst_250 : f32 to vector<8x1024xf32>
    %505 = arith.addf %503, %504 : vector<8x1024xf32>
    %506 = arith.mulf %505, %498 : vector<8x1024xf32>
    %cst_251 = arith.constant -0.284496725 : f32
    %507 = vector.broadcast %cst_251 : f32 to vector<8x1024xf32>
    %508 = arith.addf %506, %507 : vector<8x1024xf32>
    %509 = arith.mulf %508, %498 : vector<8x1024xf32>
    %cst_252 = arith.constant 0.254829586 : f32
    %510 = vector.broadcast %cst_252 : f32 to vector<8x1024xf32>
    %511 = arith.addf %509, %510 : vector<8x1024xf32>
    %512 = arith.mulf %511, %498 : vector<8x1024xf32>
    %cst_253 = arith.constant 0.000000e+00 : f32
    %513 = vector.broadcast %cst_253 : f32 to vector<8x1024xf32>
    %514 = arith.subf %513, %489 : vector<8x1024xf32>
    %515 = arith.mulf %514, %489 : vector<8x1024xf32>
    %516 = math.exp %515 : vector<8x1024xf32>
    %517 = arith.mulf %512, %516 : vector<8x1024xf32>
    %cst_254 = arith.constant 1.000000e+00 : f32
    %518 = vector.broadcast %cst_254 : f32 to vector<8x1024xf32>
    %519 = arith.subf %518, %517 : vector<8x1024xf32>
    %cst_255 = arith.constant 0.000000e+00 : f32
    %520 = vector.broadcast %cst_255 : f32 to vector<8x1024xf32>
    %521 = arith.cmpf oge, %488, %520 : vector<8x1024xf32>
    %cst_256 = arith.constant 0.000000e+00 : f32
    %522 = vector.broadcast %cst_256 : f32 to vector<8x1024xf32>
    %523 = arith.subf %522, %519 : vector<8x1024xf32>
    %524 = arith.select %521, %519, %523 : vector<8x1024xi1>, vector<8x1024xf32>
    %cst_257 = arith.constant 1.000000e+00 : f32
    %525 = vector.broadcast %cst_257 : f32 to vector<8x1024xf32>
    %526 = arith.addf %525, %524 : vector<8x1024xf32>
    %527 = arith.mulf %486, %526 : vector<8x1024xf32>
    %528 = vector.extract_strided_slice %527 {offsets = [0, 0], sizes = [8, 256], strides = [1, 1]} : vector<8x1024xf32> to vector<8x256xf32>
    %529 = vector.extract_strided_slice %527 {offsets = [0, 256], sizes = [8, 256], strides = [1, 1]} : vector<8x1024xf32> to vector<8x256xf32>
    %530 = arith.addf %528, %529 : vector<8x256xf32>
    %531 = vector.extract_strided_slice %527 {offsets = [0, 512], sizes = [8, 256], strides = [1, 1]} : vector<8x1024xf32> to vector<8x256xf32>
    %532 = arith.addf %530, %531 : vector<8x256xf32>
    %533 = vector.extract_strided_slice %527 {offsets = [0, 768], sizes = [8, 256], strides = [1, 1]} : vector<8x1024xf32> to vector<8x256xf32>
    %534 = arith.addf %532, %533 : vector<8x256xf32>
    %cst_258 = arith.constant 2.500000e-01 : f32
    %535 = vector.broadcast %cst_258 : f32 to vector<8x256xf32>
    %536 = arith.mulf %535, %534 : vector<8x256xf32>
    %537 = arith.truncf %536 : vector<8x256xf32> to vector<8x256xbf16>
    %c3_259 = arith.constant 3 : index
    %c0_260 = arith.constant 0 : index
    %c0_261 = arith.constant 0 : index
    %538 = vector.load %arg9[%c3_259, %c0_260, %c0_261] : memref<4x256x512xbf16, #tpu.memory_space<vmem>>, vector<1x256x512xbf16>
    %539 = vector.shape_cast %538 : vector<1x256x512xbf16> to vector<256x512xbf16>
    %cst_262 = arith.constant dense<0.000000e+00> : vector<8x512xf32>
    %540 = tpu.matmul %537, %539, %cst_262 {dimension_numbers = #tpu.dot_dimension_numbers<[1], [0], [0], [1], [0, 0, 1, 1], [], []>} : vector<8x256xbf16>, vector<256x512xbf16>, vector<8x512xf32> -> vector<8x512xf32>
    %c3_263 = arith.constant 3 : index
    %c0_264 = arith.constant 0 : index
    %c0_265 = arith.constant 0 : index
    %541 = vector.load %arg10[%c3_263, %c0_264, %c0_265] : memref<4x1x512xf32, #tpu.memory_space<vmem>>, vector<1x1x512xf32>
    %542 = vector.shape_cast %541 : vector<1x1x512xf32> to vector<1x512xf32>
    %543 = vector.broadcast %542 : vector<1x512xf32> to vector<8x512xf32>
    %544 = arith.addf %540, %543 : vector<8x512xf32>
    %545 = arith.truncf %544 : vector<8x512xf32> to vector<8x512xbf16>
    %c3_266 = arith.constant 3 : index
    %c0_267 = arith.constant 0 : index
    %c0_268 = arith.constant 0 : index
    %546 = vector.load %arg11[%c3_266, %c0_267, %c0_268] : memref<4x512x128xbf16, #tpu.memory_space<vmem>>, vector<1x512x128xbf16>
    %547 = vector.shape_cast %546 : vector<1x512x128xbf16> to vector<512x128xbf16>
    %cst_269 = arith.constant dense<0.000000e+00> : vector<8x128xf32>
    %548 = tpu.matmul %545, %547, %cst_269 {dimension_numbers = #tpu.dot_dimension_numbers<[1], [0], [0], [1], [0, 0, 1, 1], [], []>} : vector<8x512xbf16>, vector<512x128xbf16>, vector<8x128xf32> -> vector<8x128xf32>
    %549 = arith.addf %413, %548 : vector<8x128xf32>
    %c0_270 = arith.constant 0 : index
    %c0_271 = arith.constant 0 : index
    %550 = vector.load %arg13[%c0_270, %c0_271] : memref<8x128xf32, #tpu.memory_space<vmem>>, vector<8x128xf32>
    tpu.vector_store %arg13[%c0_270, %c0_271], %549 {strides = array<i32>} : memref<8x128xf32, #tpu.memory_space<vmem>>, vector<8x128xf32>,
    return
  }
}

</mosaic_0001>

<bundles_post_ra>
// kernel: quda_rebuild_net.1
= control target key start
LH: loop header
LB: loop body
LE: loop exit
PB: predicated region body
PF: predicated region fallthrough
CT: control target
= control target key end

     0   :  { %18 = vsyncpa [#allocation3], 0  ;;  %s16702_s0 = inlined_call_operand.vmem [shape: f32[32,360], index: 0, kind: input, shape index: {}]   ;;  %s16703_s1 = inlined_call_operand.vmem [shape: f32[360,8], index: 1, kind: input, shape index: {}]   ;;  %s16704_s2 = inlined_call_operand.vmem [shape: bf16[4,32,360], index: 2, kind: input, shape index: {}]   ;;  %s16705_s3 = inlined_call_operand.vmem [shape: bf16[4,32,360], index: 3, kind: input, shape index: {}]   ;;  %s16706_s4 = inlined_call_operand.vmem [shape: f32[4,32,32], index: 4, kind: input, shape index: {}]   ;;  %s16707_s5 = inlined_call_operand.vmem [shape: f32[4,32,64], index: 5, kind: input, shape index: {}]   ;;  %s16708_s6 = inlined_call_operand.vmem [shape: f32[4,1,64], index: 6, kind: input, shape index: {}]   ;;  %s16709_s7 = inlined_call_operand.hbm [shape: bf16[4,64,1024], index: 7, kind: input, shape index: {}]   ;;  %s16710_s8 = inlined_call_operand.vmem [shape: f32[4,1,1024], index: 8, kind: input, shape index: {}]   ;;  %s16711_s9 = inlined_call_operand.vmem [shape: bf16[4,256,512], index: 9, kind: input, shape index: {}]   ;;  %s16712_s10 = inlined_call_operand.vmem [shape: f32[4,1,512], index: 10, kind: input, shape index: {}]   ;;  %s16713_s11 = inlined_call_operand.hbm [shape: bf16[4,512,128], index: 11, kind: input, shape index: {}]   ;;  %s16714_s12 = inlined_call_operand.vmem [shape: f32[1,128], index: 12, kind: input, shape index: {}]   ;;  %s16715_s13 = inlined_call_operand.vmem [shape: f32[8,128], index: 13, kind: output, shape index: {}]  }
   0x1   :  { %s38_s27 = sshll.u32 %s16709_s7, 4  ;;  %s39_s27 = int_to_ptr.hbm [resolvable:$true] %s38_s27 }
   0x2   :  { %19 = vsyncpa [#allocation5], 0  ;;  %s11811_s28 = smov [#allocation2]   ;;  %s57_s15 = sshll.u32 %s16713_s11, 4  ;;  %s58_s15 = int_to_ptr.hbm [resolvable:$true] %s57_s15 }
   0x3   :  { %s40_s29 = sshll.u32 %s11811_s28, 4  ;;  %s11812_s16 = smov 512   ;;  %s41_s29 = int_to_ptr.vmem [resolvable:$true] %s40_s29 }
   0x4   :  { %s11813_s17 = smov 32   ;;  %s11814_s18 = smov [#allocation4]  }
   0x5   :  { %46 = dma.hbm_to_vmem [thread:$0]  %s39_s27, 16384, %s41_s29, [#allocation3], %s11812_s16, %s11812_s16, %s11813_s17  }
   0x6   :  { %s59_s19 = sshll.u32 %s11814_s18, 4  ;;  %s11815_s20 = smov 64   ;;  %s60_s19 = int_to_ptr.vmem [resolvable:$true] %s59_s19 }
   0x7   :  { %s11816_s21 = smov 4  }
   0x8   :  { %65 = dma.hbm_to_vmem [thread:$0]  %s58_s15, 16384, %s60_s19, [#allocation5], %s11815_s20, %s11815_s20, %s11816_s21  }
   0x9   :  { %11807 = dma.done.wait [#allocation3], 16384  }
   0xa   :  { %11808 = vsyncadd [#allocation3], 4294950912 }
   0xb   :  { %11809 = dma.done.wait [#allocation5], 16384  }
   0xc   :  { %11810 = vsyncadd [#allocation5], 4294950912  ;;  %v86_v0 = vld [vmem:[%s16702_s0 + $0x48] sm:$0xff]  ;;  %v87_v2 = vld [vmem:[%s16702_s0 + $0x50] sm:$0xff]  ;;  %vm195_vm0 = vcmask 261120   ;;  %vm643_vm2 = vcmask 850944  }
   0xd   :  { %v145_v1 = vld [vmem:[%s16704_s2 + $0x24] sm:$0xff]  ;;  %v88_v5 = vld [vmem:[%s16702_s0 + $0x58] sm:$0xff]  ;;  %v146_v6 = vld [vmem:[%s16704_s2 + $0x2c] sm:$0xf]  ;;  %vm1017_vm14 = vcmask 523264  }
   0xe   :  { %v156_v3 = vunpack.c.l.bf16 %v145_v1  ;;  %v157_v4 = vunpack.c.h.bf16 %v145_v1  ;;  %v83_v7 = vld [vmem:[%s16702_s0 + $0x30] sm:$0xff]  ;;  %v158_v8 = vunpack.c.l.bf16 %v146_v6  ;;  %v143_v9 = vld [vmem:[%s16704_s2 + $0x18] sm:$0xff]  ;;  %v85_v11 = vld [vmem:[%s16702_s0 + $0x40] sm:$0xff] }
   0xf   :  { %v84_v10 = vld [vmem:[%s16702_s0 + $0x38] sm:$0xff]  ;;  %v153_v14 = vunpack.c.l.bf16 %v143_v9  ;;  %v154_v15 = vunpack.c.h.bf16 %v143_v9  ;;  %v144_v16 = vld [vmem:[%s16704_s2 + $0x20] sm:$0xf]  ;;  %v141_v18 = vld [vmem:[%s16704_s2 + $0xc] sm:$0xff] }
  0x10   :  { %v168_v12 = vmul.f32 %v156_v3, %v86_v0  ;;  %v169_v13 = vmul.f32 %v157_v4, %v87_v2  ;;  %v80_v17 = vld [vmem:[%s16702_s0 + $0x18] sm:$0xff]  ;;  %v170_v19 = vmul.f32 %v158_v8, %v88_v5  ;;  %v155_v20 = vunpack.c.l.bf16 %v144_v16  ;;  %v81_v22 = vld [vmem:[%s16702_s0 + $0x20] sm:$0xff]  ;;  %v82_v24 = vld [vmem:[%s16702_s0 + $0x28] sm:$0xff] }
  0x11   :  { %v150_v21 = vunpack.c.l.bf16 %v141_v18  ;;  %v151_v23 = vunpack.c.h.bf16 %v141_v18  ;;  %v142_v25 = vld [vmem:[%s16704_s2 + $0x14] sm:$0xf]  ;;  %v165_v26 = vmul.f32 %v153_v14, %v83_v7  ;;  %v166_v27 = vmul.f32 %v154_v15, %v84_v10  ;;  %v77_v29 = vld [vmem:[%s16702_s0] sm:$0xff]  ;;  %v78_v35 = vld [vmem:[%s16702_s0 + $0x8] sm:$0xff] }
  0x12   :  { %220 = vmatpush.msra.mxu0 %v168_v12  ;;  %249 = vmatpush.msra.mxu1 %v169_v13  ;;  %v152_v28 = vunpack.c.l.bf16 %v142_v25  ;;  %v139_v30 = vld [vmem:[%s16704_s2] sm:$0xff]  ;;  %v167_v31 = vmul.f32 %v155_v20, %v85_v11  ;;  %v79_v36 = vld [vmem:[%s16702_s0 + $0x10] sm:$0xff]  ;;  %v140_v37 = vld [vmem:[%s16704_s2 + $0x8] sm:$0xf] }
  0x13   :  { %278 = vmatpush.msra.mxu2 %v170_v19  ;;  %v162_v32 = vmul.f32 %v150_v21, %v80_v17  ;;  %v163_v33 = vmul.f32 %v151_v23, %v81_v22  ;;  %v147_v34 = vunpack.c.l.bf16 %v139_v30  ;;  %v148_v39 = vunpack.c.h.bf16 %v139_v30  ;;  %v171_v42 = vld [vmem:[%s16706_s4] sm:$0xff]  ;;  %v172_v45 = vld [vmem:[%s16706_s4 + $0x8] sm:$0xff]  ;;  %v173_v46 = vld [vmem:[%s16706_s4 + $0x10] sm:$0xff] }
  0x14   :  { %221 = vmatpush.msra.mxu0 %v165_v26  ;;  %250 = vmatpush.msra.mxu1 %v166_v27  ;;  %v164_v38 = vmul.f32 %v152_v28, %v82_v24  ;;  %v149_v40 = vunpack.c.l.bf16 %v140_v37  ;;  %v174_v47 = vld [vmem:[%s16706_s4 + $0x18] sm:$0xff]  ;;  %v175_v48 = vld [vmem:[%s16705_s3] sm:$0xff]  ;;  %v176_v56 = vld [vmem:[%s16705_s3 + $0x8] sm:$0xf] }
  0x15   :  { %279 = vmatpush.msra.mxu2 %v167_v31  ;;  %v159_v41 = vmul.f32 %v147_v34, %v77_v29  ;;  %v160_v43 = vmul.f32 %v148_v39, %v78_v35  ;;  %v183_v49 = vunpack.c.l.bf16 %v175_v48  ;;  %v104_v50 = vld [vmem:[%s16703_s1 + $0x78] sm:$0xff]  ;;  %v184_v52 = vunpack.c.h.bf16 %v175_v48  ;;  %v177_v58 = vld [vmem:[%s16705_s3 + $0xc] sm:$0xff]  ;;  %v101_v8 = vld [vmem:[%s16703_s1 + $0x60] sm:$0xff] }
  0x16   :  { %222 = vmatpush.msra.mxu0 %v162_v32  ;;  %251 = vmatpush.msra.mxu1 %v163_v33  ;;  %v161_v44 = vmul.f32 %v149_v40, %v79_v36  ;;  %v120_v51 = vld [vmem:[%s16703_s1 + $0xf8] sm:$0xff]  ;;  %v185_v61 = vunpack.c.l.bf16 %v176_v56  ;;  %v103_v62 = vld [vmem:[%s16703_s1 + $0x70] sm:$0xff]  ;;  %v186_v1 = vunpack.c.l.bf16 %v177_v58  ;;  %v102_v2 = vld [vmem:[%s16703_s1 + $0x68] sm:$0xff]  ;;  %v187_v12 = vunpack.c.h.bf16 %v177_v58 }
  0x17   :  { %280 = vmatpush.msra.mxu2 %v164_v38  ;;  %656 = vmatpush.msra.mxu3 %v104_v50  ;;  %v119_v63 = vld [vmem:[%s16703_s1 + $0xf0] sm:$0xff]  ;;  %v118_v3 = vld [vmem:[%s16703_s1 + $0xe8] sm:$0xff]  ;;  %v117_v9 = vld [vmem:[%s16703_s1 + $0xe0] sm:$0xff] }
  0x18   :  { %223 = vmatpush.msra.mxu0 %v159_v41  ;;  %252 = vmatpush.msra.mxu1 %v160_v43  ;;  %v178_v13 = vld [vmem:[%s16705_s3 + $0x14] sm:$0xf]  ;;  %v100_v16 = vld [vmem:[%s16703_s1 + $0x58] sm:$0xff]  ;;  %v133_v31 = vld [vmem:[%s16703_s1 + $0x160] sm:$0xff] }
  0x19   :  { %281 = vmatpush.msra.mxu2 %v161_v44  ;;  %8323 = vmatmul.msk.f32.vlgmr.msra.gmra.mxu0 %vm195_vm0, %v171_v42  ;;  %v116_v17 = vld [vmem:[%s16703_s1 + $0xd8] sm:$0xff]  ;;  %v188_v23 = vunpack.c.l.bf16 %v178_v13  ;;  %v99_v24 = vld [vmem:[%s16703_s1 + $0x50] sm:$0xff]  ;;  %v98_v32 = vld [vmem:[%s16703_s1 + $0x48] sm:$0xff] }
  0x1a   :  { %8327 = vmatmul.msk.f32.vlgmr.msra.gmra.mxu1 %vm195_vm0, %v171_v42  ;;  %8331 = vmatmul.msk.f32.vlgmr.msra.gmra.mxu2 %vm195_vm0, %v171_v42  ;;  %v12057_v28 = vld [vmem:[%s16705_s3 + $0x18] sm:$0xff]  ;;  %v115_v29 = vld [vmem:[%s16703_s1 + $0xd0] sm:$0xff]  ;;  %v114_v33 = vld [vmem:[%s16703_s1 + $0xc8] sm:$0xff] }
  0x1b   :  { %685 = vmatpush.msrb.mxu0 %v120_v51  ;;  %657 = vmatpush.msra.mxu3 %v103_v62  ;;  %v132_v42 = vld [vmem:[%s16703_s1 + $0x158] sm:$0xff]  ;;  %v97_v43 = vld [vmem:[%s16703_s1 + $0x40] sm:$0xff] }
  0x1c   :  { %717 = vmatpush.msrb.mxu1 %v133_v31  ;;  %v113_v44 = vld [vmem:[%s16703_s1 + $0xc0] sm:$0xff]  ;;  %v112_v56 = vld [vmem:[%s16703_s1 + $0xb8] sm:$0xff] }
  0x1d   :  { %686 = vmatpush.msrb.mxu0 %v119_v63  ;;  %658 = vmatpush.msra.mxu3 %v102_v2  ;;  %v12101_v48 = vld [vmem:[%s16705_s3 + $0x20] sm:$0xf] }
  0x1e   :  { %718 = vmatpush.msrb.mxu1 %v132_v42  ;;  %v191_v2 = vunpack.c.l.bf16 %v12101_v48 }
  0x1f   :  { %687 = vmatpush.msrb.mxu0 %v118_v3  ;;  %659 = vmatpush.msra.mxu3 %v101_v8  ;;  %v12148_v8 = vld [vmem:[%s16705_s3 + $0x2c] sm:$0xf] }
  0x21   :  { %8324 = vmatmul.msk.f32.gmra.mxu0 %vm195_vm0, %v172_v45  ;;  %660 = vmatpush.msra.mxu3 %v100_v16  ;;  %v94_v16 = vld [vmem:[%s16703_s1 + $0x28] sm:$0xff] }
  0x22   :  { %8328 = vmatmul.msk.f32.gmra.mxu1 %vm195_vm0, %v172_v45  ;;  %8332 = vmatmul.msk.f32.gmra.mxu2 %vm195_vm0, %v172_v45 }
  0x23   :  { %688 = vmatpush.msrb.mxu0 %v117_v9  ;;  %661 = vmatpush.msra.mxu3 %v99_v24  ;;  %v111_v9 = vld [vmem:[%s16703_s1 + $0xb0] sm:$0xff] }
  0x25   :  { %689 = vmatpush.msrb.mxu0 %v116_v17  ;;  %662 = vmatpush.msra.mxu3 %v98_v32  ;;  %v110_v17 = vld [vmem:[%s16703_s1 + $0xa8] sm:$0xff] }
  0x27   :  { %690 = vmatpush.msrb.mxu0 %v115_v29  ;;  %663 = vmatpush.msra.mxu3 %v97_v43  ;;  %v194_v29 = vunpack.c.l.bf16 %v12148_v8 }
  0x29   :  { %8325 = vmatmul.msk.f32.gmra.mxu0 %vm195_vm0, %v173_v46 }
  0x2a   :  { %8329 = vmatmul.msk.f32.gmra.mxu1 %vm195_vm0, %v173_v46  ;;  %8333 = vmatmul.msk.f32.gmra.mxu2 %vm195_vm0, %v173_v46 }
  0x2b   :  { %691 = vmatpush.msrb.mxu0 %v114_v33 }
  0x2d   :  { %692 = vmatpush.msrb.mxu0 %v113_v44 }
  0x2f   :  { %693 = vmatpush.msrb.mxu0 %v112_v56 }
  0x31   :  { %8326 = vmatmul.msk.f32.gmra.mxu0 %vm195_vm0, %v174_v47 }
  0x32   :  { %8330 = vmatmul.msk.f32.gmra.mxu1 %vm195_vm0, %v174_v47  ;;  %8334 = vmatmul.msk.f32.gmra.mxu2 %vm195_vm0, %v174_v47  ;;  %v189_v47 = vunpack.c.l.bf16 %v12057_v28 }
  0x33   :  { %694 = vmatpush.msrb.mxu0 %v111_v9 }
  0x35   :  { %695 = vmatpush.msrb.mxu0 %v110_v17 }
  0x96   :  { %v225_v53 = vpop.f32.mrf.mxu0 }
  0x97   :  { %v11986_v54 = vadd.f32 %v225_v53, %v183_v49  ;;  %v254_v55 = vpop.f32.mrf.mxu1  ;;  %v12106_v49 = vld [vmem:[%s16705_s3 + $0x24] sm:$0xff]  ;;  %v131_v53 = vld [vmem:[%s16703_s1 + $0x150] sm:$0xff] }
  0x98   :  { %v11991_v57 = vadd.f32 %v254_v55, %v184_v52  ;;  %v190_v52 = vunpack.c.h.bf16 %v12057_v28  ;;  %v96_v55 = vld [vmem:[%s16703_s1 + $0x38] sm:$0xff]  ;;  %719 = vmatpush.msrb.mxu1 %v131_v53  ;;  %v192_v3 = vunpack.c.l.bf16 %v12106_v49  ;;  %v193_v13 = vunpack.c.h.bf16 %v12106_v49 }
  0x99   :  { %v11997_v59 = vmul.f32 0.70710677, %v11986_v54  ;;  %664 = vmatpush.msra.mxu3 %v96_v55  ;;  %v12125_v62 = vmul.f32 0.5, %v11986_v54 }
  0x9a   :  { %v12000_v60 = vmul.f32 0.70710677, %v11991_v57 }
  0x9b   :  { %v319_v0 = vand.u32 2147483647, %v11997_v59  ;;  %vm583_vm3 = vcmp.ge.f32.partialorder %v11997_v59, 0.0 }
  0x9c   :  { %v320_v4 = vand.u32 2147483647, %v12000_v60  ;;  %vm584_vm4 = vcmp.ge.f32.partialorder %v12000_v60, 0.0 }
  0x9d   :  { %v283_v5 = vpop.f32.mrf.mxu2  ;;  %v331_v10 = vmul.f32 0.3275911, %v319_v0  ;;  %v511_v18 = vsub.f32 0.0, %v319_v0 }
  0x9e   :  { %v12016_v6 = vadd.f32 %v283_v5, %v185_v61  ;;  %v228_v7 = vpop.f32.mrf.mxu0  ;;  %v332_v19 = vmul.f32 0.3275911, %v320_v4  ;;  %v512_v21 = vsub.f32 0.0, %v320_v4  ;;  %v12121_v61 = vmul.f32 0.5, %v11991_v57  ;;  %v130_v57 = vld [vmem:[%s16703_s1 + $0x148] sm:$0xff] }
  0x9f   :  { %v12024_v11 = vadd.f32 %v228_v7, %v186_v1  ;;  %v257_v15 = vpop.f32.mrf.mxu1  ;;  %v12047_v25 = vadd.f32 1.0, %v331_v10  ;;  %v523_v34 = vmul.f32 %v511_v18, %v319_v0  ;;  %720 = vmatpush.msrb.mxu1 %v130_v57 }
  0xa0   :  { %v12030_v14 = vmul.f32 0.70710677, %v12016_v6  ;;  %v12052_v27 = vadd.f32 %v257_v15, %v187_v12  ;;  %v12072_v35 = vadd.f32 1.0, %v332_v19  ;;  %v524_v39 = vmul.f32 %v512_v21, %v320_v4  ;;  %v95_v4 = vld [vmem:[%s16703_s1 + $0x30] sm:$0xff]  ;;  %v129_v15 = vld [vmem:[%s16703_s1 + $0x140] sm:$0xff] }
  0xa1   :  { %v12039_v20 = vmul.f32 0.70710677, %v12024_v11  ;;  %11268 = vrcp.f32 %v12047_v25  ;;  %v535_v58 = vmul.f32 1.442695, %v523_v34  ;;  %v12139_v54 = vmul.f32 0.5, %v12016_v6  ;;  %665 = vmatpush.msra.mxu3 %v95_v4  ;;  %721 = vmatpush.msrb.mxu1 %v129_v15  ;;  %v125_v15 = vld [vmem:[%s16703_s1 + $0x120] sm:$0xff] }
  0xa2   :  { %v12042_v22 = vand.u32 2147483647, %v12030_v14  ;;  %v12076_v37 = vmul.f32 0.70710677, %v12052_v27  ;;  %v537_v63 = vmul.f32 1.442695, %v524_v39 }
  0xa3   :  { %v12050_v26 = vand.u32 2147483647, %v12039_v20  ;;  %v12171_v19 = vmul.f32 0.5, %v12024_v11  ;;  %666 = vmatpush.msra.mxu3 %v94_v16  ;;  %v128_v11 = vld [vmem:[%s16703_s1 + $0x138] sm:$0xff]  ;;  %v12199_v39 = vmul.f32 0.5, %v12052_v27  ;;  %v90_v16 = vld [vmem:[%s16703_s1 + $0x8] sm:$0xff] }
  0xa4   :  { %v333_v30 = vmul.f32 0.3275911, %v12042_v22  ;;  %v12095_v46 = vand.u32 2147483647, %v12076_v37  ;;  %v513_v50 = vsub.f32 0.0, %v12042_v22  ;;  %722 = vmatpush.msrb.mxu1 %v128_v11  ;;  %v92_v27 = vld [vmem:[%s16703_s1 + $0x18] sm:$0xff] }
  0xa5   :  { %v334_v36 = vmul.f32 0.3275911, %v12050_v26  ;;  %v286_v38 = vpop.f32.mrf.mxu2  ;;  %v514_v10 = vsub.f32 0.0, %v12050_v26  ;;  %vm585_vm1 = vcmp.ge.f32.partialorder %v12030_v14, 0.0  ;;  %vm586_vm5 = vcmp.ge.f32.partialorder %v12039_v20, 0.0 }
  0xa6   :  { %v12078_v40 = vadd.f32 1.0, %v333_v30  ;;  %v12080_v41 = vadd.f32 %v286_v38, %v188_v23  ;;  %v231_v51 = vpop.f32.mrf.mxu0  ;;  %v335_v5 = vmul.f32 0.3275911, %v12095_v46  ;;  %v525_v6 = vmul.f32 %v513_v50, %v12042_v22  ;;  %v109_v38 = vld [vmem:[%s16703_s1 + $0xa0] sm:$0xff] }
  0xa7   :  { %v12092_v45 = vadd.f32 1.0, %v334_v36  ;;  %v260_v1 = vpop.f32.mrf.mxu1  ;;  %v12143_v7 = vadd.f32 %v231_v51, %v189_v47  ;;  %v12168_v18 = vpop.eup %11268  ;;  %v515_v24 = vsub.f32 0.0, %v12095_v46  ;;  %v93_v36 = vld [vmem:[%s16703_s1 + $0x20] sm:$0xff]  ;;  %v526_v43 = vmul.f32 %v514_v10, %v12050_v26  ;;  %696 = vmatpush.msrb.mxu0 %v109_v38  ;;  %v127_v47 = vld [vmem:[%s16703_s1 + $0x130] sm:$0xff] }
  0xa8   :  { %11270 = vrcp.f32 %v12078_v40  ;;  %v12128_v0 = vmul.f32 0.70710677, %v12080_v41  ;;  %v12176_v22 = vadd.f32 %v260_v1, %v190_v52  ;;  %v12187_v32 = vadd.f32 1.0, %v335_v5  ;;  %667 = vmatpush.msra.mxu3 %v93_v36  ;;  %723 = vmatpush.msrb.mxu1 %v127_v47  ;;  %v105_v36 = vld [vmem:[%s16703_s1 + $0x80] sm:$0xff]  ;;  %v124_v47 = vld [vmem:[%s16703_s1 + $0x118] sm:$0xff] }
  0xa9   :  { %11272 = vrcp.f32 %v12072_v35  ;;  %v12174_v21 = vmul.f32 0.70710677, %v12143_v7  ;;  %v539_v42 = vmul.f32 1.442695, %v525_v6  ;;  %v12220_v26 = vmul.f32 0.5, %v12080_v41  ;;  %v126_v41 = vld [vmem:[%s16703_s1 + $0x128] sm:$0xff] }
  0xaa   :  { %11274 = vrcp.f32 %v12092_v45  ;;  %v12156_v12 = vand.u32 2147483647, %v12128_v0  ;;  %v12224_v52 = vmul.f32 0.70710677, %v12176_v22  ;;  %v527_v55 = vmul.f32 %v515_v24, %v12095_v46  ;;  %668 = vmatpush.msra.mxu3 %v92_v27  ;;  %724 = vmatpush.msrb.mxu1 %v126_v41 }
  0xab   :  { %11276 = vpow2.f32 %v535_v58  ;;  %v12190_v33 = vand.u32 2147483647, %v12174_v21  ;;  %v541_v9 = vmul.f32 1.442695, %v526_v43  ;;  %vm587_vm6 = vcmp.ge.f32.partialorder %v12076_v37, 0.0 }
  0xac   :  { %11278 = vpow2.f32 %v537_v63  ;;  %v336_v28 = vmul.f32 0.3275911, %v12156_v12  ;;  %v516_v56 = vsub.f32 0.0, %v12156_v12  ;;  %v91_v63 = vld [vmem:[%s16703_s1 + $0x10] sm:$0xff]  ;;  %v12246_v46 = vand.u32 2147483647, %v12224_v52  ;;  %725 = vmatpush.msrb.mxu1 %v125_v15 }
  0xad   :  { %v289_v34 = vpop.f32.mrf.mxu2  ;;  %v337_v51 = vmul.f32 0.3275911, %v12190_v33  ;;  %11280 = vrcp.f32 %v12187_v32  ;;  %v517_v6 = vsub.f32 0.0, %v12190_v33  ;;  %669 = vmatpush.msra.mxu3 %v91_v63  ;;  %vm588_vm7 = vcmp.ge.f32.partialorder %v12128_v0, 0.0 }
  0xae   :  { %v11271_v23 = vpop.eup %11270  ;;  %v12206_v44 = vadd.f32 1.0, %v336_v28  ;;  %v12230_v58 = vadd.f32 %v289_v34, %v191_v2  ;;  %v107_v2 = vld [vmem:[%s16703_s1 + $0x90] sm:$0xff]  ;;  %v234_v10 = vpop.f32.mrf.mxu0  ;;  %v338_v24 = vmul.f32 0.3275911, %v12246_v46  ;;  %v528_v11 = vmul.f32 %v516_v56, %v12156_v12  ;;  %v89_v34 = vld [vmem:[%s16703_s1] sm:$0xff]  ;;  %726 = vmatpush.msrb.mxu1 %v124_v47 }
  0xaf   :  { %v12184_v30 = vpop.eup %11272  ;;  %v369_v31 = vmul.f32 %v11271_v23, %v12078_v40  ;;  %v12203_v40 = vmul.f32 %v12168_v18, %v12047_v25  ;;  %v108_v25 = vld [vmem:[%s16703_s1 + $0x98] sm:$0xff]  ;;  %670 = vmatpush.msra.mxu3 %v90_v16  ;;  %v263_v12 = vpop.f32.mrf.mxu1  ;;  %vm589_vm8 = vcmp.ge.f32.partialorder %v12174_v21, 0.0  ;;  %vm590_vm9 = vcmp.ge.f32.partialorder %v12224_v52, 0.0 }
  0xb0   :  { %v12217_v48 = vpop.eup %11274  ;;  %v368_v53 = vmul.f32 %v12184_v30, %v12072_v35  ;;  %697 = vmatpush.msrb.mxu0 %v108_v25  ;;  %v12243_v35 = vadd.f32 1.0, %v337_v51  ;;  %11282 = vrcp.f32 %v12206_v44  ;;  %v350_v43 = vadd.f32 1.0, %v338_v24 }
  0xb1   :  { %v381_v50 = vsub.f32 2.0, %v369_v31  ;;  %v12238_v1 = vpop.eup %11276  ;;  %v370_v5 = vmul.f32 %v12217_v48, %v12092_v45  ;;  %v106_v45 = vld [vmem:[%s16703_s1 + $0x88] sm:$0xff]  ;;  %v379_v17 = vsub.f32 2.0, %v12203_v40  ;;  %v12272_v31 = vmul.f32 0.70710677, %v12230_v58  ;;  %671 = vmatpush.msra.mxu3 %v89_v34 }
  0xb2   :  { %v12251_v4 = vpop.eup %11278  ;;  %698 = vmatpush.msrb.mxu0 %v107_v2  ;;  %11284 = vrcp.f32 %v12243_v35  ;;  %v380_v28 = vsub.f32 2.0, %v368_v53  ;;  %v543_v40 = vmul.f32 1.442695, %v527_v55  ;;  %v529_v25 = vmul.f32 %v517_v6, %v12190_v33 }
  0xb3   :  { %v12240_v57 = vmul.f32 %v11271_v23, %v381_v50  ;;  %11286 = vpow2.f32 %v539_v42  ;;  %v12282_v42 = vadd.f32 %v234_v10, %v192_v3  ;;  %v382_v27 = vsub.f32 2.0, %v370_v5  ;;  %v11281_v51 = vpop.eup %11280 }
  0xb4   :  { %699 = vmatpush.msrb.mxu0 %v106_v45  ;;  %11288 = vpow2.f32 %v541_v9  ;;  %v327_v50 = vand.u32 2147483647, %v12272_v31  ;;  %v12290_v53 = vmul.f32 %v12168_v18, %v379_v17  ;;  %v518_v55 = vsub.f32 0.0, %v12246_v46 }
  0xb5   :  { %v405_v23 = vmul.f32 1.0614054, %v12240_v57  ;;  %16721 = vst [vmem:[#allocation8_spill] sm:$0xff] %v12282_v42  ;;  %11290 = vrcp.f32 %v350_v43  ;;  %v12295_v41 = vmul.f32 %v12184_v30, %v380_v28  ;;  %v545_v63 = vmul.f32 1.442695, %v528_v11  ;;  %v292_v10 = vpop.f32.mrf.mxu2 }
  0xb6   :  { %700 = vmatpush.msrb.mxu0 %v105_v36  ;;  %v11283_v56 = vpop.eup %11282  ;;  %v339_v33 = vmul.f32 0.3275911, %v327_v50  ;;  %v12299_v2 = vadd.f32 %v263_v12, %v193_v13  ;;  %11292 = vpow2.f32 %v543_v40  ;;  %v519_v18 = vsub.f32 0.0, %v327_v50 }
  0xb7   :  { %v417_v38 = vadd.f32 -1.4531521, %v405_v23  ;;  %v12302_v6 = vmul.f32 0.70710677, %v12282_v42  ;;  %v12305_v16 = vmul.f32 %v12217_v48, %v382_v27  ;;  %v371_v30 = vmul.f32 %v11281_v51, %v12187_v32 }
  0xb8   :  { %16722 = vst [vmem:[#allocation9_spill] sm:$0xff] %v12299_v2  ;;  %v11285_v5 = vpop.eup %11284  ;;  %v547_v45 = vmul.f32 1.442695, %v529_v25  ;;  %v351_v17 = vadd.f32 1.0, %v339_v33  ;;  %v372_v13 = vmul.f32 %v11283_v56, %v12206_v44  ;;  %v530_v23 = vmul.f32 %v518_v55, %v12246_v46 }
  0xb9   :  { %v429_v3 = vmul.f32 %v417_v38, %v12240_v57  ;;  %v11287_v15 = vpop.eup %11286  ;;  %v328_v24 = vand.u32 2147483647, %v12302_v6  ;;  %v373_v11 = vmul.f32 %v11285_v5, %v12243_v35  ;;  %v12316_v48 = vmul.f32 0.70710677, %v12299_v2 }
  0xba   :  { %v12312_v28 = vpop.eup %11288  ;;  %11294 = vrcp.f32 %v351_v17  ;;  %v12320_v32 = vadd.f32 %v292_v10, %v194_v29  ;;  %v531_v44 = vmul.f32 %v519_v18, %v327_v50  ;;  %v383_v46 = vsub.f32 2.0, %v371_v30 }
  0xbb   :  { %v441_v9 = vadd.f32 1.4214138, %v429_v3  ;;  %16723 = vst [vmem:[#allocation10_spill] sm:$0xff] %v12316_v48  ;;  %v11291_v34 = vpop.eup %11290  ;;  %11296 = vpow2.f32 %v545_v63  ;;  %v340_v38 = vmul.f32 0.3275911, %v328_v24  ;;  %v520_v40 = vsub.f32 0.0, %v328_v24 }
  0xbc   :  { %16724 = vst [vmem:[#allocation11_spill] sm:$0xff] %v12320_v32  ;;  %11298 = vpow2.f32 %v547_v45  ;;  %v12323_v12 = vand.u32 2147483647, %v12316_v48  ;;  %v12325_v35 = vpop.eup %11292  ;;  %v374_v27 = vmul.f32 %v11291_v34, %v350_v43  ;;  %v549_v25 = vmul.f32 1.442695, %v530_v23 }
  0xbd   :  { %v453_v49 = vmul.f32 %v441_v9, %v12240_v57  ;;  %v352_v8 = vadd.f32 1.0, %v340_v38  ;;  %v384_v29 = vsub.f32 2.0, %v372_v13  ;;  %v385_v3 = vsub.f32 2.0, %v373_v11  ;;  %v122_v13 = vld [vmem:[%s16703_s1 + $0x108] sm:$0xff] }
  0xbe   :  { %v341_v55 = vmul.f32 0.3275911, %v12323_v12  ;;  %v12330_v50 = vmul.f32 0.70710677, %v12320_v32  ;;  %v551_v33 = vmul.f32 1.442695, %v531_v44  ;;  %v12334_v10 = vmul.f32 %v11281_v51, %v383_v46 }
  0xbf   :  { %v465_v36 = vadd.f32 -0.28449672, %v453_v49  ;;  %11300 = vrcp.f32 %v352_v8  ;;  %v403_v9 = vmul.f32 1.0614054, %v12290_v53  ;;  %v532_v43 = vmul.f32 %v520_v40, %v328_v24  ;;  %v123_v49 = vld [vmem:[%s16703_s1 + $0x110] sm:$0xff]  ;;  %v121_v40 = vld [vmem:[%s16703_s1 + $0x100] sm:$0xff] }
  0xc0   :  { %16725 = vst [vmem:[#allocation12_spill] sm:$0xff] %v12330_v50  ;;  %v11295_v18 = vpop.eup %11294  ;;  %v353_v30 = vadd.f32 1.0, %v341_v55  ;;  %v12337_v45 = vand.u32 2147483647, %v12330_v50  ;;  %11302 = vpow2.f32 %v549_v25  ;;  %727 = vmatpush.msrb.mxu1 %v123_v49  ;;  %v12350_v44 = vmul.f32 %v11283_v56, %v384_v29 }
  0xc1   :  { %v477_v47 = vmul.f32 %v465_v36, %v12240_v57  ;;  %v12345_v23 = vpop.eup %11296  ;;  %v386_v36 = vsub.f32 2.0, %v374_v27  ;;  %v375_v51 = vmul.f32 %v11295_v18, %v351_v17  ;;  %v12352_v38 = vmul.f32 %v11285_v5, %v385_v3 }
  0xc2   :  { %v12348_v24 = vpop.eup %11298  ;;  %11304 = vrcp.f32 %v353_v30  ;;  %v342_v46 = vmul.f32 0.3275911, %v12337_v45  ;;  %v404_v27 = vmul.f32 1.0614054, %v12295_v41  ;;  %728 = vmatpush.msrb.mxu1 %v122_v13  ;;  %v12359_v25 = vmul.f32 1.442695, %v532_v43 }
  0xc3   :  { %v489_v63 = vadd.f32 0.2548296, %v477_v47  ;;  %11306 = vpow2.f32 %v551_v33  ;;  %v387_v17 = vsub.f32 2.0, %v375_v51  ;;  %v12362_v55 = vmul.f32 %v11291_v34, %v386_v36 }
  0xc4   :  { %v354_v5 = vadd.f32 1.0, %v342_v46  ;;  %v416_v49 = vadd.f32 -1.4531521, %v404_v27  ;;  %729 = vmatpush.msrb.mxu1 %v121_v40  ;;  %v406_v33 = vmul.f32 1.0614054, %v12305_v16  ;;  %v302_v21 = vmul.f32 0.5, %v12176_v22 }
  0xc5   :  { %v501_v11 = vmul.f32 %v489_v63, %v12240_v57  ;;  %v415_v57 = vadd.f32 -1.4531521, %v403_v9  ;;  %v11301_v29 = vpop.eup %11300  ;;  %v407_v51 = vmul.f32 1.0614054, %v12334_v10  ;;  %v12370_v34 = vmul.f32 %v11295_v18, %v387_v17 }
  0xc6   :  { %11308 = vrcp.f32 %v354_v5  ;;  %v12366_v9 = vpop.eup %11302  ;;  %v408_v40 = vmul.f32 1.0614054, %v12350_v44  ;;  %vm591_vm10 = vcmp.ge.f32.partialorder %v12272_v31, 0.0  ;;  %vm592_vm11 = vcmp.ge.f32.partialorder %v12302_v6, 0.0 }
  0xc7   :  { %v561_v47 = vmul.f32 %v11287_v15, %v501_v11  ;;  %v427_v63 = vmul.f32 %v415_v57, %v12290_v53  ;;  %v376_v15 = vmul.f32 %v11301_v29, %v352_v8  ;;  %v428_v11 = vmul.f32 %v416_v49, %v12295_v41 }
  0xc8   :  { %v11305_v46 = vpop.eup %11304  ;;  %v419_v18 = vadd.f32 -1.4531521, %v407_v51  ;;  %v420_v50 = vadd.f32 -1.4531521, %v408_v40  ;;  %v410_v40 = vmul.f32 1.0614054, %v12362_v55  ;;  %11310 = vpow2.f32 %v12359_v25 }
  0xc9   :  { %v573_v3 = vsub.f32 1.0, %v561_v47  ;;  %v439_v13 = vadd.f32 1.4214138, %v427_v63  ;;  %v388_v36 = vsub.f32 2.0, %v376_v15  ;;  %v418_v47 = vadd.f32 -1.4531521, %v406_v33  ;;  %v12373_v8 = vpop.eup %11306 }
  0xca   :  { %v377_v27 = vmul.f32 %v11305_v46, %v353_v30  ;;  %v440_v63 = vadd.f32 1.4214138, %v428_v11  ;;  %v431_v30 = vmul.f32 %v419_v18, %v12334_v10  ;;  %v422_v18 = vadd.f32 -1.4531521, %v410_v40 }
  0xcb   :  { %v597_v43 = vsub.f32 0.0, %v573_v3  ;;  %v451_v56 = vmul.f32 %v439_v13, %v12290_v53  ;;  %v12378_v49 = vmul.f32 %v11301_v29, %v388_v36  ;;  %v430_v2 = vmul.f32 %v418_v47, %v12305_v16 }
  0xcc   :  { %v389_v17 = vsub.f32 2.0, %v377_v27  ;;  %v452_v33 = vmul.f32 %v440_v63, %v12295_v41  ;;  %v11309_v48 = vpop.eup %11308  ;;  %v443_v51 = vadd.f32 1.4214138, %v431_v30  ;;  %v432_v36 = vmul.f32 %v420_v50, %v12350_v44 }
  0xcd   :  { %v609_v57 = vsel %vm585_vm1, %v573_v3, %v597_v43  ;;  %v463_v15 = vadd.f32 -0.28449672, %v451_v56  ;;  %v442_v14 = vadd.f32 1.4214138, %v430_v2  ;;  %v409_v3 = vmul.f32 1.0614054, %v12352_v38 }
  0xce   :  { %v621_v32 = vadd.f32 1.0, %v609_v57  ;;  %v12385_v43 = vmul.f32 %v11305_v46, %v389_v17  ;;  %v378_v29 = vmul.f32 %v11309_v48, %v354_v5  ;;  %v464_v11 = vadd.f32 -0.28449672, %v452_v33 }
  0xcf   :  { %v475_v13 = vmul.f32 %v463_v15, %v12290_v53  ;;  %v454_v56 = vmul.f32 %v442_v14, %v12305_v16  ;;  %v421_v47 = vadd.f32 -1.4531521, %v409_v3  ;;  %v455_v46 = vmul.f32 %v443_v51, %v12334_v10 }
  0xd0   :  { %v633_v42 = vmul.f32 %v621_v32, %v12139_v54  ;;  %v390_v54 = vsub.f32 2.0, %v378_v29  ;;  %v476_v32 = vmul.f32 %v464_v11, %v12295_v41  ;;  %v444_v57 = vadd.f32 1.4214138, %v432_v36 }
  0xd1   :  { %v487_v2 = vadd.f32 0.2548296, %v475_v13  ;;  %v466_v5 = vadd.f32 -0.28449672, %v454_v56  ;;  %v467_v15 = vadd.f32 -0.28449672, %v455_v46  ;;  %v434_v29 = vmul.f32 %v422_v18, %v12362_v55 }
  0xd2   :  { %8335 = vmatmul.msk.f32.vlgmr.msrb.gmra.mxu1 %vm643_vm2, %v633_v42  ;;  %v433_v42 = vmul.f32 %v421_v47, %v12352_v38  ;;  %v12396_v27 = vmul.f32 %v11309_v48, %v390_v54  ;;  %v488_v50 = vadd.f32 0.2548296, %v476_v32  ;;  %v456_v33 = vmul.f32 %v444_v57, %v12350_v44 }
  0xd3   :  { %v499_v63 = vmul.f32 %v487_v2, %v12290_v53  ;;  %v478_v17 = vmul.f32 %v466_v5, %v12305_v16  ;;  %v411_v48 = vmul.f32 1.0614054, %v12370_v34  ;;  %v479_v53 = vmul.f32 %v467_v15, %v12334_v10 }
  0xd4   :  { %v445_v14 = vadd.f32 1.4214138, %v433_v42  ;;  %v500_v3 = vmul.f32 %v488_v50, %v12295_v41  ;;  %v468_v11 = vadd.f32 -0.28449672, %v456_v33  ;;  %v446_v47 = vadd.f32 1.4214138, %v434_v29 }
  0xd5   :  { %v559_v30 = vmul.f32 %v12238_v1, %v499_v63  ;;  %v490_v13 = vadd.f32 0.2548296, %v478_v17  ;;  %v423_v54 = vadd.f32 -1.4531521, %v411_v48  ;;  %v491_v41 = vadd.f32 0.2548296, %v479_v53 }
  0xd6   :  { %v457_v56 = vmul.f32 %v445_v14, %v12352_v38  ;;  %v560_v36 = vmul.f32 %v12251_v4, %v500_v3  ;;  %v480_v2 = vmul.f32 %v468_v11, %v12350_v44  ;;  %v458_v46 = vmul.f32 %v446_v47, %v12362_v55 }
  0xd7   :  { %v571_v51 = vsub.f32 1.0, %v559_v30  ;;  %v502_v1 = vmul.f32 %v490_v13, %v12305_v16  ;;  %v435_v57 = vmul.f32 %v423_v54, %v12370_v34  ;;  %v503_v4 = vmul.f32 %v491_v41, %v12334_v10 }
  0xd8   :  { %v469_v32 = vadd.f32 -0.28449672, %v457_v56  ;;  %v572_v5 = vsub.f32 1.0, %v560_v36  ;;  %v492_v63 = vadd.f32 0.2548296, %v480_v2  ;;  %v303_v25 = vmul.f32 0.5, %v12230_v58 }
  0xd9   :  { %v595_v40 = vsub.f32 0.0, %v571_v51  ;;  %v562_v42 = vmul.f32 %v12312_v28, %v502_v1  ;;  %v470_v17 = vadd.f32 -0.28449672, %v458_v46  ;;  %v447_v15 = vadd.f32 1.4214138, %v435_v57 }
  0xda   :  { %v481_v50 = vmul.f32 %v469_v32, %v12352_v38  ;;  %v596_v18 = vsub.f32 0.0, %v572_v5  ;;  %v563_v30 = vmul.f32 %v12325_v35, %v503_v4  ;;  %v504_v3 = vmul.f32 %v492_v63, %v12350_v44 }
  0xdb   :  { %v607_v16 = vsel %vm583_vm3, %v571_v51, %v595_v40  ;;  %v574_v14 = vsub.f32 1.0, %v562_v42  ;;  %v482_v29 = vmul.f32 %v470_v17, %v12362_v55  ;;  %v459_v59 = vmul.f32 %v447_v15, %v12370_v34 }
  0xdc   :  { %v619_v33 = vadd.f32 1.0, %v607_v16  ;;  %v608_v28 = vsel %vm584_vm4, %v572_v5, %v596_v18  ;;  %v493_v10 = vadd.f32 0.2548296, %v481_v50  ;;  %v575_v11 = vsub.f32 1.0, %v563_v30 }
  0xdd   :  { %v620_v13 = vadd.f32 1.0, %v608_v28  ;;  %v598_v53 = vsub.f32 0.0, %v574_v14  ;;  %v564_v56 = vmul.f32 %v12345_v23, %v504_v3  ;;  %v494_v44 = vadd.f32 0.2548296, %v482_v29 }
  0xde   :  { %v631_v48 = vmul.f32 %v619_v33, %v12125_v62  ;;  %v505_v35 = vmul.f32 %v493_v10, %v12352_v38  ;;  %v471_v51 = vadd.f32 -0.28449672, %v459_v59  ;;  %v599_v47 = vsub.f32 0.0, %v575_v11 }
  0xdf   :  { %v632_v60 = vmul.f32 %v620_v13, %v12121_v61  ;;  %v610_v36 = vsel %vm586_vm5, %v574_v14, %v598_v53  ;;  %v412_v54 = vmul.f32 1.0614054, %v12378_v49  ;;  %v576_v1 = vsub.f32 1.0, %v564_v56 }
  0xe0   :  { %672 = vmatmul.f32.vlgmr.msra.gmra.mxu3 %v631_v48  ;;  %v622_v62 = vadd.f32 1.0, %v610_v36  ;;  %v565_v41 = vmul.f32 %v12348_v24, %v505_v35  ;;  %v506_v23 = vmul.f32 %v494_v44, %v12362_v55  ;;  %v522_v38 = vsub.f32 0.0, %v12337_v45 }
  0xe1   :  { %701 = vmatmul.f32.vlgmr.msrb.gmra.mxu0 %v632_v60  ;;  %v611_v61 = vsel %vm587_vm6, %v575_v11, %v599_v47  ;;  %v483_v20 = vmul.f32 %v471_v51, %v12370_v34  ;;  %v424_v2 = vadd.f32 -1.4531521, %v412_v54  ;;  %v600_v5 = vsub.f32 0.0, %v576_v1 }
  0xe2   :  { %v634_v32 = vmul.f32 %v622_v62, %v12171_v19  ;;  %v623_v40 = vadd.f32 1.0, %v611_v61  ;;  %v577_v46 = vsub.f32 1.0, %v565_v41  ;;  %v566_v57 = vmul.f32 %v12366_v9, %v506_v23 }
  0xe3   :  { %v495_v42 = vadd.f32 0.2548296, %v483_v20  ;;  %v436_v24 = vmul.f32 %v424_v2, %v12378_v49  ;;  %v413_v55 = vmul.f32 1.0614054, %v12385_v43  ;;  %v612_v37 = vsel %vm588_vm7, %v576_v1, %v600_v5  ;;  %v11311_v1 = vpop.eup %11310 }
  0xe4   :  { %v635_v4 = vmul.f32 %v623_v40, %v12199_v39  ;;  %v601_v63 = vsub.f32 0.0, %v577_v46  ;;  %v414_v50 = vmul.f32 1.0614054, %v12396_v27  ;;  %v624_v16 = vadd.f32 1.0, %v612_v37 }
  0xe5   :  { %v578_v19 = vsub.f32 1.0, %v566_v57  ;;  %v507_v18 = vmul.f32 %v495_v42, %v12370_v34  ;;  %v448_v17 = vadd.f32 1.4214138, %v436_v24  ;;  %v16726_v9 = vsub.f32 0.0, %v12323_v12 }
  0xe6   :  { %v613_v33 = vsel %vm589_vm8, %v577_v46, %v601_v63  ;;  %v425_v14 = vadd.f32 -1.4531521, %v413_v55  ;;  %v426_v39 = vadd.f32 -1.4531521, %v414_v50  ;;  %v636_v0 = vmul.f32 %v624_v16, %v12220_v26 }
  0xe7   :  { %v533_v15 = vmul.f32 %v16726_v9, %v12323_v12  ;;  %v625_v30 = vadd.f32 1.0, %v613_v33  ;;  %v602_v3 = vsub.f32 0.0, %v578_v19  ;;  %v567_v28 = vmul.f32 %v12373_v8, %v507_v18  ;;  %v16730_v9 = vld [vmem:[#allocation9_spill] sm:$0xff] }
  0xe8   :  { %675 = vmatmul.f32.gmra.mxu3 %v634_v32  ;;  %v534_v10 = vmul.f32 %v522_v38, %v12337_v45  ;;  %v460_v34 = vmul.f32 %v448_v17, %v12378_v49  ;;  %v437_v29 = vmul.f32 %v425_v14, %v12385_v43  ;;  %v438_v12 = vmul.f32 %v426_v39, %v12396_v27  ;;  %v16729_v17 = vld [vmem:[#allocation12_spill] sm:$0xff]  ;;  %v16731_v14 = vld [vmem:[#allocation11_spill] sm:$0xff] }
  0xe9   :  { %704 = vmatmul.f32.gmra.mxu0 %v635_v4  ;;  %8336 = vmatmul.msk.f32.gmra.mxu1 %vm643_vm2, %v636_v0  ;;  %v301_v59 = vmul.f32 0.5, %v12143_v7  ;;  %v614_v26 = vsel %vm590_vm9, %v578_v19, %v602_v3  ;;  %v579_v48 = vsub.f32 1.0, %v567_v28  ;;  %v555_v53 = vmul.f32 1.442695, %v533_v15  ;;  %v16727_v4 = vld [vmem:[#allocation8_spill] sm:$0xff]  ;;  %v16728_v19 = vld [vmem:[#allocation10_spill] sm:$0xff] }
  0xea   :  { %v626_v45 = vadd.f32 1.0, %v614_v26  ;;  %v472_v8 = vadd.f32 -0.28449672, %v460_v34  ;;  %v449_v13 = vadd.f32 1.4214138, %v437_v29  ;;  %v304_v37 = vmul.f32 0.5, %v16727_v4 }
  0xeb   :  { %v637_v11 = vmul.f32 %v625_v30, %v301_v59  ;;  %v603_v56 = vsub.f32 0.0, %v579_v48  ;;  %v450_v35 = vadd.f32 1.4214138, %v438_v12  ;;  %v557_v22 = vmul.f32 1.442695, %v534_v10  ;;  %v777_v59 = vld [vmem:[%s16707_s5 + $0x10] sm:$0xff] }
  0xec   :  { %v484_v44 = vmul.f32 %v472_v8, %v12378_v49  ;;  %v461_v7 = vmul.f32 %v449_v13, %v12385_v43  ;;  %v638_v51 = vmul.f32 %v626_v45, %v302_v21  ;;  %11312 = vpow2.f32 %v555_v53  ;;  %v778_v21 = vld [vmem:[%s16707_s5 + $0x18] sm:$0xff]  ;;  %v776_v26 = vld [vmem:[%s16707_s5 + $0x8] sm:$0xff]  ;;  %v775_v45 = vld [vmem:[%s16707_s5] sm:$0xff] }
  0xed   :  { %v615_v52 = vsel %vm591_vm10, %v579_v48, %v603_v56  ;;  %v462_v60 = vmul.f32 %v450_v35, %v12396_v27  ;;  %11314 = vpow2.f32 %v557_v22  ;;  %vm593_vm12 = vcmp.ge.f32.partialorder %v16728_v19, 0.0  ;;  %798 = vmatpush.msrb.mxu2 %v778_v21  ;;  %v8416_v4 = vld [vmem:[#allocation2 + $0xa8] sm:$0xf0]  ;;  %v8382_v19 = vld [vmem:[#allocation2 + $0x48] sm:$0xf] }
  0xee   :  { %v627_v36 = vadd.f32 1.0, %v615_v52  ;;  %v496_v47 = vadd.f32 0.2548296, %v484_v44  ;;  %v473_v54 = vadd.f32 -0.28449672, %v461_v7  ;;  %vm594_vm13 = vcmp.ge.f32.partialorder %v16729_v17, 0.0 }
  0xef   :  { %v474_v62 = vadd.f32 -0.28449672, %v462_v60  ;;  %v305_v15 = vmul.f32 0.5, %v16730_v9  ;;  %v306_v39 = vmul.f32 0.5, %v16731_v14  ;;  %799 = vmatpush.msrb.mxu2 %v777_v59  ;;  %v10753_v9 = vld [vmem:[#allocation2 + $0x4c] sm:$0xf] }
  0xf0   :  { %678 = vmatmul.f32.gmra.mxu3 %v637_v11  ;;  %v639_v31 = vmul.f32 %v627_v36, %v303_v25  ;;  %v508_v41 = vmul.f32 %v496_v47, %v12378_v49  ;;  %v485_v23 = vmul.f32 %v473_v54, %v12385_v43  ;;  %v10768_v47 = vld [vmem:[#allocation2 + $0xc4] sm:$0xf]  ;;  %v10745_v21 = vld [vmem:[#allocation2 + $0xc] sm:$0xf] }
  0xf1   :  { %707 = vmatmul.f32.gmra.mxu0 %v638_v51  ;;  %v486_v38 = vmul.f32 %v474_v62, %v12396_v27  ;;  %800 = vmatpush.msrb.mxu2 %v776_v26  ;;  %v8440_v54 = vld [vmem:[#allocation2 + $0xe0] sm:$0xf0]  ;;  %v8446_v62 = vld [vmem:[#allocation2 + $0xc8] sm:$0xf]  ;;  %v8352_v59 = vld [vmem:[#allocation2 + $0x28] sm:$0xf0] }
  0xf2   :  { %8337 = vmatmul.msk.f32.gmra.mxu1 %vm643_vm2, %v639_v31  ;;  %v568_v61 = vmul.f32 %v11311_v1, %v508_v41  ;;  %v497_v58 = vadd.f32 0.2548296, %v485_v23  ;;  %v11313_v40 = vpop.eup %11312  ;;  %v8443_v1 = vor.u32 %v10768_v47, %v8440_v54  ;;  %v10773_v31 = vld [vmem:[#allocation2 + $0xe4] sm:$0xf0]  ;;  %v10760_v41 = vld [vmem:[#allocation2 + $0x84] sm:$0xf] }
  0xf3   :  { %v498_v20 = vadd.f32 0.2548296, %v486_v38  ;;  %v11315_v46 = vpop.eup %11314  ;;  %801 = vmatpush.msrb.mxu2 %v775_v45  ;;  %v8408_v23 = vld [vmem:[#allocation2 + $0xa0] sm:$0xf0]  ;;  %v8447_v38 = vor.u32 %v10773_v31, %v8446_v62  ;;  %v8454_v45 = vld [vmem:[#allocation2 + $0xd0] sm:$0xf] }
  0xf4   :  { %v580_v2 = vsub.f32 1.0, %v568_v61  ;;  %v509_v32 = vmul.f32 %v497_v58, %v12385_v43  ;;  %v10769_v61 = vld [vmem:[#allocation2 + $0xcc] sm:$0xf]  ;;  %1038 = vmatpush.bf16.msrb.mxu3 %v8443_v1  ;;  %v8344_v14 = vld [vmem:[#allocation2 + $0x20] sm:$0xf0] }
  0xf5   :  { %v510_v5 = vmul.f32 %v498_v20, %v12396_v27  ;;  %v8448_v58 = vld [vmem:[#allocation2 + $0xe8] sm:$0xf0]  ;;  %v8414_v20 = vld [vmem:[#allocation2 + $0x88] sm:$0xf]  ;;  %1051 = vmatpush.bf16.msra.mxu0 %v8447_v38  ;;  %v8424_v47 = vld [vmem:[#allocation2 + $0xb0] sm:$0xf0] }
  0xf6   :  { %v604_v57 = vsub.f32 0.0, %v580_v2  ;;  %v569_v42 = vmul.f32 %v11313_v40, %v509_v32  ;;  %v8451_v32 = vor.u32 %v10769_v61, %v8448_v58  ;;  %v10765_v40 = vld [vmem:[#allocation2 + $0xa4] sm:$0xf0]  ;;  %v8430_v1 = vld [vmem:[#allocation2 + $0x98] sm:$0xf] }
  0xf7   :  { %v570_v49 = vmul.f32 %v11315_v46, %v510_v5  ;;  %v8438_v5 = vld [vmem:[#allocation2 + $0xc0] sm:$0xf]  ;;  %v10767_v31 = vld [vmem:[#allocation2 + $0xb4] sm:$0xf0]  ;;  %v8432_v38 = vld [vmem:[#allocation2 + $0xb8] sm:$0xf0] }
  0xf8   :  { %v616_v24 = vsel %vm592_vm11, %v580_v2, %v604_v57  ;;  %v581_v55 = vsub.f32 1.0, %v569_v42  ;;  %v8411_v2 = vor.u32 %v10760_v41, %v8408_v23  ;;  %v10772_v46 = vld [vmem:[#allocation2 + $0xdc] sm:$0xf0]  ;;  %v8415_v57 = vor.u32 %v10765_v40, %v8414_v20  ;;  %1064 = vmatpush.bf16.msra.mxu1 %v8451_v32  ;;  %v10763_v41 = vld [vmem:[#allocation2 + $0x9c] sm:$0xf] }
  0xf9   :  { %v628_v63 = vadd.f32 1.0, %v616_v24  ;;  %v582_v50 = vsub.f32 1.0, %v570_v49  ;;  %v8439_v42 = vor.u32 %v10772_v46, %v8438_v5  ;;  %v10752_v49 = vld [vmem:[#allocation2 + $0x44] sm:$0xf]  ;;  %v8431_v23 = vor.u32 %v10767_v31, %v8430_v1  ;;  %v8390_v61 = vld [vmem:[#allocation2 + $0x50] sm:$0xf] }
  0xfa   :  { %v605_v16 = vsub.f32 0.0, %v581_v55  ;;  %v8376_v24 = vld [vmem:[#allocation2 + $0x60] sm:$0xf0]  ;;  %1039 = vmatpush.bf16.msrb.mxu3 %v8411_v2  ;;  %1052 = vmatpush.bf16.msra.mxu0 %v8415_v57  ;;  %v10758_v58 = vld [vmem:[#allocation2 + $0x6c] sm:$0xf0]  ;;  %v8435_v20 = vor.u32 %v10763_v41, %v8432_v38 }
  0xfb   :  { %v640_v18 = vmul.f32 %v628_v63, %v304_v37  ;;  %v606_v43 = vsub.f32 0.0, %v582_v50  ;;  %v8406_v37 = vld [vmem:[#allocation2 + $0x80] sm:$0xf]  ;;  %1025 = vmatpush.bf16.msra.mxu2 %v8439_v42  ;;  %v8379_v17 = vor.u32 %v10752_v49, %v8376_v24  ;;  %v10754_v2 = vld [vmem:[#allocation2 + $0x54] sm:$0xf]  ;;  %v8391_v5 = vor.u32 %v10758_v58, %v8390_v61 }
  0xfc   :  { %v617_v27 = vsel %vm593_vm12, %v581_v55, %v605_v16  ;;  %v10761_v55 = vld [vmem:[#allocation2 + $0x8c] sm:$0xf]  ;;  %v10764_v63 = vld [vmem:[#allocation2 + $0x9c] sm:$0xf0]  ;;  %v8392_v32 = vld [vmem:[#allocation2 + $0x70] sm:$0xf0] }
  0xfd   :  { %681 = vmatmul.f32.gmra.mxu3 %v640_v18  ;;  %v629_v33 = vadd.f32 1.0, %v617_v27  ;;  %v618_v6 = vsel %vm594_vm13, %v582_v50, %v606_v43  ;;  %v8419_v50 = vor.u32 %v10761_v55, %v8416_v4  ;;  %v8407_v16 = vor.u32 %v10764_v63, %v8406_v37  ;;  %v10757_v18 = vld [vmem:[#allocation2 + $0x64] sm:$0xf0]  ;;  %v8374_v43 = vld [vmem:[#allocation2 + $0x40] sm:$0xf] }
  0xfe   :  { %v630_v0 = vadd.f32 1.0, %v618_v6  ;;  %v10756_v27 = vld [vmem:[#allocation2 + $0x5c] sm:$0xf0]  ;;  %v10744_v6 = vld [vmem:[#allocation2 + $0x4] sm:$0xf]  ;;  %1040 = vmatpush.bf16.msrb.mxu3 %v8379_v17  ;;  %v8395_v49 = vor.u32 %v10754_v2, %v8392_v32 }
  0xff   :  { %v641_v30 = vmul.f32 %v629_v33, %v305_v15  ;;  %v8384_v15 = vld [vmem:[#allocation2 + $0x68] sm:$0xf0]  ;;  %v8383_v33 = vor.u32 %v10757_v18, %v8382_v19  ;;  %1065 = vmatpush.bf16.msra.mxu1 %v8419_v50  ;;  %1026 = vmatpush.bf16.msra.mxu2 %v8407_v16  ;;  %v8398_v40 = vld [vmem:[#allocation2 + $0x58] sm:$0xf]  ;;  %v10755_v57 = vld [vmem:[#allocation2 + $0x5c] sm:$0xf] }
 0x100   :  { %v642_v3 = vmul.f32 %v630_v0, %v306_v39  ;;  %v8387_v39 = vor.u32 %v10753_v9, %v8384_v15  ;;  %v8375_v0 = vor.u32 %v10756_v27, %v8374_v43  ;;  %v10759_v46 = vld [vmem:[#allocation2 + $0x74] sm:$0xf0]  ;;  %v8400_v42 = vld [vmem:[#allocation2 + $0x78] sm:$0xf0]  ;;  %v8358_v55 = vld [vmem:[#allocation2 + $0x10] sm:$0xf] }
 0x101   :  { %710 = vmatmul.f32.gmra.mxu0 %v641_v30  ;;  %v8347_v30 = vor.u32 %v10744_v6, %v8344_v14  ;;  %v8399_v24 = vor.u32 %v10759_v46, %v8398_v40  ;;  %v10750_v4 = vld [vmem:[#allocation2 + $0x2c] sm:$0xf0]  ;;  %v10746_v37 = vld [vmem:[#allocation2 + $0x14] sm:$0xf]  ;;  %v8403_v63 = vor.u32 %v10755_v57, %v8400_v42  ;;  %v8366_v16 = vld [vmem:[#allocation2 + $0x18] sm:$0xf] }
 0x102   :  { %8338 = vmatmul.msk.f32.gmra.mxu1 %vm643_vm2, %v642_v3  ;;  %1053 = vmatpush.bf16.msra.mxu0 %v8383_v33  ;;  %v8360_v50 = vld [vmem:[#allocation2 + $0x30] sm:$0xf0]  ;;  %v10751_v19 = vld [vmem:[#allocation2 + $0x34] sm:$0xf0]  ;;  %v10747_v18 = vld [vmem:[#allocation2 + $0x1c] sm:$0xf]  ;;  %v8359_v17 = vor.u32 %v10750_v4, %v8358_v55 }
 0x103   :  { %1066 = vmatpush.bf16.msra.mxu1 %v8387_v39  ;;  %1027 = vmatpush.bf16.msra.mxu2 %v8375_v0  ;;  %v8368_v43 = vld [vmem:[#allocation2 + $0x38] sm:$0xf0]  ;;  %v8363_v27 = vor.u32 %v10746_v37, %v8360_v50  ;;  %v8367_v9 = vor.u32 %v10751_v19, %v8366_v16  ;;  %v11263_v33 = vld [vmem:[%s16708_s6] ss:$0 sm:$0xff] }
 0x104   :  { %1041 = vmatpush.bf16.msrb.mxu3 %v8347_v30  ;;  %v8371_v15 = vor.u32 %v10747_v18, %v8368_v43  ;;  %v12513_v0 = vld [vmem:[%s16710_s8] sm:$0xff] }
 0x105   :  { %v843_v30 = vperm.slane %v12513_v0, 2  ;;  %v847_v31 = vperm.slane %v12513_v0, 6  ;;  %v848_v41 = vperm.slane %v12513_v0, 7  ;;  %v845_v43 = vperm.slane %v12513_v0, 4 }
 0x14f   :  { %v731_v10 = vpop.f32.mrf.mxu1 }
 0x15e   :  { %v702_v28 = vpop.f32.mrf.mxu0 }
 0x163   :  { %v673_v34 = vpop.f32.mrf.mxu3 }
 0x164   :  { %v703_v29 = vadd.f32 %v702_v28, %v673_v34  ;;  %v8342_v28 = vld [vmem:[#allocation2] sm:$0xf]  ;;  %v8350_v34 = vld [vmem:[#allocation2 + $0x8] sm:$0xf] }
 0x166   :  { %v732_v12 = vadd.f32 %v731_v10, %v703_v29  ;;  %v705_v48 = vpop.f32.mrf.mxu0  ;;  %v734_v13 = vpop.f32.mrf.mxu1  ;;  %v10748_v10 = vld [vmem:[#allocation2 + $0x1c] sm:$0xf0] }
 0x167   :  { %v8343_v29 = vor.u32 %v10748_v10, %v8342_v28 }
 0x168   :  { %743 = vxpose.xlu0.b32.start [1/4] (short) (narrow) %v732_v12, 8  ;;  %v10749_v12 = vld [vmem:[#allocation2 + $0x24] sm:$0xf0] }
 0x169   :  { %v8351_v26 = vor.u32 %v10749_v12, %v8350_v34  ;;  %1028 = vmatpush.bf16.msra.mxu2 %v8343_v29  ;;  %v841_v12 = vperm.slane %v12513_v0, 0 }
 0x16b   :  { %v676_v8 = vpop.f32.mrf.mxu3  ;;  %1054 = vmatpush.bf16.msra.mxu0 %v8351_v26 }
 0x16c   :  { %v706_v53 = vadd.f32 %v705_v48, %v676_v8  ;;  %v8355_v48 = vor.u32 %v10745_v21, %v8352_v59  ;;  %v10774_v8 = vld [vmem:[#allocation2 + $0xec] sm:$0xf0]  ;;  %v842_v21 = vperm.slane %v12513_v0, 1 }
 0x16e   :  { %v735_v11 = vadd.f32 %v734_v13, %v706_v53  ;;  %v708_v56 = vpop.f32.mrf.mxu0  ;;  %v10770_v13 = vld [vmem:[#allocation2 + $0xd4] sm:$0xf]  ;;  %1067 = vmatpush.bf16.msra.mxu1 %v8355_v48  ;;  %v8455_v53 = vor.u32 %v10774_v8, %v8454_v45 }
 0x16f   :  { %v737_v44 = vpop.f32.mrf.mxu1 }
 0x170   :  { %744 = vxpose.xlu0.b32.cont [2/4] (short) (narrow) %v735_v11, 8  ;;  %v8456_v11 = vld [vmem:[#allocation2 + $0xf0] sm:$0xf0] }
 0x173   :  { %v679_v35 = vpop.f32.mrf.mxu3 }
 0x174   :  { %v709_v22 = vadd.f32 %v708_v56, %v679_v35  ;;  %v8462_v56 = vld [vmem:[#allocation2 + $0xd8] sm:$0xf] }
 0x175   :  { %v10775_v35 = vld [vmem:[#allocation2 + $0xf4] sm:$0xf0] }
 0x176   :  { %v738_v7 = vadd.f32 %v737_v44, %v709_v22  ;;  %v8459_v22 = vor.u32 %v10770_v13, %v8456_v11  ;;  %v8463_v44 = vor.u32 %v10775_v35, %v8462_v56 }
 0x178   :  { %745 = vxpose.xlu0.b32.cont [3/4] (short) (narrow) %v738_v7, 8  ;;  %v10771_v7 = vld [vmem:[#allocation2 + $0xdc] sm:$0xf]  ;;  %1090 = vmatpush.bf16.msra.mxu3 %v8459_v22 }
 0x179   :  { %1103 = vmatpush.bf16.msrb.mxu0 %v8463_v44 }
 0x17d   :  { %1104 = vmatpush.bf16.msrb.mxu0 %v8431_v23 }
 0x17e   :  { %v711_v51 = vpop.f32.mrf.mxu0 }
 0x17f   :  { %v740_v25 = vpop.f32.mrf.mxu1 }
 0x180   :  { %v682_v52 = vpop.f32.mrf.mxu3 }
 0x181   :  { %v712_v60 = vadd.f32 %v711_v51, %v682_v52  ;;  %v8464_v51 = vld [vmem:[#allocation2 + $0xf8] sm:$0xf0]  ;;  %v8422_v52 = vld [vmem:[#allocation2 + $0x90] sm:$0xf]  ;;  %1105 = vmatpush.bf16.msrb.mxu0 %v8399_v24 }
 0x183   :  { %v741_v36 = vadd.f32 %v740_v25, %v712_v60  ;;  %v8467_v60 = vor.u32 %v10771_v7, %v8464_v51  ;;  %v10766_v25 = vld [vmem:[#allocation2 + $0xac] sm:$0xf0] }
 0x184   :  { %v8423_v54 = vor.u32 %v10766_v25, %v8422_v52 }
 0x185   :  { %746 = vxpose.xlu0.b32.end [4/4] (short) (narrow) %v741_v36, 8  ;;  %v10762_v36 = vld [vmem:[#allocation2 + $0x94] sm:$0xf]  ;;  %1116 = vmatpush.bf16.msrb.mxu1 %v8467_v60 }
 0x186   :  { %v8427_v62 = vor.u32 %v10762_v36, %v8424_v47  ;;  %1106 = vmatpush.bf16.msrb.mxu0 %v8367_v9 }
 0x188   :  { %1091 = vmatpush.bf16.msra.mxu3 %v8427_v62 }
 0x189   :  { %1117 = vmatpush.bf16.msrb.mxu1 %v8435_v20 }
 0x18c   :  { %1092 = vmatpush.bf16.msra.mxu3 %v8395_v49 }
 0x18d   :  { %1118 = vmatpush.bf16.msrb.mxu1 %v8403_v63 }
 0x190   :  { %1093 = vmatpush.bf16.msra.mxu3 %v8363_v27 }
 0x191   :  { %1119 = vmatpush.bf16.msrb.mxu1 %v8371_v15 }
 0x211   :  { %v759_v3 = vpop.trf.xlu0 }
 0x212   :  { %8339 = vmatmul.msk.f32.vlgmr.msrb.gmra.mxu2 %vm195_vm0, %v759_v3  ;;  %v844_v3 = vperm.slane %v12513_v0, 3 }
 0x213   :  { %1077 = vmatpush.bf16.msrb.mxu2 %v8455_v53 }
 0x217   :  { %1078 = vmatpush.bf16.msrb.mxu2 %v8423_v54 }
 0x21b   :  { %1079 = vmatpush.bf16.msrb.mxu2 %v8391_v5 }
 0x21f   :  { %1080 = vmatpush.bf16.msrb.mxu2 %v8359_v17  ;;  %v846_v17 = vperm.slane %v12513_v0, 5 }
 0x295   :  { %v803_v6 = vpop.f32.mrf.mxu2 }
 0x296   :  { %v804_v14 = vadd.f32 %v11263_v33, %v803_v6 }
 0x298   :  { %v806_v39 = vpack.c.bf16 %v804_v14, %v804_v14 }
 0x29a   :  { %8468 = vmatmul.msk.bf16.vlgmr.msra.gmra.mxu2 %vm1017_vm14, %v806_v39  ;;  %8469 = vmatmul.msk.bf16.vlgmr.msrb.gmra.mxu3 %vm1017_vm14, %v806_v39 }
 0x29b   :  { %8470 = vmatmul.msk.bf16.vlgmr.msra.gmra.mxu0 %vm1017_vm14, %v806_v39  ;;  %8471 = vmatmul.msk.bf16.vlgmr.msra.gmra.mxu1 %vm1017_vm14, %v806_v39 }
 0x2aa   :  { %8472 = vmatmul.msk.bf16.vlgmr.msrb.gmra.mxu2 %vm1017_vm14, %v806_v39  ;;  %8473 = vmatmul.msk.bf16.vlgmr.msra.gmra.mxu3 %vm1017_vm14, %v806_v39 }
 0x2ab   :  { %8474 = vmatmul.msk.bf16.vlgmr.msrb.gmra.mxu0 %vm1017_vm14, %v806_v39  ;;  %8475 = vmatmul.msk.bf16.vlgmr.msrb.gmra.mxu1 %vm1017_vm14, %v806_v39 }
 0x318   :  { %v1056_v28 = vpop.f32.mrf.mxu0  ;;  %v1069_v10 = vpop.f32.mrf.mxu1 }
 0x319   :  { %v1057_v34 = vadd.f32 %v1056_v28, %v843_v30  ;;  %v12517_v29 = vadd.f32 %v1069_v10, %v844_v3 }
 0x31b   :  { %v12521_v59 = vmul.f32 0.70710677, %v1057_v34  ;;  %v12524_v26 = vmul.f32 0.70710677, %v12517_v29  ;;  %v12561_v55 = vmul.f32 0.5, %v1057_v34 }
 0x31d   :  { %v1143_v48 = vand.u32 2147483647, %v12521_v59  ;;  %v12528_v45 = vand.u32 2147483647, %v12524_v26  ;;  %v1030_v8 = vpop.f32.mrf.mxu2  ;;  %v1043_v13 = vpop.f32.mrf.mxu3  ;;  %vm1319_vm15 = vcmp.ge.f32.partialorder %v12521_v59, 0.0  ;;  %vm1320_vm1 = vcmp.ge.f32.partialorder %v12524_v26, 0.0 }
 0x31e   :  { %v12530_v53 = vadd.f32 %v1030_v8, %v841_v12  ;;  %v12532_v11 = vadd.f32 %v1043_v13, %v842_v21 }
 0x31f   :  { %v1151_v56 = vmul.f32 0.3275911, %v1143_v48  ;;  %v1152_v35 = vmul.f32 0.3275911, %v12528_v45  ;;  %v1271_v49 = vsub.f32 0.0, %v1143_v48  ;;  %v1272_v15 = vsub.f32 0.0, %v12528_v45 }
 0x320   :  { %v12536_v22 = vmul.f32 0.70710677, %v12530_v53  ;;  %v12539_v44 = vmul.f32 0.70710677, %v12532_v11  ;;  %v1058_v7 = vpop.f32.mrf.mxu0  ;;  %v1071_v51 = vpop.f32.mrf.mxu1 }
 0x321   :  { %v1159_v52 = vadd.f32 1.0, %v1151_v56  ;;  %v1160_v60 = vadd.f32 1.0, %v1152_v35  ;;  %v1279_v39 = vmul.f32 %v1271_v49, %v1143_v48  ;;  %v1280_v51 = vmul.f32 %v1272_v15, %v12528_v45 }
 0x322   :  { %v12542_v25 = vand.u32 2147483647, %v12536_v22  ;;  %v12545_v36 = vand.u32 2147483647, %v12539_v44  ;;  %vm1317_vm3 = vcmp.ge.f32.partialorder %v12536_v22, 0.0  ;;  %vm1318_vm4 = vcmp.ge.f32.partialorder %v12539_v44, 0.0 }
 0x323   :  { %11316 = vrcp.f32 %v1159_v52 }
 0x324   :  { %11318 = vrcp.f32 %v1160_v60  ;;  %v1149_v47 = vmul.f32 0.3275911, %v12542_v25  ;;  %v1150_v54 = vmul.f32 0.3275911, %v12545_v36  ;;  %v1269_v0 = vsub.f32 0.0, %v12542_v25 }
 0x325   :  { %v1032_v62 = vpop.f32.mrf.mxu2  ;;  %v1045_v1 = vpop.f32.mrf.mxu3 }
 0x326   :  { %v1157_v23 = vadd.f32 1.0, %v1149_v47  ;;  %v1158_v38 = vadd.f32 1.0, %v1150_v54  ;;  %v1277_v1 = vmul.f32 %v1269_v0, %v12542_v25 }
 0x328   :  { %11320 = vrcp.f32 %v1157_v23  ;;  %v1108_v61 = vpop.f32.mrf.mxu0  ;;  %v1121_v58 = vpop.f32.mrf.mxu1 }
 0x329   :  { %v11317_v20 = vpop.eup %11316  ;;  %11322 = vrcp.f32 %v1158_v38  ;;  %v12551_v2 = vadd.f32 %v1108_v61, %v847_v31  ;;  %v12553_v32 = vadd.f32 %v1121_v58, %v848_v41  ;;  %v1270_v31 = vsub.f32 0.0, %v12545_v36 }
 0x32a   :  { %v11319_v40 = vpop.eup %11318  ;;  %v1175_v5 = vmul.f32 %v11317_v20, %v1159_v52 }
 0x32b   :  { %v1176_v46 = vmul.f32 %v11319_v40, %v1160_v60  ;;  %v12556_v57 = vmul.f32 0.70710677, %v12551_v2  ;;  %v12559_v24 = vmul.f32 0.70710677, %v12553_v32  ;;  %v1289_v60 = vmul.f32 1.442695, %v1279_v39 }
 0x32c   :  { %v1183_v42 = vsub.f32 2.0, %v1175_v5 }
 0x32d   :  { %v1184_v4 = vsub.f32 2.0, %v1176_v46  ;;  %v12564_v37 = vand.u32 2147483647, %v12556_v57  ;;  %v1082_v63 = vpop.f32.mrf.mxu2  ;;  %v1095_v50 = vpop.f32.mrf.mxu3  ;;  %v12569_v18 = vand.u32 2147483647, %v12559_v24  ;;  %vm1323_vm5 = vcmp.ge.f32.partialorder %v12556_v57, 0.0 }
 0x32e   :  { %v11321_v16 = vpop.eup %11320  ;;  %v12566_v19 = vmul.f32 %v11317_v20, %v1183_v42  ;;  %v12581_v35 = vadd.f32 %v1082_v63, %v845_v43  ;;  %v1291_v20 = vmul.f32 1.442695, %v1280_v51  ;;  %v12597_v5 = vadd.f32 %v1095_v50, %v846_v17  ;;  %v10782_v57 = vld [vmem:[%s16711_s9 + $0x2c] sm:$0xf0] }
 0x32f   :  { %v11323_v27 = vpop.eup %11322  ;;  %v12573_v9 = vmul.f32 %v11319_v40, %v1184_v4  ;;  %v1173_v33 = vmul.f32 %v11321_v16, %v1157_v23  ;;  %v1155_v6 = vmul.f32 0.3275911, %v12564_v37  ;;  %v1156_v3 = vmul.f32 0.3275911, %v12569_v18 }
 0x330   :  { %v1199_v14 = vmul.f32 1.0614054, %v12566_v19  ;;  %v1174_v30 = vmul.f32 %v11323_v27, %v1158_v38  ;;  %v1110_v28 = vpop.f32.mrf.mxu0  ;;  %v1123_v10 = vpop.f32.mrf.mxu1  ;;  %v12595_v61 = vmul.f32 0.70710677, %v12581_v35  ;;  %v1278_v43 = vmul.f32 %v1270_v31, %v12545_v36 }
 0x331   :  { %v1200_v34 = vmul.f32 1.0614054, %v12573_v9  ;;  %v1181_v12 = vsub.f32 2.0, %v1173_v33  ;;  %v1163_v21 = vadd.f32 1.0, %v1155_v6  ;;  %v1164_v56 = vadd.f32 1.0, %v1156_v3 }
 0x332   :  { %v1207_v8 = vadd.f32 -1.4531521, %v1199_v14  ;;  %v1182_v13 = vsub.f32 2.0, %v1174_v30  ;;  %v12601_v25 = vand.u32 2147483647, %v12595_v61  ;;  %vm1324_vm6 = vcmp.ge.f32.partialorder %v12559_v24, 0.0 }
 0x333   :  { %v1208_v7 = vadd.f32 -1.4531521, %v1200_v34  ;;  %v12584_v48 = vmul.f32 %v11321_v16, %v1181_v12  ;;  %11324 = vrcp.f32 %v1163_v21  ;;  %v1285_v16 = vmul.f32 1.442695, %v1277_v1 }
 0x334   :  { %v1215_v52 = vmul.f32 %v1207_v8, %v12566_v19  ;;  %v12587_v47 = vmul.f32 %v11323_v27, %v1182_v13  ;;  %11326 = vrcp.f32 %v1164_v56  ;;  %v1153_v33 = vmul.f32 0.3275911, %v12601_v25 }
 0x335   :  { %v1216_v54 = vmul.f32 %v1208_v7, %v12573_v9  ;;  %v1197_v62 = vmul.f32 1.0614054, %v12584_v48  ;;  %v1084_v41 = vpop.f32.mrf.mxu2  ;;  %v1097_v23 = vpop.f32.mrf.mxu3  ;;  %11328 = vpow2.f32 %v1289_v60  ;;  %v12609_v30 = vmul.f32 0.70710677, %v12597_v5 }
 0x336   :  { %v1223_v45 = vadd.f32 1.4214138, %v1215_v52  ;;  %v1198_v38 = vmul.f32 1.0614054, %v12587_v47  ;;  %v1161_v34 = vadd.f32 1.0, %v1153_v33  ;;  %11330 = vpow2.f32 %v1291_v20 }
 0x337   :  { %v1224_v58 = vadd.f32 1.4214138, %v1216_v54  ;;  %v1205_v40 = vadd.f32 -1.4531521, %v1197_v62  ;;  %v1287_v13 = vmul.f32 1.442695, %v1278_v43 }
 0x338   :  { %v1231_v46 = vmul.f32 %v1223_v45, %v12566_v19  ;;  %v1206_v42 = vadd.f32 -1.4531521, %v1198_v38  ;;  %11332 = vrcp.f32 %v1161_v34  ;;  %v1275_v52 = vsub.f32 0.0, %v12564_v37 }
 0x339   :  { %v11325_v49 = vpop.eup %11324  ;;  %v1232_v4 = vmul.f32 %v1224_v58, %v12573_v9  ;;  %v1213_v63 = vmul.f32 %v1205_v40, %v12584_v48  ;;  %11334 = vpow2.f32 %v1285_v16  ;;  %v12622_v1 = vand.u32 2147483647, %v12609_v30 }
 0x33a   :  { %v11327_v27 = vpop.eup %11326  ;;  %v1239_v15 = vadd.f32 -0.28449672, %v1231_v46  ;;  %v1214_v50 = vmul.f32 %v1206_v42, %v12587_v47  ;;  %v1179_v17 = vmul.f32 %v11325_v49, %v1163_v21  ;;  %v1276_v45 = vsub.f32 0.0, %v12569_v18 }
 0x33b   :  { %v1240_v6 = vadd.f32 -0.28449672, %v1232_v4  ;;  %v1221_v14 = vadd.f32 1.4214138, %v1213_v63  ;;  %v1180_v39 = vmul.f32 %v11327_v27, %v1164_v56  ;;  %v11329_v21 = vpop.eup %11328  ;;  %v12628_v38 = vmul.f32 0.5, %v12517_v29 }
 0x33c   :  { %v1247_v3 = vmul.f32 %v1239_v15, %v12566_v19  ;;  %v1222_v28 = vadd.f32 1.4214138, %v1214_v50  ;;  %v1187_v10 = vsub.f32 2.0, %v1179_v17  ;;  %11336 = vpow2.f32 %v1287_v13  ;;  %v11331_v40 = vpop.eup %11330 }
 0x33d   :  { %v1248_v36 = vmul.f32 %v1240_v6, %v12573_v9  ;;  %v1229_v12 = vmul.f32 %v1221_v14, %v12584_v48  ;;  %v1188_v0 = vsub.f32 2.0, %v1180_v39  ;;  %v1154_v20 = vmul.f32 0.3275911, %v12622_v1 }
 0x33e   :  { %v1230_v8 = vmul.f32 %v1222_v28, %v12587_v47  ;;  %v12615_v7 = vmul.f32 %v11325_v49, %v1187_v10  ;;  %v1255_v56 = vadd.f32 0.2548296, %v1247_v3  ;;  %v1283_v49 = vmul.f32 %v1275_v52, %v12564_v37  ;;  %v11333_v63 = vpop.eup %11332  ;;  %v8590_v52 = vld [vmem:[%s16711_s9 + $0xe0] sm:$0xf] }
 0x33f   :  { %v1237_v51 = vadd.f32 -0.28449672, %v1229_v12  ;;  %v12618_v60 = vmul.f32 %v11327_v27, %v1188_v0  ;;  %v1256_v31 = vadd.f32 0.2548296, %v1248_v36  ;;  %v1273_v27 = vsub.f32 0.0, %v12601_v25  ;;  %v11335_v6 = vpop.eup %11334 }
 0x340   :  { %v1238_v54 = vadd.f32 -0.28449672, %v1230_v8  ;;  %v1203_v62 = vmul.f32 1.0614054, %v12615_v7  ;;  %v1263_v16 = vmul.f32 %v1255_v56, %v12566_v19  ;;  %v1162_v29 = vadd.f32 1.0, %v1154_v20 }
 0x341   :  { %v1245_v41 = vmul.f32 %v1237_v51, %v12584_v48  ;;  %v1204_v23 = vmul.f32 1.0614054, %v12618_v60  ;;  %v1264_v15 = vmul.f32 %v1256_v31, %v12573_v9  ;;  %v1284_v17 = vmul.f32 %v1276_v45, %v12569_v18 }
 0x342   :  { %v1211_v58 = vadd.f32 -1.4531521, %v1203_v62  ;;  %v1246_v42 = vmul.f32 %v1238_v54, %v12587_v47  ;;  %v1177_v33 = vmul.f32 %v11333_v63, %v1161_v34  ;;  %v12640_v14 = vmul.f32 0.5, %v12530_v53  ;;  %v11337_v9 = vpop.eup %11336  ;;  %v10806_v54 = vld [vmem:[%s16711_s9 + $0xec] sm:$0xf0] }
 0x343   :  { %v1253_v46 = vadd.f32 0.2548296, %v1245_v41  ;;  %v1212_v4 = vadd.f32 -1.4531521, %v1204_v23  ;;  %v12643_v37 = vmul.f32 0.5, %v12532_v11  ;;  %11338 = vrcp.f32 %v1162_v29 }
 0x344   :  { %v1219_v43 = vmul.f32 %v1211_v58, %v12615_v7  ;;  %v1254_v3 = vadd.f32 0.2548296, %v1246_v42  ;;  %v1185_v10 = vsub.f32 2.0, %v1177_v33  ;;  %v12646_v36 = vmul.f32 %v11329_v21, %v1263_v16  ;;  %v10838_v23 = vld [vmem:[%s16711_s9 + $0x1ec] sm:$0xf0] }
 0x345   :  { %v1220_v50 = vmul.f32 %v1212_v4, %v12618_v60  ;;  %v1261_v39 = vmul.f32 %v1253_v46, %v12584_v48  ;;  %v12649_v18 = vmul.f32 0.5, %v12551_v2  ;;  %v1281_v53 = vmul.f32 %v1273_v27, %v12601_v25  ;;  %v10804_v46 = vld [vmem:[%s16711_s9 + $0xe4] sm:$0xf]  ;;  %v8592_v42 = vld [vmem:[%s16711_s9 + $0xf0] sm:$0xf0] }
 0x346   :  { %v1227_v19 = vadd.f32 1.4214138, %v1219_v43  ;;  %v12653_v12 = vmul.f32 %v11331_v40, %v1264_v15  ;;  %v1297_v11 = vmul.f32 1.442695, %v1283_v49  ;;  %v1299_v8 = vmul.f32 1.442695, %v1284_v17 }
 0x347   :  { %v1228_v28 = vadd.f32 1.4214138, %v1220_v50  ;;  %v12657_v13 = vmul.f32 0.5, %v12581_v35  ;;  %v12659_v56 = vmul.f32 %v11333_v63, %v1185_v10  ;;  %v12662_v21 = vmul.f32 0.5, %v12597_v5  ;;  %v10836_v63 = vld [vmem:[%s16711_s9 + $0x1e4] sm:$0xf] }
 0x348   :  { %v1235_v34 = vmul.f32 %v1227_v19, %v12615_v7  ;;  %v12664_v2 = vmul.f32 %v11335_v6, %v1261_v39  ;;  %v1262_v51 = vmul.f32 %v1254_v3, %v12587_v47  ;;  %v1311_v62 = vsub.f32 1.0, %v12646_v36  ;;  %v8718_v47 = vld [vmem:[%s16711_s9 + $0x1e0] sm:$0xf]  ;;  %v8720_v16 = vld [vmem:[%s16711_s9 + $0x1f0] sm:$0xf0] }
 0x349   :  { %v1236_v0 = vmul.f32 %v1228_v28, %v12618_v60  ;;  %v11339_v35 = vpop.eup %11338  ;;  %v1201_v5 = vmul.f32 1.0614054, %v12659_v56  ;;  %v12676_v41 = vmul.f32 1.442695, %v1281_v53  ;;  %v1312_v45 = vsub.f32 1.0, %v12653_v12 }
 0x34a   :  { %v1243_v48 = vadd.f32 -0.28449672, %v1235_v34  ;;  %v1178_v20 = vmul.f32 %v11339_v35, %v1162_v29  ;;  %v1274_v40 = vsub.f32 0.0, %v12622_v1  ;;  %11340 = vpow2.f32 %v1297_v11  ;;  %v8574_v15 = vld [vmem:[%s16711_s9 + $0xc0] sm:$0xf] }
 0x34b   :  { %v1244_v25 = vadd.f32 -0.28449672, %v1236_v0  ;;  %v1209_v4 = vadd.f32 -1.4531521, %v1201_v5  ;;  %v1309_v43 = vsub.f32 1.0, %v12664_v2  ;;  %v12702_v27 = vmul.f32 %v11337_v9, %v1262_v51 }
 0x34c   :  { %v1251_v31 = vmul.f32 %v1243_v48, %v12615_v7  ;;  %11342 = vpow2.f32 %v1299_v8  ;;  %v1186_v29 = vsub.f32 2.0, %v1178_v20  ;;  %v10802_v50 = vld [vmem:[%s16711_s9 + $0xcc] sm:$0xf0]  ;;  %v8702_v17 = vld [vmem:[%s16711_s9 + $0x1c0] sm:$0xf]  ;;  %v1327_v6 = vsub.f32 0.0, %v1311_v62 }
 0x34d   :  { %v1252_v58 = vmul.f32 %v1244_v25, %v12618_v60  ;;  %v10834_v33 = vld [vmem:[%s16711_s9 + $0x1cc] sm:$0xf0]  ;;  %v1217_v39 = vmul.f32 %v1209_v4, %v12659_v56  ;;  %v8591_v3 = vor.u32 %v10806_v54, %v8590_v52  ;;  %v10800_v28 = vld [vmem:[%s16711_s9 + $0xc4] sm:$0xf]  ;;  %v1328_v10 = vsub.f32 0.0, %v1312_v45 }
 0x34e   :  { %v1259_v49 = vadd.f32 0.2548296, %v1251_v31  ;;  %v12725_v9 = vmul.f32 %v11339_v35, %v1186_v29  ;;  %v1282_v34 = vmul.f32 %v1274_v40, %v12622_v1  ;;  %v8719_v53 = vor.u32 %v10838_v23, %v8718_v47  ;;  %v8576_v11 = vld [vmem:[%s16711_s9 + $0xd0] sm:$0xf0]  ;;  %v10832_v0 = vld [vmem:[%s16711_s9 + $0x1c4] sm:$0xf] }
 0x34f   :  { %v1260_v19 = vadd.f32 0.2548296, %v1252_v58  ;;  %v1225_v48 = vadd.f32 1.4214138, %v1217_v39  ;;  %1761 = vmatpush.bf16.msra.mxu2 %v8591_v3  ;;  %v8595_v51 = vor.u32 %v10804_v46, %v8592_v42  ;;  %v8704_v1 = vld [vmem:[%s16711_s9 + $0x1d0] sm:$0xf0]  ;;  %v8575_v58 = vor.u32 %v10802_v50, %v8574_v15 }
 0x350   :  { %v1267_v8 = vmul.f32 %v1259_v49, %v12615_v7  ;;  %v8558_v25 = vld [vmem:[%s16711_s9 + $0xa0] sm:$0xf]  ;;  %v1325_v52 = vsub.f32 0.0, %v1309_v43  ;;  %v1310_v54 = vsub.f32 1.0, %v12702_v27  ;;  %v1202_v35 = vmul.f32 1.0614054, %v12725_v9  ;;  %1774 = vmatpush.bf16.msrb.mxu3 %v8719_v53  ;;  %v11341_v5 = vpop.eup %11340 }
 0x351   :  { %v8723_v7 = vor.u32 %v10836_v63, %v8720_v16  ;;  %v10798_v31 = vld [vmem:[%s16711_s9 + $0xac] sm:$0xf0]  ;;  %v1268_v47 = vmul.f32 %v1260_v19, %v12618_v60  ;;  %v1233_v23 = vmul.f32 %v1225_v48, %v12659_v56  ;;  %1787 = vmatpush.bf16.msra.mxu0 %v8595_v51  ;;  %v8703_v20 = vor.u32 %v10834_v33, %v8702_v17  ;;  %v8686_v40 = vld [vmem:[%s16711_s9 + $0x1a0] sm:$0xf]  ;;  %v10796_v42 = vld [vmem:[%s16711_s9 + $0xa4] sm:$0xf] }
 0x352   :  { %v10830_v46 = vld [vmem:[%s16711_s9 + $0x1ac] sm:$0xf0]  ;;  %v11343_v49 = vpop.eup %11342  ;;  %v1210_v4 = vadd.f32 -1.4531521, %v1202_v35  ;;  %v1295_v60 = vmul.f32 1.442695, %v1282_v34  ;;  %v8579_v63 = vor.u32 %v10800_v28, %v8576_v11  ;;  %v8707_v16 = vor.u32 %v10832_v0, %v8704_v1 }
 0x353   :  { %1800 = vmatpush.bf16.msra.mxu1 %v8723_v7  ;;  %v8560_v27 = vld [vmem:[%s16711_s9 + $0xb0] sm:$0xf0]  ;;  %v12763_v29 = vmul.f32 %v11341_v5, %v1267_v8  ;;  %v1241_v15 = vadd.f32 -0.28449672, %v1233_v23  ;;  %11344 = vpow2.f32 %v12676_v41  ;;  %1762 = vmatpush.bf16.msra.mxu2 %v8575_v58  ;;  %v8559_v50 = vor.u32 %v10798_v31, %v8558_v25  ;;  %v10828_v17 = vld [vmem:[%s16711_s9 + $0x1a4] sm:$0xf] }
 0x354   :  { %v8688_v33 = vld [vmem:[%s16711_s9 + $0x1b0] sm:$0xf0]  ;;  %v1335_v19 = vsel %vm1319_vm15, %v1311_v62, %v1327_v6  ;;  %v1326_v39 = vsub.f32 0.0, %v1310_v54  ;;  %v1218_v3 = vmul.f32 %v1210_v4, %v12725_v9  ;;  %1775 = vmatpush.bf16.msrb.mxu3 %v8703_v20  ;;  %v8687_v41 = vor.u32 %v10830_v46, %v8686_v40  ;;  %v8542_v28 = vld [vmem:[%s16711_s9 + $0x80] sm:$0xf] }
 0x355   :  { %v10794_v34 = vld [vmem:[%s16711_s9 + $0x8c] sm:$0xf0]  ;;  %v1336_v36 = vsel %vm1320_vm1, %v1312_v45, %v1328_v10  ;;  %v12787_v59 = vmul.f32 %v11343_v49, %v1268_v47  ;;  %v1249_v62 = vmul.f32 %v1241_v15, %v12659_v56  ;;  %1788 = vmatpush.bf16.msra.mxu0 %v8579_v63  ;;  %v8563_v6 = vor.u32 %v10796_v42, %v8560_v27  ;;  %v8670_v53 = vld [vmem:[%s16711_s9 + $0x180] sm:$0xf]  ;;  %v10792_v12 = vld [vmem:[%s16711_s9 + $0x84] sm:$0xf] }
 0x356   :  { %v10826_v11 = vld [vmem:[%s16711_s9 + $0x18c] sm:$0xf0]  ;;  %v1333_v26 = vsel %vm1317_vm3, %v1309_v43, %v1325_v52  ;;  %v1226_v45 = vadd.f32 1.4214138, %v1218_v3  ;;  %v8691_v10 = vor.u32 %v10828_v17, %v8688_v33  ;;  %v8544_v0 = vld [vmem:[%s16711_s9 + $0x90] sm:$0xf0]  ;;  %v8543_v22 = vor.u32 %v10794_v34, %v8542_v28 }
 0x357   :  { %1801 = vmatpush.bf16.msra.mxu1 %v8707_v16  ;;  %v10824_v8 = vld [vmem:[%s16711_s9 + $0x184] sm:$0xf]  ;;  %v12810_v48 = vadd.f32 1.0, %v1335_v19  ;;  %v1315_v2 = vsub.f32 1.0, %v12763_v29  ;;  %v1257_v51 = vadd.f32 0.2548296, %v1249_v62  ;;  %1763 = vmatpush.bf16.msra.mxu2 %v8559_v50  ;;  %v1334_v25 = vsel %vm1318_vm4, %v1310_v54, %v1326_v39 }
 0x358   :  { %v8672_v43 = vld [vmem:[%s16711_s9 + $0x190] sm:$0xf0]  ;;  %v12816_v1 = vadd.f32 1.0, %v1336_v36  ;;  %vm1321_vm7 = vcmp.ge.f32.partialorder %v12595_v61, 0.0  ;;  %v1234_v52 = vmul.f32 %v1226_v45, %v12725_v9  ;;  %1776 = vmatpush.bf16.msrb.mxu3 %v8687_v41  ;;  %v8671_v35 = vor.u32 %v10826_v11, %v8670_v53  ;;  %v8526_v7 = vld [vmem:[%s16711_s9 + $0x60] sm:$0xf] }
 0x359   :  { %v10790_v31 = vld [vmem:[%s16711_s9 + $0x6c] sm:$0xf0]  ;;  %v11345_v5 = vpop.eup %11344  ;;  %v1341_v47 = vadd.f32 1.0, %v1333_v26  ;;  %v1316_v44 = vsub.f32 1.0, %v12787_v59  ;;  %v1265_v54 = vmul.f32 %v1257_v51, %v12659_v56  ;;  %1789 = vmatpush.bf16.msra.mxu0 %v8563_v6  ;;  %v8547_v23 = vor.u32 %v10792_v12, %v8544_v0  ;;  %v8654_v58 = vld [vmem:[%s16711_s9 + $0x160] sm:$0xf] }
 0x35a   :  { %v10822_v20 = vld [vmem:[%s16711_s9 + $0x16c] sm:$0xf0]  ;;  %v1242_v40 = vadd.f32 -0.28449672, %v1234_v52  ;;  %11346 = vpow2.f32 %v1295_v60  ;;  %v8675_v46 = vor.u32 %v10824_v8, %v8672_v43  ;;  %v10788_v42 = vld [vmem:[%s16711_s9 + $0x64] sm:$0xf]  ;;  %v8527_v16 = vor.u32 %v10790_v31, %v8526_v7 }
 0x35b   :  { %1802 = vmatpush.bf16.msra.mxu1 %v8691_v10  ;;  %v8528_v56 = vld [vmem:[%s16711_s9 + $0x70] sm:$0xf0]  ;;  %v12843_v49 = vadd.f32 1.0, %v1334_v25  ;;  %v1331_v4 = vsub.f32 0.0, %v1315_v2  ;;  %v1305_v63 = vmul.f32 %v11345_v5, %v1265_v54  ;;  %1764 = vmatpush.bf16.msra.mxu2 %v8543_v22  ;;  %v10820_v60 = vld [vmem:[%s16711_s9 + $0x164] sm:$0xf]  ;;  %v8655_v15 = vor.u32 %v10822_v20, %v8654_v58 }
 0x35c   :  { %v8656_v27 = vld [vmem:[%s16711_s9 + $0x170] sm:$0xf0]  ;;  %v1250_v29 = vmul.f32 %v1242_v40, %v12725_v9  ;;  %1777 = vmatpush.bf16.msrb.mxu3 %v8671_v35  ;;  %v8510_v50 = vld [vmem:[%s16711_s9 + $0x40] sm:$0xf]  ;;  %v10786_v17 = vld [vmem:[%s16711_s9 + $0x4c] sm:$0xf0]  ;;  %v8531_v3 = vor.u32 %v10788_v42, %v8528_v56  ;;  %v1349_v6 = vmul.f32 %v1341_v47, %v12640_v14  ;;  %v1351_v51 = vmul.f32 %v12810_v48, %v12561_v55 }
 0x35d   :  { %v8638_v33 = vld [vmem:[%s16711_s9 + $0x140] sm:$0xf]  ;;  %v1332_v19 = vsub.f32 0.0, %v1316_v44  ;;  %v1313_v39 = vsub.f32 1.0, %v1305_v63  ;;  %1790 = vmatpush.bf16.msra.mxu0 %v8547_v23  ;;  %v10818_v41 = vld [vmem:[%s16711_s9 + $0x14c] sm:$0xf0]  ;;  %v8659_v36 = vor.u32 %v10820_v60, %v8656_v27  ;;  %v1339_v53 = vsel %vm1323_vm5, %v1315_v2, %v1331_v4 }
 0x35e   :  { %v10784_v28 = vld [vmem:[%s16711_s9 + $0x44] sm:$0xf]  ;;  %v1258_v34 = vadd.f32 0.2548296, %v1250_v29  ;;  %v8512_v59 = vld [vmem:[%s16711_s9 + $0x50] sm:$0xf0]  ;;  %v8511_v12 = vor.u32 %v10786_v17, %v8510_v50  ;;  %v8639_v14 = vor.u32 %v10818_v41, %v8638_v33  ;;  %v1357_v5 = vadd.f32 %v1351_v51, %v1349_v6 }
 0x35f   :  { %1803 = vmatpush.bf16.msra.mxu1 %v8675_v46  ;;  %v10816_v62 = vld [vmem:[%s16711_s9 + $0x144] sm:$0xf]  ;;  %v1329_v11 = vsub.f32 0.0, %v1313_v39  ;;  %vm1322_vm8 = vcmp.ge.f32.partialorder %v12609_v30, 0.0  ;;  %1765 = vmatpush.bf16.msra.mxu2 %v8527_v16  ;;  %v8640_v26 = vld [vmem:[%s16711_s9 + $0x150] sm:$0xf0]  ;;  %v8515_v43 = vor.u32 %v10784_v28, %v8512_v59  ;;  %v1350_v33 = vmul.f32 %v12843_v49, %v12643_v37 }
 0x360   :  { %v8494_v45 = vld [vmem:[%s16711_s9 + $0x20] sm:$0xf]  ;;  %v11347_v10 = vpop.eup %11346  ;;  %v1266_v0 = vmul.f32 %v1258_v34, %v12725_v9  ;;  %1778 = vmatpush.bf16.msrb.mxu3 %v8655_v15  ;;  %v10814_v2 = vld [vmem:[%s16711_s9 + $0x12c] sm:$0xf0]  ;;  %v1340_v9 = vsel %vm1324_vm6, %v1316_v44, %v1332_v19  ;;  %v10780_v25 = vld [vmem:[%s16711_s9 + $0x24] sm:$0xf]  ;;  %v8643_v61 = vor.u32 %v10816_v62, %v8640_v26  ;;  %v1352_v59 = vmul.f32 %v12816_v1, %v12628_v38 }
 0x361   :  { %v8622_v8 = vld [vmem:[%s16711_s9 + $0x120] sm:$0xf]  ;;  %v1337_v22 = vsel %vm1321_vm7, %v1313_v39, %v1329_v11  ;;  %1791 = vmatpush.bf16.msra.mxu0 %v8531_v3  ;;  %v8496_v52 = vld [vmem:[%s16711_s9 + $0x30] sm:$0xf0]  ;;  %v10812_v55 = vld [vmem:[%s16711_s9 + $0x124] sm:$0xf]  ;;  %v8495_v47 = vor.u32 %v10782_v57, %v8494_v45 }
 0x362   :  { %v1347_v48 = vadd.f32 1.0, %v1339_v53  ;;  %v1345_v24 = vadd.f32 1.0, %v1337_v22  ;;  %v1306_v35 = vmul.f32 %v11347_v10, %v1266_v0  ;;  %v8624_v7 = vld [vmem:[%s16711_s9 + $0x130] sm:$0xf0]  ;;  %v8478_v31 = vld [vmem:[%s16711_s9] sm:$0xf]  ;;  %v8623_v46 = vor.u32 %v10814_v2, %v8622_v8 }
 0x363   :  { %1804 = vmatpush.bf16.msra.mxu1 %v8659_v36  ;;  %1766 = vmatpush.bf16.msra.mxu2 %v8511_v12  ;;  %v10778_v44 = vld [vmem:[%s16711_s9 + $0xc] sm:$0xf0]  ;;  %v8606_v54 = vld [vmem:[%s16711_s9 + $0x100] sm:$0xf]  ;;  %v1348_v58 = vadd.f32 1.0, %v1340_v9  ;;  %v8499_v4 = vor.u32 %v10780_v25, %v8496_v52  ;;  %v8627_v15 = vor.u32 %v10812_v55, %v8624_v7  ;;  %v1132_v12 = vmul.f32 0.5, %v12553_v32 }
 0x364   :  { %v10810_v23 = vld [vmem:[%s16711_s9 + $0x10c] sm:$0xf0]  ;;  %v1353_v20 = vmul.f32 %v1345_v24, %v12657_v13  ;;  %v1314_v40 = vsub.f32 1.0, %v1306_v35  ;;  %1779 = vmatpush.bf16.msrb.mxu3 %v8639_v14  ;;  %v10776_v42 = vld [vmem:[%s16711_s9 + $0x4] sm:$0xf]  ;;  %v1355_v60 = vmul.f32 %v1347_v48, %v12649_v18  ;;  %v8479_v19 = vor.u32 %v10778_v44, %v8478_v31 }
 0x365   :  { %v8480_v56 = vld [vmem:[%s16711_s9 + $0x10] sm:$0xf0]  ;;  %1792 = vmatpush.bf16.msra.mxu0 %v8515_v43  ;;  %v10808_v63 = vld [vmem:[%s16711_s9 + $0x104] sm:$0xf]  ;;  %v8598_v13 = vld [vmem:[%s16711_s9 + $0xe8] sm:$0xf]  ;;  %v8607_v28 = vor.u32 %v10810_v23, %v8606_v54  ;;  %v1358_v10 = vadd.f32 %v1352_v59, %v1350_v33  ;;  %v1356_v2 = vmul.f32 %v1348_v58, %v1132_v12 }
 0x366   :  { %v10807_v16 = vld [vmem:[%s16711_s9 + $0xf4] sm:$0xf0]  ;;  %v1359_v27 = vadd.f32 %v1357_v5, %v1353_v20  ;;  %v1330_v29 = vsub.f32 0.0, %v1314_v40  ;;  %v8726_v50 = vld [vmem:[%s16711_s9 + $0x1e8] sm:$0xf]  ;;  %v8483_v6 = vor.u32 %v10776_v42, %v8480_v56 }
 0x367   :  { %1805 = vmatpush.bf16.msra.mxu1 %v8643_v61  ;;  %v10839_v17 = vld [vmem:[%s16711_s9 + $0x1f4] sm:$0xf0]  ;;  %1767 = vmatpush.bf16.msra.mxu2 %v8495_v47  ;;  %v8608_v18 = vld [vmem:[%s16711_s9 + $0x110] sm:$0xf0]  ;;  %v10805_v39 = vld [vmem:[%s16711_s9 + $0xec] sm:$0xf]  ;;  %v8599_v37 = vor.u32 %v10807_v16, %v8598_v13 }
 0x368   :  { %v8600_v3 = vld [vmem:[%s16711_s9 + $0xf8] sm:$0xf0]  ;;  %v1338_v41 = vsel %vm1322_vm8, %v1314_v40, %v1330_v29  ;;  %1780 = vmatpush.bf16.msrb.mxu3 %v8623_v46  ;;  %v10837_v49 = vld [vmem:[%s16711_s9 + $0x1ec] sm:$0xf]  ;;  %v1361_v36 = vadd.f32 %v1359_v27, %v1355_v60  ;;  %v8727_v30 = vor.u32 %v10839_v17, %v8726_v50  ;;  %v8582_v53 = vld [vmem:[%s16711_s9 + $0xc8] sm:$0xf]  ;;  %v8611_v26 = vor.u32 %v10808_v63, %v8608_v18 }
 0x369   :  { %v8728_v34 = vld [vmem:[%s16711_s9 + $0x1f8] sm:$0xf0]  ;;  %v1346_v62 = vadd.f32 1.0, %v1338_v41  ;;  %1793 = vmatpush.bf16.msra.mxu0 %v8499_v4  ;;  %v10803_v11 = vld [vmem:[%s16711_s9 + $0xd4] sm:$0xf0]  ;;  %v8603_v45 = vor.u32 %v10805_v39, %v8600_v3 }
 0x36a   :  { %v8710_v38 = vld [vmem:[%s16711_s9 + $0x1c8] sm:$0xf]  ;;  %v10835_v1 = vld [vmem:[%s16711_s9 + $0x1d4] sm:$0xf0]  ;;  %v8731_v14 = vor.u32 %v10837_v49, %v8728_v34  ;;  %v10801_v32 = vld [vmem:[%s16711_s9 + $0xcc] sm:$0xf]  ;;  %v8583_v51 = vor.u32 %v10803_v11, %v8582_v53 }
 0x36b   :  { %1806 = vmatpush.bf16.msra.mxu1 %v8627_v15  ;;  %v1354_v0 = vmul.f32 %v1346_v62, %v12662_v21  ;;  %1768 = vmatpush.bf16.msra.mxu2 %v8479_v19  ;;  %v8584_v57 = vld [vmem:[%s16711_s9 + $0xd8] sm:$0xf0]  ;;  %v1363_v8 = vmul.f32 0.25, %v1361_v36  ;;  %v10833_v9 = vld [vmem:[%s16711_s9 + $0x1cc] sm:$0xf]  ;;  %v8711_v43 = vor.u32 %v10835_v1, %v8710_v38 }
 0x36c   :  { %1781 = vmatpush.bf16.msrb.mxu3 %v8607_v28  ;;  %v8712_v21 = vld [vmem:[%s16711_s9 + $0x1d8] sm:$0xf0]  ;;  %v8566_v25 = vld [vmem:[%s16711_s9 + $0xa8] sm:$0xf]  ;;  %v10799_v52 = vld [vmem:[%s16711_s9 + $0xb4] sm:$0xf0]  ;;  %v8587_v48 = vor.u32 %v10801_v32, %v8584_v57 }
 0x36d   :  { %v1360_v22 = vadd.f32 %v1358_v10, %v1354_v0  ;;  %1794 = vmatpush.bf16.msra.mxu0 %v8483_v6  ;;  %v12999_v55 = vpack.c.bf16 %v1363_v8, %v1363_v8  ;;  %v8694_v24 = vld [vmem:[%s16711_s9 + $0x1a8] sm:$0xf]  ;;  %v10831_v35 = vld [vmem:[%s16711_s9 + $0x1b4] sm:$0xf0]  ;;  %v8715_v61 = vor.u32 %v10833_v9, %v8712_v21  ;;  %v10797_v7 = vld [vmem:[%s16711_s9 + $0xac] sm:$0xf]  ;;  %v8567_v47 = vor.u32 %v10799_v52, %v8566_v25 }
 0x36e   :  { %v8568_v31 = vld [vmem:[%s16711_s9 + $0xb8] sm:$0xf0]  ;;  %v10829_v44 = vld [vmem:[%s16711_s9 + $0x1ac] sm:$0xf]  ;;  %v8695_v23 = vor.u32 %v10831_v35, %v8694_v24  ;;  %v8550_v58 = vld [vmem:[%s16711_s9 + $0x88] sm:$0xf] }
 0x36f   :  { %1813 = vmatpush.bf16.msrb.mxu2 %v8599_v37  ;;  %1807 = vmatpush.bf16.msra.mxu1 %v8611_v26  ;;  %v1362_v5 = vadd.f32 %v1360_v22, %v1356_v2  ;;  %v8696_v54 = vld [vmem:[%s16711_s9 + $0x1b8] sm:$0xf0]  ;;  %v10795_v20 = vld [vmem:[%s16711_s9 + $0x94] sm:$0xf0]  ;;  %v8571_v46 = vor.u32 %v10797_v7, %v8568_v31  ;;  %v8678_v42 = vld [vmem:[%s16711_s9 + $0x188] sm:$0xf] }
 0x370   :  { %1826 = vmatpush.bf16.msra.mxu3 %v8727_v30  ;;  %1769 = vmatmul.bf16.vlgmr.msra.gmra.mxu2 %v12999_v55  ;;  %v10827_v56 = vld [vmem:[%s16711_s9 + $0x194] sm:$0xf0]  ;;  %v8699_v4 = vor.u32 %v10829_v44, %v8696_v54  ;;  %v10793_v63 = vld [vmem:[%s16711_s9 + $0x8c] sm:$0xf]  ;;  %v8552_v13 = vld [vmem:[%s16711_s9 + $0x98] sm:$0xf0]  ;;  %v8551_v60 = vor.u32 %v10795_v20, %v8550_v58 }
 0x371   :  { %1839 = vmatpush.bf16.msrb.mxu0 %v8603_v45  ;;  %v1364_v40 = vmul.f32 0.25, %v1362_v5  ;;  %v10825_v27 = vld [vmem:[%s16711_s9 + $0x18c] sm:$0xf]  ;;  %v8680_v29 = vld [vmem:[%s16711_s9 + $0x198] sm:$0xf0]  ;;  %v8679_v15 = vor.u32 %v10827_v56, %v8678_v42  ;;  %v8555_v33 = vor.u32 %v10793_v63, %v8552_v13  ;;  %v10846_v42 = vld [vmem:[#allocation4 + $0x30] sm:$0xff] }
 0x372   :  { %1795 = vmatmul.bf16.vlgmr.msra.gmra.mxu0 %v12999_v55  ;;  %v8534_v50 = vld [vmem:[%s16711_s9 + $0x68] sm:$0xf]  ;;  %v10791_v17 = vld [vmem:[%s16711_s9 + $0x74] sm:$0xf0]  ;;  %v8683_v39 = vor.u32 %v10825_v27, %v8680_v29  ;;  %v10789_v3 = vld [vmem:[%s16711_s9 + $0x6c] sm:$0xf] }
 0x373   :  { %1852 = vmatpush.bf16.msrb.mxu1 %v8731_v14  ;;  %1814 = vmatpush.bf16.msrb.mxu2 %v8583_v51  ;;  %v13039_v16 = vpack.c.bf16 %v1364_v40, %v1364_v40  ;;  %v8662_v19 = vld [vmem:[%s16711_s9 + $0x168] sm:$0xf]  ;;  %v10823_v18 = vld [vmem:[%s16711_s9 + $0x174] sm:$0xf0]  ;;  %v8536_v41 = vld [vmem:[%s16711_s9 + $0x78] sm:$0xf0]  ;;  %v8535_v28 = vor.u32 %v10791_v17, %v8534_v50 }
 0x374   :  { %1827 = vmatpush.bf16.msra.mxu3 %v8711_v43  ;;  %v10821_v37 = vld [vmem:[%s16711_s9 + $0x16c] sm:$0xf]  ;;  %v8664_v49 = vld [vmem:[%s16711_s9 + $0x178] sm:$0xf0]  ;;  %v8663_v34 = vor.u32 %v10823_v18, %v8662_v19  ;;  %v8518_v36 = vld [vmem:[%s16711_s9 + $0x48] sm:$0xf]  ;;  %v8539_v62 = vor.u32 %v10789_v3, %v8536_v41 }
 0x375   :  { %1840 = vmatpush.bf16.msrb.mxu0 %v8587_v48  ;;  %1808 = vmatmul.bf16.vlgmr.msra.gmra.mxu1 %v13039_v16  ;;  %v10787_v59 = vld [vmem:[%s16711_s9 + $0x54] sm:$0xf0]  ;;  %v8646_v6 = vld [vmem:[%s16711_s9 + $0x148] sm:$0xf]  ;;  %v8667_v53 = vor.u32 %v10821_v37, %v8664_v49  ;;  %v10785_v11 = vld [vmem:[%s16711_s9 + $0x4c] sm:$0xf] }
 0x376   :  { %1782 = vmatmul.bf16.vlgmr.msrb.gmra.mxu3 %v13039_v16  ;;  %v10819_v30 = vld [vmem:[%s16711_s9 + $0x154] sm:$0xf0]  ;;  %v8520_v12 = vld [vmem:[%s16711_s9 + $0x58] sm:$0xf0]  ;;  %v8519_v26 = vor.u32 %v10787_v59, %v8518_v36  ;;  %v10817_v45 = vld [vmem:[%s16711_s9 + $0x14c] sm:$0xf] }
 0x377   :  { %1853 = vmatpush.bf16.msrb.mxu1 %v8715_v61  ;;  %1815 = vmatpush.bf16.msrb.mxu2 %v8567_v47  ;;  %v8648_v38 = vld [vmem:[%s16711_s9 + $0x158] sm:$0xf0]  ;;  %v8647_v1 = vor.u32 %v10819_v30, %v8646_v6  ;;  %v8502_v10 = vld [vmem:[%s16711_s9 + $0x28] sm:$0xf]  ;;  %v10783_v0 = vld [vmem:[%s16711_s9 + $0x34] sm:$0xf0]  ;;  %v8523_v14 = vor.u32 %v10785_v11, %v8520_v12 }
 0x378   :  { %1828 = vmatpush.bf16.msra.mxu3 %v8695_v23  ;;  %v8630_v32 = vld [vmem:[%s16711_s9 + $0x128] sm:$0xf]  ;;  %v10815_v57 = vld [vmem:[%s16711_s9 + $0x134] sm:$0xf0]  ;;  %v8651_v8 = vor.u32 %v10817_v45, %v8648_v38  ;;  %v10781_v2 = vld [vmem:[%s16711_s9 + $0x2c] sm:$0xf]  ;;  %v8503_v9 = vor.u32 %v10783_v0, %v8502_v10 }
 0x379   :  { %1841 = vmatpush.bf16.msrb.mxu0 %v8571_v46  ;;  %v8504_v51 = vld [vmem:[%s16711_s9 + $0x38] sm:$0xf0]  ;;  %v10813_v21 = vld [vmem:[%s16711_s9 + $0x12c] sm:$0xf]  ;;  %v8631_v43 = vor.u32 %v10815_v57, %v8630_v32  ;;  %v8486_v25 = vld [vmem:[%s16711_s9 + $0x8] sm:$0xf] }
 0x37a   :  { %v8632_v22 = vld [vmem:[%s16711_s9 + $0x138] sm:$0xf0]  ;;  %v10779_v52 = vld [vmem:[%s16711_s9 + $0x14] sm:$0xf0]  ;;  %v8507_v48 = vor.u32 %v10781_v2, %v8504_v51  ;;  %v8614_v24 = vld [vmem:[%s16711_s9 + $0x108] sm:$0xf] }
 0x37b   :  { %1854 = vmatpush.bf16.msrb.mxu1 %v8699_v4  ;;  %1816 = vmatpush.bf16.msrb.mxu2 %v8551_v60  ;;  %v10811_v35 = vld [vmem:[%s16711_s9 + $0x114] sm:$0xf0]  ;;  %v8635_v61 = vor.u32 %v10813_v21, %v8632_v22  ;;  %v10777_v7 = vld [vmem:[%s16711_s9 + $0xc] sm:$0xf]  ;;  %v8488_v31 = vld [vmem:[%s16711_s9 + $0x18] sm:$0xf0]  ;;  %v8487_v5 = vor.u32 %v10779_v52, %v8486_v25 }
 0x37c   :  { %1829 = vmatpush.bf16.msra.mxu3 %v8679_v15  ;;  %v10809_v47 = vld [vmem:[%s16711_s9 + $0x10c] sm:$0xf]  ;;  %v8616_v44 = vld [vmem:[%s16711_s9 + $0x118] sm:$0xf0]  ;;  %v8615_v54 = vor.u32 %v10811_v35, %v8614_v24  ;;  %v8491_v58 = vor.u32 %v10777_v7, %v8488_v31  ;;  %v10854_v56 = vld [vmem:[#allocation4 + $0x70] sm:$0xff] }
 0x37d   :  { %1842 = vmatpush.bf16.msrb.mxu0 %v8555_v33  ;;  %v10847_v23 = vld [vmem:[#allocation4 + $0x38] sm:$0xff]  ;;  %v8619_v40 = vor.u32 %v10809_v47, %v8616_v44  ;;  %v10870_v63 = vld [vmem:[#allocation4 + $0xf0] sm:$0xff]  ;;  %v10845_v13 = vld [vmem:[#allocation4 + $0x28] sm:$0xff] }
 0x37e   :  { %v10855_v20 = vld [vmem:[#allocation4 + $0x78] sm:$0xff]  ;;  %v10853_v60 = vld [vmem:[#allocation4 + $0x68] sm:$0xff]  ;;  %v10844_v27 = vld [vmem:[#allocation4 + $0x20] sm:$0xff] }
 0x37f   :  { %1855 = vmatpush.bf16.msrb.mxu1 %v8683_v39  ;;  %1817 = vmatpush.bf16.msrb.mxu2 %v8535_v28  ;;  %v10871_v46 = vld [vmem:[#allocation4 + $0xf8] sm:$0xff]  ;;  %v10852_v29 = vld [vmem:[#allocation4 + $0x60] sm:$0xff]  ;;  %v10850_v17 = vld [vmem:[#allocation4 + $0x50] sm:$0xff] }
 0x380   :  { %1830 = vmatpush.bf16.msra.mxu3 %v8663_v34  ;;  %v10863_v4 = vld [vmem:[#allocation4 + $0xb8] sm:$0xff]  ;;  %v10869_v33 = vld [vmem:[#allocation4 + $0xe8] sm:$0xff]  ;;  %v10842_v19 = vld [vmem:[#allocation4 + $0x10] sm:$0xff] }
 0x381   :  { %1843 = vmatpush.bf16.msrb.mxu0 %v8539_v62  ;;  %v10843_v15 = vld [vmem:[#allocation4 + $0x18] sm:$0xff]  ;;  %v10848_v18 = vld [vmem:[#allocation4 + $0x40] sm:$0xff]  ;;  %v10841_v3 = vld [vmem:[#allocation4 + $0x8] sm:$0xff] }
 0x382   :  { %v10851_v50 = vld [vmem:[#allocation4 + $0x58] sm:$0xff]  ;;  %v10868_v39 = vld [vmem:[#allocation4 + $0xe0] sm:$0xff]  ;;  %v10861_v41 = vld [vmem:[#allocation4 + $0xa8] sm:$0xff] }
 0x383   :  { %1856 = vmatpush.bf16.msrb.mxu1 %v8667_v53  ;;  %1818 = vmatpush.bf16.msrb.mxu2 %v8519_v26  ;;  %v10867_v28 = vld [vmem:[#allocation4 + $0xd8] sm:$0xff]  ;;  %v10840_v37 = vld [vmem:[#allocation4] sm:$0xff]  ;;  %v10866_v34 = vld [vmem:[#allocation4 + $0xd0] sm:$0xff] }
 0x384   :  { %1831 = vmatpush.bf16.msra.mxu3 %v8647_v1  ;;  %v10860_v49 = vld [vmem:[#allocation4 + $0xa0] sm:$0xff]  ;;  %v10859_v36 = vld [vmem:[#allocation4 + $0x98] sm:$0xff]  ;;  %v8864_v11 = vld [vmem:[%s16704_s2 + $0x48] sm:$0xff] }
 0x385   :  { %1844 = vmatpush.bf16.msrb.mxu0 %v8523_v14  ;;  %v13152_v59 = vld [vmem:[%s16712_s10] sm:$0xf]  ;;  %v8866_v6 = vld [vmem:[%s16704_s2 + $0x54] sm:$0xff]  ;;  %v10865_v26 = vld [vmem:[#allocation4 + $0xc8] sm:$0xff]  ;;  %v2194_v10 = vunpack.c.h.bf16 %v8864_v11  ;;  %v2193_v35 = vunpack.c.l.bf16 %v8864_v11 }
 0x386   :  { %v1434_v62 = vperm.slane %v13152_v59, 1  ;;  %v2197_v53 = vunpack.c.h.bf16 %v8866_v6  ;;  %v11588_v45 = vld [vmem:[%s16702_s0 + $0x50] sm:$0xff]  ;;  %v8862_v0 = vld [vmem:[%s16704_s2 + $0x3c] sm:$0xff]  ;;  %v1433_v51 = vperm.slane %v13152_v59, 0  ;;  %v10857_v52 = vld [vmem:[#allocation4 + $0x88] sm:$0xff] }
 0x387   :  { %1857 = vmatpush.bf16.msrb.mxu1 %v8651_v8  ;;  %1819 = vmatpush.bf16.msrb.mxu2 %v8503_v9  ;;  %v10858_v1 = vld [vmem:[#allocation4 + $0x90] sm:$0xff]  ;;  %v11589_v14 = vld [vmem:[%s16702_s0 + $0x38] sm:$0xff]  ;;  %v10864_v57 = vld [vmem:[#allocation4 + $0xc0] sm:$0xff]  ;;  %v2191_v8 = vunpack.c.h.bf16 %v8862_v0 }
 0x388   :  { %1832 = vmatpush.bf16.msra.mxu3 %v8631_v43  ;;  %v2209_v38 = vmul.f32 %v11588_v45, %v2197_v53  ;;  %v2206_v32 = vmul.f32 %v11589_v14, %v2194_v10  ;;  %v8860_v21 = vld [vmem:[%s16704_s2 + $0x30] sm:$0xff]  ;;  %v11590_v43 = vld [vmem:[%s16702_s0 + $0x20] sm:$0xff]  ;;  %v11603_v53 = vld [vmem:[%s16703_s1 + $0x158] sm:$0xff] }
 0x389   :  { %1845 = vmatpush.bf16.msrb.mxu0 %v8507_v48  ;;  %v2203_v25 = vmul.f32 %v11590_v43, %v2191_v8  ;;  %v2196_v48 = vunpack.c.l.bf16 %v8866_v6  ;;  %v2188_v24 = vunpack.c.h.bf16 %v8860_v21  ;;  %v2187_v44 = vunpack.c.l.bf16 %v8860_v21  ;;  %v11604_v11 = vld [vmem:[%s16702_s0 + $0x10] sm:$0xff]  ;;  %v11606_v45 = vld [vmem:[%s16703_s1 + $0xf8] sm:$0xff]  ;;  %v13258_v8 = vld [vmem:[%s16706_s4 + $0x20] sm:$0xff] }
 0x38a   :  { %v11610_v14 = vld [vmem:[%s16703_s1 + $0x50] sm:$0xff]  ;;  %v11616_v21 = vld [vmem:[%s16703_s1 + $0x40] sm:$0xff]  ;;  %v1436_v43 = vperm.slane %v13152_v59, 3 }
 0x38b   :  { %1858 = vmatpush.bf16.msrb.mxu1 %v8635_v61  ;;  %1820 = vmatpush.bf16.msrb.mxu2 %v8487_v5  ;;  %v2190_v61 = vunpack.c.l.bf16 %v8862_v0  ;;  %v11591_v5 = vld [vmem:[%s16702_s0 + $0x48] sm:$0xff]  ;;  %v11609_v0 = vld [vmem:[%s16703_s1 + $0xf0] sm:$0xff] }
 0x38c   :  { %1833 = vmatpush.bf16.msra.mxu3 %v8615_v54  ;;  %v2208_v47 = vmul.f32 %v11591_v5, %v2196_v48  ;;  %v8867_v54 = vld [vmem:[%s16704_s2 + $0x5c] sm:$0xf]  ;;  %v11620_v48 = vld [vmem:[%s16703_s1 + $0x130] sm:$0xff] }
 0x38d   :  { %1846 = vmatpush.bf16.msrb.mxu0 %v8491_v58  ;;  %v11592_v58 = vld [vmem:[%s16702_s0 + $0x8] sm:$0xff] }
 0x38e   :  { %1821 = vmatmul.bf16.vlgmr.msrb.gmra.mxu2 %v12999_v55 }
 0x38f   :  { %2125 = vmatpush.bf16.msra.mxu2 %v10847_v23  ;;  %1859 = vmatpush.bf16.msrb.mxu1 %v8619_v40  ;;  %v11593_v40 = vld [vmem:[%s16702_s0 + $0x30] sm:$0xff] }
 0x390   :  { %2138 = vmatpush.bf16.msrb.mxu3 %v10855_v20  ;;  %1847 = vmatmul.bf16.vlgmr.msrb.gmra.mxu0 %v12999_v55  ;;  %v10849_v55 = vld [vmem:[#allocation4 + $0x48] sm:$0xff]  ;;  %v2200_v20 = vmul.f32 %v11592_v58, %v2188_v24  ;;  %v11621_v24 = vld [vmem:[%s16703_s1 + $0xd0] sm:$0xff]  ;;  %v11626_v58 = vld [vmem:[%s16703_s1 + $0x120] sm:$0xff] }
 0x391   :  { %1834 = vmatmul.bf16.vlgmr.msra.gmra.mxu3 %v13039_v16  ;;  %2151 = vmatpush.bf16.msra.mxu0 %v10863_v4 }
 0x392   :  { %1860 = vmatmul.bf16.vlgmr.msrb.gmra.mxu1 %v13039_v16  ;;  %v10862_v16 = vld [vmem:[#allocation4 + $0xb0] sm:$0xff] }
 0x393   :  { %2164 = vmatpush.bf16.msra.mxu1 %v10871_v46  ;;  %2126 = vmatpush.bf16.msra.mxu2 %v10846_v42  ;;  %v2205_v46 = vmul.f32 %v11593_v40, %v2193_v35  ;;  %v10856_v42 = vld [vmem:[#allocation4 + $0x80] sm:$0xff] }
 0x394   :  { %2139 = vmatpush.bf16.msrb.mxu3 %v10854_v56  ;;  %v11594_v56 = vld [vmem:[%s16702_s0 + $0x18] sm:$0xff] }
 0x395   :  { %2152 = vmatpush.bf16.msra.mxu0 %v10862_v16  ;;  %v2202_v4 = vmul.f32 %v11594_v56, %v2190_v61  ;;  %v11622_v61 = vld [vmem:[%s16703_s1 + $0x30] sm:$0xff] }
 0x397   :  { %2165 = vmatpush.bf16.msra.mxu1 %v10870_v63  ;;  %2127 = vmatpush.bf16.msra.mxu2 %v10845_v13  ;;  %v2198_v63 = vunpack.c.l.bf16 %v8867_v54  ;;  %v8865_v13 = vld [vmem:[%s16704_s2 + $0x50] sm:$0xf]  ;;  %v13303_v54 = vld [vmem:[%s16706_s4 + $0x28] sm:$0xff] }
 0x398   :  { %2140 = vmatpush.bf16.msrb.mxu3 %v10853_v60  ;;  %v8863_v60 = vld [vmem:[%s16704_s2 + $0x44] sm:$0xf] }
 0x399   :  { %2153 = vmatpush.bf16.msra.mxu0 %v10861_v41 }
 0x39b   :  { %2128 = vmatpush.bf16.msra.mxu2 %v10844_v27  ;;  %2166 = vmatpush.bf16.msra.mxu1 %v10869_v33  ;;  %v2195_v27 = vunpack.c.l.bf16 %v8865_v13  ;;  %v11630_v13 = vld [vmem:[%s16703_s1 + $0x18] sm:$0xff] }
 0x39c   :  { %2141 = vmatpush.bf16.msrb.mxu3 %v10852_v29  ;;  %v2192_v29 = vunpack.c.l.bf16 %v8863_v60  ;;  %v11631_v60 = vld [vmem:[%s16703_s1 + $0x118] sm:$0xff] }
 0x39d   :  { %2154 = vmatpush.bf16.msra.mxu0 %v10860_v49 }
 0x39f   :  { %2129 = vmatpush.bf16.msra.mxu2 %v10843_v15  ;;  %2167 = vmatpush.bf16.msra.mxu1 %v10868_v39  ;;  %v8861_v15 = vld [vmem:[%s16704_s2 + $0x38] sm:$0xf]  ;;  %v11598_v39 = vld [vmem:[%s16703_s1 + $0x160] sm:$0xff] }
 0x3a0   :  { %2142 = vmatpush.bf16.msrb.mxu3 %v10851_v50  ;;  %v11595_v50 = vld [vmem:[%s16703_s1 + $0x78] sm:$0xff] }
 0x3a1   :  { %2155 = vmatpush.bf16.msra.mxu0 %v10859_v36  ;;  %v11601_v36 = vld [vmem:[%s16702_s0 + $0x28] sm:$0xff] }
 0x3a3   :  { %2130 = vmatpush.bf16.msra.mxu2 %v10842_v19  ;;  %2168 = vmatpush.bf16.msra.mxu1 %v10867_v28  ;;  %v11597_v19 = vld [vmem:[%s16702_s0 + $0x58] sm:$0xff] }
 0x3a4   :  { %2143 = vmatpush.bf16.msrb.mxu3 %v10850_v17  ;;  %v2210_v16 = vmul.f32 %v11597_v19, %v2198_v63  ;;  %v11629_v63 = vld [vmem:[%s16703_s1 + $0xb8] sm:$0xff]  ;;  %v11635_v19 = vld [vmem:[%s16703_s1 + $0xa8] sm:$0xff] }
 0x3a5   :  { %2156 = vmatpush.bf16.msra.mxu0 %v10858_v1  ;;  %v11608_v1 = vld [vmem:[%s16703_s1 + $0x150] sm:$0xff] }
 0x3a7   :  { %2131 = vmatpush.bf16.msra.mxu2 %v10841_v3  ;;  %2169 = vmatpush.bf16.msra.mxu1 %v10866_v34  ;;  %v11600_v34 = vld [vmem:[%s16703_s1 + $0x70] sm:$0xff] }
 0x3a8   :  { %2144 = vmatpush.bf16.msrb.mxu3 %v10849_v55  ;;  %v11596_v55 = vld [vmem:[%s16702_s0] sm:$0xff] }
 0x3a9   :  { %2157 = vmatpush.bf16.msra.mxu0 %v10857_v52  ;;  %v2199_v33 = vmul.f32 %v11596_v55, %v2187_v44  ;;  %v11619_v52 = vld [vmem:[%s16703_s1 + $0x38] sm:$0xff]  ;;  %v11624_v44 = vld [vmem:[%s16703_s1 + $0xc8] sm:$0xff] }
 0x3ab   :  { %2132 = vmatpush.bf16.msra.mxu2 %v10840_v37  ;;  %2170 = vmatpush.bf16.msra.mxu1 %v10865_v26  ;;  %v11599_v37 = vld [vmem:[%s16702_s0 + $0x40] sm:$0xff] }
 0x3ac   :  { %2145 = vmatpush.bf16.msrb.mxu3 %v10848_v18  ;;  %v2189_v18 = vunpack.c.l.bf16 %v8861_v15  ;;  %v2207_v49 = vmul.f32 %v11599_v37, %v2195_v27  ;;  %v11605_v26 = vld [vmem:[%s16703_s1 + $0x60] sm:$0xff] }
 0x3ad   :  { %2158 = vmatpush.bf16.msra.mxu0 %v10856_v42 }
 0x3af   :  { %2171 = vmatpush.bf16.msra.mxu1 %v10864_v57  ;;  %2261 = vmatpush.msrb.mxu2 %v2208_v47  ;;  %v11612_v57 = vld [vmem:[%s16703_s1 + $0xe8] sm:$0xff]  ;;  %v1435_v47 = vperm.slane %v13152_v59, 2 }
 0x3b0   :  { %2290 = vmatpush.msra.mxu3 %v2209_v38  ;;  %v11607_v38 = vld [vmem:[%s16703_s1 + $0x58] sm:$0xff] }
 0x3b1   :  { %2262 = vmatpush.msrb.mxu2 %v2205_v46  ;;  %2319 = vmatpush.msrb.mxu0 %v2210_v16  ;;  %v11628_v46 = vld [vmem:[%s16703_s1 + $0x20] sm:$0xff]  ;;  %v8870_v16 = vld [vmem:[%s16706_s4 + $0x30] sm:$0xff] }
 0x3b2   :  { %2291 = vmatpush.msra.mxu3 %v2206_v32  ;;  %v11611_v32 = vld [vmem:[%s16703_s1 + $0x148] sm:$0xff] }
 0x3b3   :  { %2696 = vmatpush.msrb.mxu1 %v11595_v50  ;;  %2263 = vmatpush.msrb.mxu2 %v2202_v4  ;;  %v11633_v50 = vld [vmem:[%s16703_s1 + $0x10] sm:$0xff] }
 0x3b4   :  { %2292 = vmatpush.msra.mxu3 %v2203_v25  ;;  %2320 = vmatpush.msrb.mxu0 %v2207_v49  ;;  %v11618_v25 = vld [vmem:[%s16703_s1 + $0xd8] sm:$0xff] }
 0x3b5   :  { %2697 = vmatpush.msrb.mxu1 %v11600_v34  ;;  %2264 = vmatpush.msrb.mxu2 %v2199_v33  ;;  %v11640_v49 = vld [vmem:[%s16703_s1 + $0x98] sm:$0xff]  ;;  %v11641_v34 = vld [vmem:[%s16703_s1 + $0x100] sm:$0xff] }
 0x3b6   :  { %2293 = vmatpush.msra.mxu3 %v2200_v20  ;;  %v11627_v20 = vld [vmem:[%s16703_s1 + $0xc0] sm:$0xff] }
 0x3ef   :  { %v1796_v30 = vpop.f32.mrf.mxu0 }
 0x3f0   :  { %v1797_v12 = vadd.f32 %v1796_v30, %v1434_v62  ;;  %v2204_v62 = vmul.f32 %v11601_v36, %v2192_v29  ;;  %v11602_v30 = vld [vmem:[%s16703_s1 + $0x68] sm:$0xff]  ;;  %v11632_v29 = vld [vmem:[%s16703_s1 + $0xb0] sm:$0xff] }
 0x3f1   :  { %2698 = vmatpush.msrb.mxu1 %v11602_v30  ;;  %v11642_v36 = vld [vmem:[%s16703_s1 + $0x90] sm:$0xff]  ;;  %v11644_v30 = vld [vmem:[%s16703_s1 + $0x80] sm:$0xff] }
 0x3f2   :  { %v1809_v2 = vpop.f32.mrf.mxu1  ;;  %2321 = vmatpush.msrb.mxu0 %v2204_v62  ;;  %v11643_v62 = vld [vmem:[%s16703_s1 + $0x88] sm:$0xff] }
 0x3f3   :  { %v1770_v9 = vpop.f32.mrf.mxu2  ;;  %v1810_v22 = vadd.f32 %v1809_v2, %v1797_v12  ;;  %v2201_v12 = vmul.f32 %v11604_v11, %v2189_v18  ;;  %2699 = vmatpush.msrb.mxu1 %v11605_v26  ;;  %v11613_v2 = vld [vmem:[%s16703_s1 + $0x48] sm:$0xff]  ;;  %v8872_v26 = vld [vmem:[%s16705_s3 + $0x30] sm:$0xff] }
 0x3f4   :  { %v1771_v23 = vadd.f32 %v1770_v9, %v1433_v51  ;;  %v11614_v51 = vld [vmem:[%s16703_s1 + $0x140] sm:$0xff]  ;;  %v11636_v18 = vld [vmem:[%s16703_s1 + $0x8] sm:$0xff] }
 0x3f5   :  { %v1866_v7 = vpack.c.bf16 %v1810_v22, %v1810_v22  ;;  %2700 = vmatpush.msrb.mxu1 %v11607_v38  ;;  %2322 = vmatpush.msrb.mxu0 %v2201_v12  ;;  %v11615_v9 = vld [vmem:[%s16703_s1 + $0xe0] sm:$0xff]  ;;  %v11617_v22 = vld [vmem:[%s16703_s1 + $0x138] sm:$0xff] }
 0x3f7   :  { %v1798_v31 = vpop.f32.mrf.mxu0  ;;  %2146 = vmatmul.bf16.vlgmr.msrb.gmra.mxu3 %v1866_v7  ;;  %2701 = vmatpush.msrb.mxu1 %v11610_v14  ;;  %v11623_v7 = vld [vmem:[%s16703_s1 + $0x128] sm:$0xff] }
 0x3f8   :  { %2757 = vmatpush.msrb.mxu3 %v11598_v39  ;;  %v11637_v39 = vld [vmem:[%s16703_s1 + $0x108] sm:$0xff] }
 0x3f9   :  { %v1783_v17 = vpop.f32.mrf.mxu3  ;;  %2702 = vmatpush.msrb.mxu1 %v11613_v2 }
 0x3fa   :  { %v1784_v3 = vadd.f32 %v1783_v17, %v1771_v23  ;;  %v1811_v41 = vpop.f32.mrf.mxu1  ;;  %2758 = vmatpush.msrb.mxu3 %v11603_v53  ;;  %v11625_v23 = vld [vmem:[%s16703_s1 + $0x28] sm:$0xff]  ;;  %v11634_v17 = vld [vmem:[%s16703_s1 + $0x110] sm:$0xff] }
 0x3fb   :  { %v1772_v28 = vpop.f32.mrf.mxu2  ;;  %2703 = vmatpush.msrb.mxu1 %v11616_v21 }
 0x3fc   :  { %v1865_v6 = vpack.c.bf16 %v1784_v3, %v1784_v3  ;;  %2759 = vmatpush.msrb.mxu3 %v11608_v1  ;;  %v11638_v3 = vld [vmem:[%s16703_s1 + $0xa0] sm:$0xff] }
 0x3fd   :  { %2704 = vmatpush.msrb.mxu1 %v11619_v52  ;;  %v11639_v28 = vld [vmem:[%s16703_s1] sm:$0xff] }
 0x3fe   :  { %2133 = vmatmul.bf16.vlgmr.msra.gmra.mxu2 %v1865_v6  ;;  %2760 = vmatpush.msrb.mxu3 %v11611_v32  ;;  %v8871_v6 = vld [vmem:[%s16706_s4 + $0x38] sm:$0xff] }
 0x3ff   :  { %2725 = vmatpush.msra.mxu2 %v11606_v45  ;;  %2705 = vmatpush.msrb.mxu1 %v11622_v61  ;;  %v2226_v45 = vunpack.c.h.bf16 %v8872_v26  ;;  %v8876_v61 = vld [vmem:[%s16705_s3 + $0x48] sm:$0xff] }
 0x400   :  { %2761 = vmatpush.msrb.mxu3 %v11614_v51 }
 0x401   :  { %v1785_v10 = vpop.f32.mrf.mxu3  ;;  %2726 = vmatpush.msra.mxu2 %v11609_v0  ;;  %2706 = vmatpush.msrb.mxu1 %v11625_v23  ;;  %v8874_v0 = vld [vmem:[%s16705_s3 + $0x3c] sm:$0xff]  ;;  %v2232_v23 = vunpack.c.h.bf16 %v8876_v61 }
 0x402   :  { %2762 = vmatpush.msrb.mxu3 %v11617_v22  ;;  %v2229_v2 = vunpack.c.h.bf16 %v8874_v0 }
 0x403   :  { %2727 = vmatpush.msra.mxu2 %v11612_v57  ;;  %2707 = vmatpush.msrb.mxu1 %v11628_v46  ;;  %v2225_v57 = vunpack.c.l.bf16 %v8872_v26 }
 0x404   :  { %2763 = vmatpush.msrb.mxu3 %v11620_v48 }
 0x405   :  { %2728 = vmatpush.msra.mxu2 %v11615_v9  ;;  %2708 = vmatpush.msrb.mxu1 %v11630_v13 }
 0x406   :  { %2764 = vmatpush.msrb.mxu3 %v11623_v7 }
 0x407   :  { %8884 = vmatmul.msk.f32.vlgmr.msra.gmra.mxu3 %vm195_vm0, %v13258_v8  ;;  %2729 = vmatpush.msra.mxu2 %v11618_v25 }
 0x408   :  { %2765 = vmatpush.msrb.mxu3 %v11626_v58  ;;  %2709 = vmatpush.msrb.mxu1 %v11633_v50 }
 0x409   :  { %2730 = vmatpush.msra.mxu2 %v11621_v24 }
 0x40a   :  { %2766 = vmatpush.msrb.mxu3 %v11631_v60  ;;  %2710 = vmatpush.msrb.mxu1 %v11636_v18 }
 0x40b   :  { %2731 = vmatpush.msra.mxu2 %v11624_v44  ;;  %v2228_v44 = vunpack.c.l.bf16 %v8874_v0 }
 0x40c   :  { %2767 = vmatpush.msrb.mxu3 %v11634_v17  ;;  %2711 = vmatpush.msrb.mxu1 %v11639_v28 }
 0x40d   :  { %v1848_v35 = vpop.f32.mrf.mxu0  ;;  %2732 = vmatpush.msra.mxu2 %v11627_v20 }
 0x40e   :  { %v1849_v31 = vadd.f32 %v1848_v35, %v1436_v43  ;;  %8880 = vmatmul.msk.f32.vlgmr.msrb.gmra.mxu2 %vm195_vm0, %v13258_v8  ;;  %2768 = vmatpush.msrb.mxu3 %v11637_v39  ;;  %v2231_v39 = vunpack.c.l.bf16 %v8876_v61 }
 0x40f   :  { %v1861_v5 = vpop.f32.mrf.mxu1  ;;  %8885 = vmatmul.msk.f32.gmra.mxu3 %vm195_vm0, %v13303_v54  ;;  %2733 = vmatpush.msra.mxu2 %v11629_v63 }
 0x410   :  { %v1862_v59 = vadd.f32 %v1861_v5, %v1849_v31  ;;  %2769 = vmatpush.msrb.mxu3 %v11641_v34 }
 0x411   :  { %v1822_v40 = vpop.f32.mrf.mxu2  ;;  %2734 = vmatpush.msra.mxu2 %v11632_v29 }
 0x412   :  { %v1868_v42 = vpack.c.bf16 %v1862_v59, %v1862_v59  ;;  %v1823_v56 = vadd.f32 %v1822_v40, %v1435_v47 }
 0x413   :  { %2735 = vmatpush.msra.mxu2 %v11635_v19  ;;  %v13425_v19 = vld [vmem:[%s16705_s3 + $0x54] sm:$0xff] }
 0x414   :  { %v1835_v4 = vpop.f32.mrf.mxu3  ;;  %2172 = vmatmul.bf16.vlgmr.msra.gmra.mxu1 %v1868_v42 }
 0x415   :  { %v1836_v27 = vadd.f32 %v1835_v4, %v1823_v56  ;;  %v1850_v15 = vpop.f32.mrf.mxu0  ;;  %2736 = vmatpush.msra.mxu2 %v11638_v3 }
 0x416   :  { %8881 = vmatmul.msk.f32.gmra.mxu2 %vm195_vm0, %v13303_v54 }
 0x417   :  { %v1867_v55 = vpack.c.bf16 %v1836_v27, %v1836_v27  ;;  %v1863_v33 = vpop.f32.mrf.mxu1  ;;  %8886 = vmatmul.msk.f32.gmra.mxu3 %vm195_vm0, %v8870_v16  ;;  %2737 = vmatpush.msra.mxu2 %v11640_v49  ;;  %v8873_v27 = vld [vmem:[%s16705_s3 + $0x38] sm:$0xf] }
 0x418   :  { %v2227_v18 = vunpack.c.l.bf16 %v8873_v27 }
 0x419   :  { %2159 = vmatmul.bf16.vlgmr.msra.gmra.mxu0 %v1867_v55  ;;  %v1824_v41 = vpop.f32.mrf.mxu2  ;;  %2738 = vmatpush.msra.mxu2 %v11642_v36 }
 0x41b   :  { %2739 = vmatpush.msra.mxu2 %v11643_v62  ;;  %v2235_v62 = vunpack.c.h.bf16 %v13425_v19 }
 0x41c   :  { %v1837_v37 = vpop.f32.mrf.mxu3 }
 0x41d   :  { %2740 = vmatpush.msra.mxu2 %v11644_v30 }
 0x41e   :  { %8882 = vmatmul.msk.f32.gmra.mxu2 %vm195_vm0, %v8870_v16 }
 0x41f   :  { %8887 = vmatmul.msk.f32.gmra.mxu3 %vm195_vm0, %v8871_v6 }
 0x426   :  { %8883 = vmatmul.msk.f32.gmra.mxu2 %vm195_vm0, %v8871_v6 }
 0x429   :  { %8888 = vmatmul.msk.f32.vlgmr.msrb.gmra.mxu0 %vm195_vm0, %v13258_v8 }
 0x431   :  { %8889 = vmatmul.msk.f32.gmra.mxu0 %vm195_vm0, %v13303_v54 }
 0x439   :  { %8890 = vmatmul.msk.f32.gmra.mxu0 %vm195_vm0, %v8870_v16 }
 0x441   :  { %8891 = vmatmul.msk.f32.gmra.mxu0 %vm195_vm0, %v8871_v6  ;;  %v13437_v6 = vld [vmem:[%s16705_s3 + $0x44] sm:$0xf] }
 0x47a   :  { %v2147_v53 = vpop.f32.mrf.mxu3 }
 0x481   :  { %v2134_v11 = vpop.f32.mrf.mxu2 }
 0x482   :  { %v2149_v12 = vpop.f32.mrf.mxu3  ;;  %v2148_v51 = vadd.f32 %v2147_v53, %v2134_v11 }
 0x489   :  { %v2136_v38 = vpop.f32.mrf.mxu2 }
 0x48a   :  { %v2295_v1 = vpop.f32.mrf.mxu3 }
 0x48b   :  { %v2296_v10 = vadd.f32 %v2295_v1, %v2226_v45 }
 0x48d   :  { %v13393_v14 = vmul.f32 0.70710677, %v2296_v10  ;;  %v13428_v3 = vmul.f32 0.5, %v2296_v10 }
 0x48f   :  { %v2361_v8 = vand.u32 2147483647, %v13393_v14  ;;  %vm2625_vm9 = vcmp.ge.f32.partialorder %v13393_v14, 0.0 }
 0x491   :  { %v2173_v32 = vpop.f32.mrf.mxu1  ;;  %v2373_v9 = vmul.f32 0.3275911, %v2361_v8  ;;  %v2266_v21 = vpop.f32.mrf.mxu2  ;;  %v2553_v59 = vsub.f32 0.0, %v2361_v8 }
 0x492   :  { %v2267_v43 = vadd.f32 %v2266_v21, %v2225_v57  ;;  %v2298_v25 = vpop.f32.mrf.mxu3 }
 0x493   :  { %v2385_v48 = vadd.f32 1.0, %v2373_v9  ;;  %v2299_v24 = vadd.f32 %v2298_v25, %v2229_v2  ;;  %v2565_v29 = vmul.f32 %v2553_v59, %v2361_v8  ;;  %v2230_v8 = vunpack.c.l.bf16 %v13437_v6  ;;  %v13449_v9 = vld [vmem:[%s16705_s3 + $0x50] sm:$0xf] }
 0x494   :  { %v13396_v35 = vmul.f32 0.70710677, %v2267_v43 }
 0x495   :  { %11348 = vrcp.f32 %v2385_v48  ;;  %v13403_v31 = vmul.f32 0.70710677, %v2299_v24  ;;  %v2578_v49 = vmul.f32 1.442695, %v2565_v29  ;;  %v13451_v21 = vmul.f32 0.5, %v2299_v24 }
 0x496   :  { %v2160_v22 = vpop.f32.mrf.mxu0  ;;  %v2360_v47 = vand.u32 2147483647, %v13396_v35  ;;  %vm2624_vm10 = vcmp.ge.f32.partialorder %v13396_v35, 0.0 }
 0x497   :  { %v2161_v52 = vadd.f32 %v2160_v22, %v2148_v51  ;;  %v2364_v54 = vand.u32 2147483647, %v13403_v31  ;;  %vm2628_vm12 = vcmp.ge.f32.partialorder %v13403_v31, 0.0 }
 0x498   :  { %v2372_v58 = vmul.f32 0.3275911, %v2360_v47  ;;  %v2552_v17 = vsub.f32 0.0, %v2360_v47 }
 0x499   :  { %v13401_v7 = vadd.f32 %v2173_v32, %v2161_v52  ;;  %v2175_v5 = vpop.f32.mrf.mxu1  ;;  %v2269_v20 = vpop.f32.mrf.mxu2  ;;  %v2376_v42 = vmul.f32 0.3275911, %v2364_v54  ;;  %v2556_v28 = vsub.f32 0.0, %v2364_v54  ;;  %v13443_v32 = vmul.f32 0.5, %v2267_v43 }
 0x49a   :  { %v2384_v40 = vadd.f32 1.0, %v2372_v58  ;;  %v13407_v56 = vadd.f32 %v2269_v20, %v2228_v44  ;;  %v2301_v4 = vpop.f32.mrf.mxu3  ;;  %v2564_v11 = vmul.f32 %v2552_v17, %v2360_v47  ;;  %v2234_v43 = vunpack.c.l.bf16 %v13425_v19 }
 0x49b   :  { %v11349_v63 = vpop.eup %11348  ;;  %v13409_v13 = vadd.f32 %v2301_v4, %v2232_v23  ;;  %v13417_v55 = vadd.f32 1.0, %v2376_v42  ;;  %v2568_v57 = vmul.f32 %v2556_v28, %v2364_v54  ;;  %v2233_v58 = vunpack.c.l.bf16 %v13449_v9 }
 0x49c   :  { %v2409_v60 = vmul.f32 %v11349_v63, %v2385_v48  ;;  %11350 = vrcp.f32 %v2384_v40  ;;  %v13415_v15 = vmul.f32 0.70710677, %v13407_v56  ;;  %v2576_v61 = vmul.f32 1.442695, %v2564_v11 }
 0x49d   :  { %v13420_v33 = vmul.f32 0.70710677, %v13409_v13  ;;  %11352 = vrcp.f32 %v13417_v55  ;;  %v2584_v23 = vmul.f32 1.442695, %v2568_v57  ;;  %v13469_v42 = vmul.f32 0.5, %v13407_v56 }
 0x49e   :  { %v2162_v46 = vpop.f32.mrf.mxu0  ;;  %v2421_v50 = vsub.f32 2.0, %v2409_v60  ;;  %v2363_v16 = vand.u32 2147483647, %v13415_v15  ;;  %11354 = vpow2.f32 %v2578_v49  ;;  %vm2627_vm13 = vcmp.ge.f32.partialorder %v13415_v15, 0.0 }
 0x49f   :  { %v2367_v37 = vand.u32 2147483647, %v13420_v33  ;;  %vm2631_vm15 = vcmp.ge.f32.partialorder %v13420_v33, 0.0 }
 0x4a0   :  { %v13430_v41 = vmul.f32 %v11349_v63, %v2421_v50  ;;  %v2375_v34 = vmul.f32 0.3275911, %v2363_v16  ;;  %v2555_v25 = vsub.f32 0.0, %v2363_v16  ;;  %v13473_v50 = vmul.f32 0.5, %v13409_v13 }
 0x4a1   :  { %v2272_v36 = vpop.f32.mrf.mxu2  ;;  %v2379_v12 = vmul.f32 0.3275911, %v2367_v37  ;;  %v2559_v24 = vsub.f32 0.0, %v2367_v37 }
 0x4a2   :  { %v11351_v30 = vpop.eup %11350  ;;  %v2445_v53 = vmul.f32 1.0614054, %v13430_v41  ;;  %v2387_v38 = vadd.f32 1.0, %v2375_v34  ;;  %v13441_v10 = vadd.f32 %v2272_v36, %v2231_v39  ;;  %v2304_v52 = vpop.f32.mrf.mxu3  ;;  %v2567_v4 = vmul.f32 %v2555_v25, %v2363_v16 }
 0x4a3   :  { %v2408_v45 = vmul.f32 %v11351_v30, %v2384_v40  ;;  %v2391_v51 = vadd.f32 1.0, %v2379_v12  ;;  %v11353_v44 = vpop.eup %11352  ;;  %v13465_v40 = vadd.f32 %v2304_v52, %v2235_v62  ;;  %v2571_v28 = vmul.f32 %v2559_v24, %v2367_v37 }
 0x4a4   :  { %v2457_v0 = vadd.f32 -1.4531521, %v2445_v53  ;;  %11356 = vrcp.f32 %v2387_v38  ;;  %v13460_v47 = vmul.f32 0.70710677, %v13441_v10  ;;  %v11355_v27 = vpop.eup %11354  ;;  %v2412_v39 = vmul.f32 %v11353_v44, %v13417_v55 }
 0x4a5   :  { %v2420_v2 = vsub.f32 2.0, %v2408_v45  ;;  %11358 = vrcp.f32 %v2391_v51  ;;  %v13478_v34 = vmul.f32 0.70710677, %v13465_v40  ;;  %v2582_v62 = vmul.f32 1.442695, %v2567_v4 }
 0x4a6   :  { %v2324_v26 = vpop.f32.mrf.mxu0  ;;  %v2469_v22 = vmul.f32 %v2457_v0, %v13430_v41  ;;  %v2366_v63 = vand.u32 2147483647, %v13460_v47  ;;  %11360 = vpow2.f32 %v2576_v61  ;;  %v2590_v45 = vmul.f32 1.442695, %v2571_v28 }
 0x4a7   :  { %v2325_v1 = vadd.f32 %v2324_v26, %v2227_v18  ;;  %v13455_v48 = vmul.f32 %v11351_v30, %v2420_v2  ;;  %11362 = vpow2.f32 %v2584_v23  ;;  %v2424_v26 = vsub.f32 2.0, %v2412_v39 }
 0x4a8   :  { %v2481_v54 = vadd.f32 1.4214138, %v2469_v22  ;;  %v2378_v49 = vmul.f32 0.3275911, %v2366_v63  ;;  %v2370_v22 = vand.u32 2147483647, %v13478_v34 }
 0x4a9   :  { %v13457_v5 = vmul.f32 0.70710677, %v2325_v1  ;;  %v2444_v59 = vmul.f32 1.0614054, %v13455_v48  ;;  %v13481_v6 = vmul.f32 0.5, %v2325_v1  ;;  %v2275_v30 = vpop.f32.mrf.mxu2  ;;  %v2558_v1 = vsub.f32 0.0, %v2366_v63 }
 0x4aa   :  { %v2493_v46 = vmul.f32 %v2481_v54, %v13430_v41  ;;  %v11357_v19 = vpop.eup %11356  ;;  %v2390_v37 = vadd.f32 1.0, %v2378_v49  ;;  %v13490_v25 = vadd.f32 %v2275_v30, %v2234_v43  ;;  %v2382_v24 = vmul.f32 0.3275911, %v2370_v22 }
 0x4ab   :  { %v2362_v20 = vand.u32 2147483647, %v13457_v5  ;;  %v2456_v29 = vadd.f32 -1.4531521, %v2444_v59  ;;  %v13483_v53 = vpop.eup %11358  ;;  %v2411_v55 = vmul.f32 %v11357_v19, %v2387_v38  ;;  %v13496_v4 = vmul.f32 %v11353_v44, %v2424_v26 }
 0x4ac   :  { %v2505_v18 = vadd.f32 -0.28449672, %v2493_v46  ;;  %v11361_v57 = vpop.eup %11360  ;;  %v2415_v38 = vmul.f32 %v13483_v53, %v2391_v51  ;;  %v2394_v51 = vadd.f32 1.0, %v2382_v24  ;;  %v2562_v39 = vsub.f32 0.0, %v2370_v22 }
 0x4ad   :  { %v2374_v17 = vmul.f32 0.3275911, %v2362_v20  ;;  %v2468_v56 = vmul.f32 %v2456_v29, %v13455_v48  ;;  %v2554_v13 = vsub.f32 0.0, %v2362_v20  ;;  %v13494_v54 = vpop.eup %11362  ;;  %v2423_v23 = vsub.f32 2.0, %v2411_v55 }
 0x4ae   :  { %v2327_v60 = vpop.f32.mrf.mxu0  ;;  %v2517_v36 = vmul.f32 %v2505_v18, %v13430_v41  ;;  %v2570_v29 = vmul.f32 %v2558_v1, %v2366_v63  ;;  %v2427_v49 = vsub.f32 2.0, %v2415_v38  ;;  %v2574_v1 = vmul.f32 %v2562_v39, %v2370_v22 }
 0x4af   :  { %v2386_v16 = vadd.f32 1.0, %v2374_v17  ;;  %v2480_v11 = vadd.f32 1.4214138, %v2468_v56  ;;  %v13485_v0 = vadd.f32 %v2327_v60, %v2230_v8  ;;  %v2566_v61 = vmul.f32 %v2554_v13, %v2362_v20 }
 0x4b0   :  { %v2529_v12 = vadd.f32 0.2548296, %v2517_v36  ;;  %v13503_v20 = vmul.f32 0.70710677, %v13490_v25  ;;  %v13506_v44 = vmul.f32 %v11357_v19, %v2423_v23  ;;  %v13532_v14 = vmul.f32 %v13483_v53, %v2427_v49 }
 0x4b1   :  { %11364 = vrcp.f32 %v2386_v16  ;;  %v2492_v2 = vmul.f32 %v2480_v11, %v13455_v48  ;;  %v13499_v43 = vmul.f32 0.70710677, %v13485_v0  ;;  %v2580_v56 = vmul.f32 1.442695, %v2566_v61 }
 0x4b2   :  { %v2541_v52 = vmul.f32 %v2529_v12, %v13430_v41  ;;  %11366 = vpow2.f32 %v2582_v62  ;;  %v2588_v11 = vmul.f32 1.442695, %v2570_v29  ;;  %v2369_v55 = vand.u32 2147483647, %v13503_v20  ;;  %v8879_v12 = vld [vmem:[%s16705_s3 + $0x5c] sm:$0xf] }
 0x4b3   :  { %v2504_v8 = vadd.f32 -0.28449672, %v2492_v2  ;;  %11368 = vrcp.f32 %v2390_v37  ;;  %v2365_v28 = vand.u32 2147483647, %v13499_v43  ;;  %v2236_v23 = vunpack.c.l.bf16 %v8879_v12 }
 0x4b4   :  { %v2601_v46 = vmul.f32 %v11355_v27, %v2541_v52  ;;  %11370 = vpow2.f32 %v2590_v45  ;;  %v2561_v29 = vsub.f32 0.0, %v2369_v55  ;;  %vm2626_vm11 = vcmp.ge.f32.partialorder %v13457_v5, 0.0 }
 0x4b5   :  { %v2516_v41 = vmul.f32 %v2504_v8, %v13455_v48  ;;  %11372 = vrcp.f32 %v2394_v51  ;;  %v2377_v13 = vmul.f32 0.3275911, %v2365_v28  ;;  %v2557_v61 = vsub.f32 0.0, %v2365_v28 }
 0x4b6   :  { %v2330_v59 = vpop.f32.mrf.mxu0  ;;  %v2613_v17 = vsub.f32 1.0, %v2601_v46  ;;  %v2381_v8 = vmul.f32 0.3275911, %v2369_v55  ;;  %vm2630_vm1 = vcmp.ge.f32.partialorder %v13460_v47, 0.0  ;;  %vm2634_vm3 = vcmp.ge.f32.partialorder %v13478_v34, 0.0 }
 0x4b7   :  { %v11365_v60 = vpop.eup %11364  ;;  %v2528_v27 = vadd.f32 0.2548296, %v2516_v41  ;;  %v13517_v19 = vadd.f32 %v2330_v59, %v2233_v58  ;;  %vm2629_vm4 = vcmp.ge.f32.partialorder %v13499_v43, 0.0  ;;  %vm2633_vm5 = vcmp.ge.f32.partialorder %v13503_v20, 0.0 }
 0x4b8   :  { %v2410_v18 = vmul.f32 %v11365_v60, %v2386_v16  ;;  %v13508_v36 = vpop.eup %11366  ;;  %v2637_v62 = vsub.f32 0.0, %v2613_v17  ;;  %v2393_v46 = vadd.f32 1.0, %v2381_v8 }
 0x4b9   :  { %v13511_v30 = vpop.eup %11368  ;;  %v2540_v16 = vmul.f32 %v2528_v27, %v13455_v48  ;;  %v2389_v48 = vadd.f32 1.0, %v2377_v13 }
 0x4ba   :  { %v2422_v63 = vsub.f32 2.0, %v2410_v18  ;;  %v13522_v26 = vpop.eup %11370  ;;  %v2649_v45 = vsel %vm2625_vm9, %v2613_v17, %v2637_v62  ;;  %v2414_v58 = vmul.f32 %v13511_v30, %v2390_v37  ;;  %v2569_v18 = vmul.f32 %v2557_v61, %v2365_v28 }
 0x4bb   :  { %v2661_v52 = vadd.f32 1.0, %v2649_v45  ;;  %v2600_v38 = vmul.f32 %v11361_v57, %v2540_v16  ;;  %11374 = vrcp.f32 %v2389_v48  ;;  %v11373_v22 = vpop.eup %11372  ;;  %v2596_v57 = vmul.f32 1.442695, %v2574_v1 }
 0x4bc   :  { %v13526_v2 = vmul.f32 %v11365_v60, %v2422_v63  ;;  %11376 = vpow2.f32 %v2580_v56  ;;  %v13535_v37 = vmul.f32 0.70710677, %v13517_v19  ;;  %v2426_v39 = vsub.f32 2.0, %v2414_v58 }
 0x4bd   :  { %v2673_v24 = vmul.f32 %v2661_v52, %v13428_v3  ;;  %v2612_v59 = vsub.f32 1.0, %v2600_v38  ;;  %11378 = vrcp.f32 %v2393_v46  ;;  %v2418_v49 = vmul.f32 %v11373_v22, %v2394_v51 }
 0x4be   :  { %v2446_v9 = vmul.f32 1.0614054, %v13526_v2  ;;  %v2333_v60 = vpop.f32.mrf.mxu0  ;;  %11380 = vpow2.f32 %v2588_v11  ;;  %v2368_v56 = vand.u32 2147483647, %v13535_v37  ;;  %v2448_v62 = vmul.f32 1.0614054, %v13496_v4 }
 0x4bf   :  { %v2636_v17 = vsub.f32 0.0, %v2612_v59  ;;  %2741 = vmatmul.f32.vlgmr.msra.gmra.mxu2 %v2673_v24  ;;  %v13538_v53 = vadd.f32 %v2333_v60, %v2236_v23  ;;  %11382 = vpow2.f32 %v2596_v57  ;;  %v2573_v16 = vmul.f32 %v2561_v29, %v2369_v55 }
 0x4c0   :  { %v2458_v41 = vadd.f32 -1.4531521, %v2446_v9  ;;  %v2586_v45 = vmul.f32 1.442695, %v2569_v18  ;;  %v2380_v1 = vmul.f32 0.3275911, %v2368_v56 }
 0x4c1   :  { %v2648_v27 = vsel %vm2624_vm10, %v2612_v59, %v2636_v17  ;;  %v11375_v28 = vpop.eup %11374  ;;  %v2560_v52 = vsub.f32 0.0, %v2368_v56  ;;  %v13547_v51 = vmul.f32 0.70710677, %v13538_v53  ;;  %v2460_v61 = vadd.f32 -1.4531521, %v2448_v62 }
 0x4c2   :  { %v2470_v3 = vmul.f32 %v2458_v41, %v13526_v2  ;;  %v2660_v63 = vadd.f32 1.0, %v2648_v27  ;;  %v2413_v12 = vmul.f32 %v11375_v28, %v2389_v48  ;;  %v11377_v11 = vpop.eup %11376  ;;  %v2430_v9 = vsub.f32 2.0, %v2418_v49 }
 0x4c3   :  { %v11379_v8 = vpop.eup %11378  ;;  %v2392_v58 = vadd.f32 1.0, %v2380_v1  ;;  %v2572_v23 = vmul.f32 %v2560_v52, %v2368_v56  ;;  %v2447_v24 = vmul.f32 1.0614054, %v13506_v44  ;;  %v2594_v60 = vmul.f32 1.442695, %v2573_v16 }
 0x4c4   :  { %v2482_v13 = vadd.f32 1.4214138, %v2470_v3  ;;  %v2672_v38 = vmul.f32 %v2660_v63, %v13443_v32  ;;  %v13550_v55 = vpop.eup %11380  ;;  %v2417_v59 = vmul.f32 %v11379_v8, %v2393_v46  ;;  %v13553_v41 = vand.u32 2147483647, %v13547_v51 }
 0x4c5   :  { %v13556_v32 = vmul.f32 %v13511_v30, %v2426_v39  ;;  %v2425_v57 = vsub.f32 2.0, %v2413_v12  ;;  %11384 = vrcp.f32 %v2392_v58  ;;  %v2472_v29 = vmul.f32 %v2460_v61, %v13496_v4  ;;  %v13559_v17 = vpop.eup %11382 }
 0x4c6   :  { %v2494_v35 = vmul.f32 %v2482_v13, %v13526_v2  ;;  %2712 = vmatmul.f32.vlgmr.msrb.gmra.mxu1 %v2672_v38  ;;  %11386 = vpow2.f32 %v2586_v45  ;;  %v2592_v3 = vmul.f32 1.442695, %v2572_v23  ;;  %v2383_v46 = vmul.f32 0.3275911, %v13553_v41 }
 0x4c7   :  { %v13563_v27 = vmul.f32 %v11373_v22, %v2430_v9  ;;  %v2484_v49 = vadd.f32 1.4214138, %v2472_v29  ;;  %v2459_v56 = vadd.f32 -1.4531521, %v2447_v24  ;;  %v2451_v62 = vmul.f32 1.0614054, %v13532_v14 }
 0x4c8   :  { %v2506_v48 = vadd.f32 -0.28449672, %v2494_v35  ;;  %v2429_v39 = vsub.f32 2.0, %v2417_v59  ;;  %11388 = vpow2.f32 %v2594_v60  ;;  %v2395_v63 = vadd.f32 1.0, %v2383_v46 }
 0x4c9   :  { %v13567_v13 = vmul.f32 %v11375_v28, %v2425_v57  ;;  %v2496_v16 = vmul.f32 %v2484_v49, %v13496_v4  ;;  %v2471_v12 = vmul.f32 %v2459_v56, %v13506_v44  ;;  %v2463_v45 = vadd.f32 -1.4531521, %v2451_v62 }
 0x4ca   :  { %v2518_v18 = vmul.f32 %v2506_v48, %v13526_v2  ;;  %11390 = vrcp.f32 %v2395_v63  ;;  %v2563_v1 = vsub.f32 0.0, %v13553_v41  ;;  %v2450_v52 = vmul.f32 1.0614054, %v13556_v32 }
 0x4cb   :  { %v11385_v38 = vpop.eup %11384  ;;  %11392 = vpow2.f32 %v2592_v3  ;;  %v2508_v35 = vadd.f32 -0.28449672, %v2496_v16  ;;  %v2483_v61 = vadd.f32 1.4214138, %v2471_v12  ;;  %v2475_v9 = vmul.f32 %v2463_v45, %v13532_v14 }
 0x4cc   :  { %v2530_v30 = vadd.f32 0.2548296, %v2518_v18  ;;  %v13575_v28 = vpop.eup %11386  ;;  %v13577_v24 = vmul.f32 %v11379_v8, %v2429_v39  ;;  %v2416_v48 = vmul.f32 %v11385_v38, %v2392_v58  ;;  %v2462_v59 = vadd.f32 -1.4531521, %v2450_v52 }
 0x4cd   :  { %v2495_v60 = vmul.f32 %v2483_v61, %v13506_v44  ;;  %v2487_v57 = vadd.f32 1.4214138, %v2475_v9  ;;  %v2454_v29 = vmul.f32 1.0614054, %v13563_v27  ;;  %v2449_v56 = vmul.f32 1.0614054, %v13567_v13 }
 0x4ce   :  { %v2542_v22 = vmul.f32 %v2530_v30, %v13526_v2  ;;  %v2520_v2 = vmul.f32 %v2508_v35, %v13496_v4  ;;  %v13582_v18 = vpop.eup %11388  ;;  %v2428_v46 = vsub.f32 2.0, %v2416_v48  ;;  %v2474_v49 = vmul.f32 %v2462_v59, %v13556_v32 }
 0x4cf   :  { %v2507_v8 = vadd.f32 -0.28449672, %v2495_v60  ;;  %v2499_v58 = vmul.f32 %v2487_v57, %v13532_v14  ;;  %v2466_v62 = vadd.f32 -1.4531521, %v2454_v29  ;;  %v2461_v45 = vadd.f32 -1.4531521, %v2449_v56 }
 0x4d0   :  { %v2602_v23 = vmul.f32 %v11377_v11, %v2542_v22  ;;  %v2532_v11 = vadd.f32 0.2548296, %v2520_v2  ;;  %v11391_v30 = vpop.eup %11390  ;;  %v13588_v16 = vmul.f32 %v11385_v38, %v2428_v46  ;;  %v2486_v12 = vadd.f32 1.4214138, %v2474_v49 }
 0x4d1   :  { %v13590_v22 = vpop.eup %11392  ;;  %v2419_v52 = vmul.f32 %v11391_v30, %v2395_v63  ;;  %v2519_v61 = vmul.f32 %v2507_v8, %v13506_v44  ;;  %v2511_v9 = vadd.f32 -0.28449672, %v2499_v58  ;;  %v2478_v59 = vmul.f32 %v2466_v62, %v13563_v27 }
 0x4d2   :  { %v2614_v3 = vsub.f32 1.0, %v2602_v23  ;;  %v2544_v35 = vmul.f32 %v2532_v11, %v13496_v4  ;;  %v2498_v48 = vmul.f32 %v2486_v12, %v13556_v32  ;;  %v2473_v38 = vmul.f32 %v2461_v45, %v13567_v13 }
 0x4d3   :  { %v2431_v60 = vsub.f32 2.0, %v2419_v52  ;;  %v2531_v29 = vadd.f32 0.2548296, %v2519_v61  ;;  %v2523_v4 = vmul.f32 %v2511_v9, %v13532_v14  ;;  %v2490_v46 = vadd.f32 1.4214138, %v2478_v59 }
 0x4d4   :  { %v2638_v39 = vsub.f32 0.0, %v2614_v3  ;;  %v2604_v57 = vmul.f32 %v13494_v54, %v2544_v35  ;;  %v2510_v63 = vadd.f32 -0.28449672, %v2498_v48  ;;  %v2485_v49 = vadd.f32 1.4214138, %v2473_v38 }
 0x4d5   :  { %v2543_v11 = vmul.f32 %v2531_v29, %v13506_v44  ;;  %v2535_v8 = vadd.f32 0.2548296, %v2523_v4  ;;  %v2502_v54 = vmul.f32 %v2490_v46, %v13563_v27  ;;  %vm2632_vm6 = vcmp.ge.f32.partialorder %v13535_v37, 0.0 }
 0x4d6   :  { %v2650_v23 = vsel %vm2626_vm11, %v2614_v3, %v2638_v39  ;;  %v13603_v3 = vmul.f32 %v11391_v30, %v2431_v60  ;;  %v2616_v56 = vsub.f32 1.0, %v2604_v57  ;;  %v2522_v58 = vmul.f32 %v2510_v63, %v13556_v32 }
 0x4d7   :  { %v2662_v2 = vadd.f32 1.0, %v2650_v23  ;;  %v2497_v62 = vmul.f32 %v2485_v49, %v13567_v13  ;;  %v2603_v12 = vmul.f32 %v13508_v36, %v2543_v11  ;;  %v2452_v30 = vmul.f32 1.0614054, %v13588_v16 }
 0x4d8   :  { %v2640_v39 = vsub.f32 0.0, %v2616_v56  ;;  %v2547_v44 = vmul.f32 %v2535_v8, %v13532_v14  ;;  %v2534_v45 = vadd.f32 0.2548296, %v2522_v58  ;;  %v2514_v52 = vadd.f32 -0.28449672, %v2502_v54 }
 0x4d9   :  { %v2674_v5 = vmul.f32 %v2662_v2, %v13481_v6  ;;  %v2453_v6 = vmul.f32 1.0614054, %v13577_v24  ;;  %v2509_v35 = vadd.f32 -0.28449672, %v2497_v62  ;;  %v2615_v9 = vsub.f32 1.0, %v2603_v12 }
 0x4da   :  { %v2652_v61 = vsel %vm2628_vm12, %v2616_v56, %v2640_v39  ;;  %v2464_v48 = vadd.f32 -1.4531521, %v2452_v30  ;;  %v2607_v59 = vmul.f32 %v13522_v26, %v2547_v44  ;;  %v2546_v38 = vmul.f32 %v2534_v45, %v13556_v32 }
 0x4db   :  { %8892 = vmatmul.msk.f32.vlgmr.msrb.gmra.mxu3 %vm643_vm2, %v2674_v5  ;;  %v2465_v23 = vadd.f32 -1.4531521, %v2453_v6  ;;  %v2664_v36 = vadd.f32 1.0, %v2652_v61  ;;  %v2526_v2 = vmul.f32 %v2514_v52, %v13563_v27  ;;  %v2639_v60 = vsub.f32 0.0, %v2615_v9 }
 0x4dc   :  { %v2521_v14 = vmul.f32 %v2509_v35, %v13567_v13  ;;  %v2476_v29 = vmul.f32 %v2464_v48, %v13588_v16  ;;  %v2619_v4 = vsub.f32 1.0, %v2607_v59  ;;  %v2606_v63 = vmul.f32 %v13550_v55, %v2546_v38 }
 0x4dd   :  { %v2477_v57 = vmul.f32 %v2465_v23, %v13577_v24  ;;  %v2676_v31 = vmul.f32 %v2664_v36, %v13451_v21  ;;  %v2538_v46 = vadd.f32 0.2548296, %v2526_v2  ;;  %v2651_v26 = vsel %vm2627_vm13, %v2615_v9, %v2639_v60 }
 0x4de   :  { %v2533_v32 = vadd.f32 0.2548296, %v2521_v14  ;;  %v2488_v5 = vadd.f32 1.4214138, %v2476_v29  ;;  %v2663_v56 = vadd.f32 1.0, %v2651_v26  ;;  %v2643_v11 = vsub.f32 0.0, %v2619_v4 }
 0x4df   :  { %v2489_v49 = vadd.f32 1.4214138, %v2477_v57  ;;  %2744 = vmatmul.f32.gmra.mxu2 %v2676_v31  ;;  %v2618_v8 = vsub.f32 1.0, %v2606_v63  ;;  %v2550_v58 = vmul.f32 %v2538_v46, %v13563_v27  ;;  %v2455_v62 = vmul.f32 1.0614054, %v13603_v3 }
 0x4e0   :  { %v2545_v21 = vmul.f32 %v2533_v32, %v13567_v13  ;;  %v2500_v55 = vmul.f32 %v2488_v5, %v13588_v16  ;;  %v2675_v15 = vmul.f32 %v2663_v56, %v13469_v42  ;;  %v2655_v39 = vsel %vm2631_vm15, %v2619_v4, %v2643_v11 }
 0x4e1   :  { %v2501_v54 = vmul.f32 %v2489_v49, %v13577_v24  ;;  %v2642_v12 = vsub.f32 0.0, %v2618_v8  ;;  %v2610_v6 = vmul.f32 %v13559_v17, %v2550_v58  ;;  %v2667_v30 = vadd.f32 1.0, %v2655_v39 }
 0x4e2   :  { %v2605_v44 = vmul.f32 %v13575_v28, %v2545_v21  ;;  %v2512_v45 = vadd.f32 -0.28449672, %v2500_v55  ;;  %v2575_v13 = vmul.f32 %v2563_v1, %v13553_v41  ;;  %2715 = vmatmul.f32.gmra.mxu1 %v2675_v15  ;;  %v2467_v35 = vadd.f32 -1.4531521, %v2455_v62 }
 0x4e3   :  { %v2513_v27 = vadd.f32 -0.28449672, %v2501_v54  ;;  %v2654_v52 = vsel %vm2630_vm1, %v2618_v8, %v2642_v12  ;;  %v2622_v42 = vsub.f32 1.0, %v2610_v6  ;;  %v2679_v33 = vmul.f32 %v2667_v30, %v13473_v50 }
 0x4e4   :  { %v2666_v61 = vadd.f32 1.0, %v2654_v52  ;;  %v2617_v9 = vsub.f32 1.0, %v2605_v44  ;;  %v2342_v28 = vmul.f32 0.5, %v13441_v10  ;;  %v2524_v48 = vmul.f32 %v2512_v45, %v13588_v16  ;;  %v8899_v45 = vld [vmem:[%s16707_s5 + $0x38] sm:$0xff] }
 0x4e5   :  { %v2525_v17 = vmul.f32 %v2513_v27, %v13577_v24  ;;  %v2646_v23 = vsub.f32 0.0, %v2622_v42  ;;  %v2479_v36 = vmul.f32 %v2467_v35, %v13603_v3  ;;  %v2341_v41 = vmul.f32 0.5, %v13485_v0  ;;  %2840 = vmatpush.msra.mxu0 %v8899_v45  ;;  %v10876_v45 = vld [vmem:[#allocation2 + $0x11c] sm:$0xf0] }
 0x4e6   :  { %v2641_v47 = vsub.f32 0.0, %v2617_v9  ;;  %v2678_v59 = vmul.f32 %v2666_v61, %v2342_v28  ;;  %v2536_v38 = vadd.f32 0.2548296, %v2524_v48  ;;  %v2598_v60 = vmul.f32 1.442695, %v2575_v13  ;;  %v8896_v13 = vld [vmem:[%s16707_s5 + $0x20] sm:$0xff] }
 0x4e7   :  { %v2537_v1 = vadd.f32 0.2548296, %v2525_v17  ;;  %2747 = vmatmul.f32.gmra.mxu2 %v2679_v33  ;;  %v2658_v50 = vsel %vm2634_vm3, %v2622_v42, %v2646_v23  ;;  %v2491_v2 = vadd.f32 1.4214138, %v2479_v36  ;;  %v2346_v29 = vmul.f32 0.5, %v13465_v40 }
 0x4e8   :  { %v2670_v10 = vadd.f32 1.0, %v2658_v50  ;;  %v2653_v14 = vsel %vm2629_vm4, %v2617_v9, %v2641_v47  ;;  %v2548_v0 = vmul.f32 %v2536_v38, %v13588_v16  ;;  %11394 = vpow2.f32 %v2598_v60  ;;  %v9009_v50 = vld [vmem:[#allocation2 + $0x1c8] sm:$0xf] }
 0x4e9   :  { %v2549_v57 = vmul.f32 %v2537_v1, %v13577_v24  ;;  %v2665_v31 = vadd.f32 1.0, %v2653_v14  ;;  %v2503_v43 = vmul.f32 %v2491_v2, %v13603_v3  ;;  %v2345_v56 = vmul.f32 0.5, %v13490_v25  ;;  %v10901_v38 = vld [vmem:[#allocation2 + $0x1e4] sm:$0xf0]  ;;  %v10897_v2 = vld [vmem:[#allocation2 + $0x1cc] sm:$0xf] }
 0x4ea   :  { %2718 = vmatmul.f32.gmra.mxu1 %v2678_v59  ;;  %v2682_v63 = vmul.f32 %v2670_v10, %v2346_v29  ;;  %v2608_v46 = vmul.f32 %v13590_v22, %v2548_v0  ;;  %v2344_v21 = vmul.f32 0.5, %v13517_v19  ;;  %vm2635_vm7 = vcmp.ge.f32.partialorder %v13547_v51, 0.0  ;;  %v8898_v51 = vld [vmem:[%s16707_s5 + $0x30] sm:$0xff]  ;;  %v9011_v10 = vld [vmem:[#allocation2 + $0x1e8] sm:$0xf0] }
 0x4eb   :  { %v2609_v4 = vmul.f32 %v13582_v18, %v2549_v57  ;;  %v2677_v34 = vmul.f32 %v2665_v31, %v2341_v41  ;;  %v2515_v26 = vadd.f32 -0.28449672, %v2503_v43  ;;  %v2347_v25 = vmul.f32 0.5, %v13538_v53  ;;  %v8897_v53 = vld [vmem:[%s16707_s5 + $0x28] sm:$0xff]  ;;  %2841 = vmatpush.msra.mxu0 %v8898_v51  ;;  %v10896_v14 = vld [vmem:[#allocation2 + $0x1c4] sm:$0xf] }
 0x4ec   :  { %v2620_v24 = vsub.f32 1.0, %v2608_v46  ;;  %v9010_v60 = vor.u32 %v10901_v38, %v9009_v50  ;;  %v9003_v57 = vld [vmem:[#allocation2 + $0x1e0] sm:$0xf0]  ;;  %v9014_v29 = vor.u32 %v10897_v2, %v9011_v10  ;;  %v8977_v0 = vld [vmem:[#allocation2 + $0x188] sm:$0xf] }
 0x4ed   :  { %v2621_v32 = vsub.f32 1.0, %v2609_v4  ;;  %8893 = vmatmul.msk.f32.gmra.mxu3 %vm643_vm2, %v2677_v34  ;;  %v2527_v40 = vmul.f32 %v2515_v26, %v13603_v3  ;;  %2842 = vmatpush.msra.mxu0 %v8897_v53  ;;  %v9006_v31 = vor.u32 %v10896_v14, %v9003_v57  ;;  %v10893_v43 = vld [vmem:[#allocation2 + $0x1a4] sm:$0xf0]  ;;  %v10889_v4 = vld [vmem:[#allocation2 + $0x18c] sm:$0xf] }
 0x4ee   :  { %v2644_v16 = vsub.f32 0.0, %v2620_v24  ;;  %v11395_v58 = vpop.eup %11394  ;;  %3094 = vmatpush.bf16.msrb.mxu2 %v9010_v60  ;;  %v8979_v34 = vld [vmem:[#allocation2 + $0x1a8] sm:$0xf0]  ;;  %v10888_v46 = vld [vmem:[#allocation2 + $0x184] sm:$0xf]  ;;  %3107 = vmatpush.bf16.msra.mxu3 %v9014_v29 }
 0x4ef   :  { %v2645_v49 = vsub.f32 0.0, %v2621_v32  ;;  %2750 = vmatmul.f32.gmra.mxu2 %v2682_v63  ;;  %v2539_v5 = vadd.f32 0.2548296, %v2527_v40  ;;  %2843 = vmatpush.msra.mxu0 %v8896_v13  ;;  %v8978_v63 = vor.u32 %v10893_v43, %v8977_v0  ;;  %v8971_v26 = vld [vmem:[#allocation2 + $0x1a0] sm:$0xf0] }
 0x4f0   :  { %v2656_v11 = vsel %vm2632_vm6, %v2620_v24, %v2644_v16  ;;  %3081 = vmatpush.bf16.msra.mxu1 %v9006_v31  ;;  %v8974_v24 = vor.u32 %v10888_v46, %v8971_v26  ;;  %v8945_v40 = vld [vmem:[#allocation2 + $0x148] sm:$0xf]  ;;  %v9001_v16 = vld [vmem:[#allocation2 + $0x1c0] sm:$0xf]  ;;  %v10872_v51 = vld [vmem:[#allocation2 + $0x104] sm:$0xf] }
 0x4f1   :  { %v2657_v18 = vsel %vm2633_vm5, %v2621_v32, %v2645_v49  ;;  %v2551_v8 = vmul.f32 %v2539_v5, %v13603_v3  ;;  %v2668_v54 = vadd.f32 1.0, %v2656_v11  ;;  %v8982_v32 = vor.u32 %v10889_v4, %v8979_v34  ;;  %v10885_v49 = vld [vmem:[#allocation2 + $0x164] sm:$0xf0]  ;;  %v10900_v5 = vld [vmem:[#allocation2 + $0x1dc] sm:$0xf0] }
 0x4f2   :  { %v2669_v22 = vadd.f32 1.0, %v2657_v18  ;;  %v10881_v18 = vld [vmem:[#allocation2 + $0x14c] sm:$0xf]  ;;  %v8969_v11 = vld [vmem:[#allocation2 + $0x180] sm:$0xf]  ;;  %3095 = vmatpush.bf16.msrb.mxu2 %v8978_v63 }
 0x4f3   :  { %v2611_v62 = vmul.f32 %v11395_v58, %v2551_v8  ;;  %v2680_v15 = vmul.f32 %v2668_v54, %v2344_v21  ;;  %v10892_v8 = vld [vmem:[#allocation2 + $0x19c] sm:$0xf0]  ;;  %v10880_v58 = vld [vmem:[#allocation2 + $0x144] sm:$0xf]  ;;  %v8946_v21 = vor.u32 %v10885_v49, %v8945_v40  ;;  %3108 = vmatpush.bf16.msra.mxu3 %v8982_v32  ;;  %v8985_v50 = vld [vmem:[#allocation2 + $0x190] sm:$0xf] }
 0x4f4   :  { %v2681_v55 = vmul.f32 %v2669_v22, %v2345_v56  ;;  %v8947_v56 = vld [vmem:[#allocation2 + $0x168] sm:$0xf0]  ;;  %v9002_v22 = vor.u32 %v10900_v5, %v9001_v16  ;;  %v8939_v54 = vld [vmem:[#allocation2 + $0x160] sm:$0xf0]  ;;  %3082 = vmatpush.bf16.msra.mxu1 %v8974_v24  ;;  %v10894_v38 = vld [vmem:[#allocation2 + $0x1ac] sm:$0xf0] }
 0x4f5   :  { %v2623_v20 = vsub.f32 1.0, %v2611_v62  ;;  %8894 = vmatmul.msk.f32.gmra.mxu3 %vm643_vm2, %v2680_v15  ;;  %v8942_v62 = vor.u32 %v10880_v58, %v8939_v54  ;;  %v8913_v15 = vld [vmem:[#allocation2 + $0x108] sm:$0xf]  ;;  %v8907_v13 = vld [vmem:[#allocation2 + $0x120] sm:$0xf0]  ;;  %v8986_v60 = vor.u32 %v10894_v38, %v8985_v50 }
 0x4f6   :  { %2721 = vmatmul.f32.gmra.mxu1 %v2681_v55  ;;  %v8950_v55 = vor.u32 %v10881_v18, %v8947_v56  ;;  %3068 = vmatpush.bf16.msrb.mxu0 %v9002_v22  ;;  %v10890_v10 = vld [vmem:[#allocation2 + $0x194] sm:$0xf]  ;;  %v10891_v57 = vld [vmem:[#allocation2 + $0x19c] sm:$0xf]  ;;  %v8961_v0 = vld [vmem:[#allocation2 + $0x158] sm:$0xf] }
 0x4f7   :  { %v2647_v39 = vsub.f32 0.0, %v2623_v20  ;;  %3096 = vmatpush.bf16.msrb.mxu2 %v8946_v21  ;;  %v8987_v14 = vld [vmem:[#allocation2 + $0x1b0] sm:$0xf0]  ;;  %v8995_v31 = vld [vmem:[#allocation2 + $0x1b8] sm:$0xf0] }
 0x4f8   :  { %3109 = vmatpush.bf16.msra.mxu3 %v8950_v55  ;;  %3083 = vmatpush.bf16.msra.mxu1 %v8942_v62  ;;  %v8990_v29 = vor.u32 %v10890_v10, %v8987_v14  ;;  %v10887_v43 = vld [vmem:[#allocation2 + $0x174] sm:$0xf0]  ;;  %v8998_v4 = vor.u32 %v10891_v57, %v8995_v31  ;;  %v8953_v63 = vld [vmem:[#allocation2 + $0x150] sm:$0xf]  ;;  %v10882_v46 = vld [vmem:[#allocation2 + $0x154] sm:$0xf] }
 0x4f9   :  { %v2659_v37 = vsel %vm2635_vm7, %v2623_v20, %v2647_v39  ;;  %v10877_v20 = vld [vmem:[#allocation2 + $0x124] sm:$0xf0]  ;;  %v8970_v39 = vor.u32 %v10892_v8, %v8969_v11  ;;  %v10886_v34 = vld [vmem:[#allocation2 + $0x16c] sm:$0xf0]  ;;  %v8962_v26 = vor.u32 %v10887_v43, %v8961_v0  ;;  %v8955_v32 = vld [vmem:[#allocation2 + $0x170] sm:$0xf0] }
 0x4fa   :  { %v2671_v12 = vadd.f32 1.0, %v2659_v37  ;;  %v10873_v37 = vld [vmem:[#allocation2 + $0x10c] sm:$0xf]  ;;  %v10883_v24 = vld [vmem:[#allocation2 + $0x15c] sm:$0xf]  ;;  %v8954_v49 = vor.u32 %v10886_v34, %v8953_v63  ;;  %v8958_v16 = vor.u32 %v10882_v46, %v8955_v32 }
 0x4fb   :  { %3069 = vmatpush.bf16.msrb.mxu0 %v8970_v39  ;;  %v8963_v40 = vld [vmem:[#allocation2 + $0x178] sm:$0xf0]  ;;  %v8929_v5 = vld [vmem:[#allocation2 + $0x118] sm:$0xf]  ;;  %v8921_v56 = vld [vmem:[#allocation2 + $0x110] sm:$0xf] }
 0x4fc   :  { %v2683_v6 = vmul.f32 %v2671_v12, %v2347_v25  ;;  %v8915_v25 = vld [vmem:[#allocation2 + $0x128] sm:$0xf0]  ;;  %v8937_v12 = vld [vmem:[#allocation2 + $0x140] sm:$0xf]  ;;  %v10879_v18 = vld [vmem:[#allocation2 + $0x134] sm:$0xf0]  ;;  %v8966_v22 = vor.u32 %v10883_v24, %v8963_v40 }
 0x4fd   :  { %v10878_v11 = vld [vmem:[#allocation2 + $0x12c] sm:$0xf0]  ;;  %v10874_v8 = vld [vmem:[#allocation2 + $0x114] sm:$0xf]  ;;  %v10875_v21 = vld [vmem:[#allocation2 + $0x11c] sm:$0xf]  ;;  %v8930_v55 = vor.u32 %v10879_v18, %v8929_v5 }
 0x4fe   :  { %8895 = vmatmul.msk.f32.gmra.mxu3 %vm643_vm2, %v2683_v6  ;;  %v10884_v6 = vld [vmem:[#allocation2 + $0x15c] sm:$0xf0]  ;;  %v8923_v58 = vld [vmem:[#allocation2 + $0x130] sm:$0xf0]  ;;  %v8931_v54 = vld [vmem:[#allocation2 + $0x138] sm:$0xf0]  ;;  %v8922_v62 = vor.u32 %v10878_v11, %v8921_v56 }
 0x4ff   :  { %v11264_v39 = vld [vmem:[%s16708_s6 + $0x1] ss:$0 sm:$0xff] }
 0x542   :  { %v2742_v19 = vpop.f32.mrf.mxu2 }
 0x543   :  { %v2713_v3 = vpop.f32.mrf.mxu1 }
 0x544   :  { %v2743_v30 = vadd.f32 %v2742_v19, %v2713_v3  ;;  %v8914_v3 = vor.u32 %v10877_v20, %v8913_v15  ;;  %v8918_v19 = vor.u32 %v10873_v37, %v8915_v25  ;;  %v8926_v15 = vor.u32 %v10874_v8, %v8923_v58 }
 0x545   :  { %v8934_v20 = vor.u32 %v10875_v21, %v8931_v54 }
 0x546   :  { %3097 = vmatpush.bf16.msrb.mxu2 %v8914_v3  ;;  %3110 = vmatpush.bf16.msra.mxu3 %v8918_v19 }
 0x55e   :  { %v2771_v44 = vpop.f32.mrf.mxu3 }
 0x55f   :  { %v2772_v27 = vadd.f32 %v2771_v44, %v2743_v30  ;;  %v2716_v52 = vpop.f32.mrf.mxu1  ;;  %v8938_v30 = vor.u32 %v10884_v6, %v8937_v12  ;;  %v13697_v6 = vld [vmem:[%s16710_s8 + $0x8] sm:$0xff] }
 0x560   :  { %v2885_v3 = vperm.slane %v13697_v6, 0  ;;  %v2886_v19 = vperm.slane %v13697_v6, 1  ;;  %v2891_v11 = vperm.slane %v13697_v6, 6  ;;  %v2892_v54 = vperm.slane %v13697_v6, 7 }
 0x561   :  { %2783 = vxpose.xlu1.b32.start [1/4] (short) (narrow) %v2772_v27, 8  ;;  %3070 = vmatpush.bf16.msrb.mxu0 %v8938_v30  ;;  %v8905_v27 = vld [vmem:[#allocation2 + $0x100] sm:$0xf] }
 0x562   :  { %v2745_v42 = vpop.f32.mrf.mxu2  ;;  %v8906_v53 = vor.u32 %v10876_v45, %v8905_v27 }
 0x563   :  { %v2746_v35 = vadd.f32 %v2745_v42, %v2716_v52  ;;  %v8910_v52 = vor.u32 %v10872_v51, %v8907_v13  ;;  %v9025_v42 = vld [vmem:[#allocation2 + $0x1d8] sm:$0xf]  ;;  %v2887_v13 = vperm.slane %v13697_v6, 2 }
 0x565   :  { %3071 = vmatpush.bf16.msrb.mxu0 %v8906_v53  ;;  %3084 = vmatpush.bf16.msra.mxu1 %v8910_v52  ;;  %v2888_v52 = vperm.slane %v13697_v6, 3 }
 0x567   :  { %v2719_v9 = vpop.f32.mrf.mxu1 }
 0x56a   :  { %v2748_v17 = vpop.f32.mrf.mxu2 }
 0x56b   :  { %v2749_v28 = vadd.f32 %v2748_v17, %v2719_v9  ;;  %v10902_v9 = vld [vmem:[#allocation2 + $0x1ec] sm:$0xf0]  ;;  %v10898_v17 = vld [vmem:[#allocation2 + $0x1d4] sm:$0xf] }
 0x570   :  { %v2774_v33 = vpop.f32.mrf.mxu3 }
 0x571   :  { %v2775_v61 = vadd.f32 %v2774_v33, %v2746_v35  ;;  %v10903_v35 = vld [vmem:[#allocation2 + $0x1f4] sm:$0xf0]  ;;  %v9017_v33 = vld [vmem:[#allocation2 + $0x1d0] sm:$0xf] }
 0x572   :  { %v2751_v41 = vpop.f32.mrf.mxu2 }
 0x573   :  { %2784 = vxpose.xlu1.b32.cont [2/4] (short) (narrow) %v2775_v61, 8  ;;  %v2722_v36 = vpop.f32.mrf.mxu1  ;;  %v9026_v61 = vor.u32 %v10903_v35, %v9025_v42 }
 0x574   :  { %v2752_v47 = vadd.f32 %v2751_v41, %v2722_v36  ;;  %v10899_v36 = vld [vmem:[#allocation2 + $0x1dc] sm:$0xf] }
 0x575   :  { %v9027_v41 = vld [vmem:[#allocation2 + $0x1f8] sm:$0xf0]  ;;  %3146 = vmatpush.bf16.msra.mxu2 %v9026_v61 }
 0x578   :  { %v2777_v23 = vpop.f32.mrf.mxu3 }
 0x579   :  { %v2778_v48 = vadd.f32 %v2777_v23, %v2749_v28  ;;  %v9019_v28 = vld [vmem:[#allocation2 + $0x1f0] sm:$0xf0]  ;;  %v9018_v23 = vor.u32 %v10902_v9, %v9017_v33 }
 0x57b   :  { %2785 = vxpose.xlu1.b32.cont [3/4] (short) (narrow) %v2778_v48, 8  ;;  %v9022_v48 = vor.u32 %v10898_v17, %v9019_v28 }
 0x57d   :  { %3133 = vmatpush.bf16.msrb.mxu1 %v9022_v48 }
 0x581   :  { %v2780_v1 = vpop.f32.mrf.mxu3  ;;  %3134 = vmatpush.bf16.msrb.mxu1 %v8990_v29 }
 0x582   :  { %v2781_v59 = vadd.f32 %v2780_v1, %v2752_v47  ;;  %v8993_v47 = vld [vmem:[#allocation2 + $0x198] sm:$0xf]  ;;  %v9030_v1 = vor.u32 %v10899_v36, %v9027_v41 }
 0x584   :  { %2786 = vxpose.xlu1.b32.end [4/4] (short) (narrow) %v2781_v59, 8  ;;  %v10895_v59 = vld [vmem:[#allocation2 + $0x1b4] sm:$0xf0]  ;;  %3159 = vmatpush.bf16.msrb.mxu3 %v9030_v1 }
 0x585   :  { %v8994_v2 = vor.u32 %v10895_v59, %v8993_v47  ;;  %3135 = vmatpush.bf16.msrb.mxu1 %v8958_v16 }
 0x587   :  { %3147 = vmatpush.bf16.msra.mxu2 %v8994_v2  ;;  %v2889_v2 = vperm.slane %v13697_v6, 4 }
 0x588   :  { %3160 = vmatpush.bf16.msrb.mxu3 %v8998_v4 }
 0x589   :  { %3136 = vmatpush.bf16.msrb.mxu1 %v8926_v15 }
 0x58b   :  { %3148 = vmatpush.bf16.msra.mxu2 %v8962_v26 }
 0x58c   :  { %3161 = vmatpush.bf16.msrb.mxu3 %v8966_v22 }
 0x58f   :  { %3149 = vmatpush.bf16.msra.mxu2 %v8930_v55 }
 0x590   :  { %3162 = vmatpush.bf16.msrb.mxu3 %v8934_v20 }
 0x610   :  { %v2799_v44 = vpop.trf.xlu1 }
 0x611   :  { %8901 = vmatmul.msk.f32.vlgmr.msra.gmra.mxu0 %vm195_vm0, %v2799_v44 }
 0x612   :  { %3120 = vmatpush.bf16.msra.mxu0 %v9018_v23 }
 0x616   :  { %3121 = vmatpush.bf16.msra.mxu0 %v8986_v60  ;;  %v2890_v60 = vperm.slane %v13697_v6, 5 }
 0x61a   :  { %3122 = vmatpush.bf16.msra.mxu0 %v8954_v49 }
 0x61e   :  { %3123 = vmatpush.bf16.msra.mxu0 %v8922_v62 }
 0x68e   :  { %v2845_v37 = vpop.f32.mrf.mxu0 }
 0x68f   :  { %v2846_v25 = vadd.f32 %v11264_v39, %v2845_v37 }
 0x691   :  { %v2848_v12 = vpack.c.bf16 %v2846_v25, %v2846_v25 }
 0x693   :  { %9031 = vmatmul.msk.bf16.vlgmr.msrb.gmra.mxu0 %vm1017_vm14, %v2848_v12  ;;  %9032 = vmatmul.msk.bf16.vlgmr.msra.gmra.mxu1 %vm1017_vm14, %v2848_v12 }
 0x694   :  { %9033 = vmatmul.msk.bf16.vlgmr.msrb.gmra.mxu2 %vm1017_vm14, %v2848_v12  ;;  %9034 = vmatmul.msk.bf16.vlgmr.msra.gmra.mxu3 %vm1017_vm14, %v2848_v12 }
 0x6a3   :  { %9035 = vmatmul.msk.bf16.vlgmr.msra.gmra.mxu0 %vm1017_vm14, %v2848_v12  ;;  %9036 = vmatmul.msk.bf16.vlgmr.msrb.gmra.mxu1 %vm1017_vm14, %v2848_v12 }
 0x6a4   :  { %9037 = vmatmul.msk.bf16.vlgmr.msra.gmra.mxu2 %vm1017_vm14, %v2848_v12  ;;  %9038 = vmatmul.msk.bf16.vlgmr.msrb.gmra.mxu3 %vm1017_vm14, %v2848_v12 }
 0x710   :  { %v3073_v30 = vpop.f32.mrf.mxu0  ;;  %v3086_v44 = vpop.f32.mrf.mxu1 }
 0x711   :  { %v3074_v27 = vadd.f32 %v3073_v30, %v2885_v3  ;;  %v3087_v45 = vadd.f32 %v3086_v44, %v2886_v19 }
 0x713   :  { %v13701_v51 = vmul.f32 0.70710677, %v3074_v27  ;;  %v13703_v53 = vmul.f32 0.70710677, %v3087_v45  ;;  %v13737_v8 = vmul.f32 0.5, %v3074_v27  ;;  %v13745_v55 = vmul.f32 0.5, %v3087_v45 }
 0x715   :  { %v3184_v42 = vand.u32 2147483647, %v13701_v51  ;;  %v3185_v35 = vand.u32 2147483647, %v13703_v53  ;;  %vm3360_vm8 = vcmp.ge.f32.partialorder %v13701_v51, 0.0  ;;  %vm3361_vm13 = vcmp.ge.f32.partialorder %v13703_v53, 0.0 }
 0x716   :  { %v9186_v51 = vld [vmem:[%s16711_s9 + $0x2a0] sm:$0xf]  ;;  %v10933_v53 = vld [vmem:[%s16711_s9 + $0x2ec] sm:$0xf] }
 0x717   :  { %v3192_v33 = vmul.f32 0.3275911, %v3184_v42  ;;  %v3193_v61 = vmul.f32 0.3275911, %v3185_v35  ;;  %v3099_v9 = vpop.f32.mrf.mxu2  ;;  %v3112_v17 = vpop.f32.mrf.mxu3  ;;  %v3312_v31 = vsub.f32 0.0, %v3184_v42  ;;  %v3313_v5 = vsub.f32 0.0, %v3185_v35 }
 0x718   :  { %v3100_v28 = vadd.f32 %v3099_v9, %v2887_v13  ;;  %v13709_v23 = vadd.f32 %v3112_v17, %v2888_v52  ;;  %v3075_v48 = vpop.f32.mrf.mxu0  ;;  %v3088_v36 = vpop.f32.mrf.mxu1 }
 0x719   :  { %v3200_v41 = vadd.f32 1.0, %v3192_v33  ;;  %v3201_v47 = vadd.f32 1.0, %v3193_v61  ;;  %v3320_v16 = vmul.f32 %v3312_v31, %v3184_v42  ;;  %v3321_v19 = vmul.f32 %v3313_v5, %v3185_v35  ;;  %v10934_v31 = vld [vmem:[%s16711_s9 + $0x2ec] sm:$0xf0] }
 0x71a   :  { %v13711_v1 = vmul.f32 0.70710677, %v3100_v28  ;;  %v13714_v59 = vmul.f32 0.70710677, %v13709_v23  ;;  %v13749_v15 = vmul.f32 0.5, %v3100_v28 }
 0x71b   :  { %11396 = vrcp.f32 %v3200_v41  ;;  %v3328_v3 = vmul.f32 1.442695, %v3320_v16 }
 0x71c   :  { %11398 = vrcp.f32 %v3201_v47  ;;  %v13717_v50 = vand.u32 2147483647, %v13711_v1  ;;  %v13720_v38 = vand.u32 2147483647, %v13714_v59  ;;  %vm3362_vm9 = vcmp.ge.f32.partialorder %v13711_v1, 0.0 }
 0x71d   :  { %vm3363_vm11 = vcmp.ge.f32.partialorder %v13714_v59, 0.0 }
 0x71e   :  { %v3194_v10 = vmul.f32 0.3275911, %v13717_v50  ;;  %v3195_v14 = vmul.f32 0.3275911, %v13720_v38  ;;  %v3314_v42 = vsub.f32 0.0, %v13717_v50  ;;  %v3315_v17 = vsub.f32 0.0, %v13720_v38 }
 0x71f   :  { %v3101_v57 = vpop.f32.mrf.mxu2  ;;  %v3114_v29 = vpop.f32.mrf.mxu3 }
 0x720   :  { %v3202_v0 = vadd.f32 1.0, %v3194_v10  ;;  %v3203_v43 = vadd.f32 1.0, %v3195_v14  ;;  %v3125_v4 = vpop.f32.mrf.mxu0  ;;  %v3138_v63 = vpop.f32.mrf.mxu1  ;;  %v3322_v57 = vmul.f32 %v3314_v42, %v13717_v50  ;;  %v9218_v29 = vld [vmem:[%s16711_s9 + $0x2e0] sm:$0xf]  ;;  %v10966_v50 = vld [vmem:[%s16711_s9 + $0x3ec] sm:$0xf0] }
 0x721   :  { %v11397_v34 = vpop.eup %11396  ;;  %v13726_v46 = vadd.f32 %v3125_v4, %v2889_v2  ;;  %v13728_v26 = vadd.f32 %v3138_v63, %v2890_v60  ;;  %v3330_v2 = vmul.f32 1.442695, %v3321_v19  ;;  %v3323_v4 = vmul.f32 %v3315_v17, %v13720_v38  ;;  %v9346_v63 = vld [vmem:[%s16711_s9 + $0x3e0] sm:$0xf] }
 0x722   :  { %v11399_v32 = vpop.eup %11398  ;;  %v3216_v24 = vmul.f32 %v11397_v34, %v3200_v41  ;;  %11400 = vrcp.f32 %v3202_v0  ;;  %v9219_v5 = vor.u32 %v10934_v31, %v9218_v29 }
 0x723   :  { %v3217_v40 = vmul.f32 %v11399_v32, %v3201_v47  ;;  %11402 = vrcp.f32 %v3203_v43  ;;  %v13731_v18 = vmul.f32 0.70710677, %v13726_v46  ;;  %v13734_v22 = vmul.f32 0.70710677, %v13728_v26 }
 0x724   :  { %v3224_v49 = vsub.f32 2.0, %v3216_v24  ;;  %3806 = vmatpush.bf16.msrb.mxu0 %v9219_v5 }
 0x725   :  { %v3225_v56 = vsub.f32 2.0, %v3217_v40  ;;  %v13742_v21 = vand.u32 2147483647, %v13731_v18  ;;  %v13752_v20 = vand.u32 2147483647, %v13734_v22  ;;  %vm3364_vm10 = vcmp.ge.f32.partialorder %v13731_v18, 0.0 }
 0x726   :  { %v13739_v58 = vmul.f32 %v11397_v34, %v3224_v49  ;;  %v9284_v18 = vld [vmem:[%s16711_s9 + $0x370] sm:$0xf0]  ;;  %vm3365_vm15 = vcmp.ge.f32.partialorder %v13734_v22, 0.0 }
 0x727   :  { %v13747_v62 = vmul.f32 %v11399_v32, %v3225_v56  ;;  %v3151_v39 = vpop.f32.mrf.mxu2  ;;  %v13754_v37 = vpop.f32.mrf.mxu3  ;;  %v3196_v30 = vmul.f32 0.3275911, %v13742_v21  ;;  %v3197_v33 = vmul.f32 0.3275911, %v13752_v20  ;;  %v3316_v29 = vsub.f32 0.0, %v13742_v21 }
 0x728   :  { %v11401_v25 = vpop.eup %11400  ;;  %v3240_v12 = vmul.f32 1.0614054, %v13739_v58  ;;  %v3127_v44 = vpop.f32.mrf.mxu0  ;;  %v13762_v41 = vadd.f32 %v3151_v39, %v2891_v11  ;;  %v3332_v39 = vmul.f32 1.442695, %v3322_v57 }
 0x729   :  { %v3140_v27 = vpop.f32.mrf.mxu1  ;;  %v11403_v45 = vpop.eup %11402  ;;  %v3241_v13 = vmul.f32 1.0614054, %v13747_v62  ;;  %v3218_v52 = vmul.f32 %v11401_v25, %v3202_v0  ;;  %v3204_v28 = vadd.f32 1.0, %v3196_v30  ;;  %v3205_v35 = vadd.f32 1.0, %v3197_v33 }
 0x72a   :  { %v3248_v61 = vadd.f32 -1.4531521, %v3240_v12  ;;  %v3219_v9 = vmul.f32 %v11403_v45, %v3203_v43  ;;  %v13786_v24 = vmul.f32 0.70710677, %v13762_v41  ;;  %v3334_v30 = vmul.f32 1.442695, %v3323_v4 }
 0x72b   :  { %v3249_v48 = vadd.f32 -1.4531521, %v3241_v13  ;;  %v3226_v36 = vsub.f32 2.0, %v3218_v52  ;;  %11404 = vrcp.f32 %v3204_v28  ;;  %v9347_v44 = vor.u32 %v10966_v50, %v9346_v63 }
 0x72c   :  { %v3256_v47 = vmul.f32 %v3248_v61, %v13739_v58  ;;  %v3227_v60 = vsub.f32 2.0, %v3219_v9  ;;  %11406 = vrcp.f32 %v3205_v35  ;;  %v13799_v9 = vmul.f32 0.5, %v13726_v46 }
 0x72d   :  { %v3257_v10 = vmul.f32 %v3249_v48, %v13747_v62  ;;  %v13766_v14 = vmul.f32 %v11401_v25, %v3226_v36  ;;  %11408 = vpow2.f32 %v3328_v3  ;;  %v13792_v25 = vand.u32 2147483647, %v13786_v24  ;;  %3819 = vmatpush.bf16.msra.mxu1 %v9347_v44 }
 0x72e   :  { %v3264_v0 = vadd.f32 1.4214138, %v3256_v47  ;;  %v13775_v43 = vmul.f32 %v11403_v45, %v3227_v60  ;;  %11410 = vpow2.f32 %v3330_v2  ;;  %v13804_v60 = vadd.f32 %v13754_v37, %v2892_v54 }
 0x72f   :  { %v3265_v34 = vadd.f32 1.4214138, %v3257_v10  ;;  %v3242_v32 = vmul.f32 1.0614054, %v13766_v14  ;;  %v3153_v40 = vpop.f32.mrf.mxu2  ;;  %v3166_v49 = vpop.f32.mrf.mxu3  ;;  %v3198_v42 = vmul.f32 0.3275911, %v13792_v25 }
 0x730   :  { %v3272_v16 = vmul.f32 %v3264_v0, %v13739_v58  ;;  %v3243_v38 = vmul.f32 1.0614054, %v13775_v43  ;;  %v3317_v54 = vsub.f32 0.0, %v13752_v20  ;;  %v3324_v40 = vmul.f32 %v3316_v29, %v13742_v21 }
 0x731   :  { %v3273_v56 = vmul.f32 %v3265_v34, %v13747_v62  ;;  %v3250_v11 = vadd.f32 -1.4531521, %v3242_v32  ;;  %v11405_v12 = vpop.eup %11404  ;;  %v3206_v2 = vadd.f32 1.0, %v3198_v42  ;;  %v13818_v34 = vmul.f32 0.70710677, %v13804_v60 }
 0x732   :  { %v3280_v3 = vadd.f32 -0.28449672, %v3272_v16  ;;  %v3251_v19 = vadd.f32 -1.4531521, %v3243_v38  ;;  %v11407_v27 = vpop.eup %11406  ;;  %v3220_v52 = vmul.f32 %v11405_v12, %v3204_v28  ;;  %vm3366_vm12 = vcmp.ge.f32.partialorder %v13786_v24, 0.0 }
 0x733   :  { %v3281_v45 = vadd.f32 -0.28449672, %v3273_v56  ;;  %v3258_v13 = vmul.f32 %v3250_v11, %v13766_v14  ;;  %v3221_v17 = vmul.f32 %v11407_v27, %v3205_v35  ;;  %v11409_v48 = vpop.eup %11408  ;;  %11412 = vrcp.f32 %v3206_v2 }
 0x734   :  { %v3288_v33 = vmul.f32 %v3280_v3, %v13739_v58  ;;  %v3259_v61 = vmul.f32 %v3251_v19, %v13775_v43  ;;  %v3228_v47 = vsub.f32 2.0, %v3220_v52  ;;  %v11411_v28 = vpop.eup %11410  ;;  %11414 = vpow2.f32 %v3332_v39 }
 0x735   :  { %v3266_v36 = vadd.f32 1.4214138, %v3258_v13  ;;  %v3229_v31 = vsub.f32 2.0, %v3221_v17  ;;  %v3289_v46 = vmul.f32 %v3281_v45, %v13747_v62  ;;  %11416 = vpow2.f32 %v3334_v30 }
 0x736   :  { %v3296_v10 = vadd.f32 0.2548296, %v3288_v33  ;;  %v3267_v57 = vadd.f32 1.4214138, %v3259_v61  ;;  %v13809_v0 = vmul.f32 %v11405_v12, %v3228_v47  ;;  %v13824_v5 = vand.u32 2147483647, %v13818_v34 }
 0x737   :  { %v3274_v35 = vmul.f32 %v3266_v36, %v13766_v14  ;;  %v13813_v63 = vmul.f32 %v11407_v27, %v3229_v31  ;;  %v3325_v12 = vmul.f32 %v3317_v54, %v13752_v20  ;;  %v3318_v30 = vsub.f32 0.0, %v13792_v25 }
 0x738   :  { %v3304_v4 = vmul.f32 %v3296_v10, %v13739_v58  ;;  %v3275_v6 = vmul.f32 %v3267_v57, %v13775_v43  ;;  %v3244_v50 = vmul.f32 1.0614054, %v13809_v0  ;;  %v3297_v58 = vadd.f32 0.2548296, %v3289_v46  ;;  %v9220_v46 = vld [vmem:[%s16711_s9 + $0x2f0] sm:$0xf0] }
 0x739   :  { %v3282_v37 = vadd.f32 -0.28449672, %v3274_v35  ;;  %v3245_v49 = vmul.f32 1.0614054, %v13813_v63  ;;  %v11413_v3 = vpop.eup %11412  ;;  %v3199_v44 = vmul.f32 0.3275911, %v13824_v5 }
 0x73a   :  { %v3283_v32 = vadd.f32 -0.28449672, %v3275_v6  ;;  %v3252_v38 = vadd.f32 -1.4531521, %v3244_v50  ;;  %v13826_v56 = vmul.f32 %v11409_v48, %v3304_v4  ;;  %v3336_v45 = vmul.f32 1.442695, %v3324_v40  ;;  %v11415_v42 = vpop.eup %11414 }
 0x73b   :  { %v3290_v16 = vmul.f32 %v3282_v37, %v13766_v14  ;;  %v3253_v39 = vadd.f32 -1.4531521, %v3245_v49  ;;  %v3222_v52 = vmul.f32 %v11413_v3, %v3206_v2  ;;  %v3305_v33 = vmul.f32 %v3297_v58, %v13747_v62  ;;  %v11417_v48 = vpop.eup %11416  ;;  %v10964_v4 = vld [vmem:[%s16711_s9 + $0x3e4] sm:$0xf]  ;;  %v9202_v6 = vld [vmem:[%s16711_s9 + $0x2c0] sm:$0xf] }
 0x73c   :  { %v3291_v11 = vmul.f32 %v3283_v32, %v13775_v43  ;;  %v3260_v21 = vmul.f32 %v3252_v38, %v13809_v0  ;;  %v13837_v17 = vadd.f32 1.0, %v3199_v44  ;;  %v3352_v36 = vsub.f32 1.0, %v13826_v56  ;;  %v10930_v32 = vld [vmem:[%s16711_s9 + $0x2cc] sm:$0xf0] }
 0x73d   :  { %v3298_v19 = vadd.f32 0.2548296, %v3290_v16  ;;  %v3261_v13 = vmul.f32 %v3253_v39, %v13813_v63  ;;  %v3230_v57 = vsub.f32 2.0, %v3222_v52  ;;  %v3338_v31 = vmul.f32 1.442695, %v3325_v12 }
 0x73e   :  { %v3299_v27 = vadd.f32 0.2548296, %v3291_v11  ;;  %v3268_v61 = vadd.f32 1.4214138, %v3260_v21  ;;  %v3326_v62 = vmul.f32 %v3318_v30, %v13792_v25  ;;  %11418 = vpow2.f32 %v3336_v45  ;;  %v9348_v25 = vld [vmem:[%s16711_s9 + $0x3f0] sm:$0xf0] }
 0x73f   :  { %v3306_v20 = vmul.f32 %v3298_v19, %v13766_v14  ;;  %v3269_v10 = vadd.f32 1.4214138, %v3261_v13  ;;  %v10932_v14 = vld [vmem:[%s16711_s9 + $0x2e4] sm:$0xf]  ;;  %v13851_v35 = vmul.f32 %v11413_v3, %v3230_v57  ;;  %v13862_v54 = vmul.f32 %v11411_v28, %v3305_v33  ;;  %v9330_v28 = vld [vmem:[%s16711_s9 + $0x3c0] sm:$0xf] }
 0x740   :  { %v3307_v47 = vmul.f32 %v3299_v27, %v13775_v43  ;;  %v3276_v2 = vmul.f32 %v3268_v61, %v13809_v0  ;;  %11420 = vrcp.f32 %v13837_v17  ;;  %v3368_v40 = vsub.f32 0.0, %v3352_v36  ;;  %v10962_v39 = vld [vmem:[%s16711_s9 + $0x3cc] sm:$0xf0]  ;;  %v10928_v30 = vld [vmem:[%s16711_s9 + $0x2c4] sm:$0xf] }
 0x741   :  { %v3346_v29 = vmul.f32 %v11415_v42, %v3306_v20  ;;  %v3277_v43 = vmul.f32 %v3269_v10, %v13813_v63  ;;  %v3246_v16 = vmul.f32 1.0614054, %v13851_v35  ;;  %v3340_v56 = vmul.f32 1.442695, %v3326_v62  ;;  %v9204_v13 = vld [vmem:[%s16711_s9 + $0x2d0] sm:$0xf0] }
 0x742   :  { %v3284_v50 = vadd.f32 -0.28449672, %v3276_v2  ;;  %v13868_v49 = vmul.f32 %v11417_v48, %v3307_v47  ;;  %v9223_v11 = vor.u32 %v10932_v14, %v9220_v46  ;;  %v9351_v21 = vor.u32 %v10964_v4, %v9348_v25  ;;  %v10960_v48 = vld [vmem:[%s16711_s9 + $0x3c4] sm:$0xf]  ;;  %v9332_v47 = vld [vmem:[%s16711_s9 + $0x3d0] sm:$0xf0] }
 0x743   :  { %v3354_v37 = vsub.f32 1.0, %v3346_v29  ;;  %v3285_v58 = vadd.f32 -0.28449672, %v3277_v43  ;;  %v3254_v19 = vadd.f32 -1.4531521, %v3246_v16  ;;  %v3353_v44 = vsub.f32 1.0, %v13862_v54 }
 0x744   :  { %v3292_v38 = vmul.f32 %v3284_v50, %v13809_v0  ;;  %11422 = vpow2.f32 %v3338_v31  ;;  %3832 = vmatpush.bf16.msrb.mxu2 %v9223_v11  ;;  %v9203_v45 = vor.u32 %v10930_v32, %v9202_v6  ;;  %v11419_v52 = vpop.eup %11418  ;;  %v3376_v42 = vsel %vm3360_vm8, %v3352_v36, %v3368_v40  ;;  %3845 = vmatpush.bf16.msra.mxu3 %v9351_v21  ;;  %v10926_v29 = vld [vmem:[%s16711_s9 + $0x2ac] sm:$0xf0]  ;;  %v9314_v2 = vld [vmem:[%s16711_s9 + $0x3a0] sm:$0xf]  ;;  %v10924_v43 = vld [vmem:[%s16711_s9 + $0x2a4] sm:$0xf] }
 0x745   :  { %v3370_v12 = vsub.f32 0.0, %v3354_v37  ;;  %v3293_v3 = vmul.f32 %v3285_v58, %v13813_v63  ;;  %v3355_v33 = vsub.f32 1.0, %v13868_v49  ;;  %v3262_v20 = vmul.f32 %v3254_v19, %v13851_v35  ;;  %v10958_v31 = vld [vmem:[%s16711_s9 + $0x3ac] sm:$0xf0]  ;;  %v9188_v4 = vld [vmem:[%s16711_s9 + $0x2b0] sm:$0xf0] }
 0x746   :  { %v3300_v27 = vadd.f32 0.2548296, %v3292_v38  ;;  %v3319_v61 = vsub.f32 0.0, %v13824_v5  ;;  %v11421_v36 = vpop.eup %11420  ;;  %11424 = vpow2.f32 %v3340_v56  ;;  %3807 = vmatpush.bf16.msrb.mxu0 %v9203_v45  ;;  %v9331_v57 = vor.u32 %v10962_v39, %v9330_v28  ;;  %v9316_v50 = vld [vmem:[%s16711_s9 + $0x3b0] sm:$0xf0] }
 0x747   :  { %v3378_v62 = vsel %vm3362_vm9, %v3354_v37, %v3370_v12  ;;  %v3270_v14 = vadd.f32 1.4214138, %v3262_v20  ;;  %v3223_v46 = vmul.f32 %v11421_v36, %v13837_v17  ;;  %v13920_v25 = vadd.f32 1.0, %v3376_v42  ;;  %v10956_v17 = vld [vmem:[%s16711_s9 + $0x3a4] sm:$0xf] }
 0x748   :  { %v3308_v10 = vmul.f32 %v3300_v27, %v13809_v0  ;;  %v3301_v0 = vadd.f32 0.2548296, %v3293_v3  ;;  %v13924_v1 = vsub.f32 0.0, %v3353_v44  ;;  %3820 = vmatpush.bf16.msra.mxu1 %v9331_v57  ;;  %v9207_v37 = vor.u32 %v10928_v30, %v9204_v13  ;;  %v9170_v38 = vld [vmem:[%s16711_s9 + $0x280] sm:$0xf] }
 0x749   :  { %v13934_v32 = vsub.f32 0.0, %v3355_v33  ;;  %v3278_v40 = vmul.f32 %v3270_v14, %v13851_v35  ;;  %v3231_v58 = vsub.f32 2.0, %v3223_v46  ;;  %v3327_v16 = vmul.f32 %v3319_v61, %v13824_v5  ;;  %v10922_v56 = vld [vmem:[%s16711_s9 + $0x28c] sm:$0xf0]  ;;  %v9298_v19 = vld [vmem:[%s16711_s9 + $0x380] sm:$0xf] }
 0x74a   :  { %v3348_v6 = vmul.f32 %v11419_v52, %v3308_v10  ;;  %v11423_v11 = vpop.eup %11422  ;;  %v13944_v28 = vadd.f32 1.0, %v3378_v62  ;;  %3833 = vmatpush.bf16.msrb.mxu2 %v9207_v37  ;;  %v9335_v12 = vor.u32 %v10960_v48, %v9332_v47  ;;  %v9187_v3 = vor.u32 %v10926_v29, %v9186_v51  ;;  %v10954_v5 = vld [vmem:[%s16711_s9 + $0x38c] sm:$0xf0]  ;;  %v10920_v13 = vld [vmem:[%s16711_s9 + $0x284] sm:$0xf] }
 0x74b   :  { %v3309_v21 = vmul.f32 %v3301_v0, %v13813_v63  ;;  %v3286_v30 = vadd.f32 -0.28449672, %v3278_v40  ;;  %v13953_v27 = vmul.f32 %v11421_v36, %v3231_v58  ;;  %v9315_v45 = vor.u32 %v10958_v31, %v9314_v2  ;;  %v9172_v52 = vld [vmem:[%s16711_s9 + $0x290] sm:$0xf0]  ;;  %v10952_v63 = vld [vmem:[%s16711_s9 + $0x384] sm:$0xf] }
 0x74c   :  { %v3356_v39 = vsub.f32 1.0, %v3348_v6  ;;  %v11425_v42 = vpop.eup %11424  ;;  %3846 = vmatpush.bf16.msra.mxu3 %v9335_v12  ;;  %3808 = vmatpush.bf16.msrb.mxu0 %v9187_v3  ;;  %v9191_v61 = vor.u32 %v10924_v43, %v9188_v4  ;;  %v9319_v48 = vor.u32 %v10956_v17, %v9316_v50  ;;  %v9171_v47 = vor.u32 %v10922_v56, %v9170_v38  ;;  %v9300_v51 = vld [vmem:[%s16711_s9 + $0x390] sm:$0xf0]  ;;  %v9154_v29 = vld [vmem:[%s16711_s9 + $0x260] sm:$0xf] }
 0x74d   :  { %v3294_v36 = vmul.f32 %v3286_v30, %v13851_v35  ;;  %v3247_v10 = vmul.f32 1.0614054, %v13953_v27  ;;  %3821 = vmatpush.bf16.msra.mxu1 %v9315_v45  ;;  %v9299_v57 = vor.u32 %v10954_v5, %v9298_v19  ;;  %v10918_v2 = vld [vmem:[%s16711_s9 + $0x26c] sm:$0xf0]  ;;  %v9175_v31 = vor.u32 %v10920_v13, %v9172_v52  ;;  %v9282_v62 = vld [vmem:[%s16711_s9 + $0x360] sm:$0xf] }
 0x74e   :  { %v3372_v20 = vsub.f32 0.0, %v3356_v39  ;;  %3834 = vmatpush.bf16.msrb.mxu2 %v9191_v61  ;;  %v10950_v0 = vld [vmem:[%s16711_s9 + $0x36c] sm:$0xf0]  ;;  %v10916_v14 = vld [vmem:[%s16711_s9 + $0x264] sm:$0xf]  ;;  %v13985_v46 = vmul.f32 %v11423_v11, %v3309_v21  ;;  %v9303_v50 = vor.u32 %v10952_v63, %v9300_v51  ;;  %v9155_v40 = vor.u32 %v10918_v2, %v9154_v29 }
 0x74f   :  { %v3302_v43 = vadd.f32 0.2548296, %v3294_v36  ;;  %v3255_v4 = vadd.f32 -1.4531521, %v3247_v10  ;;  %v9156_v6 = vld [vmem:[%s16711_s9 + $0x270] sm:$0xf0]  ;;  %v9283_v11 = vor.u32 %v10950_v0, %v9282_v62  ;;  %v3392_v29 = vmul.f32 %v13920_v25, %v13737_v8 }
 0x750   :  { %v3380_v37 = vsel %vm3364_vm10, %v3356_v39, %v3372_v20  ;;  %v3342_v17 = vmul.f32 1.442695, %v3327_v16  ;;  %3847 = vmatpush.bf16.msra.mxu3 %v9319_v48  ;;  %3809 = vmatpush.bf16.msrb.mxu0 %v9171_v47  ;;  %v10948_v58 = vld [vmem:[%s16711_s9 + $0x364] sm:$0xf]  ;;  %v9138_v16 = vld [vmem:[%s16711_s9 + $0x240] sm:$0xf]  ;;  %v3394_v47 = vmul.f32 %v13944_v28, %v13749_v15 }
 0x751   :  { %v3310_v38 = vmul.f32 %v3302_v43, %v13851_v35  ;;  %v3263_v56 = vmul.f32 %v3255_v4, %v13953_v27  ;;  %3822 = vmatpush.bf16.msra.mxu1 %v9299_v57  ;;  %v10914_v39 = vld [vmem:[%s16711_s9 + $0x24c] sm:$0xf0]  ;;  %v9159_v35 = vor.u32 %v10916_v14, %v9156_v6  ;;  %v9266_v12 = vld [vmem:[%s16711_s9 + $0x340] sm:$0xf]  ;;  %v10912_v19 = vld [vmem:[%s16711_s9 + $0x244] sm:$0xf]  ;;  %v9287_v52 = vor.u32 %v10948_v58, %v9284_v18 }
 0x752   :  { %3835 = vmatpush.bf16.msrb.mxu2 %v9175_v31  ;;  %v10946_v3 = vld [vmem:[%s16711_s9 + $0x34c] sm:$0xf0]  ;;  %v3388_v5 = vadd.f32 1.0, %v3380_v37  ;;  %v3357_v21 = vsub.f32 1.0, %v13985_v46  ;;  %v9140_v13 = vld [vmem:[%s16711_s9 + $0x250] sm:$0xf0]  ;;  %v9139_v20 = vor.u32 %v10914_v39, %v9138_v16  ;;  %v3379_v4 = vsel %vm3363_vm11, %v3355_v33, %v13934_v32 }
 0x753   :  { %v3350_v30 = vmul.f32 %v11425_v42, %v3310_v38  ;;  %v3271_v45 = vadd.f32 1.4214138, %v3263_v56  ;;  %v10944_v61 = vld [vmem:[%s16711_s9 + $0x344] sm:$0xf]  ;;  %v9268_v48 = vld [vmem:[%s16711_s9 + $0x350] sm:$0xf0]  ;;  %v9267_v36 = vor.u32 %v10946_v3, %v9266_v12  ;;  %v9143_v2 = vor.u32 %v10912_v19, %v9140_v13 }
 0x754   :  { %3848 = vmatpush.bf16.msra.mxu3 %v9303_v50  ;;  %3810 = vmatpush.bf16.msrb.mxu0 %v9155_v40  ;;  %v9122_v42 = vld [vmem:[%s16711_s9 + $0x220] sm:$0xf]  ;;  %v10910_v10 = vld [vmem:[%s16711_s9 + $0x22c] sm:$0xf0]  ;;  %v10908_v28 = vld [vmem:[%s16711_s9 + $0x224] sm:$0xf]  ;;  %v3396_v62 = vmul.f32 %v3388_v5, %v13799_v9  ;;  %11426 = vpow2.f32 %v3342_v17  ;;  %v9271_v9 = vor.u32 %v10944_v61, %v9268_v48  ;;  %v3400_v40 = vadd.f32 %v3394_v47, %v3392_v29 }
 0x755   :  { %v3358_v63 = vsub.f32 1.0, %v3350_v30  ;;  %v3279_v51 = vmul.f32 %v3271_v45, %v13953_v27  ;;  %3823 = vmatpush.bf16.msra.mxu1 %v9283_v11  ;;  %v9250_v57 = vld [vmem:[%s16711_s9 + $0x320] sm:$0xf]  ;;  %v10942_v15 = vld [vmem:[%s16711_s9 + $0x32c] sm:$0xf0]  ;;  %v3373_v0 = vsub.f32 0.0, %v3357_v21  ;;  %v9123_v6 = vor.u32 %v10910_v10, %v9122_v42 }
 0x756   :  { %3836 = vmatpush.bf16.msrb.mxu2 %v9159_v35  ;;  %v9124_v31 = vld [vmem:[%s16711_s9 + $0x230] sm:$0xf0]  ;;  %v10940_v14 = vld [vmem:[%s16711_s9 + $0x324] sm:$0xf]  ;;  %v9106_v37 = vld [vmem:[%s16711_s9 + $0x200] sm:$0xf]  ;;  %v9251_v32 = vor.u32 %v10942_v15, %v9250_v57  ;;  %v3377_v39 = vsel %vm3361_vm13, %v3353_v44, %v13924_v1  ;;  %v3402_v35 = vadd.f32 %v3400_v40, %v3396_v62 }
 0x757   :  { %v3374_v8 = vsub.f32 0.0, %v3358_v63  ;;  %v3287_v25 = vadd.f32 -0.28449672, %v3279_v51  ;;  %v9252_v43 = vld [vmem:[%s16711_s9 + $0x330] sm:$0xf0]  ;;  %v3174_v56 = vmul.f32 0.5, %v13762_v41  ;;  %v9127_v11 = vor.u32 %v10908_v28, %v9124_v31 }
 0x758   :  { %3849 = vmatpush.bf16.msra.mxu3 %v9287_v52  ;;  %3811 = vmatpush.bf16.msrb.mxu0 %v9139_v20  ;;  %v10906_v50 = vld [vmem:[%s16711_s9 + $0x20c] sm:$0xf0]  ;;  %v9234_v49 = vld [vmem:[%s16711_s9 + $0x300] sm:$0xf]  ;;  %v10904_v58 = vld [vmem:[%s16711_s9 + $0x204] sm:$0xf]  ;;  %v9255_v30 = vor.u32 %v10940_v14, %v9252_v43  ;;  %v3381_v44 = vsel %vm3365_vm15, %v3357_v21, %v3373_v0 }
 0x759   :  { %v3382_v59 = vsel %vm3366_vm12, %v3358_v63, %v3374_v8  ;;  %v3295_v33 = vmul.f32 %v3287_v25, %v13953_v27  ;;  %3824 = vmatpush.bf16.msra.mxu1 %v9267_v36  ;;  %v10938_v17 = vld [vmem:[%s16711_s9 + $0x30c] sm:$0xf0]  ;;  %v9108_v38 = vld [vmem:[%s16711_s9 + $0x210] sm:$0xf0]  ;;  %v9226_v18 = vld [vmem:[%s16711_s9 + $0x2e8] sm:$0xf]  ;;  %v9107_v45 = vor.u32 %v10906_v50, %v9106_v37 }
 0x75a   :  { %v3390_v24 = vadd.f32 1.0, %v3382_v59  ;;  %3837 = vmatpush.bf16.msrb.mxu2 %v9143_v2  ;;  %v10935_v16 = vld [vmem:[%s16711_s9 + $0x2f4] sm:$0xf0]  ;;  %v9354_v41 = vld [vmem:[%s16711_s9 + $0x3e8] sm:$0xf]  ;;  %v3387_v19 = vadd.f32 1.0, %v3379_v4  ;;  %v9235_v13 = vor.u32 %v10938_v17, %v9234_v49  ;;  %v11427_v48 = vpop.eup %11426  ;;  %v9111_v21 = vor.u32 %v10904_v58, %v9108_v38 }
 0x75b   :  { %v3303_v12 = vadd.f32 0.2548296, %v3295_v33  ;;  %v10967_v3 = vld [vmem:[%s16711_s9 + $0x3f4] sm:$0xf0]  ;;  %v9228_v54 = vld [vmem:[%s16711_s9 + $0x2f8] sm:$0xf0]  ;;  %v9227_v61 = vor.u32 %v10935_v16, %v9226_v18 }
 0x75c   :  { %v3398_v5 = vmul.f32 %v3390_v24, %v3174_v56  ;;  %3850 = vmatpush.bf16.msra.mxu3 %v9271_v9  ;;  %3812 = vmatpush.bf16.msrb.mxu0 %v9123_v6  ;;  %v10936_v52 = vld [vmem:[%s16711_s9 + $0x304] sm:$0xf]  ;;  %v9236_v20 = vld [vmem:[%s16711_s9 + $0x310] sm:$0xf0]  ;;  %v10965_v46 = vld [vmem:[%s16711_s9 + $0x3ec] sm:$0xf]  ;;  %v9231_v57 = vor.u32 %v10933_v53, %v9228_v54 }
 0x75d   :  { %v3311_v1 = vmul.f32 %v3303_v12, %v13953_v27  ;;  %3825 = vmatpush.bf16.msra.mxu1 %v9251_v32  ;;  %v9355_v27 = vor.u32 %v10967_v3, %v9354_v41  ;;  %v9356_v42 = vld [vmem:[%s16711_s9 + $0x3f8] sm:$0xf0]  ;;  %v9210_v47 = vld [vmem:[%s16711_s9 + $0x2c8] sm:$0xf]  ;;  %v10931_v63 = vld [vmem:[%s16711_s9 + $0x2d4] sm:$0xf0]  ;;  %v9239_v31 = vor.u32 %v10936_v52, %v9236_v20 }
 0x75e   :  { %v3404_v22 = vadd.f32 %v3402_v35, %v3398_v5  ;;  %3838 = vmatpush.bf16.msrb.mxu2 %v9127_v11  ;;  %v3385_v51 = vadd.f32 1.0, %v3377_v39  ;;  %v3171_v36 = vmul.f32 0.5, %v13709_v23  ;;  %v9338_v29 = vld [vmem:[%s16711_s9 + $0x3c8] sm:$0xf]  ;;  %v10963_v2 = vld [vmem:[%s16711_s9 + $0x3d4] sm:$0xf0]  ;;  %v9359_v25 = vor.u32 %v10965_v46, %v9356_v42 }
 0x75f   :  { %v3351_v10 = vmul.f32 %v11427_v48, %v3311_v1  ;;  %v3389_v15 = vadd.f32 1.0, %v3381_v44  ;;  %v10929_v62 = vld [vmem:[%s16711_s9 + $0x2cc] sm:$0xf]  ;;  %v9212_v23 = vld [vmem:[%s16711_s9 + $0x2d8] sm:$0xf0]  ;;  %v3173_v0 = vmul.f32 0.5, %v13728_v26  ;;  %v9211_v14 = vor.u32 %v10931_v63, %v9210_v47 }
 0x760   :  { %v3406_v28 = vmul.f32 0.25, %v3404_v22  ;;  %3851 = vmatpush.bf16.msra.mxu3 %v9255_v30  ;;  %3813 = vmatpush.bf16.msrb.mxu0 %v9107_v45  ;;  %v10961_v43 = vld [vmem:[%s16711_s9 + $0x3cc] sm:$0xf]  ;;  %v3395_v4 = vmul.f32 %v3387_v19, %v3171_v36  ;;  %v9339_v6 = vor.u32 %v10963_v2, %v9338_v29  ;;  %v9340_v37 = vld [vmem:[%s16711_s9 + $0x3d8] sm:$0xf0]  ;;  %v9215_v40 = vor.u32 %v10929_v62, %v9212_v23 }
 0x761   :  { %v3359_v8 = vsub.f32 1.0, %v3351_v10  ;;  %3826 = vmatpush.bf16.msra.mxu1 %v9235_v13  ;;  %v9194_v26 = vld [vmem:[%s16711_s9 + $0x2a8] sm:$0xf]  ;;  %v10927_v50 = vld [vmem:[%s16711_s9 + $0x2b4] sm:$0xf0]  ;;  %v3393_v32 = vmul.f32 %v3385_v51, %v13745_v55  ;;  %v3397_v17 = vmul.f32 %v3389_v15, %v3173_v0  ;;  %vm3367_vm1 = vcmp.ge.f32.partialorder %v13818_v34, 0.0 }
 0x762   :  { %v14150_v9 = vpack.c.bf16 %v3406_v28, %v3406_v28  ;;  %3839 = vmatpush.bf16.msrb.mxu2 %v9111_v21  ;;  %v9322_v59 = vld [vmem:[%s16711_s9 + $0x3a8] sm:$0xf]  ;;  %v10959_v33 = vld [vmem:[%s16711_s9 + $0x3b4] sm:$0xf0]  ;;  %v10925_v58 = vld [vmem:[%s16711_s9 + $0x2ac] sm:$0xf]  ;;  %v9343_v24 = vor.u32 %v10961_v43, %v9340_v37  ;;  %v9195_v11 = vor.u32 %v10927_v50, %v9194_v26 }
 0x763   :  { %v3375_v49 = vsub.f32 0.0, %v3359_v8  ;;  %v9196_v38 = vld [vmem:[%s16711_s9 + $0x2b8] sm:$0xf0]  ;;  %v10957_v55 = vld [vmem:[%s16711_s9 + $0x3ac] sm:$0xf]  ;;  %v3401_v18 = vadd.f32 %v3395_v4, %v3393_v32  ;;  %v3175_v16 = vmul.f32 0.5, %v13804_v60  ;;  %v9323_v35 = vor.u32 %v10959_v33, %v9322_v59 }
 0x764   :  { %3858 = vmatpush.bf16.msra.mxu0 %v9227_v61  ;;  %3852 = vmatpush.bf16.msra.mxu3 %v9239_v31  ;;  %v9324_v34 = vld [vmem:[%s16711_s9 + $0x3b8] sm:$0xf0]  ;;  %v9178_v12 = vld [vmem:[%s16711_s9 + $0x288] sm:$0xf]  ;;  %v10923_v41 = vld [vmem:[%s16711_s9 + $0x294] sm:$0xf0]  ;;  %v9199_v3 = vor.u32 %v10925_v58, %v9196_v38 }
 0x765   :  { %3871 = vmatpush.bf16.msrb.mxu1 %v9355_v27  ;;  %3814 = vmatmul.bf16.vlgmr.msrb.gmra.mxu0 %v14150_v9  ;;  %v3383_v56 = vsel %vm3367_vm1, %v3359_v8, %v3375_v49  ;;  %v9306_v19 = vld [vmem:[%s16711_s9 + $0x388] sm:$0xf]  ;;  %v10955_v60 = vld [vmem:[%s16711_s9 + $0x394] sm:$0xf0]  ;;  %v3403_v5 = vadd.f32 %v3401_v18, %v3397_v17  ;;  %v10921_v45 = vld [vmem:[%s16711_s9 + $0x28c] sm:$0xf]  ;;  %v9327_v54 = vor.u32 %v10957_v55, %v9324_v34 }
 0x766   :  { %3884 = vmatpush.bf16.msra.mxu2 %v9231_v57  ;;  %v3391_v39 = vadd.f32 1.0, %v3383_v56  ;;  %v9180_v53 = vld [vmem:[%s16711_s9 + $0x298] sm:$0xf0]  ;;  %v9179_v44 = vor.u32 %v10923_v41, %v9178_v12  ;;  %v10953_v1 = vld [vmem:[%s16711_s9 + $0x38c] sm:$0xf]  ;;  %v9307_v52 = vor.u32 %v10955_v60, %v9306_v19 }
 0x767   :  { %3840 = vmatmul.bf16.vlgmr.msrb.gmra.mxu2 %v14150_v9  ;;  %v9308_v20 = vld [vmem:[%s16711_s9 + $0x398] sm:$0xf0]  ;;  %v9162_v61 = vld [vmem:[%s16711_s9 + $0x268] sm:$0xf]  ;;  %v10919_v46 = vld [vmem:[%s16711_s9 + $0x274] sm:$0xf0]  ;;  %v9183_v48 = vor.u32 %v10921_v45, %v9180_v53 }
 0x768   :  { %3897 = vmatpush.bf16.msrb.mxu3 %v9359_v25  ;;  %3859 = vmatpush.bf16.msra.mxu0 %v9211_v14  ;;  %v3399_v30 = vmul.f32 %v3391_v39, %v3175_v16  ;;  %v9290_v22 = vld [vmem:[%s16711_s9 + $0x368] sm:$0xf]  ;;  %v10951_v21 = vld [vmem:[%s16711_s9 + $0x374] sm:$0xf0]  ;;  %v10917_v42 = vld [vmem:[%s16711_s9 + $0x26c] sm:$0xf]  ;;  %v9311_v63 = vor.u32 %v10953_v1, %v9308_v20  ;;  %v9163_v51 = vor.u32 %v10919_v46, %v9162_v61 }
 0x769   :  { %3872 = vmatpush.bf16.msrb.mxu1 %v9339_v6  ;;  %v9164_v47 = vld [vmem:[%s16711_s9 + $0x278] sm:$0xf0]  ;;  %v10949_v36 = vld [vmem:[%s16711_s9 + $0x36c] sm:$0xf]  ;;  %v9291_v57 = vor.u32 %v10951_v21, %v9290_v22  ;;  %v9146_v2 = vld [vmem:[%s16711_s9 + $0x248] sm:$0xf] }
 0x76a   :  { %3885 = vmatpush.bf16.msra.mxu2 %v9215_v40  ;;  %v3405_v13 = vadd.f32 %v3403_v5, %v3399_v30  ;;  %v9292_v29 = vld [vmem:[%s16711_s9 + $0x378] sm:$0xf0]  ;;  %v10915_v15 = vld [vmem:[%s16711_s9 + $0x254] sm:$0xf0]  ;;  %v9167_v28 = vor.u32 %v10917_v42, %v9164_v47  ;;  %v9274_v31 = vld [vmem:[%s16711_s9 + $0x348] sm:$0xf] }
 0x76b   :  { %v10947_v62 = vld [vmem:[%s16711_s9 + $0x354] sm:$0xf0]  ;;  %v10913_v23 = vld [vmem:[%s16711_s9 + $0x24c] sm:$0xf]  ;;  %v9148_v0 = vld [vmem:[%s16711_s9 + $0x258] sm:$0xf0]  ;;  %v9295_v8 = vor.u32 %v10949_v36, %v9292_v29  ;;  %v9147_v25 = vor.u32 %v10915_v15, %v9146_v2 }
 0x76c   :  { %3898 = vmatpush.bf16.msrb.mxu3 %v9343_v24  ;;  %3860 = vmatpush.bf16.msra.mxu0 %v9195_v11  ;;  %v3407_v27 = vmul.f32 0.25, %v3405_v13  ;;  %v10945_v14 = vld [vmem:[%s16711_s9 + $0x34c] sm:$0xf]  ;;  %v9275_v43 = vor.u32 %v10947_v62, %v9274_v31  ;;  %v9276_v4 = vld [vmem:[%s16711_s9 + $0x358] sm:$0xf0]  ;;  %v9151_v26 = vor.u32 %v10913_v23, %v9148_v0  ;;  %v10974_v53 = vld [vmem:[#allocation4 + $0x130] sm:$0xff] }
 0x76d   :  { %3873 = vmatpush.bf16.msrb.mxu1 %v9323_v35  ;;  %v9130_v6 = vld [vmem:[%s16711_s9 + $0x228] sm:$0xf]  ;;  %v10911_v37 = vld [vmem:[%s16711_s9 + $0x234] sm:$0xf0]  ;;  %v10909_v40 = vld [vmem:[%s16711_s9 + $0x22c] sm:$0xf]  ;;  %v9279_v33 = vor.u32 %v10945_v14, %v9276_v4 }
 0x76e   :  { %3886 = vmatpush.bf16.msra.mxu2 %v9199_v3  ;;  %v14229_v10 = vpack.c.bf16 %v3407_v27, %v3407_v27  ;;  %v9258_v50 = vld [vmem:[%s16711_s9 + $0x328] sm:$0xf]  ;;  %v10943_v49 = vld [vmem:[%s16711_s9 + $0x334] sm:$0xf0]  ;;  %v9132_v59 = vld [vmem:[%s16711_s9 + $0x238] sm:$0xf0]  ;;  %v9131_v32 = vor.u32 %v10911_v37, %v9130_v6 }
 0x76f   :  { %v10941_v17 = vld [vmem:[%s16711_s9 + $0x32c] sm:$0xf]  ;;  %v9259_v58 = vor.u32 %v10943_v49, %v9258_v50  ;;  %v9260_v38 = vld [vmem:[%s16711_s9 + $0x338] sm:$0xf0]  ;;  %v9114_v56 = vld [vmem:[%s16711_s9 + $0x208] sm:$0xf]  ;;  %v9135_v11 = vor.u32 %v10909_v40, %v9132_v59 }
 0x770   :  { %3899 = vmatpush.bf16.msrb.mxu3 %v9327_v54  ;;  %3861 = vmatpush.bf16.msra.mxu0 %v9179_v44  ;;  %v10907_v24 = vld [vmem:[%s16711_s9 + $0x214] sm:$0xf0]  ;;  %v9242_v55 = vld [vmem:[%s16711_s9 + $0x308] sm:$0xf]  ;;  %v10905_v18 = vld [vmem:[%s16711_s9 + $0x20c] sm:$0xf]  ;;  %v9263_v39 = vor.u32 %v10941_v17, %v9260_v38 }
 0x771   :  { %3874 = vmatpush.bf16.msrb.mxu1 %v9307_v52  ;;  %3853 = vmatmul.bf16.vlgmr.msra.gmra.mxu3 %v14229_v10  ;;  %v10939_v34 = vld [vmem:[%s16711_s9 + $0x314] sm:$0xf0]  ;;  %v9116_v16 = vld [vmem:[%s16711_s9 + $0x218] sm:$0xf0]  ;;  %v9115_v35 = vor.u32 %v10907_v24, %v9114_v56  ;;  %v10937_v41 = vld [vmem:[%s16711_s9 + $0x30c] sm:$0xf] }
 0x772   :  { %3887 = vmatpush.bf16.msra.mxu2 %v9183_v48  ;;  %3827 = vmatmul.bf16.vlgmr.msra.gmra.mxu1 %v14229_v10  ;;  %v9243_v12 = vor.u32 %v10939_v34, %v9242_v55  ;;  %v9244_v3 = vld [vmem:[%s16711_s9 + $0x318] sm:$0xf0]  ;;  %v9119_v60 = vor.u32 %v10905_v18, %v9116_v16  ;;  %v10982_v54 = vld [vmem:[#allocation4 + $0x170] sm:$0xff]  ;;  %v10973_v13 = vld [vmem:[#allocation4 + $0x128] sm:$0xff] }
 0x773   :  { %v10975_v19 = vld [vmem:[#allocation4 + $0x138] sm:$0xff]  ;;  %v9247_v45 = vor.u32 %v10937_v41, %v9244_v3  ;;  %v10990_v1 = vld [vmem:[#allocation4 + $0x1b0] sm:$0xff]  ;;  %v10981_v52 = vld [vmem:[#allocation4 + $0x168] sm:$0xff] }
 0x774   :  { %3900 = vmatpush.bf16.msrb.mxu3 %v9311_v63  ;;  %3862 = vmatpush.bf16.msra.mxu0 %v9163_v51  ;;  %v10983_v5 = vld [vmem:[#allocation4 + $0x178] sm:$0xff]  ;;  %v10972_v20 = vld [vmem:[#allocation4 + $0x120] sm:$0xff]  ;;  %v10970_v22 = vld [vmem:[#allocation4 + $0x110] sm:$0xff] }
 0x775   :  { %3875 = vmatpush.bf16.msrb.mxu1 %v9291_v57  ;;  %v10991_v30 = vld [vmem:[#allocation4 + $0x1b8] sm:$0xff]  ;;  %v10980_v61 = vld [vmem:[#allocation4 + $0x160] sm:$0xff]  ;;  %v10989_v21 = vld [vmem:[#allocation4 + $0x1a8] sm:$0xff] }
 0x776   :  { %3888 = vmatpush.bf16.msra.mxu2 %v9167_v28  ;;  %v10999_v44 = vld [vmem:[#allocation4 + $0x1f8] sm:$0xff]  ;;  %v10978_v27 = vld [vmem:[#allocation4 + $0x150] sm:$0xff]  ;;  %v10968_v47 = vld [vmem:[#allocation4 + $0x100] sm:$0xff] }
 0x777   :  { %v10971_v46 = vld [vmem:[#allocation4 + $0x118] sm:$0xff]  ;;  %v10998_v42 = vld [vmem:[#allocation4 + $0x1f0] sm:$0xff]  ;;  %v10988_v63 = vld [vmem:[#allocation4 + $0x1a0] sm:$0xff] }
 0x778   :  { %3901 = vmatpush.bf16.msrb.mxu3 %v9295_v8  ;;  %3863 = vmatpush.bf16.msra.mxu0 %v9147_v25  ;;  %v10979_v48 = vld [vmem:[#allocation4 + $0x158] sm:$0xff]  ;;  %v10977_v51 = vld [vmem:[#allocation4 + $0x148] sm:$0xff]  ;;  %v10976_v57 = vld [vmem:[#allocation4 + $0x140] sm:$0xff] }
 0x779   :  { %3876 = vmatpush.bf16.msrb.mxu1 %v9275_v43  ;;  %v10997_v36 = vld [vmem:[#allocation4 + $0x1e8] sm:$0xff]  ;;  %v10996_v29 = vld [vmem:[#allocation4 + $0x1e0] sm:$0xff]  ;;  %v10986_v2 = vld [vmem:[#allocation4 + $0x190] sm:$0xff] }
 0x77a   :  { %3889 = vmatpush.bf16.msra.mxu2 %v9151_v26  ;;  %v10995_v15 = vld [vmem:[#allocation4 + $0x1d8] sm:$0xff]  ;;  %v9494_v28 = vld [vmem:[%s16704_s2 + $0x84] sm:$0xff]  ;;  %v10994_v43 = vld [vmem:[#allocation4 + $0x1d0] sm:$0xff] }
 0x77b   :  { %v4242_v31 = vunpack.c.l.bf16 %v9494_v28  ;;  %v9492_v62 = vld [vmem:[%s16704_s2 + $0x78] sm:$0xff]  ;;  %v10985_v0 = vld [vmem:[#allocation4 + $0x188] sm:$0xff]  ;;  %v14327_v6 = vld [vmem:[%s16712_s10 + $0x4] sm:$0xf]  ;;  %v4243_v17 = vunpack.c.h.bf16 %v9494_v28 }
 0x77c   :  { %3902 = vmatpush.bf16.msrb.mxu3 %v9279_v33  ;;  %3864 = vmatpush.bf16.msra.mxu0 %v9131_v32  ;;  %v11645_v8 = vld [vmem:[%s16702_s0 + $0x48] sm:$0xff]  ;;  %v4239_v14 = vunpack.c.l.bf16 %v9492_v62  ;;  %v11646_v37 = vld [vmem:[%s16702_s0 + $0x30] sm:$0xff]  ;;  %v10984_v50 = vld [vmem:[#allocation4 + $0x180] sm:$0xff]  ;;  %v4240_v34 = vunpack.c.h.bf16 %v9492_v62 }
 0x77d   :  { %3877 = vmatpush.bf16.msrb.mxu1 %v9259_v58  ;;  %v4254_v25 = vmul.f32 %v11645_v8, %v4242_v31  ;;  %v9490_v4 = vld [vmem:[%s16704_s2 + $0x6c] sm:$0xff]  ;;  %v9488_v40 = vld [vmem:[%s16704_s2 + $0x60] sm:$0xff]  ;;  %v11647_v59 = vld [vmem:[%s16702_s0 + $0x18] sm:$0xff]  ;;  %v3478_v58 = vperm.slane %v14327_v6, 0 }
 0x77e   :  { %3890 = vmatpush.bf16.msra.mxu2 %v9135_v11  ;;  %v4251_v26 = vmul.f32 %v11646_v37, %v4239_v14  ;;  %v4236_v49 = vunpack.c.l.bf16 %v9490_v4  ;;  %v4233_v32 = vunpack.c.l.bf16 %v9488_v40  ;;  %v10993_v38 = vld [vmem:[#allocation4 + $0x1c8] sm:$0xff]  ;;  %v11648_v56 = vld [vmem:[%s16702_s0] sm:$0xff]  ;;  %v11649_v11 = vld [vmem:[%s16702_s0 + $0x50] sm:$0xff] }
 0x77f   :  { %v4255_v55 = vmul.f32 %v11649_v11, %v4243_v17  ;;  %v9495_v3 = vld [vmem:[%s16704_s2 + $0x8c] sm:$0xf]  ;;  %v11660_v62 = vld [vmem:[%s16703_s1 + $0xf8] sm:$0xff]  ;;  %v11665_v37 = vld [vmem:[%s16703_s1 + $0x50] sm:$0xff] }
 0x780   :  { %3903 = vmatpush.bf16.msrb.mxu3 %v9263_v39  ;;  %3865 = vmatpush.bf16.msra.mxu0 %v9115_v35  ;;  %v4248_v33 = vmul.f32 %v11647_v59, %v4236_v49  ;;  %v4245_v24 = vmul.f32 %v11648_v56, %v4233_v32  ;;  %v11650_v39 = vld [vmem:[%s16702_s0 + $0x38] sm:$0xff]  ;;  %v11659_v28 = vld [vmem:[%s16703_s1 + $0x68] sm:$0xff]  ;;  %v3480_v49 = vperm.slane %v14327_v6, 2  ;;  %v11671_v17 = vld [vmem:[%s16703_s1 + $0x40] sm:$0xff] }
 0x781   :  { %3878 = vmatpush.bf16.msrb.mxu1 %v9243_v12  ;;  %v4252_v35 = vmul.f32 %v11650_v39, %v4240_v34  ;;  %v4237_v12 = vunpack.c.h.bf16 %v9490_v4  ;;  %v11664_v4 = vld [vmem:[%s16703_s1 + $0xe8] sm:$0xff]  ;;  %v11670_v32 = vld [vmem:[%s16703_s1 + $0x158] sm:$0xff]  ;;  %v11673_v56 = vld [vmem:[%s16703_s1 + $0x150] sm:$0xff] }
 0x782   :  { %3891 = vmatpush.bf16.msra.mxu2 %v9119_v60  ;;  %v9493_v60 = vld [vmem:[%s16704_s2 + $0x80] sm:$0xf] }
 0x783   :  { %3866 = vmatmul.bf16.vlgmr.msra.gmra.mxu0 %v14150_v9  ;;  %v14437_v34 = vld [vmem:[%s16706_s4 + $0x40] sm:$0xff] }
 0x784   :  { %4171 = vmatpush.bf16.msrb.mxu0 %v10975_v19  ;;  %3904 = vmatpush.bf16.msrb.mxu3 %v9247_v45  ;;  %v10992_v19 = vld [vmem:[#allocation4 + $0x1c0] sm:$0xff] }
 0x785   :  { %4184 = vmatpush.bf16.msra.mxu1 %v10983_v5  ;;  %3892 = vmatmul.bf16.vlgmr.msra.gmra.mxu2 %v14150_v9  ;;  %v10969_v9 = vld [vmem:[#allocation4 + $0x108] sm:$0xff]  ;;  %v4234_v5 = vunpack.c.h.bf16 %v9488_v40  ;;  %v11651_v45 = vld [vmem:[%s16702_s0 + $0x20] sm:$0xff] }
 0x786   :  { %4197 = vmatpush.bf16.msrb.mxu2 %v10991_v30  ;;  %3879 = vmatmul.bf16.vlgmr.msrb.gmra.mxu1 %v14229_v10  ;;  %v4244_v30 = vunpack.c.l.bf16 %v9495_v3  ;;  %v11668_v40 = vld [vmem:[%s16703_s1 + $0x48] sm:$0xff] }
 0x787   :  { %3905 = vmatmul.bf16.vlgmr.msrb.gmra.mxu3 %v14229_v10  ;;  %v10987_v10 = vld [vmem:[#allocation4 + $0x198] sm:$0xff] }
 0x788   :  { %4172 = vmatpush.bf16.msrb.mxu0 %v10974_v53  ;;  %4210 = vmatpush.bf16.msra.mxu3 %v10999_v44  ;;  %v4249_v53 = vmul.f32 %v11651_v45, %v4237_v12  ;;  %v3479_v44 = vperm.slane %v14327_v6, 1  ;;  %v11678_v12 = vld [vmem:[%s16703_s1 + $0xc0] sm:$0xff] }
 0x789   :  { %4185 = vmatpush.bf16.msra.mxu1 %v10982_v54  ;;  %v4241_v54 = vunpack.c.l.bf16 %v9493_v60  ;;  %v11680_v60 = vld [vmem:[%s16703_s1 + $0x28] sm:$0xff] }
 0x78a   :  { %4198 = vmatpush.bf16.msrb.mxu2 %v10990_v1  ;;  %v11652_v1 = vld [vmem:[%s16702_s0 + $0x8] sm:$0xff] }
 0x78c   :  { %4173 = vmatpush.bf16.msrb.mxu0 %v10973_v13  ;;  %4211 = vmatpush.bf16.msra.mxu3 %v10998_v42  ;;  %v4246_v13 = vmul.f32 %v11652_v1, %v4234_v5  ;;  %v11681_v5 = vld [vmem:[%s16703_s1 + $0xb8] sm:$0xff] }
 0x78d   :  { %4186 = vmatpush.bf16.msra.mxu1 %v10981_v52 }
 0x78e   :  { %4199 = vmatpush.bf16.msrb.mxu2 %v10989_v21  ;;  %v9491_v21 = vld [vmem:[%s16704_s2 + $0x74] sm:$0xf] }
 0x790   :  { %4174 = vmatpush.bf16.msrb.mxu0 %v10972_v20  ;;  %4212 = vmatpush.bf16.msra.mxu3 %v10997_v36  ;;  %v11653_v20 = vld [vmem:[%s16702_s0 + $0x58] sm:$0xff]  ;;  %v11656_v36 = vld [vmem:[%s16703_s1 + $0x70] sm:$0xff] }
 0x791   :  { %4187 = vmatpush.bf16.msra.mxu1 %v10980_v61  ;;  %v4256_v61 = vmul.f32 %v11653_v20, %v4244_v30  ;;  %v11682_v30 = vld [vmem:[%s16703_s1 + $0x138] sm:$0xff] }
 0x792   :  { %4200 = vmatpush.bf16.msrb.mxu2 %v10988_v63  ;;  %v4238_v63 = vunpack.c.l.bf16 %v9491_v21  ;;  %v11690_v21 = vld [vmem:[%s16703_s1 + $0xa0] sm:$0xff] }
 0x794   :  { %4175 = vmatpush.bf16.msrb.mxu0 %v10971_v46  ;;  %4213 = vmatpush.bf16.msra.mxu3 %v10996_v29  ;;  %v11654_v46 = vld [vmem:[%s16702_s0 + $0x40] sm:$0xff] }
 0x795   :  { %4188 = vmatpush.bf16.msra.mxu1 %v10979_v48  ;;  %v4253_v48 = vmul.f32 %v11654_v46, %v4241_v54  ;;  %v11684_v54 = vld [vmem:[%s16703_s1 + $0xb0] sm:$0xff]  ;;  %v11687_v46 = vld [vmem:[%s16703_s1 + $0xa8] sm:$0xff] }
 0x796   :  { %4201 = vmatpush.bf16.msrb.mxu2 %v10987_v10 }
 0x798   :  { %4176 = vmatpush.bf16.msrb.mxu0 %v10970_v22  ;;  %4214 = vmatpush.bf16.msra.mxu3 %v10995_v15 }
 0x799   :  { %4189 = vmatpush.bf16.msra.mxu1 %v10978_v27  ;;  %v9489_v27 = vld [vmem:[%s16704_s2 + $0x68] sm:$0xf] }
 0x79a   :  { %4202 = vmatpush.bf16.msrb.mxu2 %v10986_v2  ;;  %v11658_v2 = vld [vmem:[%s16702_s0 + $0x10] sm:$0xff] }
 0x79c   :  { %4177 = vmatpush.bf16.msrb.mxu0 %v10969_v9  ;;  %4215 = vmatpush.bf16.msra.mxu3 %v10994_v43  ;;  %v11655_v9 = vld [vmem:[%s16703_s1 + $0x78] sm:$0xff] }
 0x79d   :  { %4190 = vmatpush.bf16.msra.mxu1 %v10977_v51  ;;  %v4235_v51 = vunpack.c.l.bf16 %v9489_v27  ;;  %v11663_v43 = vld [vmem:[%s16703_s1 + $0x58] sm:$0xff]  ;;  %v11691_v27 = vld [vmem:[%s16703_s1 + $0x120] sm:$0xff] }
 0x79e   :  { %4203 = vmatpush.bf16.msrb.mxu2 %v10985_v0  ;;  %v11661_v0 = vld [vmem:[%s16703_s1 + $0x60] sm:$0xff] }
 0x79f   :  { %v4247_v15 = vmul.f32 %v11658_v2, %v4235_v51  ;;  %v11694_v51 = vld [vmem:[%s16703_s1 + $0x118] sm:$0xff] }
 0x7a0   :  { %4178 = vmatpush.bf16.msrb.mxu0 %v10968_v47  ;;  %4216 = vmatpush.bf16.msra.mxu3 %v10993_v38  ;;  %v11672_v38 = vld [vmem:[%s16703_s1 + $0xd0] sm:$0xff] }
 0x7a1   :  { %4191 = vmatpush.bf16.msra.mxu1 %v10976_v57  ;;  %v11657_v57 = vld [vmem:[%s16702_s0 + $0x28] sm:$0xff] }
 0x7a2   :  { %4204 = vmatpush.bf16.msrb.mxu2 %v10984_v50  ;;  %v4250_v29 = vmul.f32 %v11657_v57, %v4238_v63  ;;  %v11667_v50 = vld [vmem:[%s16703_s1 + $0x160] sm:$0xff]  ;;  %v11693_v63 = vld [vmem:[%s16703_s1 + $0x98] sm:$0xff]  ;;  %v11696_v57 = vld [vmem:[%s16703_s1 + $0x90] sm:$0xff] }
 0x7a4   :  { %4307 = vmatpush.msra.mxu0 %v4254_v25  ;;  %4217 = vmatpush.bf16.msra.mxu3 %v10992_v19  ;;  %v11662_v25 = vld [vmem:[%s16703_s1 + $0xf0] sm:$0xff]  ;;  %v3481_v19 = vperm.slane %v14327_v6, 3  ;;  %v11683_v6 = vld [vmem:[%s16703_s1 + $0x20] sm:$0xff] }
 0x7a5   :  { %4336 = vmatpush.msrb.mxu1 %v4255_v55  ;;  %v11674_v55 = vld [vmem:[%s16703_s1 + $0x38] sm:$0xff] }
 0x7a6   :  { %4308 = vmatpush.msra.mxu0 %v4251_v26  ;;  %4365 = vmatpush.msra.mxu2 %v4256_v61  ;;  %v11666_v26 = vld [vmem:[%s16703_s1 + $0xe0] sm:$0xff]  ;;  %v9497_v61 = vld [vmem:[%s16706_s4 + $0x48] sm:$0xff] }
 0x7a7   :  { %4337 = vmatpush.msrb.mxu1 %v4252_v35  ;;  %v11677_v35 = vld [vmem:[%s16703_s1 + $0x30] sm:$0xff] }
 0x7a8   :  { %4309 = vmatpush.msra.mxu0 %v4248_v33  ;;  %4742 = vmatpush.msrb.mxu3 %v11655_v9  ;;  %v11669_v33 = vld [vmem:[%s16703_s1 + $0xd8] sm:$0xff]  ;;  %v11689_v9 = vld [vmem:[%s16703_s1 + $0x10] sm:$0xff] }
 0x7a9   :  { %4338 = vmatpush.msrb.mxu1 %v4249_v53  ;;  %4366 = vmatpush.msra.mxu2 %v4253_v48  ;;  %v11688_v48 = vld [vmem:[%s16703_s1 + $0x128] sm:$0xff] }
 0x7aa   :  { %4310 = vmatpush.msra.mxu0 %v4245_v24  ;;  %4743 = vmatpush.msrb.mxu3 %v11656_v36 }
 0x7ab   :  { %4339 = vmatpush.msrb.mxu1 %v4246_v13  ;;  %4367 = vmatpush.msra.mxu2 %v4250_v29  ;;  %v11697_v29 = vld [vmem:[%s16703_s1 + $0x110] sm:$0xff] }
 0x7ac   :  { %4744 = vmatpush.msrb.mxu3 %v11659_v28  ;;  %v11698_v28 = vld [vmem:[%s16703_s1 + $0x88] sm:$0xff] }
 0x7ad   :  { %4368 = vmatpush.msra.mxu2 %v4247_v15  ;;  %v9498_v15 = vld [vmem:[%s16706_s4 + $0x50] sm:$0xff] }
 0x7ae   :  { %4745 = vmatpush.msrb.mxu3 %v11661_v0  ;;  %v9499_v0 = vld [vmem:[%s16706_s4 + $0x58] sm:$0xff] }
 0x7b0   :  { %4746 = vmatpush.msrb.mxu3 %v11663_v43  ;;  %v9500_v43 = vld [vmem:[%s16705_s3 + $0x60] sm:$0xff] }
 0x7b2   :  { %4747 = vmatpush.msrb.mxu3 %v11665_v37 }
 0x7b4   :  { %4748 = vmatpush.msrb.mxu3 %v11668_v40  ;;  %v4272_v40 = vunpack.c.h.bf16 %v9500_v43 }
 0x7b6   :  { %4749 = vmatpush.msrb.mxu3 %v11671_v17 }
 0x7b8   :  { %4750 = vmatpush.msrb.mxu3 %v11674_v55 }
 0x7ba   :  { %4751 = vmatpush.msrb.mxu3 %v11677_v35 }
 0x7bc   :  { %4752 = vmatpush.msrb.mxu3 %v11680_v60 }
 0x7be   :  { %4753 = vmatpush.msrb.mxu3 %v11683_v6 }
 0x7e2   :  { %v3815_v23 = vpop.f32.mrf.mxu0 }
 0x7e3   :  { %v3816_v41 = vadd.f32 %v3815_v23, %v3478_v58 }
 0x7ea   :  { %v3841_v18 = vpop.f32.mrf.mxu2  ;;  %v3817_v16 = vpop.f32.mrf.mxu0 }
 0x7eb   :  { %v3842_v47 = vadd.f32 %v3841_v18, %v3479_v44  ;;  %v11675_v18 = vld [vmem:[%s16703_s1 + $0xc8] sm:$0xff]  ;;  %v11685_v44 = vld [vmem:[%s16703_s1 + $0x130] sm:$0xff] }
 0x7ec   :  { %v11676_v16 = vld [vmem:[%s16703_s1 + $0x148] sm:$0xff] }
 0x7ef   :  { %v3828_v52 = vpop.f32.mrf.mxu1 }
 0x7f0   :  { %v3829_v22 = vadd.f32 %v3828_v52, %v3816_v41  ;;  %v11679_v41 = vld [vmem:[%s16703_s1 + $0x140] sm:$0xff]  ;;  %v11686_v52 = vld [vmem:[%s16703_s1 + $0x18] sm:$0xff] }
 0x7f1   :  { %4754 = vmatpush.msrb.mxu3 %v11686_v52 }
 0x7f2   :  { %v3910_v42 = vpack.c.bf16 %v3829_v22, %v3829_v22  ;;  %v3843_v10 = vpop.f32.mrf.mxu2 }
 0x7f3   :  { %4755 = vmatpush.msrb.mxu3 %v11689_v9  ;;  %v11695_v10 = vld [vmem:[%s16703_s1] sm:$0xff] }
 0x7f4   :  { %4179 = vmatmul.bf16.vlgmr.msrb.gmra.mxu0 %v3910_v42  ;;  %v3854_v31 = vpop.f32.mrf.mxu3 }
 0x7f5   :  { %4771 = vmatpush.msrb.mxu0 %v11660_v62  ;;  %v3855_v23 = vadd.f32 %v3854_v31, %v3842_v47  ;;  %v11692_v47 = vld [vmem:[%s16703_s1 + $0x8] sm:$0xff]  ;;  %v11699_v31 = vld [vmem:[%s16703_s1 + $0x80] sm:$0xff] }
 0x7f6   :  { %4756 = vmatpush.msrb.mxu3 %v11692_v47  ;;  %v11700_v62 = vld [vmem:[%s16703_s1 + $0x108] sm:$0xff] }
 0x7f7   :  { %v3830_v8 = vpop.f32.mrf.mxu1  ;;  %4772 = vmatpush.msrb.mxu0 %v11662_v25  ;;  %v3911_v14 = vpack.c.bf16 %v3855_v23, %v3855_v23  ;;  %v11701_v23 = vld [vmem:[%s16703_s1 + $0x100] sm:$0xff] }
 0x7f8   :  { %4757 = vmatpush.msrb.mxu3 %v11695_v10 }
 0x7f9   :  { %4773 = vmatpush.msrb.mxu0 %v11664_v4  ;;  %4192 = vmatmul.bf16.vlgmr.msra.gmra.mxu1 %v3911_v14  ;;  %v4271_v4 = vunpack.c.l.bf16 %v9500_v43 }
 0x7fa   :  { %4803 = vmatpush.msra.mxu1 %v11667_v50 }
 0x7fb   :  { %4774 = vmatpush.msrb.mxu0 %v11666_v26 }
 0x7fc   :  { %v3856_v59 = vpop.f32.mrf.mxu3  ;;  %4804 = vmatpush.msra.mxu1 %v11670_v32 }
 0x7fd   :  { %4775 = vmatpush.msrb.mxu0 %v11669_v33  ;;  %v9502_v59 = vld [vmem:[%s16705_s3 + $0x6c] sm:$0xff] }
 0x7fe   :  { %4805 = vmatpush.msra.mxu1 %v11673_v56  ;;  %v4274_v17 = vunpack.c.l.bf16 %v9502_v59 }
 0x7ff   :  { %4776 = vmatpush.msrb.mxu0 %v11672_v38 }
 0x800   :  { %v3867_v58 = vpop.f32.mrf.mxu0  ;;  %4806 = vmatpush.msra.mxu1 %v11676_v16 }
 0x801   :  { %v3868_v24 = vadd.f32 %v3867_v58, %v3480_v49  ;;  %4777 = vmatpush.msrb.mxu0 %v11675_v18  ;;  %v4275_v18 = vunpack.c.h.bf16 %v9502_v59 }
 0x802   :  { %4807 = vmatpush.msra.mxu1 %v11679_v41  ;;  %v9504_v41 = vld [vmem:[%s16705_s3 + $0x78] sm:$0xff] }
 0x803   :  { %v3880_v11 = vpop.f32.mrf.mxu1  ;;  %4778 = vmatpush.msrb.mxu0 %v11678_v12  ;;  %v11265_v12 = vld [vmem:[%s16714_s12] ss:$0 sm:$0xff] }
 0x804   :  { %v3881_v39 = vadd.f32 %v3880_v11, %v3868_v24  ;;  %9508 = vmatmul.msk.f32.vlgmr.msra.gmra.mxu0 %vm195_vm0, %v14437_v34  ;;  %4808 = vmatpush.msra.mxu1 %v11682_v30 }
 0x805   :  { %4779 = vmatpush.msrb.mxu0 %v11681_v5 }
 0x806   :  { %v3912_v3 = vpack.c.bf16 %v3881_v39, %v3881_v39  ;;  %4809 = vmatpush.msra.mxu1 %v11685_v44 }
 0x807   :  { %4780 = vmatpush.msrb.mxu0 %v11684_v54  ;;  %v4277_v54 = vunpack.c.l.bf16 %v9504_v41 }
 0x808   :  { %4205 = vmatmul.bf16.vlgmr.msrb.gmra.mxu2 %v3912_v3  ;;  %v3893_v45 = vpop.f32.mrf.mxu2  ;;  %v3869_v53 = vpop.f32.mrf.mxu0  ;;  %4810 = vmatpush.msra.mxu1 %v11688_v48  ;;  %v9501_v48 = vld [vmem:[%s16705_s3 + $0x68] sm:$0xf] }
 0x809   :  { %v3894_v1 = vadd.f32 %v3893_v45, %v3481_v19  ;;  %4781 = vmatpush.msrb.mxu0 %v11687_v46  ;;  %9512 = vmatmul.msk.f32.vlgmr.msrb.gmra.mxu1 %vm195_vm0, %v14437_v34 }
 0x80a   :  { %v3906_v20 = vpop.f32.mrf.mxu3  ;;  %4811 = vmatpush.msra.mxu1 %v11691_v27  ;;  %v4278_v27 = vunpack.c.h.bf16 %v9504_v41 }
 0x80b   :  { %v3882_v13 = vpop.f32.mrf.mxu1  ;;  %v3907_v22 = vadd.f32 %v3906_v20, %v3894_v1  ;;  %4782 = vmatpush.msrb.mxu0 %v11690_v21  ;;  %v2177_v1 = vadd.f32 %v11265_v12, %v13401_v7 }
 0x80c   :  { %9509 = vmatmul.msk.f32.gmra.mxu0 %vm195_vm0, %v9497_v61  ;;  %4812 = vmatpush.msra.mxu1 %v11694_v51 }
 0x80d   :  { %v3913_v42 = vpack.c.bf16 %v3907_v22, %v3907_v22  ;;  %4783 = vmatpush.msrb.mxu0 %v11693_v63  ;;  %v14584_v63 = vld [vmem:[%s16705_s3 + $0x84] sm:$0xff] }
 0x80e   :  { %4813 = vmatpush.msra.mxu1 %v11697_v29 }
 0x80f   :  { %4218 = vmatmul.bf16.vlgmr.msra.gmra.mxu3 %v3913_v42  ;;  %4784 = vmatpush.msrb.mxu0 %v11696_v57 }
 0x810   :  { %v3895_v36 = vpop.f32.mrf.mxu2  ;;  %4814 = vmatpush.msra.mxu1 %v11700_v62 }
 0x811   :  { %4785 = vmatpush.msrb.mxu0 %v11698_v28  ;;  %9513 = vmatmul.msk.f32.gmra.mxu1 %vm195_vm0, %v9497_v61  ;;  %v4273_v36 = vunpack.c.l.bf16 %v9501_v48  ;;  %v14593_v28 = vld [vmem:[%s16705_s3 + $0x74] sm:$0xf] }
 0x812   :  { %v3908_v2 = vpop.f32.mrf.mxu3  ;;  %4815 = vmatpush.msra.mxu1 %v11701_v23 }
 0x813   :  { %4786 = vmatpush.msrb.mxu0 %v11699_v31 }
 0x814   :  { %9510 = vmatmul.msk.f32.gmra.mxu0 %vm195_vm0, %v9498_v15 }
 0x818   :  { %9516 = vmatmul.msk.f32.vlgmr.msra.gmra.mxu2 %vm195_vm0, %v14437_v34 }
 0x819   :  { %9514 = vmatmul.msk.f32.gmra.mxu1 %vm195_vm0, %v9498_v15 }
 0x81c   :  { %9511 = vmatmul.msk.f32.gmra.mxu0 %vm195_vm0, %v9499_v0 }
 0x820   :  { %9517 = vmatmul.msk.f32.gmra.mxu2 %vm195_vm0, %v9497_v61 }
 0x821   :  { %9515 = vmatmul.msk.f32.gmra.mxu1 %vm195_vm0, %v9499_v0 }
 0x828   :  { %9518 = vmatmul.msk.f32.gmra.mxu2 %vm195_vm0, %v9498_v15 }
 0x830   :  { %9519 = vmatmul.msk.f32.gmra.mxu2 %vm195_vm0, %v9499_v0  ;;  %v4280_v0 = vunpack.c.l.bf16 %v14584_v63 }
 0x871   :  { %v4180_v8 = vpop.f32.mrf.mxu0 }
 0x876   :  { %v4193_v25 = vpop.f32.mrf.mxu1 }
 0x877   :  { %v4194_v35 = vadd.f32 %v4193_v25, %v4180_v8 }
 0x879   :  { %v4182_v14 = vpop.f32.mrf.mxu0 }
 0x87e   :  { %v4195_v37 = vpop.f32.mrf.mxu1 }
 0x881   :  { %v4312_v26 = vpop.f32.mrf.mxu0 }
 0x882   :  { %v4313_v50 = vadd.f32 %v4312_v26, %v4271_v4 }
 0x884   :  { %v14548_v49 = vmul.f32 0.70710677, %v4313_v50  ;;  %v14595_v31 = vmul.f32 0.5, %v4313_v50  ;;  %v4276_v50 = vunpack.c.l.bf16 %v14593_v28 }
 0x886   :  { %v4406_v33 = vand.u32 2147483647, %v14548_v49  ;;  %v4341_v32 = vpop.f32.mrf.mxu1  ;;  %vm4670_vm3 = vcmp.ge.f32.partialorder %v14548_v49, 0.0 }
 0x887   :  { %v4342_v38 = vadd.f32 %v4341_v32, %v4272_v40 }
 0x888   :  { %v4418_v58 = vmul.f32 0.3275911, %v4406_v33  ;;  %v4598_v46 = vsub.f32 0.0, %v4406_v33 }
 0x889   :  { %v4315_v24 = vpop.f32.mrf.mxu0  ;;  %v14554_v55 = vmul.f32 0.70710677, %v4342_v38  ;;  %v14600_v40 = vmul.f32 0.5, %v4342_v38 }
 0x88a   :  { %v4430_v11 = vadd.f32 1.0, %v4418_v58  ;;  %v14556_v34 = vadd.f32 %v4315_v24, %v4274_v17  ;;  %v4610_v57 = vmul.f32 %v4598_v46, %v4406_v33  ;;  %v4281_v33 = vunpack.c.h.bf16 %v14584_v63 }
 0x88b   :  { %v4206_v56 = vpop.f32.mrf.mxu2  ;;  %v4407_v16 = vand.u32 2147483647, %v14554_v55  ;;  %vm4671_vm4 = vcmp.ge.f32.partialorder %v14554_v55, 0.0 }
 0x88c   :  { %11428 = vrcp.f32 %v4430_v11  ;;  %v14560_v39 = vmul.f32 0.70710677, %v14556_v34  ;;  %v4207_v60 = vadd.f32 %v4206_v56, %v4194_v35  ;;  %v4622_v17 = vmul.f32 1.442695, %v4610_v57 }
 0x88d   :  { %v4419_v3 = vmul.f32 0.3275911, %v4407_v16  ;;  %v4599_v7 = vsub.f32 0.0, %v4407_v16  ;;  %v14608_v38 = vmul.f32 0.5, %v14556_v34 }
 0x88e   :  { %v4344_v19 = vpop.f32.mrf.mxu1  ;;  %v4409_v5 = vand.u32 2147483647, %v14560_v39  ;;  %vm4673_vm6 = vcmp.ge.f32.partialorder %v14560_v39, 0.0 }
 0x88f   :  { %v14569_v30 = vadd.f32 %v4344_v19, %v4275_v18  ;;  %v4431_v6 = vadd.f32 1.0, %v4419_v3  ;;  %v4611_v14 = vmul.f32 %v4599_v7, %v4407_v16 }
 0x890   :  { %v4421_v22 = vmul.f32 0.3275911, %v4409_v5  ;;  %v4601_v29 = vsub.f32 0.0, %v4409_v5 }
 0x891   :  { %v14573_v52 = vmul.f32 0.70710677, %v14569_v30  ;;  %v4318_v20 = vpop.f32.mrf.mxu0  ;;  %11430 = vrcp.f32 %v4431_v6  ;;  %v4624_v12 = vmul.f32 1.442695, %v4611_v14 }
 0x892   :  { %v4219_v45 = vpop.f32.mrf.mxu3  ;;  %v11429_v44 = vpop.eup %11428  ;;  %v4319_v47 = vadd.f32 %v4318_v20, %v4277_v54  ;;  %v4433_v62 = vadd.f32 1.0, %v4421_v22  ;;  %v4613_v58 = vmul.f32 %v4601_v29, %v4409_v5  ;;  %v14618_v5 = vld [vmem:[%s16705_s3 + $0x80] sm:$0xf] }
 0x893   :  { %v4208_v53 = vpop.f32.mrf.mxu2  ;;  %v4220_v13 = vadd.f32 %v4219_v45, %v4207_v60  ;;  %v4454_v61 = vmul.f32 %v11429_v44, %v4430_v11  ;;  %v4410_v21 = vand.u32 2147483647, %v14573_v52  ;;  %v14621_v45 = vmul.f32 0.5, %v14569_v30 }
 0x894   :  { %v14588_v2 = vmul.f32 0.70710677, %v4319_v47  ;;  %11432 = vrcp.f32 %v4433_v62  ;;  %v4628_v54 = vmul.f32 1.442695, %v4613_v58  ;;  %v14627_v20 = vmul.f32 0.5, %v4319_v47 }
 0x895   :  { %v14578_v9 = vadd.f32 %v4220_v13, %v2177_v1  ;;  %v4466_v42 = vsub.f32 2.0, %v4454_v61  ;;  %v4422_v51 = vmul.f32 0.3275911, %v4410_v21  ;;  %v4602_v11 = vsub.f32 0.0, %v4410_v21 }
 0x896   :  { %v4347_v15 = vpop.f32.mrf.mxu1  ;;  %v4412_v4 = vand.u32 2147483647, %v14588_v2  ;;  %v4279_v61 = vunpack.c.l.bf16 %v14618_v5  ;;  %vm4674_vm7 = vcmp.ge.f32.partialorder %v14573_v52, 0.0  ;;  %vm4676_vm8 = vcmp.ge.f32.partialorder %v14588_v2, 0.0 }
 0x897   :  { %v14586_v10 = vmul.f32 %v11429_v44, %v4466_v42  ;;  %v4348_v23 = vadd.f32 %v4347_v15, %v4278_v27  ;;  %v11431_v8 = vpop.eup %11430  ;;  %v4434_v43 = vadd.f32 1.0, %v4422_v51  ;;  %v4614_v44 = vmul.f32 %v4602_v11, %v4410_v21 }
 0x898   :  { %v4455_v59 = vmul.f32 %v11431_v8, %v4431_v6  ;;  %v4424_v56 = vmul.f32 0.3275911, %v4412_v4  ;;  %v4604_v30 = vsub.f32 0.0, %v4412_v4 }
 0x899   :  { %v4490_v25 = vmul.f32 1.0614054, %v14586_v10  ;;  %v14604_v18 = vmul.f32 0.70710677, %v4348_v23  ;;  %v4321_v16 = vpop.f32.mrf.mxu0  ;;  %11434 = vrcp.f32 %v4434_v43  ;;  %v4630_v57 = vmul.f32 1.442695, %v4614_v44 }
 0x89a   :  { %v4221_v37 = vpop.f32.mrf.mxu3  ;;  %v4467_v24 = vsub.f32 2.0, %v4455_v59  ;;  %v14612_v3 = vadd.f32 1.0, %v4424_v56  ;;  %11436 = vpow2.f32 %v4622_v17  ;;  %v14623_v34 = vadd.f32 %v4321_v16, %v4280_v0  ;;  %v11433_v46 = vpop.eup %11432 }
 0x89b   :  { %v4370_v26 = vpop.f32.mrf.mxu2  ;;  %v4502_v32 = vadd.f32 -1.4531521, %v4490_v25  ;;  %v4413_v19 = vand.u32 2147483647, %v14604_v18  ;;  %11438 = vpow2.f32 %v4624_v12  ;;  %v14641_v25 = vmul.f32 0.5, %v4348_v23 }
 0x89c   :  { %v14610_v41 = vmul.f32 %v11431_v8, %v4467_v24  ;;  %v4371_v60 = vadd.f32 %v4370_v26, %v4273_v36  ;;  %11440 = vrcp.f32 %v14612_v3  ;;  %v14636_v36 = vmul.f32 0.70710677, %v14623_v34 }
 0x89d   :  { %v4514_v35 = vmul.f32 %v4502_v32, %v14586_v10  ;;  %v4425_v1 = vmul.f32 0.3275911, %v4413_v19  ;;  %v4605_v21 = vsub.f32 0.0, %v4413_v19  ;;  %11442 = vpow2.f32 %v4628_v54 }
 0x89e   :  { %v4491_v53 = vmul.f32 1.0614054, %v14610_v41  ;;  %v14631_v22 = vmul.f32 0.70710677, %v4371_v60  ;;  %v4457_v8 = vmul.f32 %v11433_v46, %v4433_v62  ;;  %v4415_v14 = vand.u32 2147483647, %v14636_v36  ;;  %v4350_v37 = vpop.f32.mrf.mxu1 }
 0x89f   :  { %v4526_v6 = vadd.f32 1.4214138, %v4514_v35  ;;  %v11435_v42 = vpop.eup %11434  ;;  %v14633_v51 = vadd.f32 1.0, %v4425_v1  ;;  %v4616_v32 = vmul.f32 %v4604_v30, %v4412_v4  ;;  %v4617_v24 = vmul.f32 %v4605_v21, %v4413_v19 }
 0x8a0   :  { %v4503_v48 = vadd.f32 -1.4531521, %v4491_v53  ;;  %v4408_v29 = vand.u32 2147483647, %v14631_v22  ;;  %v11437_v15 = vpop.eup %11436  ;;  %v4458_v59 = vmul.f32 %v11435_v42, %v4434_v43  ;;  %v4427_v11 = vmul.f32 0.3275911, %v4415_v14 }
 0x8a1   :  { %v4538_v13 = vmul.f32 %v4526_v6, %v14586_v10  ;;  %v11439_v58 = vpop.eup %11438  ;;  %11444 = vrcp.f32 %v14633_v51  ;;  %v14649_v35 = vadd.f32 %v4350_v37, %v4281_v33  ;;  %v4469_v4 = vsub.f32 2.0, %v4457_v8 }
 0x8a2   :  { %v4515_v47 = vmul.f32 %v4503_v48, %v14610_v41  ;;  %v4420_v17 = vmul.f32 0.3275911, %v4408_v29  ;;  %v11441_v16 = vpop.eup %11440  ;;  %11446 = vpow2.f32 %v4630_v57  ;;  %v4600_v12 = vsub.f32 0.0, %v4408_v29 }
 0x8a3   :  { %v4373_v27 = vpop.f32.mrf.mxu2  ;;  %v4550_v7 = vadd.f32 -0.28449672, %v4538_v13  ;;  %v4439_v6 = vadd.f32 1.0, %v4427_v11  ;;  %v14652_v53 = vpop.eup %11442  ;;  %v4470_v54 = vsub.f32 2.0, %v4458_v59  ;;  %v4634_v44 = vmul.f32 1.442695, %v4616_v32 }
 0x8a4   :  { %v4527_v26 = vadd.f32 1.4214138, %v4515_v47  ;;  %v4432_v23 = vadd.f32 1.0, %v4420_v17  ;;  %v4636_v13 = vmul.f32 1.442695, %v4617_v24  ;;  %v14654_v48 = vmul.f32 0.5, %v4371_v60 }
 0x8a5   :  { %v4562_v0 = vmul.f32 %v4550_v7, %v14586_v10  ;;  %v4607_v30 = vsub.f32 0.0, %v4415_v14  ;;  %v4460_v33 = vmul.f32 %v11441_v16, %v14612_v3  ;;  %v14663_v7 = vadd.f32 %v4373_v27, %v4276_v50 }
 0x8a6   :  { %v4539_v62 = vmul.f32 %v4527_v26, %v14610_v41  ;;  %11448 = vrcp.f32 %v4432_v23  ;;  %v4612_v60 = vmul.f32 %v4600_v12, %v4408_v29  ;;  %v14671_v37 = vmul.f32 %v11435_v42, %v4470_v54 }
 0x8a7   :  { %v4574_v56 = vadd.f32 0.2548296, %v4562_v0  ;;  %v14665_v47 = vpop.eup %11444  ;;  %11450 = vrcp.f32 %v4439_v6  ;;  %v4619_v50 = vmul.f32 %v4607_v30, %v4415_v14  ;;  %v14678_v27 = vmul.f32 0.70710677, %v14663_v7 }
 0x8a8   :  { %v4551_v19 = vadd.f32 -0.28449672, %v4539_v62  ;;  %v14669_v0 = vpop.eup %11446  ;;  %11452 = vpow2.f32 %v4634_v44  ;;  %v4472_v26 = vsub.f32 2.0, %v4460_v33  ;;  %v4461_v42 = vmul.f32 %v14665_v47, %v14633_v51 }
 0x8a9   :  { %v4586_v43 = vmul.f32 %v4574_v56, %v14586_v10  ;;  %v14659_v10 = vmul.f32 0.70710677, %v14649_v35  ;;  %11454 = vpow2.f32 %v4636_v13  ;;  %v4626_v56 = vmul.f32 1.442695, %v4612_v60 }
 0x8aa   :  { %v4563_v63 = vmul.f32 %v4551_v19, %v14610_v41  ;;  %v4411_v24 = vand.u32 2147483647, %v14678_v27  ;;  %v4640_v12 = vmul.f32 1.442695, %v4619_v50  ;;  %vm4672_vm5 = vcmp.ge.f32.partialorder %v14631_v22, 0.0 }
 0x8ab   :  { %v4646_v1 = vmul.f32 %v11437_v15, %v4586_v43  ;;  %v4376_v21 = vpop.f32.mrf.mxu2  ;;  %v14667_v15 = vmul.f32 %v11433_v46, %v4469_v4  ;;  %v14674_v3 = vand.u32 2147483647, %v14659_v10  ;;  %vm4677_vm9 = vcmp.ge.f32.partialorder %v14604_v18, 0.0 }
 0x8ac   :  { %v4575_v8 = vadd.f32 0.2548296, %v4563_v63  ;;  %v11449_v46 = vpop.eup %11448  ;;  %v14689_v43 = vadd.f32 %v4376_v21, %v4279_v61  ;;  %v4423_v49 = vmul.f32 0.3275911, %v4411_v24  ;;  %v4603_v19 = vsub.f32 0.0, %v4411_v24 }
 0x8ad   :  { %v4658_v57 = vsub.f32 1.0, %v4646_v1  ;;  %v4428_v59 = vmul.f32 0.3275911, %v14674_v3  ;;  %v4456_v17 = vmul.f32 %v11449_v46, %v4432_v23  ;;  %v11451_v51 = vpop.eup %11450  ;;  %v4493_v60 = vmul.f32 1.0614054, %v14667_v15 }
 0x8ae   :  { %v4587_v29 = vmul.f32 %v4575_v8, %v14610_v41  ;;  %v9507_v41 = vld [vmem:[%s16705_s3 + $0x8c] sm:$0xf]  ;;  %v14694_v23 = vpop.eup %11452  ;;  %v4435_v1 = vadd.f32 1.0, %v4423_v49  ;;  %v4615_v13 = vmul.f32 %v4603_v19, %v4411_v24  ;;  %v4463_v63 = vmul.f32 %v11451_v51, %v4439_v6 }
 0x8af   :  { %v4682_v28 = vsub.f32 0.0, %v4658_v57  ;;  %v4440_v62 = vadd.f32 1.0, %v4428_v59  ;;  %v4468_v4 = vsub.f32 2.0, %v4456_v17  ;;  %v14699_v5 = vpop.eup %11454  ;;  %v14704_v33 = vmul.f32 0.70710677, %v14689_v43 }
 0x8b0   :  { %v4647_v11 = vmul.f32 %v11439_v58, %v4587_v29  ;;  %v14697_v58 = vmul.f32 %v11441_v16, %v4472_v26  ;;  %v4282_v21 = vunpack.c.l.bf16 %v9507_v41  ;;  %v4632_v29 = vmul.f32 1.442695, %v4615_v13 }
 0x8b1   :  { %v4694_v32 = vsel %vm4670_vm3, %v4658_v57, %v4682_v28  ;;  %11456 = vrcp.f32 %v4440_v62  ;;  %v14701_v61 = vmul.f32 %v11449_v46, %v4468_v4  ;;  %v4608_v28 = vsub.f32 0.0, %v14674_v3 }
 0x8b2   :  { %v4706_v14 = vadd.f32 1.0, %v4694_v32  ;;  %v4659_v44 = vsub.f32 1.0, %v4647_v11  ;;  %11458 = vpow2.f32 %v4626_v56  ;;  %v4414_v6 = vand.u32 2147483647, %v14704_v33 }
 0x8b3   :  { %v4379_v57 = vpop.f32.mrf.mxu2  ;;  %v4492_v16 = vmul.f32 1.0614054, %v14701_v61  ;;  %11460 = vpow2.f32 %v4640_v12  ;;  %v4505_v56 = vadd.f32 -1.4531521, %v4493_v60  ;;  %v14728_v13 = vmul.f32 0.5, %v14663_v7 }
 0x8b4   :  { %v4718_v54 = vmul.f32 %v4706_v14, %v14595_v31  ;;  %v4683_v30 = vsub.f32 0.0, %v4659_v44  ;;  %v4473_v31 = vsub.f32 2.0, %v4461_v42  ;;  %11462 = vrcp.f32 %v4435_v1 }
 0x8b5   :  { %v4504_v46 = vadd.f32 -1.4531521, %v4492_v16  ;;  %v14712_v26 = vadd.f32 %v4379_v57, %v4282_v21  ;;  %v4475_v42 = vsub.f32 2.0, %v4463_v63  ;;  %v4426_v32 = vmul.f32 0.3275911, %v4414_v6 }
 0x8b6   :  { %4758 = vmatmul.f32.vlgmr.msrb.gmra.mxu3 %v4718_v54  ;;  %v4695_v8 = vsel %vm4671_vm4, %v4659_v44, %v4683_v30  ;;  %v4606_v17 = vsub.f32 0.0, %v4414_v6  ;;  %v14718_v14 = vmul.f32 %v14665_v47, %v4473_v31  ;;  %v4517_v19 = vmul.f32 %v4505_v56, %v14667_v15 }
 0x8b7   :  { %v4707_v50 = vadd.f32 1.0, %v4695_v8  ;;  %v11457_v59 = vpop.eup %11456  ;;  %v4516_v11 = vmul.f32 %v4504_v46, %v14701_v61  ;;  %v4438_v4 = vadd.f32 1.0, %v4426_v32  ;;  %v14722_v49 = vmul.f32 0.70710677, %v14712_v26 }
 0x8b8   :  { %v14714_v24 = vpop.eup %11458  ;;  %v4464_v41 = vmul.f32 %v11457_v59, %v4440_v62  ;;  %v4618_v12 = vmul.f32 %v4606_v17, %v4414_v6  ;;  %11464 = vpow2.f32 %v4632_v29  ;;  %v14731_v30 = vmul.f32 %v11451_v51, %v4475_v42 }
 0x8b9   :  { %v4719_v55 = vmul.f32 %v4707_v50, %v14600_v40  ;;  %v14725_v54 = vpop.eup %11460  ;;  %v4528_v44 = vadd.f32 1.4214138, %v4516_v11  ;;  %v4494_v40 = vmul.f32 1.0614054, %v14671_v37  ;;  %v14734_v62 = vmul.f32 %v4608_v28, %v14674_v3 }
 0x8ba   :  { %v11463_v47 = vpop.eup %11462  ;;  %11466 = vrcp.f32 %v4438_v4  ;;  %v4417_v63 = vand.u32 2147483647, %v14722_v49  ;;  %v4638_v31 = vmul.f32 1.442695, %v4618_v12  ;;  %v4529_v16 = vadd.f32 1.4214138, %v4517_v19 }
 0x8bb   :  { %4787 = vmatmul.f32.vlgmr.msrb.gmra.mxu0 %v4719_v55  ;;  %v4540_v21 = vmul.f32 %v4528_v44, %v14701_v61  ;;  %v4459_v57 = vmul.f32 %v11463_v47, %v4435_v1  ;;  %v4476_v7 = vsub.f32 2.0, %v4464_v41  ;;  %v4506_v6 = vadd.f32 -1.4531521, %v4494_v40 }
 0x8bc   :  { %v4429_v60 = vmul.f32 0.3275911, %v4417_v63  ;;  %v4609_v8 = vsub.f32 0.0, %v4417_v63  ;;  %v4541_v51 = vmul.f32 %v4529_v16, %v14667_v15  ;;  %v4496_v29 = vmul.f32 1.0614054, %v14697_v58 }
 0x8bd   :  { %v4552_v50 = vadd.f32 -0.28449672, %v4540_v21  ;;  %v4471_v46 = vsub.f32 2.0, %v4459_v57  ;;  %v4518_v42 = vmul.f32 %v4506_v6, %v14671_v37  ;;  %v4497_v32 = vmul.f32 1.0614054, %v14718_v14 }
 0x8be   :  { %v4441_v3 = vadd.f32 1.0, %v4429_v60  ;;  %v4621_v28 = vmul.f32 %v4609_v8, %v4417_v63  ;;  %v14742_v17 = vpop.eup %11464  ;;  %v4553_v55 = vadd.f32 -0.28449672, %v4541_v51  ;;  %v4508_v11 = vadd.f32 -1.4531521, %v4496_v29 }
 0x8bf   :  { %v4564_v1 = vmul.f32 %v4552_v50, %v14701_v61  ;;  %v14745_v56 = vmul.f32 %v11463_v47, %v4471_v46  ;;  %v14747_v12 = vmul.f32 %v11457_v59, %v4476_v7  ;;  %v4530_v19 = vadd.f32 1.4214138, %v4518_v42 }
 0x8c0   :  { %v11467_v41 = vpop.eup %11466  ;;  %11468 = vrcp.f32 %v4441_v3  ;;  %v4509_v44 = vadd.f32 -1.4531521, %v4497_v32  ;;  %v4565_v57 = vmul.f32 %v4553_v55, %v14667_v15  ;;  %v14752_v16 = vmul.f32 1.442695, %v4621_v28 }
 0x8c1   :  { %v4576_v40 = vadd.f32 0.2548296, %v4564_v1  ;;  %v4495_v63 = vmul.f32 1.0614054, %v14745_v56  ;;  %v4462_v21 = vmul.f32 %v11467_v41, %v4438_v4  ;;  %v4542_v47 = vmul.f32 %v4530_v19, %v14671_v37 }
 0x8c2   :  { %v4520_v60 = vmul.f32 %v4508_v11, %v14697_v58  ;;  %v4521_v59 = vmul.f32 %v4509_v44, %v14718_v14  ;;  %v4577_v50 = vadd.f32 0.2548296, %v4565_v57  ;;  %11470 = vpow2.f32 %v4638_v31 }
 0x8c3   :  { %v4588_v7 = vmul.f32 %v4576_v40, %v14701_v61  ;;  %v4507_v8 = vadd.f32 -1.4531521, %v4495_v63  ;;  %v4474_v6 = vsub.f32 2.0, %v4462_v21  ;;  %v4554_v46 = vadd.f32 -0.28449672, %v4542_v47 }
 0x8c4   :  { %v4532_v4 = vadd.f32 1.4214138, %v4520_v60  ;;  %v4533_v51 = vadd.f32 1.4214138, %v4521_v59  ;;  %v4589_v32 = vmul.f32 %v4577_v50, %v14667_v15  ;;  %v4499_v11 = vmul.f32 1.0614054, %v14731_v30 }
 0x8c5   :  { %v4648_v29 = vmul.f32 %v14714_v24, %v4588_v7  ;;  %v4519_v28 = vmul.f32 %v4507_v8, %v14745_v56  ;;  %v14761_v42 = vmul.f32 %v11467_v41, %v4474_v6  ;;  %v4566_v61 = vmul.f32 %v4554_v46, %v14671_v37 }
 0x8c6   :  { %v11469_v1 = vpop.eup %11468  ;;  %v4544_v55 = vmul.f32 %v4532_v4, %v14697_v58  ;;  %v4545_v31 = vmul.f32 %v4533_v51, %v14718_v14  ;;  %v4649_v63 = vmul.f32 %v14652_v53, %v4589_v32  ;;  %vm4675_vm10 = vcmp.ge.f32.partialorder %v14678_v27, 0.0 }
 0x8c7   :  { %v4660_v19 = vsub.f32 1.0, %v4648_v29  ;;  %v4531_v44 = vadd.f32 1.4214138, %v4519_v28  ;;  %v4498_v40 = vmul.f32 1.0614054, %v14761_v42  ;;  %v4465_v24 = vmul.f32 %v11469_v1, %v4441_v3 }
 0x8c8   :  { %v4578_v41 = vadd.f32 0.2548296, %v4566_v61  ;;  %v4556_v21 = vadd.f32 -0.28449672, %v4544_v55  ;;  %v4557_v57 = vadd.f32 -0.28449672, %v4545_v31  ;;  %v14772_v7 = vpop.eup %11470  ;;  %11472 = vpow2.f32 %v14752_v16 }
 0x8c9   :  { %v4684_v15 = vsub.f32 0.0, %v4660_v19  ;;  %v4543_v47 = vmul.f32 %v4531_v44, %v14745_v56  ;;  %v4510_v60 = vadd.f32 -1.4531521, %v4498_v40  ;;  %v4477_v59 = vsub.f32 2.0, %v4465_v24 }
 0x8ca   :  { %v4661_v8 = vsub.f32 1.0, %v4649_v63  ;;  %v4590_v6 = vmul.f32 %v4578_v41, %v14671_v37  ;;  %v4568_v50 = vmul.f32 %v4556_v21, %v14697_v58  ;;  %v4569_v3 = vmul.f32 %v4557_v57, %v14718_v14 }
 0x8cb   :  { %v4696_v53 = vsel %vm4672_vm5, %v4660_v19, %v4684_v15  ;;  %v4555_v46 = vadd.f32 -0.28449672, %v4543_v47  ;;  %v4522_v4 = vmul.f32 %v4510_v60, %v14761_v42  ;;  %v14780_v51 = vmul.f32 %v11469_v1, %v4477_v59 }
 0x8cc   :  { %v4708_v29 = vadd.f32 1.0, %v4696_v53  ;;  %v4685_v28 = vsub.f32 0.0, %v4661_v8  ;;  %v4650_v32 = vmul.f32 %v14669_v0, %v4590_v6  ;;  %v4580_v61 = vadd.f32 0.2548296, %v4568_v50 }
 0x8cd   :  { %v4567_v37 = vmul.f32 %v4555_v46, %v14745_v56  ;;  %v4534_v55 = vadd.f32 1.4214138, %v4522_v4  ;;  %v4501_v31 = vmul.f32 1.0614054, %v14780_v51  ;;  %v4581_v44 = vadd.f32 0.2548296, %v4569_v3 }
 0x8ce   :  { %v4720_v22 = vmul.f32 %v4708_v29, %v14654_v48  ;;  %v4697_v19 = vsel %vm4673_vm6, %v4661_v8, %v4685_v28  ;;  %v4662_v1 = vsub.f32 1.0, %v4650_v32  ;;  %v4592_v40 = vmul.f32 %v4580_v61, %v14697_v58 }
 0x8cf   :  { %v4579_v0 = vadd.f32 0.2548296, %v4567_v37  ;;  %v4546_v24 = vmul.f32 %v4534_v55, %v14761_v42  ;;  %v4513_v63 = vadd.f32 -1.4531521, %v4501_v31  ;;  %v4709_v41 = vadd.f32 1.0, %v4697_v19 }
 0x8d0   :  { %v4686_v21 = vsub.f32 0.0, %v4662_v1  ;;  %v4652_v57 = vmul.f32 %v14694_v23, %v4592_v40  ;;  %v4593_v48 = vmul.f32 %v4581_v44, %v14718_v14  ;;  %9520 = vmatmul.msk.f32.vlgmr.msra.gmra.mxu1 %vm643_vm2, %v4720_v22  ;;  %v4511_v39 = vadd.f32 -1.4531521, %v4499_v11 }
 0x8d1   :  { %v4591_v15 = vmul.f32 %v4579_v0, %v14745_v56  ;;  %v4558_v58 = vadd.f32 -0.28449672, %v4546_v24  ;;  %v4525_v47 = vmul.f32 %v4513_v63, %v14780_v51  ;;  %v4721_v60 = vmul.f32 %v4709_v41, %v14608_v38 }
 0x8d2   :  { %v4698_v59 = vsel %vm4674_vm7, %v4662_v1, %v4686_v21  ;;  %v4664_v8 = vsub.f32 1.0, %v4652_v57  ;;  %v4653_v6 = vmul.f32 %v14699_v5, %v4593_v48  ;;  %v4523_v23 = vmul.f32 %v4511_v39, %v14731_v30 }
 0x8d3   :  { %v4651_v14 = vmul.f32 %v14742_v17, %v4591_v15  ;;  %v4570_v50 = vmul.f32 %v4558_v58, %v14761_v42  ;;  %v4537_v11 = vadd.f32 1.4214138, %v4525_v47  ;;  %4761 = vmatmul.f32.gmra.mxu3 %v4721_v60  ;;  %v4710_v56 = vadd.f32 1.0, %v4698_v59  ;;  %v11473_v15 = vpop.eup %11472 }
 0x8d4   :  { %v4688_v3 = vsub.f32 0.0, %v4664_v8  ;;  %v4665_v53 = vsub.f32 1.0, %v4653_v6  ;;  %v4535_v46 = vadd.f32 1.4214138, %v4523_v23  ;;  %v4500_v38 = vmul.f32 1.0614054, %v14747_v12 }
 0x8d5   :  { %v4663_v4 = vsub.f32 1.0, %v4651_v14  ;;  %v4582_v52 = vadd.f32 0.2548296, %v4570_v50  ;;  %v4549_v29 = vmul.f32 %v4537_v11, %v14780_v51  ;;  %v4722_v5 = vmul.f32 %v4710_v56, %v14621_v45 }
 0x8d6   :  { %v4700_v28 = vsel %vm4676_vm8, %v4664_v8, %v4688_v3  ;;  %v4689_v17 = vsub.f32 0.0, %v4665_v53  ;;  %v4547_v32 = vmul.f32 %v4535_v46, %v14731_v30  ;;  %v4512_v61 = vadd.f32 -1.4531521, %v4500_v38 }
 0x8d7   :  { %v4687_v37 = vsub.f32 0.0, %v4663_v4  ;;  %v4594_v55 = vmul.f32 %v4582_v52, %v14761_v42  ;;  %v4561_v31 = vadd.f32 -0.28449672, %v4549_v29  ;;  %4790 = vmatmul.f32.gmra.mxu0 %v4722_v5  ;;  %v4712_v44 = vadd.f32 1.0, %v4700_v28 }
 0x8d8   :  { %v4701_v22 = vsel %vm4677_vm9, %v4665_v53, %v4689_v17  ;;  %v4559_v19 = vadd.f32 -0.28449672, %v4547_v32  ;;  %v4524_v45 = vmul.f32 %v4512_v61, %v14747_v12  ;;  %v4642_v18 = vmul.f32 1.442695, %v14734_v62 }
 0x8d9   :  { %v4699_v2 = vsel %vm4675_vm10, %v4663_v4, %v4687_v37  ;;  %v4654_v1 = vmul.f32 %v14772_v7, %v4594_v55  ;;  %v4573_v40 = vmul.f32 %v4561_v31, %v14780_v51  ;;  %v4724_v42 = vmul.f32 %v4712_v44, %v14627_v20  ;;  %v9527_v37 = vld [vmem:[%s16707_s5 + $0x58] sm:$0xff]  ;;  %v9525_v55 = vld [vmem:[%s16707_s5 + $0x48] sm:$0xff]  ;;  %v9524_v44 = vld [vmem:[%s16707_s5 + $0x40] sm:$0xff] }
 0x8da   :  { %v4711_v0 = vadd.f32 1.0, %v4699_v2  ;;  %v4713_v24 = vadd.f32 1.0, %v4701_v22  ;;  %v4571_v63 = vmul.f32 %v4559_v19, %v14731_v30  ;;  %v4536_v16 = vadd.f32 1.4214138, %v4524_v45  ;;  %4886 = vmatpush.msrb.mxu2 %v9527_v37  ;;  %v11005_v37 = vld [vmem:[#allocation2 + $0x224] sm:$0xf0] }
 0x8db   :  { %v4666_v41 = vsub.f32 1.0, %v4654_v1  ;;  %v4585_v21 = vadd.f32 0.2548296, %v4573_v40  ;;  %4764 = vmatmul.f32.gmra.mxu3 %v4724_v42  ;;  %vm4678_vm11 = vcmp.ge.f32.partialorder %v14704_v33, 0.0  ;;  %11474 = vpow2.f32 %v4642_v18 }
 0x8dc   :  { %v4723_v57 = vmul.f32 %v4711_v0, %v14728_v13  ;;  %v4725_v27 = vmul.f32 %v4713_v24, %v14641_v25  ;;  %v4583_v48 = vadd.f32 0.2548296, %v4571_v63  ;;  %v4548_v7 = vmul.f32 %v4536_v16, %v14747_v12 }
 0x8dd   :  { %v4690_v39 = vsub.f32 0.0, %v4666_v41  ;;  %v4597_v20 = vmul.f32 %v4585_v21, %v14780_v51  ;;  %v4390_v25 = vmul.f32 0.5, %v14689_v43  ;;  %vm4681_vm12 = vcmp.ge.f32.partialorder %v14722_v49, 0.0  ;;  %v11024_v21 = vld [vmem:[#allocation2 + $0x2c4] sm:$0xf] }
 0x8de   :  { %v4595_v58 = vmul.f32 %v4583_v48, %v14731_v30  ;;  %v4560_v47 = vadd.f32 -0.28449672, %v4548_v7  ;;  %9521 = vmatmul.msk.f32.gmra.mxu1 %vm643_vm2, %v4723_v57  ;;  %vm4679_vm13 = vcmp.ge.f32.partialorder %v14636_v36, 0.0  ;;  %v4393_v38 = vmul.f32 0.5, %v14712_v26  ;;  %v9631_v57 = vld [vmem:[#allocation2 + $0x2e0] sm:$0xf0] }
 0x8df   :  { %v4702_v62 = vsel %vm4678_vm11, %v4666_v41, %v4690_v39  ;;  %v4657_v60 = vmul.f32 %v11473_v15, %v4597_v20  ;;  %4793 = vmatmul.f32.gmra.mxu0 %v4725_v27  ;;  %vm4680_vm15 = vcmp.ge.f32.partialorder %v14659_v10, 0.0  ;;  %v4392_v36 = vmul.f32 0.5, %v14649_v35  ;;  %v9526_v10 = vld [vmem:[%s16707_s5 + $0x50] sm:$0xff]  ;;  %v9637_v27 = vld [vmem:[#allocation2 + $0x2c8] sm:$0xf] }
 0x8e0   :  { %v4714_v13 = vadd.f32 1.0, %v4702_v62  ;;  %v4655_v59 = vmul.f32 %v14725_v54, %v4595_v58  ;;  %v4572_v8 = vmul.f32 %v4560_v47, %v14747_v12  ;;  %v4391_v54 = vmul.f32 0.5, %v14623_v34  ;;  %4887 = vmatpush.msrb.mxu2 %v9526_v10  ;;  %v11029_v7 = vld [vmem:[#allocation2 + $0x2e4] sm:$0xf0]  ;;  %v11016_v39 = vld [vmem:[#allocation2 + $0x284] sm:$0xf] }
 0x8e1   :  { %v4669_v51 = vsub.f32 1.0, %v4657_v60  ;;  %v11475_v11 = vpop.eup %11474  ;;  %v9634_v48 = vor.u32 %v11024_v21, %v9631_v57  ;;  %v9599_v20 = vld [vmem:[#allocation2 + $0x2a0] sm:$0xf0]  ;;  %v9638_v15 = vor.u32 %v11029_v7, %v9637_v27  ;;  %v11025_v58 = vld [vmem:[#allocation2 + $0x2cc] sm:$0xf] }
 0x8e2   :  { %v4726_v6 = vmul.f32 %v4714_v13, %v4390_v25  ;;  %v4667_v23 = vsub.f32 1.0, %v4655_v59  ;;  %v4584_v33 = vadd.f32 0.2548296, %v4572_v8  ;;  %4888 = vmatpush.msrb.mxu2 %v9525_v55  ;;  %v9639_v47 = vld [vmem:[#allocation2 + $0x2e8] sm:$0xf0]  ;;  %v9602_v60 = vor.u32 %v11016_v39, %v9599_v20 }
 0x8e3   :  { %v4693_v14 = vsub.f32 0.0, %v4669_v51  ;;  %v9605_v62 = vld [vmem:[#allocation2 + $0x288] sm:$0xf]  ;;  %5127 = vmatpush.bf16.msra.mxu3 %v9634_v48  ;;  %v9642_v25 = vor.u32 %v11025_v58, %v9639_v47  ;;  %v9629_v59 = vld [vmem:[#allocation2 + $0x2c0] sm:$0xf]  ;;  %5140 = vmatpush.bf16.msra.mxu0 %v9638_v15 }
 0x8e4   :  { %v4691_v30 = vsub.f32 0.0, %v4667_v23  ;;  %v4596_v50 = vmul.f32 %v4584_v33, %v14747_v12  ;;  %4889 = vmatpush.msrb.mxu2 %v9524_v44  ;;  %v11021_v13 = vld [vmem:[#allocation2 + $0x2a4] sm:$0xf0]  ;;  %v11028_v8 = vld [vmem:[#allocation2 + $0x2dc] sm:$0xf0] }
 0x8e5   :  { %v4705_v56 = vsel %vm4681_vm12, %v4669_v51, %v4693_v14  ;;  %v9606_v51 = vor.u32 %v11021_v13, %v9605_v62  ;;  %v9567_v33 = vld [vmem:[#allocation2 + $0x260] sm:$0xf0]  ;;  %v11017_v14 = vld [vmem:[#allocation2 + $0x28c] sm:$0xf]  ;;  %5153 = vmatpush.bf16.msrb.mxu1 %v9642_v25  ;;  %v9645_v44 = vld [vmem:[#allocation2 + $0x2d0] sm:$0xf] }
 0x8e6   :  { %v4717_v43 = vadd.f32 1.0, %v4705_v56  ;;  %v4703_v3 = vsel %vm4679_vm13, %v4667_v23, %v4691_v30  ;;  %v4656_v53 = vmul.f32 %v11475_v11, %v4596_v50  ;;  %9522 = vmatmul.msk.f32.gmra.mxu1 %vm643_vm2, %v4726_v6  ;;  %v9630_v6 = vor.u32 %v11028_v8, %v9629_v59  ;;  %v11008_v23 = vld [vmem:[#allocation2 + $0x244] sm:$0xf]  ;;  %v9607_v30 = vld [vmem:[#allocation2 + $0x2a8] sm:$0xf0] }
 0x8e7   :  { %v4715_v46 = vadd.f32 1.0, %v4703_v3  ;;  %v9597_v50 = vld [vmem:[#allocation2 + $0x280] sm:$0xf]  ;;  %v9610_v56 = vor.u32 %v11017_v14, %v9607_v30  ;;  %v9573_v3 = vld [vmem:[#allocation2 + $0x248] sm:$0xf]  ;;  %5128 = vmatpush.bf16.msra.mxu3 %v9602_v60  ;;  %5141 = vmatpush.bf16.msra.mxu0 %v9606_v51 }
 0x8e8   :  { %v4668_v4 = vsub.f32 1.0, %v4656_v53  ;;  %v4729_v49 = vmul.f32 %v4717_v43, %v4393_v38  ;;  %v11020_v11 = vld [vmem:[#allocation2 + $0x29c] sm:$0xf0]  ;;  %5114 = vmatpush.bf16.msra.mxu2 %v9630_v6  ;;  %v11013_v53 = vld [vmem:[#allocation2 + $0x264] sm:$0xf0] }
 0x8e9   :  { %v4727_v52 = vmul.f32 %v4715_v46, %v4391_v54  ;;  %v9598_v43 = vor.u32 %v11020_v11, %v9597_v50  ;;  %v9565_v54 = vld [vmem:[#allocation2 + $0x240] sm:$0xf]  ;;  %v9570_v46 = vor.u32 %v11008_v23, %v9567_v33  ;;  %5154 = vmatpush.bf16.msrb.mxu1 %v9610_v56  ;;  %v11001_v10 = vld [vmem:[#allocation2 + $0x20c] sm:$0xf]  ;;  %v11018_v21 = vld [vmem:[#allocation2 + $0x294] sm:$0xf] }
 0x8ea   :  { %v4692_v29 = vsub.f32 0.0, %v4668_v4  ;;  %v11012_v38 = vld [vmem:[#allocation2 + $0x25c] sm:$0xf0]  ;;  %v9615_v57 = vld [vmem:[#allocation2 + $0x2b0] sm:$0xf0] }
 0x8eb   :  { %4767 = vmatmul.f32.gmra.mxu3 %v4727_v52  ;;  %v9575_v52 = vld [vmem:[#allocation2 + $0x268] sm:$0xf0]  ;;  %v9618_v48 = vor.u32 %v11018_v21, %v9615_v57  ;;  %v9621_v7 = vld [vmem:[#allocation2 + $0x298] sm:$0xf]  ;;  %v11019_v20 = vld [vmem:[#allocation2 + $0x29c] sm:$0xf] }
 0x8ec   :  { %v4704_v12 = vsel %vm4680_vm15, %v4668_v4, %v4692_v29  ;;  %v11009_v4 = vld [vmem:[#allocation2 + $0x24c] sm:$0xf]  ;;  %v11000_v29 = vld [vmem:[#allocation2 + $0x204] sm:$0xf]  ;;  %5115 = vmatpush.bf16.msra.mxu2 %v9598_v43  ;;  %5129 = vmatpush.bf16.msra.mxu3 %v9570_v46  ;;  %v11023_v39 = vld [vmem:[#allocation2 + $0x2b4] sm:$0xf0] }
 0x8ed   :  { %v4716_v5 = vadd.f32 1.0, %v4704_v12  ;;  %v9535_v12 = vld [vmem:[#allocation2 + $0x220] sm:$0xf0]  ;;  %v9622_v15 = vor.u32 %v11023_v39, %v9621_v7  ;;  %v9623_v58 = vld [vmem:[#allocation2 + $0x2b8] sm:$0xf0] }
 0x8ee   :  { %9523 = vmatmul.msk.f32.gmra.mxu1 %vm643_vm2, %v4729_v49  ;;  %v9574_v49 = vor.u32 %v11013_v53, %v9573_v3  ;;  %v9581_v47 = vld [vmem:[#allocation2 + $0x250] sm:$0xf]  ;;  %v9626_v60 = vor.u32 %v11019_v20, %v9623_v58  ;;  %v11010_v25 = vld [vmem:[#allocation2 + $0x254] sm:$0xf]  ;;  %v9589_v59 = vld [vmem:[#allocation2 + $0x258] sm:$0xf] }
 0x8ef   :  { %v4728_v28 = vmul.f32 %v4716_v5, %v4392_v36  ;;  %v9578_v36 = vor.u32 %v11009_v4, %v9575_v52  ;;  %v9566_v5 = vor.u32 %v11012_v38, %v9565_v54  ;;  %v11014_v62 = vld [vmem:[#allocation2 + $0x26c] sm:$0xf0]  ;;  %v9583_v13 = vld [vmem:[#allocation2 + $0x270] sm:$0xf0]  ;;  %v11015_v51 = vld [vmem:[#allocation2 + $0x274] sm:$0xf0] }
 0x8f0   :  { %5142 = vmatpush.bf16.msra.mxu0 %v9574_v49  ;;  %v9582_v8 = vor.u32 %v11014_v62, %v9581_v47  ;;  %v11011_v6 = vld [vmem:[#allocation2 + $0x25c] sm:$0xf]  ;;  %v9586_v33 = vor.u32 %v11010_v25, %v9583_v13  ;;  %v9590_v14 = vor.u32 %v11015_v51, %v9589_v59  ;;  %v9549_v30 = vld [vmem:[#allocation2 + $0x210] sm:$0xf]  ;;  %v11002_v11 = vld [vmem:[#allocation2 + $0x214] sm:$0xf] }
 0x8f1   :  { %4796 = vmatmul.f32.gmra.mxu0 %v4728_v28  ;;  %v9538_v28 = vor.u32 %v11000_v29, %v9535_v12  ;;  %5155 = vmatpush.bf16.msrb.mxu1 %v9578_v36  ;;  %v9591_v23 = vld [vmem:[#allocation2 + $0x278] sm:$0xf0]  ;;  %v11006_v50 = vld [vmem:[#allocation2 + $0x22c] sm:$0xf0]  ;;  %v9551_v43 = vld [vmem:[#allocation2 + $0x230] sm:$0xf0] }
 0x8f2   :  { %5116 = vmatpush.bf16.msra.mxu2 %v9566_v5  ;;  %v9594_v56 = vor.u32 %v11011_v6, %v9591_v23  ;;  %v9557_v3 = vld [vmem:[#allocation2 + $0x218] sm:$0xf]  ;;  %v11003_v54 = vld [vmem:[#allocation2 + $0x21c] sm:$0xf]  ;;  %v9550_v38 = vor.u32 %v11006_v50, %v9549_v30  ;;  %v9554_v4 = vor.u32 %v11002_v11, %v9551_v43  ;;  %v11266_v29 = vld [vmem:[%s16708_s6 + $0x2] ss:$0 sm:$0xff] }
 0x8f3   :  { %5130 = vmatpush.bf16.msra.mxu3 %v9538_v28  ;;  %v11007_v53 = vld [vmem:[#allocation2 + $0x234] sm:$0xf0]  ;;  %v9559_v46 = vld [vmem:[#allocation2 + $0x238] sm:$0xf0]  ;;  %v14869_v28 = vld [vmem:[%s16710_s8 + $0x10] sm:$0xff] }
 0x8f4   :  { %v9558_v52 = vor.u32 %v11007_v53, %v9557_v3  ;;  %v9562_v49 = vor.u32 %v11003_v54, %v9559_v46  ;;  %v4937_v20 = vperm.slane %v14869_v28, 6  ;;  %v4935_v54 = vperm.slane %v14869_v28, 4 }
 0x938   :  { %v4788_v34 = vpop.f32.mrf.mxu0 }
 0x939   :  { %v4759_v17 = vpop.f32.mrf.mxu3 }
 0x93a   :  { %v4789_v32 = vadd.f32 %v4788_v34, %v4759_v17  ;;  %v9533_v34 = vld [vmem:[#allocation2 + $0x200] sm:$0xf] }
 0x94d   :  { %v4817_v61 = vpop.f32.mrf.mxu1 }
 0x94e   :  { %v4818_v26 = vadd.f32 %v4817_v61, %v4789_v32  ;;  %v11004_v32 = vld [vmem:[#allocation2 + $0x21c] sm:$0xf0]  ;;  %v9541_v61 = vld [vmem:[#allocation2 + $0x208] sm:$0xf] }
 0x94f   :  { %v9542_v55 = vor.u32 %v11005_v37, %v9541_v61 }
 0x950   :  { %4829 = vxpose.xlu2.b32.start [1/4] (short) (narrow) %v4818_v26, 8  ;;  %v9534_v26 = vor.u32 %v11004_v32, %v9533_v34  ;;  %v4934_v34 = vperm.slane %v14869_v28, 3 }
 0x951   :  { %5143 = vmatpush.bf16.msra.mxu0 %v9542_v55 }
 0x952   :  { %5117 = vmatpush.bf16.msra.mxu2 %v9534_v26 }
 0x954   :  { %v4791_v35 = vpop.f32.mrf.mxu0 }
 0x956   :  { %v4762_v31 = vpop.f32.mrf.mxu3 }
 0x957   :  { %v4792_v22 = vadd.f32 %v4791_v35, %v4762_v31  ;;  %v9543_v35 = vld [vmem:[#allocation2 + $0x228] sm:$0xf0] }
 0x958   :  { %v9546_v31 = vor.u32 %v11001_v10, %v9543_v35  ;;  %v4931_v10 = vperm.slane %v14869_v28, 0  ;;  %v4932_v35 = vperm.slane %v14869_v28, 1 }
 0x95a   :  { %5156 = vmatpush.bf16.msrb.mxu1 %v9546_v31 }
 0x95b   :  { %v4820_v19 = vpop.f32.mrf.mxu1 }
 0x95c   :  { %v4821_v45 = vadd.f32 %v4820_v19, %v4792_v22  ;;  %v4794_v1 = vpop.f32.mrf.mxu0  ;;  %v11030_v22 = vld [vmem:[#allocation2 + $0x2ec] sm:$0xf0]  ;;  %v11026_v19 = vld [vmem:[#allocation2 + $0x2d4] sm:$0xf] }
 0x95e   :  { %4830 = vxpose.xlu2.b32.cont [2/4] (short) (narrow) %v4821_v45, 8  ;;  %v4765_v2 = vpop.f32.mrf.mxu3  ;;  %v9646_v45 = vor.u32 %v11030_v22, %v9645_v44 }
 0x95f   :  { %v4795_v40 = vadd.f32 %v4794_v1, %v4765_v2  ;;  %v9647_v2 = vld [vmem:[#allocation2 + $0x2f0] sm:$0xf0]  ;;  %v9653_v1 = vld [vmem:[#allocation2 + $0x2d8] sm:$0xf] }
 0x963   :  { %v4823_v42 = vpop.f32.mrf.mxu1 }
 0x964   :  { %v4824_v0 = vadd.f32 %v4823_v42, %v4795_v40  ;;  %v11031_v40 = vld [vmem:[#allocation2 + $0x2f4] sm:$0xf0]  ;;  %v9650_v42 = vor.u32 %v11026_v19, %v9647_v2 }
 0x966   :  { %4831 = vxpose.xlu2.b32.cont [3/4] (short) (narrow) %v4824_v0, 8  ;;  %v9654_v0 = vor.u32 %v11031_v40, %v9653_v1  ;;  %5179 = vmatpush.bf16.msrb.mxu3 %v9650_v42 }
 0x968   :  { %5192 = vmatpush.bf16.msrb.mxu0 %v9654_v0 }
 0x96a   :  { %5180 = vmatpush.bf16.msrb.mxu3 %v9618_v48 }
 0x96b   :  { %v4826_v24 = vpop.f32.mrf.mxu1 }
 0x96c   :  { %5193 = vmatpush.bf16.msrb.mxu0 %v9622_v15  ;;  %v4938_v15 = vperm.slane %v14869_v28, 7 }
 0x96e   :  { %v4768_v63 = vpop.f32.mrf.mxu3  ;;  %v4797_v16 = vpop.f32.mrf.mxu0  ;;  %5181 = vmatpush.bf16.msrb.mxu3 %v9586_v33 }
 0x96f   :  { %v4798_v18 = vadd.f32 %v4797_v16, %v4768_v63  ;;  %v9655_v63 = vld [vmem:[#allocation2 + $0x2f8] sm:$0xf0]  ;;  %v9613_v16 = vld [vmem:[#allocation2 + $0x290] sm:$0xf] }
 0x970   :  { %5194 = vmatpush.bf16.msrb.mxu0 %v9590_v14 }
 0x971   :  { %v4827_v41 = vadd.f32 %v4826_v24, %v4798_v18  ;;  %v11027_v24 = vld [vmem:[#allocation2 + $0x2dc] sm:$0xf] }
 0x972   :  { %v9658_v18 = vor.u32 %v11027_v24, %v9655_v63  ;;  %5182 = vmatpush.bf16.msrb.mxu3 %v9554_v4 }
 0x973   :  { %4832 = vxpose.xlu2.b32.end [4/4] (short) (narrow) %v4827_v41, 8  ;;  %v11022_v41 = vld [vmem:[#allocation2 + $0x2ac] sm:$0xf0] }
 0x974   :  { %v9614_v27 = vor.u32 %v11022_v41, %v9613_v16  ;;  %5205 = vmatpush.bf16.msra.mxu1 %v9658_v18  ;;  %5195 = vmatpush.bf16.msrb.mxu0 %v9558_v52 }
 0x978   :  { %5206 = vmatpush.bf16.msra.mxu1 %v9626_v60 }
 0x97c   :  { %5207 = vmatpush.bf16.msra.mxu1 %v9594_v56 }
 0x980   :  { %5208 = vmatpush.bf16.msra.mxu1 %v9562_v49  ;;  %v4936_v49 = vperm.slane %v14869_v28, 5 }
 0x9f4   :  { %v4845_v17 = vpop.trf.xlu2 }
 0x9f5   :  { %9529 = vmatmul.msk.f32.vlgmr.msrb.gmra.mxu2 %vm195_vm0, %v4845_v17  ;;  %v4933_v17 = vperm.slane %v14869_v28, 2 }
 0x9f6   :  { %5166 = vmatpush.bf16.msrb.mxu2 %v9646_v45 }
 0x9fa   :  { %5167 = vmatpush.bf16.msrb.mxu2 %v9614_v27 }
 0x9fe   :  { %5168 = vmatpush.bf16.msrb.mxu2 %v9582_v8 }
 0xa02   :  { %5169 = vmatpush.bf16.msrb.mxu2 %v9550_v38 }
 0xa78   :  { %v4891_v12 = vpop.f32.mrf.mxu2 }
 0xa79   :  { %v4892_v36 = vadd.f32 %v11266_v29, %v4891_v12 }
 0xa7b   :  { %v4894_v5 = vpack.c.bf16 %v4892_v36, %v4892_v36 }
 0xa7d   :  { %9659 = vmatmul.msk.bf16.vlgmr.msra.gmra.mxu2 %vm1017_vm14, %v4894_v5  ;;  %9660 = vmatmul.msk.bf16.vlgmr.msra.gmra.mxu3 %vm1017_vm14, %v4894_v5 }
 0xa7e   :  { %9661 = vmatmul.msk.bf16.vlgmr.msra.gmra.mxu0 %vm1017_vm14, %v4894_v5  ;;  %9662 = vmatmul.msk.bf16.vlgmr.msrb.gmra.mxu1 %vm1017_vm14, %v4894_v5 }
 0xa8d   :  { %9663 = vmatmul.msk.bf16.vlgmr.msrb.gmra.mxu2 %vm1017_vm14, %v4894_v5  ;;  %9664 = vmatmul.msk.bf16.vlgmr.msrb.gmra.mxu3 %vm1017_vm14, %v4894_v5 }
 0xa8e   :  { %9665 = vmatmul.msk.bf16.vlgmr.msrb.gmra.mxu0 %vm1017_vm14, %v4894_v5  ;;  %9666 = vmatmul.msk.bf16.vlgmr.msra.gmra.mxu1 %vm1017_vm14, %v4894_v5 }
 0xafb   :  { %v5145_v32 = vpop.f32.mrf.mxu0  ;;  %v5158_v61 = vpop.f32.mrf.mxu1 }
 0xafc   :  { %v14873_v26 = vadd.f32 %v5145_v32, %v4933_v17  ;;  %v14875_v37 = vadd.f32 %v5158_v61, %v4934_v34 }
 0xafe   :  { %v14880_v55 = vmul.f32 0.70710677, %v14873_v26  ;;  %v14883_v31 = vmul.f32 0.70710677, %v14875_v37  ;;  %v14940_v32 = vmul.f32 0.5, %v14873_v26 }
 0xb00   :  { %v14886_v44 = vand.u32 2147483647, %v14880_v55  ;;  %v14889_v22 = vand.u32 2147483647, %v14883_v31  ;;  %v5119_v19 = vpop.f32.mrf.mxu2  ;;  %v5132_v45 = vpop.f32.mrf.mxu3  ;;  %vm5408_vm1 = vcmp.ge.f32.partialorder %v14880_v55, 0.0  ;;  %vm5409_vm3 = vcmp.ge.f32.partialorder %v14883_v31, 0.0 }
 0xb01   :  { %v14891_v2 = vadd.f32 %v5119_v19, %v4931_v10  ;;  %v14893_v1 = vadd.f32 %v5132_v45, %v4932_v35 }
 0xb02   :  { %v5240_v40 = vmul.f32 0.3275911, %v14886_v44  ;;  %v5241_v42 = vmul.f32 0.3275911, %v14889_v22  ;;  %v5360_v12 = vsub.f32 0.0, %v14886_v44 }
 0xb03   :  { %v14898_v0 = vmul.f32 0.70710677, %v14891_v2  ;;  %v14901_v24 = vmul.f32 0.70710677, %v14893_v1  ;;  %v5147_v63 = vpop.f32.mrf.mxu0  ;;  %v5160_v16 = vpop.f32.mrf.mxu1 }
 0xb04   :  { %v5248_v18 = vadd.f32 1.0, %v5240_v40  ;;  %v5249_v41 = vadd.f32 1.0, %v5241_v42  ;;  %v5361_v63 = vsub.f32 0.0, %v14889_v22  ;;  %v5368_v26 = vmul.f32 %v5360_v12, %v14886_v44 }
 0xb05   :  { %v14904_v21 = vand.u32 2147483647, %v14898_v0  ;;  %v14907_v57 = vand.u32 2147483647, %v14901_v24  ;;  %vm5406_vm4 = vcmp.ge.f32.partialorder %v14898_v0, 0.0  ;;  %vm5407_vm5 = vcmp.ge.f32.partialorder %v14901_v24, 0.0 }
 0xb06   :  { %11476 = vrcp.f32 %v5248_v18  ;;  %v11076_v24 = vld [vmem:[%s16711_s9 + $0x564] sm:$0xf] }
 0xb07   :  { %11478 = vrcp.f32 %v5249_v41  ;;  %v5238_v27 = vmul.f32 0.3275911, %v14904_v21  ;;  %v5239_v48 = vmul.f32 0.3275911, %v14907_v57 }
 0xb08   :  { %v5121_v7 = vpop.f32.mrf.mxu2  ;;  %v5134_v39 = vpop.f32.mrf.mxu3 }
 0xb09   :  { %v5246_v58 = vadd.f32 1.0, %v5238_v27  ;;  %v5247_v47 = vadd.f32 1.0, %v5239_v48  ;;  %v14953_v27 = vmul.f32 0.5, %v14875_v37  ;;  %v14957_v7 = vmul.f32 0.5, %v14891_v2 }
 0xb0a   :  { %v5378_v2 = vmul.f32 1.442695, %v5368_v26 }
 0xb0b   :  { %11480 = vrcp.f32 %v5246_v58  ;;  %v5197_v62 = vpop.f32.mrf.mxu0  ;;  %v5210_v60 = vpop.f32.mrf.mxu1 }
 0xb0c   :  { %v11477_v25 = vpop.eup %11476  ;;  %11482 = vrcp.f32 %v5247_v47  ;;  %v14913_v13 = vadd.f32 %v5197_v62, %v4937_v20  ;;  %v14915_v59 = vadd.f32 %v5210_v60, %v4938_v15  ;;  %v5369_v60 = vmul.f32 %v5361_v63, %v14889_v22 }
 0xb0d   :  { %v11479_v8 = vpop.eup %11478  ;;  %v5264_v51 = vmul.f32 %v11477_v25, %v5248_v18 }
 0xb0e   :  { %v5265_v6 = vmul.f32 %v11479_v8, %v5249_v41  ;;  %v14918_v23 = vmul.f32 0.70710677, %v14913_v13  ;;  %v14921_v14 = vmul.f32 0.70710677, %v14915_v59 }
 0xb0f   :  { %v5272_v33 = vsub.f32 2.0, %v5264_v51 }
 0xb10   :  { %v5273_v30 = vsub.f32 2.0, %v5265_v6  ;;  %v14924_v50 = vand.u32 2147483647, %v14918_v23  ;;  %v5171_v11 = vpop.f32.mrf.mxu2  ;;  %v5184_v56 = vpop.f32.mrf.mxu3  ;;  %v14929_v53 = vand.u32 2147483647, %v14921_v14  ;;  %vm5412_vm6 = vcmp.ge.f32.partialorder %v14918_v23, 0.0 }
 0xb11   :  { %v11481_v43 = vpop.eup %11480  ;;  %v14926_v3 = vmul.f32 %v11477_v25, %v5272_v33  ;;  %v14943_v28 = vadd.f32 %v5171_v11, %v4935_v54  ;;  %v14965_v25 = vadd.f32 %v5184_v56, %v4936_v49  ;;  %v5359_v54 = vsub.f32 0.0, %v14907_v57 }
 0xb12   :  { %v11483_v46 = vpop.eup %11482  ;;  %v14932_v38 = vmul.f32 %v11479_v8, %v5273_v30  ;;  %v5262_v4 = vmul.f32 %v11481_v43, %v5246_v58  ;;  %v5244_v52 = vmul.f32 0.3275911, %v14924_v50  ;;  %v5245_v5 = vmul.f32 0.3275911, %v14929_v53 }
 0xb13   :  { %v5288_v29 = vmul.f32 1.0614054, %v14926_v3  ;;  %v5263_v36 = vmul.f32 %v11483_v46, %v5247_v47  ;;  %v5199_v17 = vpop.f32.mrf.mxu0  ;;  %v5212_v34 = vpop.f32.mrf.mxu1  ;;  %v14962_v44 = vmul.f32 0.70710677, %v14943_v28  ;;  %v5367_v63 = vmul.f32 %v5359_v54, %v14907_v57 }
 0xb14   :  { %v5289_v61 = vmul.f32 1.0614054, %v14932_v38  ;;  %v5270_v10 = vsub.f32 2.0, %v5262_v4  ;;  %v5252_v35 = vadd.f32 1.0, %v5244_v52  ;;  %v5253_v40 = vadd.f32 1.0, %v5245_v5 }
 0xb15   :  { %v5296_v19 = vadd.f32 -1.4531521, %v5288_v29  ;;  %v5271_v45 = vsub.f32 2.0, %v5263_v36  ;;  %v14969_v6 = vand.u32 2147483647, %v14962_v44  ;;  %vm5410_vm7 = vcmp.ge.f32.partialorder %v14962_v44, 0.0 }
 0xb16   :  { %v5297_v42 = vadd.f32 -1.4531521, %v5289_v61  ;;  %v14946_v16 = vmul.f32 %v11481_v43, %v5270_v10  ;;  %11484 = vrcp.f32 %v5252_v35  ;;  %v5358_v43 = vsub.f32 0.0, %v14904_v21 }
 0xb17   :  { %v5304_v18 = vmul.f32 %v5296_v19, %v14926_v3  ;;  %v14950_v41 = vmul.f32 %v11483_v46, %v5271_v45  ;;  %11486 = vrcp.f32 %v5253_v40  ;;  %v5242_v52 = vmul.f32 0.3275911, %v14969_v6 }
 0xb18   :  { %v5305_v48 = vmul.f32 %v5297_v42, %v14932_v38  ;;  %v5286_v39 = vmul.f32 1.0614054, %v14946_v16  ;;  %v5173_v20 = vpop.f32.mrf.mxu2  ;;  %v5186_v15 = vpop.f32.mrf.mxu3  ;;  %v14978_v36 = vmul.f32 0.70710677, %v14965_v25  ;;  %v5380_v10 = vmul.f32 1.442695, %v5369_v60 }
 0xb19   :  { %v5312_v58 = vadd.f32 1.4214138, %v5304_v18  ;;  %v5287_v47 = vmul.f32 1.0614054, %v14950_v41  ;;  %v5250_v61 = vadd.f32 1.0, %v5242_v52  ;;  %v5366_v45 = vmul.f32 %v5358_v43, %v14904_v21 }
 0xb1a   :  { %v5313_v62 = vadd.f32 1.4214138, %v5305_v48  ;;  %v5294_v37 = vadd.f32 -1.4531521, %v5286_v39  ;;  %v14992_v21 = vand.u32 2147483647, %v14978_v36 }
 0xb1b   :  { %v5320_v8 = vmul.f32 %v5312_v58, %v14926_v3  ;;  %v5295_v51 = vadd.f32 -1.4531521, %v5287_v47  ;;  %11488 = vrcp.f32 %v5250_v61  ;;  %v5374_v57 = vmul.f32 1.442695, %v5366_v45 }
 0xb1c   :  { %v11485_v33 = vpop.eup %11484  ;;  %v5321_v30 = vmul.f32 %v5313_v62, %v14932_v38  ;;  %v5302_v11 = vmul.f32 %v5294_v37, %v14946_v16  ;;  %11490 = vpow2.f32 %v5378_v2  ;;  %v5364_v60 = vsub.f32 0.0, %v14924_v50 }
 0xb1d   :  { %v11487_v22 = vpop.eup %11486  ;;  %v5328_v46 = vadd.f32 -0.28449672, %v5320_v8  ;;  %v5303_v56 = vmul.f32 %v5295_v51, %v14950_v41  ;;  %v5268_v4 = vmul.f32 %v11485_v33, %v5252_v35  ;;  %11492 = vpow2.f32 %v5380_v10 }
 0xb1e   :  { %v5329_v49 = vadd.f32 -0.28449672, %v5321_v30  ;;  %v5310_v29 = vadd.f32 1.4214138, %v5302_v11  ;;  %v5269_v12 = vmul.f32 %v11487_v22, %v5253_v40  ;;  %v5365_v37 = vsub.f32 0.0, %v14929_v53 }
 0xb1f   :  { %v5336_v5 = vmul.f32 %v5328_v46, %v14926_v3  ;;  %v5311_v17 = vadd.f32 1.4214138, %v5303_v56  ;;  %v5276_v34 = vsub.f32 2.0, %v5268_v4  ;;  %v5243_v8 = vmul.f32 0.3275911, %v14992_v21 }
 0xb20   :  { %v5318_v19 = vmul.f32 %v5310_v29, %v14946_v16  ;;  %v5277_v42 = vsub.f32 2.0, %v5269_v12  ;;  %v5337_v26 = vmul.f32 %v5329_v49, %v14932_v38  ;;  %11494 = vpow2.f32 %v5374_v57 }
 0xb21   :  { %v5319_v35 = vmul.f32 %v5311_v17, %v14950_v41  ;;  %v14985_v18 = vmul.f32 %v11485_v33, %v5276_v34  ;;  %v5344_v40 = vadd.f32 0.2548296, %v5336_v5  ;;  %v5376_v33 = vmul.f32 1.442695, %v5367_v63  ;;  %v11489_v11 = vpop.eup %11488 }
 0xb22   :  { %v5326_v48 = vadd.f32 -0.28449672, %v5318_v19  ;;  %v14988_v39 = vmul.f32 %v11487_v22, %v5277_v42  ;;  %v5345_v2 = vadd.f32 0.2548296, %v5337_v26  ;;  %v5251_v46 = vadd.f32 1.0, %v5243_v8  ;;  %v11491_v49 = vpop.eup %11490 }
 0xb23   :  { %v5327_v20 = vadd.f32 -0.28449672, %v5319_v35  ;;  %v5292_v15 = vmul.f32 1.0614054, %v14985_v18  ;;  %v5352_v43 = vmul.f32 %v5344_v40, %v14926_v3  ;;  %v5266_v4 = vmul.f32 %v11489_v11, %v5250_v61  ;;  %v11493_v17 = vpop.eup %11492 }
 0xb24   :  { %v5334_v58 = vmul.f32 %v5326_v48, %v14946_v16  ;;  %v5293_v47 = vmul.f32 1.0614054, %v14988_v39  ;;  %v5362_v52 = vsub.f32 0.0, %v14969_v6  ;;  %v5372_v12 = vmul.f32 %v5364_v60, %v14924_v50 }
 0xb25   :  { %v5300_v62 = vadd.f32 -1.4531521, %v5292_v15  ;;  %v5335_v51 = vmul.f32 %v5327_v20, %v14950_v41  ;;  %v5373_v5 = vmul.f32 %v5365_v37, %v14929_v53  ;;  %11496 = vrcp.f32 %v5251_v46  ;;  %v11094_v37 = vld [vmem:[%s16711_s9 + $0x5ec] sm:$0xf0] }
 0xb26   :  { %v5301_v30 = vadd.f32 -1.4531521, %v5293_v47  ;;  %v5342_v54 = vadd.f32 0.2548296, %v5334_v58  ;;  %v5353_v3 = vmul.f32 %v5345_v2, %v14932_v38  ;;  %v5274_v19 = vsub.f32 2.0, %v5266_v4  ;;  %v11495_v20 = vpop.eup %11494 }
 0xb27   :  { %v5308_v22 = vmul.f32 %v5300_v62, %v14985_v18  ;;  %v5343_v34 = vadd.f32 0.2548296, %v5335_v51  ;;  %v15007_v45 = vmul.f32 %v11491_v49, %v5352_v43  ;;  %11498 = vpow2.f32 %v5376_v33 }
 0xb28   :  { %v5309_v56 = vmul.f32 %v5301_v30, %v14988_v39  ;;  %v5350_v42 = vmul.f32 %v5342_v54, %v14946_v16  ;;  %v15012_v35 = vmul.f32 0.5, %v14893_v1  ;;  %v15015_v50 = vmul.f32 0.5, %v14913_v13  ;;  %v9846_v1 = vld [vmem:[%s16711_s9 + $0x4e0] sm:$0xf]  ;;  %v11062_v13 = vld [vmem:[%s16711_s9 + $0x4ec] sm:$0xf0] }
 0xb29   :  { %v5316_v29 = vadd.f32 1.4214138, %v5308_v22  ;;  %v5370_v38 = vmul.f32 %v5362_v52, %v14969_v6  ;;  %v5386_v40 = vmul.f32 1.442695, %v5372_v12  ;;  %v5388_v26 = vmul.f32 1.442695, %v5373_v5 }
 0xb2a   :  { %v5317_v10 = vadd.f32 1.4214138, %v5309_v56  ;;  %v15019_v48 = vmul.f32 %v11489_v11, %v5274_v19  ;;  %v15021_v16 = vmul.f32 %v11493_v17, %v5353_v3  ;;  %v5351_v15 = vmul.f32 %v5343_v34, %v14950_v41  ;;  %v9974_v41 = vld [vmem:[%s16711_s9 + $0x5e0] sm:$0xf]  ;;  %v11060_v30 = vld [vmem:[%s16711_s9 + $0x4e4] sm:$0xf] }
 0xb2b   :  { %v5324_v61 = vmul.f32 %v5316_v29, %v14985_v18  ;;  %v11497_v6 = vpop.eup %11496  ;;  %v5400_v57 = vsub.f32 1.0, %v15007_v45  ;;  %v15031_v47 = vmul.f32 %v11495_v20, %v5350_v42  ;;  %v15042_v8 = vmul.f32 0.5, %v14943_v28  ;;  %v9848_v11 = vld [vmem:[%s16711_s9 + $0x4f0] sm:$0xf0]  ;;  %v11092_v28 = vld [vmem:[%s16711_s9 + $0x5e4] sm:$0xf] }
 0xb2c   :  { %v5325_v53 = vmul.f32 %v5317_v10, %v14988_v39  ;;  %v5290_v60 = vmul.f32 1.0614054, %v15019_v48  ;;  %v15044_v2 = vmul.f32 1.442695, %v5370_v38  ;;  %v5267_v51 = vmul.f32 %v11497_v6, %v5251_v46  ;;  %v9976_v46 = vld [vmem:[%s16711_s9 + $0x5f0] sm:$0xf0] }
 0xb2d   :  { %v5332_v63 = vadd.f32 -0.28449672, %v5324_v61  ;;  %v5363_v33 = vsub.f32 0.0, %v14992_v21  ;;  %v11499_v43 = vpop.eup %11498  ;;  %v5401_v4 = vsub.f32 1.0, %v15021_v16  ;;  %11500 = vpow2.f32 %v5386_v40  ;;  %v9830_v29 = vld [vmem:[%s16711_s9 + $0x4c0] sm:$0xf] }
 0xb2e   :  { %v5333_v58 = vadd.f32 -0.28449672, %v5325_v53  ;;  %v5298_v56 = vadd.f32 -1.4531521, %v5290_v60  ;;  %v15062_v52 = vmul.f32 %v11499_v43, %v5351_v15  ;;  %v5275_v49 = vsub.f32 2.0, %v5267_v51 }
 0xb2f   :  { %v5340_v62 = vmul.f32 %v5332_v63, %v14985_v18  ;;  %v11058_v12 = vld [vmem:[%s16711_s9 + $0x4cc] sm:$0xf0]  ;;  %v9958_v5 = vld [vmem:[%s16711_s9 + $0x5c0] sm:$0xf]  ;;  %v5416_v3 = vsub.f32 0.0, %v5400_v57  ;;  %v5398_v34 = vsub.f32 1.0, %v15031_v47  ;;  %v9847_v19 = vor.u32 %v11062_v13, %v9846_v1 }
 0xb30   :  { %v5341_v22 = vmul.f32 %v5333_v58, %v14988_v39  ;;  %v11090_v17 = vld [vmem:[%s16711_s9 + $0x5cc] sm:$0xf0]  ;;  %v5306_v10 = vmul.f32 %v5298_v56, %v15019_v48  ;;  %v11056_v42 = vld [vmem:[%s16711_s9 + $0x4c4] sm:$0xf]  ;;  %v9832_v61 = vld [vmem:[%s16711_s9 + $0x4d0] sm:$0xf0]  ;;  %11502 = vpow2.f32 %v5388_v26  ;;  %v15088_v53 = vmul.f32 %v11497_v6, %v5275_v49 }
 0xb31   :  { %v5348_v54 = vadd.f32 0.2548296, %v5340_v62  ;;  %v5371_v38 = vmul.f32 %v5363_v33, %v14992_v21  ;;  %v9975_v63 = vor.u32 %v11094_v37, %v9974_v41  ;;  %v11088_v40 = vld [vmem:[%s16711_s9 + $0x5c4] sm:$0xf]  ;;  %v9960_v20 = vld [vmem:[%s16711_s9 + $0x5d0] sm:$0xf0]  ;;  %5852 = vmatpush.bf16.msra.mxu2 %v9847_v19  ;;  %v9851_v13 = vor.u32 %v11060_v30, %v9848_v11 }
 0xb32   :  { %v9814_v15 = vld [vmem:[%s16711_s9 + $0x4a0] sm:$0xf]  ;;  %v5349_v26 = vadd.f32 0.2548296, %v5341_v22  ;;  %v5314_v1 = vadd.f32 1.4214138, %v5306_v10  ;;  %v9979_v41 = vor.u32 %v11092_v28, %v9976_v46  ;;  %v9831_v33 = vor.u32 %v11058_v12, %v9830_v29 }
 0xb33   :  { %v5356_v58 = vmul.f32 %v5348_v54, %v14985_v18  ;;  %v11054_v21 = vld [vmem:[%s16711_s9 + $0x4ac] sm:$0xf0]  ;;  %v5417_v6 = vsub.f32 0.0, %v5401_v4  ;;  %v5399_v62 = vsub.f32 1.0, %v15062_v52  ;;  %v5291_v60 = vmul.f32 1.0614054, %v15088_v53  ;;  %5865 = vmatpush.bf16.msra.mxu3 %v9975_v63  ;;  %5878 = vmatpush.bf16.msra.mxu0 %v9851_v13  ;;  %v11501_v54 = vpop.eup %11500 }
 0xb34   :  { %v9942_v18 = vld [vmem:[%s16711_s9 + $0x5a0] sm:$0xf]  ;;  %v5414_v37 = vsub.f32 0.0, %v5398_v34  ;;  %v5322_v51 = vmul.f32 %v5314_v1, %v15019_v48  ;;  %v9959_v30 = vor.u32 %v11090_v17, %v9958_v5  ;;  %v11086_v11 = vld [vmem:[%s16711_s9 + $0x5ac] sm:$0xf0]  ;;  %5891 = vmatpush.bf16.msrb.mxu1 %v9979_v41  ;;  %v9835_v28 = vor.u32 %v11056_v42, %v9832_v61 }
 0xb35   :  { %v11052_v43 = vld [vmem:[%s16711_s9 + $0x4a4] sm:$0xf]  ;;  %v5299_v22 = vadd.f32 -1.4531521, %v5291_v60  ;;  %v5384_v56 = vmul.f32 1.442695, %v5371_v38  ;;  %v9963_v46 = vor.u32 %v11088_v40, %v9960_v20  ;;  %v15124_v29 = vmul.f32 %v11501_v54, %v5356_v58  ;;  %5853 = vmatpush.bf16.msra.mxu2 %v9831_v33 }
 0xb36   :  { %v9816_v49 = vld [vmem:[%s16711_s9 + $0x4b0] sm:$0xf0]  ;;  %v5357_v12 = vmul.f32 %v5349_v26, %v14988_v39  ;;  %v5330_v5 = vadd.f32 -0.28449672, %v5322_v51  ;;  %v9815_v17 = vor.u32 %v11054_v21, %v9814_v15  ;;  %v11084_v10 = vld [vmem:[%s16711_s9 + $0x5a4] sm:$0xf]  ;;  %v11503_v42 = vpop.eup %11502  ;;  %11504 = vpow2.f32 %v15044_v2 }
 0xb37   :  { %v9944_v19 = vld [vmem:[%s16711_s9 + $0x5b0] sm:$0xf0]  ;;  %v5415_v61 = vsub.f32 0.0, %v5399_v62  ;;  %v5307_v38 = vmul.f32 %v5299_v22, %v15088_v53  ;;  %5866 = vmatpush.bf16.msra.mxu3 %v9959_v30  ;;  %v9943_v39 = vor.u32 %v11086_v11, %v9942_v18  ;;  %v9798_v63 = vld [vmem:[%s16711_s9 + $0x480] sm:$0xf]  ;;  %v5424_v20 = vsel %vm5408_vm1, %v5400_v57, %v5416_v3  ;;  %5879 = vmatpush.bf16.msra.mxu0 %v9835_v28 }
 0xb38   :  { %v11050_v40 = vld [vmem:[%s16711_s9 + $0x48c] sm:$0xf0]  ;;  %v5338_v15 = vmul.f32 %v5330_v5, %v15019_v48  ;;  %v9819_v2 = vor.u32 %v11052_v43, %v9816_v49  ;;  %v9926_v58 = vld [vmem:[%s16711_s9 + $0x580] sm:$0xf]  ;;  %v11048_v1 = vld [vmem:[%s16711_s9 + $0x484] sm:$0xf]  ;;  %v5425_v55 = vsel %vm5409_vm3, %v5401_v4, %v5417_v6  ;;  %v5422_v45 = vsel %vm5406_vm4, %v5398_v34, %v5414_v37  ;;  %5892 = vmatpush.bf16.msrb.mxu1 %v9963_v46 }
 0xb39   :  { %v11082_v26 = vld [vmem:[%s16711_s9 + $0x58c] sm:$0xf0]  ;;  %v5315_v57 = vadd.f32 1.4214138, %v5307_v38  ;;  %v9947_v3 = vor.u32 %v11084_v10, %v9944_v19  ;;  %v9800_v13 = vld [vmem:[%s16711_s9 + $0x490] sm:$0xf0]  ;;  %v15173_v4 = vmul.f32 %v11503_v42, %v5357_v12  ;;  %5854 = vmatpush.bf16.msra.mxu2 %v9815_v17  ;;  %v9799_v0 = vor.u32 %v11050_v40, %v9798_v63 }
 0xb3a   :  { %v11080_v16 = vld [vmem:[%s16711_s9 + $0x584] sm:$0xf]  ;;  %v5404_v31 = vsub.f32 1.0, %v15124_v29  ;;  %v5346_v47 = vadd.f32 0.2548296, %v5338_v15  ;;  %v15178_v21 = vadd.f32 1.0, %v5424_v20  ;;  %v9927_v41 = vor.u32 %v11082_v26, %v9926_v58 }
 0xb3b   :  { %v9928_v34 = vld [vmem:[%s16711_s9 + $0x590] sm:$0xf0]  ;;  %v15182_v6 = vmul.f32 0.5, %v14965_v25  ;;  %v5323_v60 = vmul.f32 %v5315_v57, %v15088_v53  ;;  %5867 = vmatpush.bf16.msra.mxu3 %v9943_v39  ;;  %v9782_v18 = vld [vmem:[%s16711_s9 + $0x460] sm:$0xf]  ;;  %v15191_v51 = vadd.f32 1.0, %v5425_v55  ;;  %5880 = vmatpush.bf16.msra.mxu0 %v9819_v2  ;;  %v9803_v25 = vor.u32 %v11048_v1, %v9800_v13 }
 0xb3c   :  { %v11046_v37 = vld [vmem:[%s16711_s9 + $0x46c] sm:$0xf0]  ;;  %v5430_v33 = vadd.f32 1.0, %v5422_v45  ;;  %v5354_v30 = vmul.f32 %v5346_v47, %v15019_v48  ;;  %v9910_v11 = vld [vmem:[%s16711_s9 + $0x560] sm:$0xf]  ;;  %v11505_v54 = vpop.eup %11504  ;;  %v5423_v22 = vsel %vm5407_vm5, %v5399_v62, %v5415_v61  ;;  %11506 = vpow2.f32 %v5384_v56  ;;  %5893 = vmatpush.bf16.msrb.mxu1 %v9947_v3 }
 0xb3d   :  { %v11078_v43 = vld [vmem:[%s16711_s9 + $0x56c] sm:$0xf0]  ;;  %v5331_v28 = vadd.f32 -0.28449672, %v5323_v60  ;;  %v9931_v48 = vor.u32 %v11080_v16, %v9928_v34  ;;  %v11044_v46 = vld [vmem:[%s16711_s9 + $0x464] sm:$0xf]  ;;  %5855 = vmatpush.bf16.msra.mxu2 %v9799_v0  ;;  %v9783_v52 = vor.u32 %v11046_v37, %v9782_v18  ;;  %v5440_v60 = vmul.f32 %v15178_v21, %v14940_v32 }
 0xb3e   :  { %v9784_v49 = vld [vmem:[%s16711_s9 + $0x470] sm:$0xf0]  ;;  %v5420_v29 = vsub.f32 0.0, %v5404_v31  ;;  %v5405_v12 = vsub.f32 1.0, %v15173_v4  ;;  %v5394_v5 = vmul.f32 %v11505_v54, %v5354_v30  ;;  %vm5413_vm8 = vcmp.ge.f32.partialorder %v14921_v14, 0.0 }
 0xb3f   :  { %v9912_v62 = vld [vmem:[%s16711_s9 + $0x570] sm:$0xf0]  ;;  %v5339_v56 = vmul.f32 %v5331_v28, %v15088_v53  ;;  %5868 = vmatpush.bf16.msra.mxu3 %v9927_v41  ;;  %v9911_v17 = vor.u32 %v11078_v43, %v9910_v11  ;;  %v9766_v10 = vld [vmem:[%s16711_s9 + $0x440] sm:$0xf]  ;;  %v11042_v19 = vld [vmem:[%s16711_s9 + $0x44c] sm:$0xf0]  ;;  %5881 = vmatpush.bf16.msra.mxu0 %v9803_v25  ;;  %v9787_v39 = vor.u32 %v11044_v46, %v9784_v49 }
 0xb40   :  { %v9894_v42 = vld [vmem:[%s16711_s9 + $0x540] sm:$0xf]  ;;  %v15228_v61 = vadd.f32 1.0, %v5423_v22  ;;  %v5402_v38 = vsub.f32 1.0, %v5394_v5  ;;  %v11074_v63 = vld [vmem:[%s16711_s9 + $0x54c] sm:$0xf0]  ;;  %5894 = vmatpush.bf16.msrb.mxu1 %v9931_v48  ;;  %v9915_v15 = vor.u32 %v11076_v24, %v9912_v62  ;;  %v5428_v26 = vsel %vm5412_vm6, %v5404_v31, %v5420_v29 }
 0xb41   :  { %v11040_v40 = vld [vmem:[%s16711_s9 + $0x444] sm:$0xf]  ;;  %v5347_v20 = vadd.f32 0.2548296, %v5339_v56  ;;  %v9768_v2 = vld [vmem:[%s16711_s9 + $0x450] sm:$0xf0]  ;;  %5856 = vmatpush.bf16.msra.mxu2 %v9783_v52  ;;  %v9767_v45 = vor.u32 %v11042_v19, %v9766_v10  ;;  %v5438_v23 = vmul.f32 %v5430_v33, %v14957_v7  ;;  %v9895_v31 = vor.u32 %v11074_v63, %v9894_v42 }
 0xb42   :  { %v11072_v58 = vld [vmem:[%s16711_s9 + $0x544] sm:$0xf]  ;;  %v5421_v1 = vsub.f32 0.0, %v5405_v12  ;;  %v5418_v55 = vsub.f32 0.0, %v5402_v38  ;;  %vm5411_vm9 = vcmp.ge.f32.partialorder %v14978_v36, 0.0  ;;  %v11507_v13 = vpop.eup %11506  ;;  %v5436_v33 = vadd.f32 1.0, %v5428_v26 }
 0xb43   :  { %v9896_v57 = vld [vmem:[%s16711_s9 + $0x550] sm:$0xf0]  ;;  %v9750_v3 = vld [vmem:[%s16711_s9 + $0x420] sm:$0xf]  ;;  %v5355_v16 = vmul.f32 %v5347_v20, %v15088_v53  ;;  %5869 = vmatpush.bf16.msra.mxu3 %v9911_v17  ;;  %v11038_v47 = vld [vmem:[%s16711_s9 + $0x42c] sm:$0xf0]  ;;  %5882 = vmatpush.bf16.msra.mxu0 %v9787_v39  ;;  %v9771_v53 = vor.u32 %v11040_v40, %v9768_v2  ;;  %v5446_v28 = vadd.f32 %v5440_v60, %v5438_v23 }
 0xb44   :  { %v9878_v0 = vld [vmem:[%s16711_s9 + $0x520] sm:$0xf]  ;;  %v11070_v34 = vld [vmem:[%s16711_s9 + $0x52c] sm:$0xf0]  ;;  %v5426_v7 = vsel %vm5410_vm7, %v5402_v38, %v5418_v55  ;;  %v11036_v41 = vld [vmem:[%s16711_s9 + $0x424] sm:$0xf]  ;;  %5895 = vmatpush.bf16.msrb.mxu1 %v9915_v15  ;;  %v9899_v44 = vor.u32 %v11072_v58, %v9896_v57  ;;  %v9751_v11 = vor.u32 %v11038_v47, %v9750_v3  ;;  %v5429_v52 = vsel %vm5413_vm8, %v5405_v12, %v5421_v1 }
 0xb45   :  { %v9752_v18 = vld [vmem:[%s16711_s9 + $0x430] sm:$0xf0]  ;;  %v11068_v37 = vld [vmem:[%s16711_s9 + $0x524] sm:$0xf]  ;;  %v5434_v30 = vadd.f32 1.0, %v5426_v7  ;;  %v5395_v32 = vmul.f32 %v11507_v13, %v5355_v16  ;;  %5857 = vmatpush.bf16.msra.mxu2 %v9767_v45  ;;  %v9879_v49 = vor.u32 %v11070_v34, %v9878_v0  ;;  %v5444_v17 = vmul.f32 %v5436_v33, %v15015_v50 }
 0xb46   :  { %v9880_v21 = vld [vmem:[%s16711_s9 + $0x530] sm:$0xf0]  ;;  %v9734_v25 = vld [vmem:[%s16711_s9 + $0x400] sm:$0xf]  ;;  %v11034_v43 = vld [vmem:[%s16711_s9 + $0x40c] sm:$0xf0]  ;;  %v9755_v24 = vor.u32 %v11036_v41, %v9752_v18  ;;  %v5441_v42 = vmul.f32 %v15191_v51, %v14953_v27  ;;  %v5439_v38 = vmul.f32 %v15228_v61, %v15012_v35 }
 0xb47   :  { %v9862_v54 = vld [vmem:[%s16711_s9 + $0x500] sm:$0xf]  ;;  %v11066_v22 = vld [vmem:[%s16711_s9 + $0x50c] sm:$0xf0]  ;;  %v5442_v48 = vmul.f32 %v5434_v30, %v15042_v8  ;;  %v5403_v46 = vsub.f32 1.0, %v5395_v32  ;;  %5870 = vmatpush.bf16.msra.mxu3 %v9895_v31  ;;  %5883 = vmatpush.bf16.msra.mxu0 %v9771_v53  ;;  %v9883_v14 = vor.u32 %v11068_v37, %v9880_v21  ;;  %v9735_v50 = vor.u32 %v11034_v43, %v9734_v25 }
 0xb48   :  { %v11032_v29 = vld [vmem:[%s16711_s9 + $0x404] sm:$0xf]  ;;  %v9736_v5 = vld [vmem:[%s16711_s9 + $0x410] sm:$0xf0]  ;;  %v9854_v62 = vld [vmem:[%s16711_s9 + $0x4e8] sm:$0xf]  ;;  %5896 = vmatpush.bf16.msrb.mxu1 %v9899_v44  ;;  %v9863_v35 = vor.u32 %v11066_v22, %v9862_v54  ;;  %v5447_v16 = vadd.f32 %v5441_v42, %v5439_v38 }
 0xb49   :  { %v11064_v8 = vld [vmem:[%s16711_s9 + $0x504] sm:$0xf]  ;;  %v11063_v56 = vld [vmem:[%s16711_s9 + $0x4f4] sm:$0xf0]  ;;  %v5448_v4 = vadd.f32 %v5446_v28, %v5442_v48  ;;  %v5419_v10 = vsub.f32 0.0, %v5403_v46  ;;  %5858 = vmatpush.bf16.msra.mxu2 %v9751_v11  ;;  %v5437_v2 = vadd.f32 1.0, %v5429_v52  ;;  %v9739_v26 = vor.u32 %v11032_v29, %v9736_v5 }
 0xb4a   :  { %v9982_v12 = vld [vmem:[%s16711_s9 + $0x5e8] sm:$0xf]  ;;  %v11095_v19 = vld [vmem:[%s16711_s9 + $0x5f4] sm:$0xf0]  ;;  %v9864_v39 = vld [vmem:[%s16711_s9 + $0x510] sm:$0xf0]  ;;  %v9855_v51 = vor.u32 %v11063_v56, %v9854_v62 }
 0xb4b   :  { %v11061_v63 = vld [vmem:[%s16711_s9 + $0x4ec] sm:$0xf]  ;;  %v9856_v40 = vld [vmem:[%s16711_s9 + $0x4f8] sm:$0xf0]  ;;  %v5450_v20 = vadd.f32 %v5448_v4, %v5444_v17  ;;  %v5427_v27 = vsel %vm5411_vm9, %v5403_v46, %v5419_v10  ;;  %5871 = vmatpush.bf16.msra.mxu3 %v9879_v49  ;;  %5884 = vmatpush.bf16.msra.mxu0 %v9755_v24  ;;  %v9983_v1 = vor.u32 %v11095_v19, %v9982_v12  ;;  %v9838_v36 = vld [vmem:[%s16711_s9 + $0x4c8] sm:$0xf] }
 0xb4c   :  { %v11093_v61 = vld [vmem:[%s16711_s9 + $0x5ec] sm:$0xf]  ;;  %v9984_v15 = vld [vmem:[%s16711_s9 + $0x5f8] sm:$0xf0]  ;;  %v5435_v58 = vadd.f32 1.0, %v5427_v27  ;;  %5897 = vmatpush.bf16.msrb.mxu1 %v9883_v14  ;;  %v9867_v57 = vor.u32 %v11064_v8, %v9864_v39  ;;  %v9859_v3 = vor.u32 %v11061_v63, %v9856_v40  ;;  %v5221_v31 = vmul.f32 0.5, %v14915_v59 }
 0xb4d   :  { %v11059_v55 = vld [vmem:[%s16711_s9 + $0x4d4] sm:$0xf0]  ;;  %v5452_v45 = vmul.f32 0.25, %v5450_v20  ;;  %v9966_v13 = vld [vmem:[%s16711_s9 + $0x5c8] sm:$0xf]  ;;  %5859 = vmatpush.bf16.msra.mxu2 %v9735_v50  ;;  %v9987_v0 = vor.u32 %v11093_v61, %v9984_v15 }
 0xb4e   :  { %v11091_v23 = vld [vmem:[%s16711_s9 + $0x5d4] sm:$0xf0]  ;;  %v5443_v47 = vmul.f32 %v5435_v58, %v15182_v6  ;;  %v11057_v34 = vld [vmem:[%s16711_s9 + $0x4cc] sm:$0xf]  ;;  %v9840_v60 = vld [vmem:[%s16711_s9 + $0x4d8] sm:$0xf0]  ;;  %v9839_v53 = vor.u32 %v11059_v55, %v9838_v36  ;;  %v5445_v41 = vmul.f32 %v5437_v2, %v5221_v31 }
 0xb4f   :  { %v15360_v7 = vpack.c.bf16 %v5452_v45, %v5452_v45  ;;  %5872 = vmatpush.bf16.msra.mxu3 %v9863_v35  ;;  %v11089_v59 = vld [vmem:[%s16711_s9 + $0x5cc] sm:$0xf]  ;;  %v9968_v6 = vld [vmem:[%s16711_s9 + $0x5d8] sm:$0xf0]  ;;  %5885 = vmatpush.bf16.msra.mxu0 %v9739_v26  ;;  %v9967_v37 = vor.u32 %v11091_v23, %v9966_v13  ;;  %v9822_v33 = vld [vmem:[%s16711_s9 + $0x4a8] sm:$0xf]  ;;  %v9843_v32 = vor.u32 %v11057_v34, %v9840_v60 }
 0xb50   :  { %v5449_v18 = vadd.f32 %v5447_v16, %v5443_v47  ;;  %v11055_v30 = vld [vmem:[%s16711_s9 + $0x4b4] sm:$0xf0]  ;;  %5898 = vmatpush.bf16.msrb.mxu1 %v9867_v57  ;;  %v9950_v44 = vld [vmem:[%s16711_s9 + $0x5a8] sm:$0xf]  ;;  %v9971_v11 = vor.u32 %v11089_v59, %v9968_v6  ;;  %v11053_v43 = vld [vmem:[%s16711_s9 + $0x4ac] sm:$0xf] }
 0xb51   :  { %5904 = vmatpush.bf16.msrb.mxu2 %v9855_v51  ;;  %v11087_v21 = vld [vmem:[%s16711_s9 + $0x5b4] sm:$0xf0]  ;;  %v9824_v54 = vld [vmem:[%s16711_s9 + $0x4b8] sm:$0xf0]  ;;  %v9823_v22 = vor.u32 %v11055_v30, %v9822_v33  ;;  %v11085_v28 = vld [vmem:[%s16711_s9 + $0x5ac] sm:$0xf] }
 0xb52   :  { %v5451_v25 = vadd.f32 %v5449_v18, %v5445_v41  ;;  %5860 = vmatmul.bf16.vlgmr.msra.gmra.mxu2 %v15360_v7  ;;  %v9952_v48 = vld [vmem:[%s16711_s9 + $0x5b8] sm:$0xf0]  ;;  %5886 = vmatmul.bf16.vlgmr.msra.gmra.mxu0 %v15360_v7  ;;  %v9951_v49 = vor.u32 %v11087_v21, %v9950_v44  ;;  %v9806_v29 = vld [vmem:[%s16711_s9 + $0x488] sm:$0xf]  ;;  %v11051_v5 = vld [vmem:[%s16711_s9 + $0x494] sm:$0xf0]  ;;  %v9827_v52 = vor.u32 %v11053_v43, %v9824_v54 }
 0xb53   :  { %5917 = vmatpush.bf16.msrb.mxu3 %v9983_v1  ;;  %5930 = vmatpush.bf16.msrb.mxu0 %v9859_v3  ;;  %v9934_v24 = vld [vmem:[%s16711_s9 + $0x588] sm:$0xf]  ;;  %v11083_v8 = vld [vmem:[%s16711_s9 + $0x594] sm:$0xf0]  ;;  %v9955_v56 = vor.u32 %v11085_v28, %v9952_v48  ;;  %v11049_v17 = vld [vmem:[%s16711_s9 + $0x48c] sm:$0xf]  ;;  %v9807_v10 = vor.u32 %v11051_v5, %v9806_v29 }
 0xb54   :  { %5943 = vmatpush.bf16.msra.mxu1 %v9987_v0  ;;  %v5453_v46 = vmul.f32 0.25, %v5451_v25  ;;  %v9808_v4 = vld [vmem:[%s16711_s9 + $0x498] sm:$0xf0]  ;;  %v11081_v14 = vld [vmem:[%s16711_s9 + $0x58c] sm:$0xf]  ;;  %v9935_v19 = vor.u32 %v11083_v8, %v9934_v24  ;;  %v11102_v8 = vld [vmem:[#allocation4 + $0x230] sm:$0xff] }
 0xb55   :  { %5905 = vmatpush.bf16.msrb.mxu2 %v9839_v53  ;;  %v9936_v12 = vld [vmem:[%s16711_s9 + $0x598] sm:$0xf0]  ;;  %v9790_v42 = vld [vmem:[%s16711_s9 + $0x468] sm:$0xf]  ;;  %v11047_v38 = vld [vmem:[%s16711_s9 + $0x474] sm:$0xf0]  ;;  %v9811_v50 = vor.u32 %v11049_v17, %v9808_v4 }
 0xb56   :  { %v15406_v62 = vpack.c.bf16 %v5453_v46, %v5453_v46  ;;  %v9918_v39 = vld [vmem:[%s16711_s9 + $0x568] sm:$0xf]  ;;  %v11079_v63 = vld [vmem:[%s16711_s9 + $0x574] sm:$0xf0]  ;;  %v9939_v40 = vor.u32 %v11081_v14, %v9936_v12  ;;  %v11045_v20 = vld [vmem:[%s16711_s9 + $0x46c] sm:$0xf]  ;;  %v9791_v35 = vor.u32 %v11047_v38, %v9790_v42 }
 0xb57   :  { %5918 = vmatpush.bf16.msrb.mxu3 %v9967_v37  ;;  %5931 = vmatpush.bf16.msrb.mxu0 %v9843_v32  ;;  %v9792_v27 = vld [vmem:[%s16711_s9 + $0x478] sm:$0xf0]  ;;  %v11077_v51 = vld [vmem:[%s16711_s9 + $0x56c] sm:$0xf]  ;;  %v9919_v15 = vor.u32 %v11079_v63, %v9918_v39  ;;  %v9774_v2 = vld [vmem:[%s16711_s9 + $0x448] sm:$0xf] }
 0xb58   :  { %5944 = vmatpush.bf16.msra.mxu1 %v9971_v11  ;;  %5873 = vmatmul.bf16.vlgmr.msra.gmra.mxu3 %v15406_v62  ;;  %v9920_v61 = vld [vmem:[%s16711_s9 + $0x578] sm:$0xf0]  ;;  %v11043_v58 = vld [vmem:[%s16711_s9 + $0x454] sm:$0xf0]  ;;  %v9795_v26 = vor.u32 %v11045_v20, %v9792_v27  ;;  %v9902_v1 = vld [vmem:[%s16711_s9 + $0x548] sm:$0xf] }
 0xb59   :  { %5906 = vmatpush.bf16.msrb.mxu2 %v9823_v22  ;;  %5899 = vmatmul.bf16.vlgmr.msrb.gmra.mxu1 %v15406_v62  ;;  %v11075_v36 = vld [vmem:[%s16711_s9 + $0x554] sm:$0xf0]  ;;  %v9923_v55 = vor.u32 %v11077_v51, %v9920_v61  ;;  %v11041_v45 = vld [vmem:[%s16711_s9 + $0x44c] sm:$0xf]  ;;  %v9776_v57 = vld [vmem:[%s16711_s9 + $0x458] sm:$0xf0]  ;;  %v9775_v3 = vor.u32 %v11043_v58, %v9774_v2 }
 0xb5a   :  { %v11073_v13 = vld [vmem:[%s16711_s9 + $0x54c] sm:$0xf]  ;;  %v9904_v23 = vld [vmem:[%s16711_s9 + $0x558] sm:$0xf0]  ;;  %v9903_v16 = vor.u32 %v11075_v36, %v9902_v1  ;;  %v9758_v31 = vld [vmem:[%s16711_s9 + $0x428] sm:$0xf]  ;;  %v9779_v0 = vor.u32 %v11041_v45, %v9776_v57 }
 0xb5b   :  { %5919 = vmatpush.bf16.msrb.mxu3 %v9951_v49  ;;  %5932 = vmatpush.bf16.msrb.mxu0 %v9827_v52  ;;  %v11039_v47 = vld [vmem:[%s16711_s9 + $0x434] sm:$0xf0]  ;;  %v9886_v34 = vld [vmem:[%s16711_s9 + $0x528] sm:$0xf]  ;;  %v9907_v53 = vor.u32 %v11073_v13, %v9904_v23  ;;  %v11037_v59 = vld [vmem:[%s16711_s9 + $0x42c] sm:$0xf] }
 0xb5c   :  { %5945 = vmatpush.bf16.msra.mxu1 %v9955_v56  ;;  %v11071_v60 = vld [vmem:[%s16711_s9 + $0x534] sm:$0xf0]  ;;  %v9760_v6 = vld [vmem:[%s16711_s9 + $0x438] sm:$0xf0]  ;;  %v9759_v41 = vor.u32 %v11039_v47, %v9758_v31  ;;  %v11069_v18 = vld [vmem:[%s16711_s9 + $0x52c] sm:$0xf] }
 0xb5d   :  { %5907 = vmatpush.bf16.msrb.mxu2 %v9807_v10  ;;  %v9888_v37 = vld [vmem:[%s16711_s9 + $0x538] sm:$0xf0]  ;;  %v9887_v33 = vor.u32 %v11071_v60, %v9886_v34  ;;  %v9742_v30 = vld [vmem:[%s16711_s9 + $0x408] sm:$0xf]  ;;  %v11035_v32 = vld [vmem:[%s16711_s9 + $0x414] sm:$0xf0]  ;;  %v9763_v44 = vor.u32 %v11037_v59, %v9760_v6 }
 0xb5e   :  { %v9870_v21 = vld [vmem:[%s16711_s9 + $0x508] sm:$0xf]  ;;  %v11067_v25 = vld [vmem:[%s16711_s9 + $0x514] sm:$0xf0]  ;;  %v9891_v11 = vor.u32 %v11069_v18, %v9888_v37  ;;  %v11033_v43 = vld [vmem:[%s16711_s9 + $0x40c] sm:$0xf]  ;;  %v9743_v22 = vor.u32 %v11035_v32, %v9742_v30 }
 0xb5f   :  { %5920 = vmatpush.bf16.msrb.mxu3 %v9935_v19  ;;  %5933 = vmatpush.bf16.msrb.mxu0 %v9811_v50  ;;  %v9744_v54 = vld [vmem:[%s16711_s9 + $0x418] sm:$0xf0]  ;;  %v11065_v28 = vld [vmem:[%s16711_s9 + $0x50c] sm:$0xf]  ;;  %v9871_v46 = vor.u32 %v11067_v25, %v9870_v21  ;;  %v11110_v56 = vld [vmem:[#allocation4 + $0x270] sm:$0xff] }
 0xb60   :  { %5946 = vmatpush.bf16.msra.mxu1 %v9939_v40  ;;  %v9872_v48 = vld [vmem:[%s16711_s9 + $0x518] sm:$0xf0]  ;;  %v9747_v29 = vor.u32 %v11033_v43, %v9744_v54  ;;  %v11126_v4 = vld [vmem:[#allocation4 + $0x2f0] sm:$0xff]  ;;  %v11101_v10 = vld [vmem:[#allocation4 + $0x228] sm:$0xff] }
 0xb61   :  { %5908 = vmatpush.bf16.msrb.mxu2 %v9791_v35  ;;  %v11103_v49 = vld [vmem:[#allocation4 + $0x238] sm:$0xff]  ;;  %v9875_v52 = vor.u32 %v11065_v28, %v9872_v48  ;;  %v11109_v14 = vld [vmem:[#allocation4 + $0x268] sm:$0xff]  ;;  %v11100_v12 = vld [vmem:[#allocation4 + $0x220] sm:$0xff] }
 0xb62   :  { %v11111_v5 = vld [vmem:[#allocation4 + $0x278] sm:$0xff]  ;;  %v11108_v19 = vld [vmem:[#allocation4 + $0x260] sm:$0xff]  ;;  %v11106_v50 = vld [vmem:[#allocation4 + $0x250] sm:$0xff] }
 0xb63   :  { %5921 = vmatpush.bf16.msrb.mxu3 %v9919_v15  ;;  %5934 = vmatpush.bf16.msrb.mxu0 %v9795_v26  ;;  %v11127_v24 = vld [vmem:[#allocation4 + $0x2f8] sm:$0xff]  ;;  %v11125_v39 = vld [vmem:[#allocation4 + $0x2e8] sm:$0xff]  ;;  %v11098_v63 = vld [vmem:[#allocation4 + $0x210] sm:$0xff] }
 0xb64   :  { %5947 = vmatpush.bf16.msra.mxu1 %v9923_v55  ;;  %v11119_v17 = vld [vmem:[#allocation4 + $0x2b8] sm:$0xff]  ;;  %v11104_v40 = vld [vmem:[#allocation4 + $0x240] sm:$0xff]  ;;  %v11097_v27 = vld [vmem:[#allocation4 + $0x208] sm:$0xff] }
 0xb65   :  { %5909 = vmatpush.bf16.msrb.mxu2 %v9775_v3  ;;  %v11099_v42 = vld [vmem:[#allocation4 + $0x218] sm:$0xff]  ;;  %v11124_v20 = vld [vmem:[#allocation4 + $0x2e0] sm:$0xff]  ;;  %v11117_v35 = vld [vmem:[#allocation4 + $0x2a8] sm:$0xff] }
 0xb66   :  { %v11107_v38 = vld [vmem:[#allocation4 + $0x258] sm:$0xff]  ;;  %v11096_v61 = vld [vmem:[#allocation4 + $0x200] sm:$0xff]  ;;  %v11122_v2 = vld [vmem:[#allocation4 + $0x2d0] sm:$0xff] }
 0xb67   :  { %5922 = vmatpush.bf16.msrb.mxu3 %v9903_v16  ;;  %5935 = vmatpush.bf16.msrb.mxu0 %v9779_v0  ;;  %v11123_v51 = vld [vmem:[#allocation4 + $0x2d8] sm:$0xff]  ;;  %v11116_v15 = vld [vmem:[#allocation4 + $0x2a0] sm:$0xff]  ;;  %v15525_v26 = vld [vmem:[%s16712_s10 + $0x8] sm:$0xf] }
 0xb68   :  { %5948 = vmatpush.bf16.msra.mxu1 %v9907_v53  ;;  %v11115_v58 = vld [vmem:[#allocation4 + $0x298] sm:$0xff]  ;;  %v5525_v1 = vperm.slane %v15525_v26, 1  ;;  %v10120_v57 = vld [vmem:[%s16704_s2 + $0xa8] sm:$0xff]  ;;  %v11702_v23 = vld [vmem:[%s16702_s0 + $0x50] sm:$0xff] }
 0xb69   :  { %5910 = vmatpush.bf16.msrb.mxu2 %v9759_v41  ;;  %v10122_v36 = vld [vmem:[%s16704_s2 + $0xb4] sm:$0xff]  ;;  %v11121_v13 = vld [vmem:[#allocation4 + $0x2c8] sm:$0xff]  ;;  %v6286_v47 = vunpack.c.h.bf16 %v10120_v57  ;;  %v10118_v0 = vld [vmem:[%s16704_s2 + $0x9c] sm:$0xff]  ;;  %v5524_v41 = vperm.slane %v15525_v26, 0 }
 0xb6a   :  { %v6289_v45 = vunpack.c.h.bf16 %v10122_v36  ;;  %v11114_v31 = vld [vmem:[#allocation4 + $0x290] sm:$0xff]  ;;  %v11703_v34 = vld [vmem:[%s16702_s0 + $0x38] sm:$0xff]  ;;  %v11120_v53 = vld [vmem:[#allocation4 + $0x2c0] sm:$0xff]  ;;  %v6283_v59 = vunpack.c.h.bf16 %v10118_v0  ;;  %v6288_v21 = vunpack.c.l.bf16 %v10122_v36  ;;  %v6282_v43 = vunpack.c.l.bf16 %v10118_v0 }
 0xb6b   :  { %5923 = vmatpush.bf16.msrb.mxu3 %v9887_v33  ;;  %5936 = vmatpush.bf16.msrb.mxu0 %v9763_v44  ;;  %v6298_v60 = vmul.f32 %v11703_v34, %v6286_v47  ;;  %v10116_v37 = vld [vmem:[%s16704_s2 + $0x90] sm:$0xff]  ;;  %v11704_v30 = vld [vmem:[%s16702_s0 + $0x20] sm:$0xff]  ;;  %v11113_v44 = vld [vmem:[#allocation4 + $0x288] sm:$0xff] }
 0xb6c   :  { %5949 = vmatpush.bf16.msra.mxu1 %v9891_v11  ;;  %v6301_v16 = vmul.f32 %v11702_v23, %v6289_v45  ;;  %v6295_v32 = vmul.f32 %v11704_v30, %v6283_v59  ;;  %v6280_v25 = vunpack.c.h.bf16 %v10116_v37  ;;  %v6285_v11 = vunpack.c.l.bf16 %v10120_v57  ;;  %v11705_v28 = vld [vmem:[%s16702_s0 + $0x48] sm:$0xff]  ;;  %v11717_v57 = vld [vmem:[%s16703_s1 + $0x158] sm:$0xff]  ;;  %v11719_v23 = vld [vmem:[%s16703_s1 + $0x60] sm:$0xff] }
 0xb6d   :  { %5911 = vmatpush.bf16.msrb.mxu2 %v9743_v22  ;;  %v6300_v48 = vmul.f32 %v11705_v28, %v6288_v21  ;;  %v11716_v45 = vld [vmem:[%s16703_s1 + $0x68] sm:$0xff]  ;;  %v11722_v47 = vld [vmem:[%s16703_s1 + $0x150] sm:$0xff]  ;;  %v11731_v30 = vld [vmem:[%s16703_s1 + $0x138] sm:$0xff] }
 0xb6e   :  { %v11723_v34 = vld [vmem:[%s16703_s1 + $0xf0] sm:$0xff]  ;;  %v11726_v59 = vld [vmem:[%s16703_s1 + $0xe8] sm:$0xff]  ;;  %v11733_v21 = vld [vmem:[%s16703_s1 + $0x38] sm:$0xff] }
 0xb6f   :  { %5924 = vmatpush.bf16.msrb.mxu3 %v9871_v46  ;;  %5937 = vmatpush.bf16.msrb.mxu0 %v9747_v29  ;;  %v6279_v46 = vunpack.c.l.bf16 %v10116_v37  ;;  %v11729_v37 = vld [vmem:[%s16703_s1 + $0xe0] sm:$0xff] }
 0xb70   :  { %5950 = vmatpush.bf16.msra.mxu1 %v9875_v52  ;;  %5912 = vmatmul.bf16.vlgmr.msrb.gmra.mxu2 %v15360_v7 }
 0xb71   :  { %6217 = vmatpush.bf16.msra.mxu2 %v11103_v49  ;;  %v10123_v49 = vld [vmem:[%s16704_s2 + $0xbc] sm:$0xf] }
 0xb72   :  { %5925 = vmatmul.bf16.vlgmr.msrb.gmra.mxu3 %v15406_v62  ;;  %5938 = vmatmul.bf16.vlgmr.msrb.gmra.mxu0 %v15360_v7  ;;  %v11105_v7 = vld [vmem:[#allocation4 + $0x248] sm:$0xff] }
 0xb73   :  { %6230 = vmatpush.bf16.msra.mxu3 %v11111_v5  ;;  %5951 = vmatmul.bf16.vlgmr.msra.gmra.mxu1 %v15406_v62  ;;  %v11118_v62 = vld [vmem:[#allocation4 + $0x2b0] sm:$0xff]  ;;  %v11706_v5 = vld [vmem:[%s16702_s0 + $0x8] sm:$0xff] }
 0xb74   :  { %6256 = vmatpush.bf16.msrb.mxu1 %v11127_v24  ;;  %6243 = vmatpush.bf16.msra.mxu0 %v11119_v17  ;;  %v6292_v52 = vmul.f32 %v11706_v5, %v6280_v25  ;;  %v11707_v24 = vld [vmem:[%s16702_s0 + $0x30] sm:$0xff]  ;;  %v11708_v17 = vld [vmem:[%s16702_s0 + $0x18] sm:$0xff]  ;;  %v11739_v5 = vld [vmem:[%s16703_s1 + $0x28] sm:$0xff] }
 0xb75   :  { %6218 = vmatpush.bf16.msra.mxu2 %v11102_v8  ;;  %v6297_v8 = vmul.f32 %v11707_v24, %v6285_v11  ;;  %v11734_v25 = vld [vmem:[%s16703_s1 + $0x130] sm:$0xff]  ;;  %v11741_v24 = vld [vmem:[%s16703_s1 + $0xc0] sm:$0xff] }
 0xb76   :  { %v11735_v11 = vld [vmem:[%s16703_s1 + $0xd0] sm:$0xff] }
 0xb77   :  { %6231 = vmatpush.bf16.msra.mxu3 %v11110_v56  ;;  %v11112_v56 = vld [vmem:[#allocation4 + $0x280] sm:$0xff] }
 0xb78   :  { %6257 = vmatpush.bf16.msrb.mxu1 %v11126_v4  ;;  %6244 = vmatpush.bf16.msra.mxu0 %v11118_v62  ;;  %v6294_v4 = vmul.f32 %v11708_v17, %v6282_v43  ;;  %v11711_v62 = vld [vmem:[%s16702_s0 + $0x58] sm:$0xff] }
 0xb79   :  { %6219 = vmatpush.bf16.msra.mxu2 %v11101_v10  ;;  %v6290_v10 = vunpack.c.l.bf16 %v10123_v49  ;;  %v11738_v49 = vld [vmem:[%s16703_s1 + $0xc8] sm:$0xff] }
 0xb7b   :  { %6232 = vmatpush.bf16.msra.mxu3 %v11109_v14  ;;  %v10121_v14 = vld [vmem:[%s16704_s2 + $0xb0] sm:$0xf] }
 0xb7c   :  { %6258 = vmatpush.bf16.msrb.mxu1 %v11125_v39  ;;  %6245 = vmatpush.bf16.msra.mxu0 %v11117_v35  ;;  %v11710_v39 = vld [vmem:[%s16702_s0] sm:$0xff] }
 0xb7d   :  { %6220 = vmatpush.bf16.msra.mxu2 %v11100_v12  ;;  %v10119_v12 = vld [vmem:[%s16704_s2 + $0xa4] sm:$0xf] }
 0xb7f   :  { %6233 = vmatpush.bf16.msra.mxu3 %v11108_v19  ;;  %v6287_v19 = vunpack.c.l.bf16 %v10121_v14  ;;  %v11743_v14 = vld [vmem:[%s16703_s1 + $0xb8] sm:$0xff] }
 0xb80   :  { %6259 = vmatpush.bf16.msrb.mxu1 %v11124_v20  ;;  %6246 = vmatpush.bf16.msra.mxu0 %v11116_v15  ;;  %v11713_v15 = vld [vmem:[%s16702_s0 + $0x40] sm:$0xff] }
 0xb81   :  { %6221 = vmatpush.bf16.msra.mxu2 %v11099_v42  ;;  %v6284_v42 = vunpack.c.l.bf16 %v10119_v12  ;;  %v11744_v12 = vld [vmem:[%s16703_s1 + $0x18] sm:$0xff] }
 0xb83   :  { %6234 = vmatpush.bf16.msra.mxu3 %v11107_v38  ;;  %v10117_v38 = vld [vmem:[%s16704_s2 + $0x98] sm:$0xf] }
 0xb84   :  { %6260 = vmatpush.bf16.msrb.mxu1 %v11123_v51  ;;  %6247 = vmatpush.bf16.msra.mxu0 %v11115_v58  ;;  %v6281_v20 = vunpack.c.l.bf16 %v10117_v38  ;;  %v11714_v58 = vld [vmem:[%s16703_s1 + $0x70] sm:$0xff] }
 0xb85   :  { %6222 = vmatpush.bf16.msra.mxu2 %v11098_v63  ;;  %v6291_v63 = vmul.f32 %v11710_v39, %v6279_v46  ;;  %v5526_v46 = vperm.slane %v15525_v26, 2  ;;  %v11746_v38 = vld [vmem:[%s16703_s1 + $0xb0] sm:$0xff] }
 0xb86   :  { %v11748_v39 = vld [vmem:[%s16703_s1 + $0x110] sm:$0xff] }
 0xb87   :  { %6235 = vmatpush.bf16.msra.mxu3 %v11106_v50  ;;  %v11709_v50 = vld [vmem:[%s16703_s1 + $0x78] sm:$0xff] }
 0xb88   :  { %6261 = vmatpush.bf16.msrb.mxu1 %v11122_v2  ;;  %6248 = vmatpush.bf16.msra.mxu0 %v11114_v31  ;;  %v6299_v2 = vmul.f32 %v11713_v15, %v6287_v19  ;;  %v11721_v31 = vld [vmem:[%s16703_s1 + $0x58] sm:$0xff]  ;;  %v11753_v15 = vld [vmem:[%s16703_s1] sm:$0xff] }
 0xb89   :  { %6223 = vmatpush.bf16.msra.mxu2 %v11097_v27  ;;  %v11712_v27 = vld [vmem:[%s16703_s1 + $0x160] sm:$0xff]  ;;  %v11745_v19 = vld [vmem:[%s16703_s1 + $0x118] sm:$0xff] }
 0xb8b   :  { %6236 = vmatpush.bf16.msra.mxu3 %v11105_v7 }
 0xb8c   :  { %6262 = vmatpush.bf16.msrb.mxu1 %v11121_v13  ;;  %6249 = vmatpush.bf16.msra.mxu0 %v11113_v44  ;;  %v11732_v44 = vld [vmem:[%s16703_s1 + $0xd8] sm:$0xff] }
 0xb8d   :  { %6224 = vmatpush.bf16.msra.mxu2 %v11096_v61 }
 0xb8f   :  { %6237 = vmatpush.bf16.msra.mxu3 %v11104_v40  ;;  %v6302_v40 = vmul.f32 %v11711_v62, %v6290_v10 }
 0xb90   :  { %6263 = vmatpush.bf16.msrb.mxu1 %v11120_v53  ;;  %6250 = vmatpush.bf16.msra.mxu0 %v11112_v56  ;;  %v11725_v53 = vld [vmem:[%s16703_s1 + $0x148] sm:$0xff]  ;;  %v11742_v56 = vld [vmem:[%s16703_s1 + $0x20] sm:$0xff] }
 0xb91   :  { %6353 = vmatpush.msrb.mxu2 %v6300_v48 }
 0xb93   :  { %6382 = vmatpush.msrb.mxu3 %v6301_v16  ;;  %6354 = vmatpush.msrb.mxu2 %v6297_v8  ;;  %v11720_v16 = vld [vmem:[%s16703_s1 + $0xf8] sm:$0xff] }
 0xb94   :  { %6788 = vmatpush.msra.mxu1 %v11709_v50  ;;  %6411 = vmatpush.msrb.mxu0 %v6302_v40  ;;  %v11749_v40 = vld [vmem:[%s16703_s1 + $0xa8] sm:$0xff] }
 0xb95   :  { %6383 = vmatpush.msrb.mxu3 %v6298_v60  ;;  %6355 = vmatpush.msrb.mxu2 %v6294_v4  ;;  %v11724_v60 = vld [vmem:[%s16703_s1 + $0x50] sm:$0xff] }
 0xb96   :  { %6789 = vmatpush.msra.mxu1 %v11714_v58  ;;  %6412 = vmatpush.msrb.mxu0 %v6299_v2  ;;  %v11754_v58 = vld [vmem:[%s16703_s1 + $0x98] sm:$0xff] }
 0xb97   :  { %6384 = vmatpush.msrb.mxu3 %v6295_v32  ;;  %6356 = vmatpush.msrb.mxu2 %v6291_v63  ;;  %v5527_v32 = vperm.slane %v15525_v26, 3 }
 0xb98   :  { %6790 = vmatpush.msra.mxu1 %v11716_v45  ;;  %v10127_v45 = vld [vmem:[%s16706_s4 + $0x78] sm:$0xff] }
 0xb99   :  { %6385 = vmatpush.msrb.mxu3 %v6292_v52  ;;  %v11740_v52 = vld [vmem:[%s16703_s1 + $0x120] sm:$0xff] }
 0xb9a   :  { %6791 = vmatpush.msra.mxu1 %v11719_v23 }
 0xb9c   :  { %6792 = vmatpush.msra.mxu1 %v11721_v31  ;;  %v10128_v31 = vld [vmem:[%s16705_s3 + $0x90] sm:$0xff] }
 0xb9e   :  { %6793 = vmatpush.msra.mxu1 %v11724_v60 }
 0xbcf   :  { %v5887_v55 = vpop.f32.mrf.mxu0 }
 0xbd0   :  { %v5888_v3 = vadd.f32 %v5887_v55, %v5525_v1  ;;  %v11715_v1 = vld [vmem:[%s16702_s0 + $0x28] sm:$0xff] }
 0xbd1   :  { %v6296_v36 = vmul.f32 %v11715_v1, %v6284_v42  ;;  %v11755_v1 = vld [vmem:[%s16703_s1 + $0x100] sm:$0xff] }
 0xbd3   :  { %6413 = vmatpush.msrb.mxu0 %v6296_v36  ;;  %v11756_v36 = vld [vmem:[%s16703_s1 + $0x90] sm:$0xff] }
 0xbd5   :  { %v5861_v18 = vpop.f32.mrf.mxu2 }
 0xbd6   :  { %v5900_v6 = vpop.f32.mrf.mxu1  ;;  %v5862_v29 = vadd.f32 %v5861_v18, %v5524_v41  ;;  %v11727_v41 = vld [vmem:[%s16703_s1 + $0x48] sm:$0xff]  ;;  %v11728_v18 = vld [vmem:[%s16703_s1 + $0x140] sm:$0xff] }
 0xbd7   :  { %v5901_v33 = vadd.f32 %v5900_v6, %v5888_v3  ;;  %v5889_v22 = vpop.f32.mrf.mxu0  ;;  %v11718_v3 = vld [vmem:[%s16702_s0 + $0x10] sm:$0xff]  ;;  %v15631_v6 = vld [vmem:[%s16706_s4 + $0x60] sm:$0xff]  ;;  %6794 = vmatpush.msra.mxu1 %v11727_v41  ;;  %v6317_v41 = vunpack.c.l.bf16 %v10128_v31 }
 0xbd8   :  { %v6293_v13 = vmul.f32 %v11718_v3, %v6281_v20  ;;  %v11737_v22 = vld [vmem:[%s16703_s1 + $0x128] sm:$0xff]  ;;  %v10126_v20 = vld [vmem:[%s16706_s4 + $0x70] sm:$0xff] }
 0xbd9   :  { %v5957_v54 = vpack.c.bf16 %v5901_v33, %v5901_v33  ;;  %v11730_v33 = vld [vmem:[%s16703_s1 + $0x40] sm:$0xff] }
 0xbda   :  { %6414 = vmatpush.msrb.mxu0 %v6293_v13  ;;  %6795 = vmatpush.msra.mxu1 %v11730_v33 }
 0xbdb   :  { %6238 = vmatmul.bf16.vlgmr.msra.gmra.mxu3 %v5957_v54  ;;  %v5874_v7 = vpop.f32.mrf.mxu3  ;;  %v11736_v54 = vld [vmem:[%s16703_s1 + $0x30] sm:$0xff] }
 0xbdc   :  { %6849 = vmatpush.msra.mxu3 %v11712_v27  ;;  %v5875_v35 = vadd.f32 %v5874_v7, %v5862_v29  ;;  %6796 = vmatpush.msra.mxu1 %v11733_v21  ;;  %v15676_v29 = vld [vmem:[%s16706_s4 + $0x68] sm:$0xff]  ;;  %v11747_v7 = vld [vmem:[%s16703_s1 + $0x10] sm:$0xff] }
 0xbdd   :  { %v5863_v61 = vpop.f32.mrf.mxu2  ;;  %v11750_v27 = vld [vmem:[%s16703_s1 + $0x8] sm:$0xff] }
 0xbde   :  { %v5902_v51 = vpop.f32.mrf.mxu1  ;;  %v5956_v55 = vpack.c.bf16 %v5875_v35, %v5875_v35  ;;  %6850 = vmatpush.msra.mxu3 %v11717_v57  ;;  %6797 = vmatpush.msra.mxu1 %v11736_v54  ;;  %v11751_v35 = vld [vmem:[%s16703_s1 + $0x108] sm:$0xff]  ;;  %v11758_v57 = vld [vmem:[%s16703_s1 + $0x80] sm:$0xff] }
 0xbdf   :  { %v11752_v51 = vld [vmem:[%s16703_s1 + $0xa0] sm:$0xff] }
 0xbe0   :  { %6225 = vmatmul.bf16.vlgmr.msra.gmra.mxu2 %v5956_v55  ;;  %6851 = vmatpush.msra.mxu3 %v11722_v47  ;;  %v11757_v55 = vld [vmem:[%s16703_s1 + $0x88] sm:$0xff]  ;;  %v6318_v47 = vunpack.c.h.bf16 %v10128_v31 }
 0xbe1   :  { %6817 = vmatpush.msra.mxu2 %v11720_v16  ;;  %6798 = vmatpush.msra.mxu1 %v11739_v5 }
 0xbe2   :  { %6852 = vmatpush.msra.mxu3 %v11725_v53  ;;  %v10130_v53 = vld [vmem:[%s16705_s3 + $0x9c] sm:$0xff] }
 0xbe3   :  { %v5876_v0 = vpop.f32.mrf.mxu3  ;;  %6818 = vmatpush.msra.mxu2 %v11723_v34  ;;  %6799 = vmatpush.msra.mxu1 %v11742_v56 }
 0xbe4   :  { %6853 = vmatpush.msra.mxu3 %v11728_v18 }
 0xbe5   :  { %6819 = vmatpush.msra.mxu2 %v11726_v59  ;;  %6800 = vmatpush.msra.mxu1 %v11744_v12 }
 0xbe6   :  { %6854 = vmatpush.msra.mxu3 %v11731_v30 }
 0xbe7   :  { %6820 = vmatpush.msra.mxu2 %v11729_v37  ;;  %6801 = vmatpush.msra.mxu1 %v11747_v7  ;;  %v6321_v37 = vunpack.c.h.bf16 %v10130_v53 }
 0xbe8   :  { %6855 = vmatpush.msra.mxu3 %v11734_v25 }
 0xbe9   :  { %6821 = vmatpush.msra.mxu2 %v11732_v44  ;;  %6802 = vmatpush.msra.mxu1 %v11750_v27 }
 0xbea   :  { %6856 = vmatpush.msra.mxu3 %v11737_v22  ;;  %v10132_v22 = vld [vmem:[%s16705_s3 + $0xa8] sm:$0xff] }
 0xbeb   :  { %10140 = vmatmul.msk.f32.vlgmr.msrb.gmra.mxu3 %vm195_vm0, %v15631_v6  ;;  %6822 = vmatpush.msra.mxu2 %v11735_v11  ;;  %v6324_v5 = vunpack.c.h.bf16 %v10132_v22  ;;  %v6323_v27 = vunpack.c.l.bf16 %v10132_v22 }
 0xbec   :  { %6857 = vmatpush.msra.mxu3 %v11740_v52  ;;  %6803 = vmatpush.msra.mxu1 %v11753_v15 }
 0xbed   :  { %6823 = vmatpush.msra.mxu2 %v11738_v49 }
 0xbee   :  { %6858 = vmatpush.msra.mxu3 %v11745_v19 }
 0xbef   :  { %v5939_v43 = vpop.f32.mrf.mxu0  ;;  %6824 = vmatpush.msra.mxu2 %v11741_v24 }
 0xbf0   :  { %v5940_v28 = vadd.f32 %v5939_v43, %v5527_v32  ;;  %v5952_v48 = vpop.f32.mrf.mxu1  ;;  %10136 = vmatmul.msk.f32.vlgmr.msrb.gmra.mxu2 %vm195_vm0, %v15631_v6  ;;  %6859 = vmatpush.msra.mxu3 %v11748_v39 }
 0xbf1   :  { %6825 = vmatpush.msra.mxu2 %v11743_v14 }
 0xbf2   :  { %v5953_v26 = vadd.f32 %v5952_v48, %v5940_v28  ;;  %6860 = vmatpush.msra.mxu3 %v11751_v35 }
 0xbf3   :  { %v5913_v8 = vpop.f32.mrf.mxu2  ;;  %10141 = vmatmul.msk.f32.gmra.mxu3 %vm195_vm0, %v15676_v29  ;;  %6826 = vmatpush.msra.mxu2 %v11746_v38  ;;  %v10129_v38 = vld [vmem:[%s16705_s3 + $0x98] sm:$0xf] }
 0xbf4   :  { %v5959_v17 = vpack.c.bf16 %v5953_v26, %v5953_v26  ;;  %v5914_v4 = vadd.f32 %v5913_v8, %v5526_v46  ;;  %6861 = vmatpush.msra.mxu3 %v11755_v1 }
 0xbf5   :  { %v5926_v10 = vpop.f32.mrf.mxu3  ;;  %6827 = vmatpush.msra.mxu2 %v11749_v40 }
 0xbf6   :  { %v5927_v42 = vadd.f32 %v5926_v10, %v5914_v4  ;;  %6264 = vmatmul.bf16.vlgmr.msrb.gmra.mxu1 %v5959_v17 }
 0xbf7   :  { %v5941_v50 = vpop.f32.mrf.mxu0  ;;  %6828 = vmatpush.msra.mxu2 %v11752_v51 }
 0xbf8   :  { %v5958_v63 = vpack.c.bf16 %v5927_v42, %v5927_v42  ;;  %v5954_v62 = vpop.f32.mrf.mxu1  ;;  %10137 = vmatmul.msk.f32.gmra.mxu2 %vm195_vm0, %v15676_v29 }
 0xbf9   :  { %6829 = vmatpush.msra.mxu2 %v11754_v58  ;;  %v15801_v58 = vld [vmem:[%s16705_s3 + $0xb4] sm:$0xff] }
 0xbfa   :  { %6251 = vmatmul.bf16.vlgmr.msra.gmra.mxu0 %v5958_v63 }
 0xbfb   :  { %v5915_v61 = vpop.f32.mrf.mxu2  ;;  %10142 = vmatmul.msk.f32.gmra.mxu3 %vm195_vm0, %v10126_v20  ;;  %6830 = vmatpush.msra.mxu2 %v11756_v36 }
 0xbfd   :  { %v5928_v2 = vpop.f32.mrf.mxu3  ;;  %6831 = vmatpush.msra.mxu2 %v11757_v55 }
 0xbff   :  { %6832 = vmatpush.msra.mxu2 %v11758_v57 }
 0xc00   :  { %10138 = vmatmul.msk.f32.gmra.mxu2 %vm195_vm0, %v10126_v20 }
 0xc03   :  { %10143 = vmatmul.msk.f32.gmra.mxu3 %vm195_vm0, %v10127_v45 }
 0xc08   :  { %10139 = vmatmul.msk.f32.gmra.mxu2 %vm195_vm0, %v10127_v45 }
 0xc0a   :  { %10144 = vmatmul.msk.f32.vlgmr.msrb.gmra.mxu0 %vm195_vm0, %v15631_v6 }
 0xc12   :  { %10145 = vmatmul.msk.f32.gmra.mxu0 %vm195_vm0, %v15676_v29  ;;  %v6320_v29 = vunpack.c.l.bf16 %v10130_v53 }
 0xc1a   :  { %10146 = vmatmul.msk.f32.gmra.mxu0 %vm195_vm0, %v10126_v20  ;;  %v6319_v20 = vunpack.c.l.bf16 %v10129_v38 }
 0xc22   :  { %10147 = vmatmul.msk.f32.gmra.mxu0 %vm195_vm0, %v10127_v45 }
 0xc5e   :  { %v6239_v3 = vpop.f32.mrf.mxu3 }
 0xc63   :  { %v6226_v13 = vpop.f32.mrf.mxu2 }
 0xc64   :  { %v6240_v23 = vadd.f32 %v6239_v3, %v6226_v13 }
 0xc66   :  { %v6241_v16 = vpop.f32.mrf.mxu3 }
 0xc6b   :  { %v6228_v0 = vpop.f32.mrf.mxu2 }
 0xc6e   :  { %v6387_v34 = vpop.f32.mrf.mxu3 }
 0xc6f   :  { %v6388_v60 = vadd.f32 %v6387_v34, %v6318_v47  ;;  %v6327_v34 = vunpack.c.h.bf16 %v15801_v58 }
 0xc71   :  { %v15766_v59 = vmul.f32 0.70710677, %v6388_v60  ;;  %v15806_v36 = vmul.f32 0.5, %v6388_v60 }
 0xc73   :  { %v6265_v6 = vpop.f32.mrf.mxu1  ;;  %v6453_v18 = vand.u32 2147483647, %v15766_v59  ;;  %v6358_v30 = vpop.f32.mrf.mxu2  ;;  %vm6717_vm10 = vcmp.ge.f32.partialorder %v15766_v59, 0.0 }
 0xc74   :  { %v6359_v44 = vadd.f32 %v6358_v30, %v6317_v41 }
 0xc75   :  { %v6465_v33 = vmul.f32 0.3275911, %v6453_v18  ;;  %v6645_v42 = vsub.f32 0.0, %v6453_v18 }
 0xc76   :  { %v6390_v21 = vpop.f32.mrf.mxu3  ;;  %v15769_v54 = vmul.f32 0.70710677, %v6359_v44  ;;  %v15810_v53 = vmul.f32 0.5, %v6359_v44 }
 0xc77   :  { %v6252_v32 = vpop.f32.mrf.mxu0  ;;  %v6477_v11 = vadd.f32 1.0, %v6465_v33  ;;  %v6391_v43 = vadd.f32 %v6390_v21, %v6321_v37  ;;  %v6657_v51 = vmul.f32 %v6645_v42, %v6453_v18 }
 0xc78   :  { %v6253_v25 = vadd.f32 %v6252_v32, %v6240_v23  ;;  %v6452_v46 = vand.u32 2147483647, %v15769_v54  ;;  %vm6716_vm11 = vcmp.ge.f32.partialorder %v15769_v54, 0.0 }
 0xc79   :  { %11508 = vrcp.f32 %v6477_v11  ;;  %v15775_v49 = vmul.f32 0.70710677, %v6391_v43  ;;  %v6670_v47 = vmul.f32 1.442695, %v6657_v51  ;;  %v15813_v37 = vmul.f32 0.5, %v6391_v43 }
 0xc7a   :  { %v6266_v28 = vadd.f32 %v6265_v6, %v6253_v25  ;;  %v6464_v52 = vmul.f32 0.3275911, %v6452_v46  ;;  %v6644_v15 = vsub.f32 0.0, %v6452_v46 }
 0xc7b   :  { %v6267_v48 = vpop.f32.mrf.mxu1  ;;  %v6456_v26 = vand.u32 2147483647, %v15775_v49  ;;  %v6361_v24 = vpop.f32.mrf.mxu2  ;;  %vm6720_vm13 = vcmp.ge.f32.partialorder %v15775_v49, 0.0 }
 0xc7c   :  { %v6476_v8 = vadd.f32 1.0, %v6464_v52  ;;  %v15778_v14 = vadd.f32 %v6361_v24, %v6320_v29  ;;  %v15792_v63 = vadd.f32 %v6266_v28, %v14578_v9  ;;  %v10131_v9 = vld [vmem:[%s16705_s3 + $0xa4] sm:$0xf]  ;;  %v6656_v41 = vmul.f32 %v6644_v15, %v6452_v46  ;;  %v15824_v48 = vld [vmem:[%s16705_s3 + $0xb0] sm:$0xf] }
 0xc7d   :  { %v6468_v10 = vmul.f32 0.3275911, %v6456_v26  ;;  %v6648_v45 = vsub.f32 0.0, %v6456_v26  ;;  %v6322_v60 = vunpack.c.l.bf16 %v10131_v9  ;;  %v6326_v52 = vunpack.c.l.bf16 %v15801_v58 }
 0xc7e   :  { %v6393_v17 = vpop.f32.mrf.mxu3  ;;  %11510 = vrcp.f32 %v6476_v8  ;;  %v15786_v50 = vmul.f32 0.70710677, %v15778_v14  ;;  %v6668_v29 = vmul.f32 1.442695, %v6656_v41  ;;  %v6325_v42 = vunpack.c.l.bf16 %v15824_v48  ;;  %v10135_v48 = vld [vmem:[%s16705_s3 + $0xbc] sm:$0xf] }
 0xc7f   :  { %v6254_v56 = vpop.f32.mrf.mxu0  ;;  %v11509_v4 = vpop.eup %11508  ;;  %v15780_v12 = vadd.f32 %v6393_v17, %v6324_v5  ;;  %v6480_v62 = vadd.f32 1.0, %v6468_v10  ;;  %v6660_v21 = vmul.f32 %v6648_v45, %v6456_v26 }
 0xc80   :  { %v6501_v19 = vmul.f32 %v11509_v4, %v6477_v11  ;;  %v6455_v40 = vand.u32 2147483647, %v15786_v50  ;;  %vm6719_vm1 = vcmp.ge.f32.partialorder %v15786_v50, 0.0 }
 0xc81   :  { %v15789_v39 = vmul.f32 0.70710677, %v15780_v12  ;;  %11512 = vrcp.f32 %v6480_v62 }
 0xc82   :  { %v6513_v7 = vsub.f32 2.0, %v6501_v19  ;;  %v6467_v57 = vmul.f32 0.3275911, %v6455_v40  ;;  %v6647_v30 = vsub.f32 0.0, %v6455_v40  ;;  %11514 = vpow2.f32 %v6670_v47 }
 0xc83   :  { %v6459_v61 = vand.u32 2147483647, %v15789_v39  ;;  %v6364_v2 = vpop.f32.mrf.mxu2  ;;  %vm6723_vm3 = vcmp.ge.f32.partialorder %v15789_v39, 0.0 }
 0xc84   :  { %v15795_v35 = vmul.f32 %v11509_v4, %v6513_v7  ;;  %v11511_v1 = vpop.eup %11510  ;;  %v6365_v16 = vadd.f32 %v6364_v2, %v6323_v27  ;;  %v6479_v33 = vadd.f32 1.0, %v6467_v57  ;;  %v6659_v24 = vmul.f32 %v6647_v30, %v6455_v40 }
 0xc85   :  { %v6500_v13 = vmul.f32 %v11511_v1, %v6476_v8  ;;  %v6471_v0 = vmul.f32 0.3275911, %v6459_v61  ;;  %v6651_v28 = vsub.f32 0.0, %v6459_v61  ;;  %v6676_v4 = vmul.f32 1.442695, %v6660_v21 }
 0xc86   :  { %v6537_v55 = vmul.f32 1.0614054, %v15795_v35  ;;  %v15819_v11 = vmul.f32 0.70710677, %v6365_v16  ;;  %11516 = vrcp.f32 %v6479_v33  ;;  %v6396_v56 = vpop.f32.mrf.mxu3  ;;  %v6674_v9 = vmul.f32 1.442695, %v6659_v24 }
 0xc87   :  { %v6416_v3 = vpop.f32.mrf.mxu0  ;;  %v6512_v6 = vsub.f32 2.0, %v6500_v13  ;;  %v6483_v44 = vadd.f32 1.0, %v6471_v0  ;;  %v11513_v43 = vpop.eup %11512  ;;  %v15838_v40 = vadd.f32 %v6396_v56, %v6327_v34  ;;  %v15845_v57 = vmul.f32 0.5, %v15778_v14 }
 0xc88   :  { %v6417_v23 = vadd.f32 %v6416_v3, %v6319_v20  ;;  %v6549_v31 = vadd.f32 -1.4531521, %v6537_v55  ;;  %v15833_v8 = vand.u32 2147483647, %v15819_v11  ;;  %v6504_v7 = vmul.f32 %v11513_v43, %v6480_v62  ;;  %v11515_v15 = vpop.eup %11514 }
 0xc89   :  { %v15815_v32 = vmul.f32 %v11511_v1, %v6512_v6  ;;  %11518 = vrcp.f32 %v6483_v44  ;;  %v6663_v20 = vmul.f32 %v6651_v28, %v6459_v61  ;;  %v15848_v62 = vmul.f32 0.5, %v15780_v12 }
 0xc8a   :  { %v6561_v18 = vmul.f32 %v6549_v31, %v15795_v35  ;;  %v15817_v25 = vmul.f32 0.70710677, %v6417_v23  ;;  %11520 = vpow2.f32 %v6668_v29  ;;  %v6470_v1 = vmul.f32 0.3275911, %v15833_v8 }
 0xc8b   :  { %v6536_v46 = vmul.f32 1.0614054, %v15815_v32  ;;  %v6516_v13 = vsub.f32 2.0, %v6504_v7  ;;  %v6682_v31 = vmul.f32 1.442695, %v6663_v20  ;;  %v15852_v0 = vmul.f32 0.5, %v6417_v23 }
 0xc8c   :  { %v6573_v22 = vadd.f32 1.4214138, %v6561_v18  ;;  %v15828_v5 = vand.u32 2147483647, %v15817_v25  ;;  %v11517_v61 = vpop.eup %11516  ;;  %v15854_v34 = vmul.f32 0.5, %v6365_v16  ;;  %v15860_v41 = vadd.f32 1.0, %v6470_v1 }
 0xc8d   :  { %v6548_v17 = vadd.f32 -1.4531521, %v6536_v46  ;;  %v15857_v14 = vmul.f32 0.70710677, %v15838_v40  ;;  %v6503_v21 = vmul.f32 %v11517_v61, %v6479_v33  ;;  %v15869_v28 = vmul.f32 %v11513_v43, %v6516_v13  ;;  %v6367_v33 = vpop.f32.mrf.mxu2 }
 0xc8e   :  { %v6585_v26 = vmul.f32 %v6573_v22, %v15795_v35  ;;  %v6466_v10 = vmul.f32 0.3275911, %v15828_v5  ;;  %v6646_v23 = vsub.f32 0.0, %v15828_v5  ;;  %v6650_v24 = vsub.f32 0.0, %v15833_v8 }
 0xc8f   :  { %v6419_v19 = vpop.f32.mrf.mxu0  ;;  %v6560_v27 = vmul.f32 %v6548_v17, %v15815_v32  ;;  %v11519_v6 = vpop.eup %11518  ;;  %v15867_v16 = vand.u32 2147483647, %v15857_v14  ;;  %v6515_v7 = vsub.f32 2.0, %v6503_v21  ;;  %v15884_v1 = vadd.f32 %v6367_v33, %v6326_v52 }
 0xc90   :  { %v6597_v38 = vadd.f32 -0.28449672, %v6585_v26  ;;  %v6478_v51 = vadd.f32 1.0, %v6466_v10  ;;  %v15842_v55 = vadd.f32 %v6419_v19, %v6322_v60  ;;  %v11521_v18 = vpop.eup %11520  ;;  %v6507_v26 = vmul.f32 %v11519_v6, %v6483_v44 }
 0xc91   :  { %v6572_v45 = vadd.f32 1.4214138, %v6560_v27  ;;  %v6474_v56 = vmul.f32 0.3275911, %v15867_v16  ;;  %v6658_v20 = vmul.f32 %v6646_v23, %v15828_v5  ;;  %v15906_v21 = vmul.f32 0.70710677, %v15884_v1 }
 0xc92   :  { %v6609_v2 = vmul.f32 %v6597_v38, %v15795_v35  ;;  %11522 = vrcp.f32 %v6478_v51  ;;  %v15863_v60 = vmul.f32 0.70710677, %v15842_v55  ;;  %vm6718_vm12 = vcmp.ge.f32.partialorder %v15817_v25, 0.0 }
 0xc93   :  { %11524 = vpow2.f32 %v6676_v4  ;;  %v6584_v47 = vmul.f32 %v6572_v45, %v15815_v32  ;;  %v6486_v27 = vadd.f32 1.0, %v6474_v56  ;;  %v6662_v45 = vmul.f32 %v6650_v24, %v15833_v8 }
 0xc94   :  { %v6621_v3 = vadd.f32 0.2548296, %v6609_v2  ;;  %11526 = vpow2.f32 %v6674_v9  ;;  %v6328_v24 = vunpack.c.l.bf16 %v10135_v48  ;;  %vm6721_vm15 = vcmp.ge.f32.partialorder %v15863_v60, 0.0 }
 0xc95   :  { %v6596_v30 = vadd.f32 -0.28449672, %v6584_v47  ;;  %11528 = vpow2.f32 %v6682_v31  ;;  %v6519_v31 = vsub.f32 2.0, %v6507_v26  ;;  %v15915_v26 = vand.u32 2147483647, %v15906_v21 }
 0xc96   :  { %v6633_v12 = vmul.f32 %v6621_v3, %v15795_v35  ;;  %v6457_v35 = vand.u32 2147483647, %v15863_v60  ;;  %11530 = vrcp.f32 %v15860_v41  ;;  %vm6722_vm4 = vcmp.ge.f32.partialorder %v15819_v11, 0.0 }
 0xc97   :  { %v6608_v29 = vmul.f32 %v6596_v30, %v15815_v32  ;;  %v6422_v17 = vpop.f32.mrf.mxu0  ;;  %11532 = vrcp.f32 %v6486_v27  ;;  %v6654_v30 = vsub.f32 0.0, %v15867_v16  ;;  %vm6726_vm6 = vcmp.ge.f32.partialorder %v15857_v14, 0.0 }
 0xc98   :  { %v6693_v22 = vmul.f32 %v11515_v15, %v6633_v12  ;;  %v11523_v46 = vpop.eup %11522  ;;  %v6469_v43 = vmul.f32 0.3275911, %v6457_v35  ;;  %v15890_v5 = vadd.f32 %v6422_v17, %v6325_v42  ;;  %v15898_v12 = vmul.f32 %v11517_v61, %v6515_v7 }
 0xc99   :  { %v15875_v4 = vpop.eup %11524  ;;  %v6502_v19 = vmul.f32 %v11523_v46, %v6478_v51  ;;  %v6620_v38 = vadd.f32 0.2548296, %v6608_v29  ;;  %v6649_v59 = vsub.f32 0.0, %v6457_v35  ;;  %v6473_v7 = vmul.f32 0.3275911, %v15915_v26 }
 0xc9a   :  { %v6705_v10 = vsub.f32 1.0, %v6693_v22  ;;  %v15879_v15 = vpop.eup %11526  ;;  %v6481_v9 = vadd.f32 1.0, %v6469_v43  ;;  %v15910_v61 = vmul.f32 0.70710677, %v15890_v5  ;;  %vm6725_vm8 = vcmp.ge.f32.partialorder %v15906_v21, 0.0  ;;  %v10154_v21 = vld [vmem:[%s16707_s5 + $0x70] sm:$0xff] }
 0xc9b   :  { %v6514_v2 = vsub.f32 2.0, %v6502_v19  ;;  %v6632_v51 = vmul.f32 %v6620_v38, %v15815_v32  ;;  %v15892_v3 = vpop.eup %11528  ;;  %v6672_v32 = vmul.f32 1.442695, %v6658_v20  ;;  %v6661_v38 = vmul.f32 %v6649_v59, %v6457_v35 }
 0xc9c   :  { %v6729_v44 = vsub.f32 0.0, %v6705_v10  ;;  %11534 = vrcp.f32 %v6481_v9  ;;  %v11531_v8 = vpop.eup %11530  ;;  %vm6724_vm5 = vcmp.ge.f32.partialorder %v15910_v61, 0.0 }
 0xc9d   :  { %v15896_v47 = vmul.f32 %v11523_v46, %v6514_v2  ;;  %v6692_v52 = vmul.f32 %v11521_v18, %v6632_v51  ;;  %v6680_v18 = vmul.f32 1.442695, %v6662_v45  ;;  %v15912_v46 = vmul.f32 %v11519_v6, %v6519_v31  ;;  %v15917_v56 = vpop.eup %11532 }
 0xc9e   :  { %v6741_v13 = vsel %vm6717_vm10, %v6705_v10, %v6729_v44  ;;  %11536 = vpow2.f32 %v6672_v32  ;;  %v6506_v17 = vmul.f32 %v11531_v8, %v15860_v41  ;;  %v6666_v6 = vmul.f32 %v6654_v30, %v15867_v16 }
 0xc9f   :  { %v6753_v58 = vadd.f32 1.0, %v6741_v13  ;;  %v6538_v42 = vmul.f32 1.0614054, %v15896_v47  ;;  %v6704_v22 = vsub.f32 1.0, %v6692_v52  ;;  %v6425_v10 = vpop.f32.mrf.mxu0  ;;  %v6485_v13 = vadd.f32 1.0, %v6473_v7 }
 0xca0   :  { %v15926_v31 = vadd.f32 %v6425_v10, %v6328_v24  ;;  %v6510_v52 = vmul.f32 %v15917_v56, %v6486_v27  ;;  %v15932_v30 = vmul.f32 0.5, %v15842_v55  ;;  %v6540_v24 = vmul.f32 1.0614054, %v15869_v28 }
 0xca1   :  { %v6765_v23 = vmul.f32 %v6753_v58, %v15806_v36  ;;  %v6550_v29 = vadd.f32 -1.4531521, %v6538_v42  ;;  %v6728_v33 = vsub.f32 0.0, %v6704_v22  ;;  %v6460_v36 = vand.u32 2147483647, %v15910_v61 }
 0xca2   :  { %v11535_v19 = vpop.eup %11534  ;;  %v6518_v58 = vsub.f32 2.0, %v6506_v17  ;;  %11538 = vrcp.f32 %v6485_v13  ;;  %v15937_v27 = vmul.f32 0.70710677, %v15926_v31  ;;  %v6522_v17 = vsub.f32 2.0, %v6510_v52 }
 0xca3   :  { %6833 = vmatmul.f32.vlgmr.msra.gmra.mxu2 %v6765_v23  ;;  %v6562_v43 = vmul.f32 %v6550_v29, %v15896_v47  ;;  %v6740_v20 = vsel %vm6716_vm11, %v6704_v22, %v6728_v33  ;;  %v6505_v44 = vmul.f32 %v11535_v19, %v6481_v9  ;;  %v6472_v2 = vmul.f32 0.3275911, %v6460_v36 }
 0xca4   :  { %v6652_v51 = vsub.f32 0.0, %v6460_v36  ;;  %v6752_v45 = vadd.f32 1.0, %v6740_v20  ;;  %v11537_v42 = vpop.eup %11536  ;;  %v6688_v9 = vmul.f32 1.442695, %v6666_v6  ;;  %v6678_v22 = vmul.f32 1.442695, %v6661_v38 }
 0xca5   :  { %v6574_v41 = vadd.f32 1.4214138, %v6562_v43  ;;  %v6517_v32 = vsub.f32 2.0, %v6505_v44  ;;  %v6484_v48 = vadd.f32 1.0, %v6472_v2  ;;  %v6539_v33 = vmul.f32 1.0614054, %v15898_v12 }
 0xca6   :  { %v6764_v16 = vmul.f32 %v6752_v45, %v15810_v53  ;;  %v6664_v54 = vmul.f32 %v6652_v51, %v6460_v36  ;;  %v15939_v53 = vmul.f32 %v11531_v8, %v6518_v58  ;;  %v6463_v10 = vand.u32 2147483647, %v15937_v27 }
 0xca7   :  { %v6586_v35 = vmul.f32 %v6574_v41, %v15896_v47  ;;  %v15934_v59 = vmul.f32 %v11535_v19, %v6517_v32  ;;  %11540 = vrcp.f32 %v6484_v48  ;;  %v6552_v19 = vadd.f32 -1.4531521, %v6540_v24 }
 0xca8   :  { %11542 = vpow2.f32 %v6680_v18  ;;  %6804 = vmatmul.f32.vlgmr.msra.gmra.mxu1 %v6764_v16  ;;  %v6684_v36 = vmul.f32 1.442695, %v6664_v54  ;;  %v6551_v43 = vadd.f32 -1.4531521, %v6539_v33  ;;  %v11539_v6 = vpop.eup %11538  ;;  %v6475_v8 = vmul.f32 0.3275911, %v6463_v10 }
 0xca9   :  { %v6598_v23 = vadd.f32 -0.28449672, %v6586_v35  ;;  %v6541_v29 = vmul.f32 1.0614054, %v15934_v59  ;;  %11544 = vpow2.f32 %v6688_v9  ;;  %v6655_v7 = vsub.f32 0.0, %v6463_v10 }
 0xcaa   :  { %11546 = vpow2.f32 %v6678_v22  ;;  %v6509_v2 = vmul.f32 %v11539_v6, %v6485_v13  ;;  %v6564_v51 = vmul.f32 %v6552_v19, %v15869_v28  ;;  %v6563_v45 = vmul.f32 %v6551_v43, %v15898_v12 }
 0xcab   :  { %v6610_v55 = vmul.f32 %v6598_v23, %v15896_v47  ;;  %v6553_v18 = vadd.f32 -1.4531521, %v6541_v29  ;;  %v6487_v32 = vadd.f32 1.0, %v6475_v8  ;;  %v6667_v16 = vmul.f32 %v6655_v7, %v6463_v10 }
 0xcac   :  { %v15954_v35 = vmul.f32 %v15917_v56, %v6522_v17  ;;  %v6653_v9 = vsub.f32 0.0, %v15915_v26  ;;  %v6576_v23 = vadd.f32 1.4214138, %v6564_v51  ;;  %v6521_v13 = vsub.f32 2.0, %v6509_v2 }
 0xcad   :  { %v6622_v38 = vadd.f32 0.2548296, %v6610_v55  ;;  %v11541_v20 = vpop.eup %11540  ;;  %v6565_v44 = vmul.f32 %v6553_v18, %v15934_v59  ;;  %11548 = vrcp.f32 %v6487_v32  ;;  %v15963_v17 = vmul.f32 1.442695, %v6667_v16 }
 0xcae   :  { %v15950_v41 = vpop.eup %11542  ;;  %v6508_v52 = vmul.f32 %v11541_v20, %v6484_v48  ;;  %11550 = vpow2.f32 %v6684_v36  ;;  %v6575_v48 = vadd.f32 1.4214138, %v6563_v45  ;;  %v6543_v18 = vmul.f32 1.0614054, %v15912_v46 }
 0xcaf   :  { %v6634_v58 = vmul.f32 %v6622_v38, %v15896_v47  ;;  %v6577_v54 = vadd.f32 1.4214138, %v6565_v44  ;;  %v15957_v24 = vpop.eup %11544  ;;  %v6588_v47 = vmul.f32 %v6576_v23, %v15869_v28  ;;  %v6542_v38 = vmul.f32 1.0614054, %v15939_v53 }
 0xcb0   :  { %v6520_v29 = vsub.f32 2.0, %v6508_v52  ;;  %v11547_v55 = vpop.eup %11546  ;;  %v6587_v43 = vmul.f32 %v6575_v48, %v15898_v12  ;;  %v15968_v7 = vmul.f32 %v11539_v6, %v6521_v13  ;;  %v6555_v44 = vadd.f32 -1.4531521, %v6543_v18 }
 0xcb1   :  { %v6694_v22 = vmul.f32 %v11537_v42, %v6634_v58  ;;  %v6589_v33 = vmul.f32 %v6577_v54, %v15934_v59  ;;  %v6600_v19 = vadd.f32 -0.28449672, %v6588_v47  ;;  %v6554_v45 = vadd.f32 -1.4531521, %v6542_v38 }
 0xcb2   :  { %v15961_v56 = vmul.f32 %v11541_v20, %v6520_v29  ;;  %v6599_v51 = vadd.f32 -0.28449672, %v6587_v43  ;;  %v6567_v54 = vmul.f32 %v6555_v44, %v15912_v46  ;;  %v6546_v23 = vmul.f32 1.0614054, %v15954_v35 }
 0xcb3   :  { %v6706_v10 = vsub.f32 1.0, %v6694_v22  ;;  %v6601_v42 = vadd.f32 -0.28449672, %v6589_v33  ;;  %v6612_v20 = vmul.f32 %v6600_v19, %v15869_v28  ;;  %v11549_v58 = vpop.eup %11548  ;;  %11552 = vpow2.f32 %v15963_v17 }
 0xcb4   :  { %v6544_v36 = vmul.f32 1.0614054, %v15961_v56  ;;  %v15977_v6 = vpop.eup %11550  ;;  %v6511_v29 = vmul.f32 %v11549_v58, %v6487_v32  ;;  %v6611_v25 = vmul.f32 %v6599_v51, %v15898_v12  ;;  %v6579_v48 = vadd.f32 1.4214138, %v6567_v54 }
 0xcb5   :  { %v6730_v8 = vsub.f32 0.0, %v6706_v10  ;;  %v6613_v2 = vmul.f32 %v6601_v42, %v15934_v59  ;;  %v6624_v33 = vadd.f32 0.2548296, %v6612_v20  ;;  %vm6727_vm7 = vcmp.ge.f32.partialorder %v15937_v27, 0.0 }
 0xcb6   :  { %v6556_v16 = vadd.f32 -1.4531521, %v6544_v36  ;;  %v6523_v19 = vsub.f32 2.0, %v6511_v29  ;;  %v6623_v38 = vadd.f32 0.2548296, %v6611_v25  ;;  %v6437_v27 = vmul.f32 0.5, %v15884_v1 }
 0xcb7   :  { %v6742_v52 = vsel %vm6718_vm12, %v6706_v10, %v6730_v8  ;;  %v6625_v13 = vadd.f32 0.2548296, %v6613_v2  ;;  %v6566_v10 = vmul.f32 %v6554_v45, %v15939_v53  ;;  %v6636_v43 = vmul.f32 %v6624_v33, %v15869_v28  ;;  %v10153_v1 = vld [vmem:[%s16707_s5 + $0x68] sm:$0xff] }
 0xcb8   :  { %v6754_v22 = vadd.f32 1.0, %v6742_v52  ;;  %v6568_v47 = vmul.f32 %v6556_v16, %v15961_v56  ;;  %v6591_v8 = vmul.f32 %v6579_v48, %v15912_v46  ;;  %v15989_v2 = vmul.f32 %v11549_v58, %v6523_v19 }
 0xcb9   :  { %v6637_v42 = vmul.f32 %v6625_v13, %v15934_v59  ;;  %v6578_v36 = vadd.f32 1.4214138, %v6566_v10  ;;  %v6696_v20 = vmul.f32 %v15875_v4, %v6636_v43  ;;  %v6635_v51 = vmul.f32 %v6623_v38, %v15898_v12 }
 0xcba   :  { %v6766_v18 = vmul.f32 %v6754_v22, %v15852_v0  ;;  %v6580_v32 = vadd.f32 1.4214138, %v6568_v47  ;;  %v6558_v0 = vadd.f32 -1.4531521, %v6546_v23  ;;  %v6603_v28 = vadd.f32 -0.28449672, %v6591_v8 }
 0xcbb   :  { %v6697_v44 = vmul.f32 %v11547_v55, %v6637_v42  ;;  %v6590_v45 = vmul.f32 %v6578_v36, %v15939_v53  ;;  %v6547_v16 = vmul.f32 1.0614054, %v15989_v2  ;;  %v6708_v54 = vsub.f32 1.0, %v6696_v20 }
 0xcbc   :  { %10148 = vmatmul.msk.f32.vlgmr.msra.gmra.mxu3 %vm643_vm2, %v6766_v18  ;;  %v6592_v59 = vmul.f32 %v6580_v32, %v15961_v56  ;;  %v6570_v55 = vmul.f32 %v6558_v0, %v15954_v35  ;;  %v6695_v22 = vmul.f32 %v15879_v15, %v6635_v51  ;;  %v6615_v4 = vmul.f32 %v6603_v28, %v15912_v46 }
 0xcbd   :  { %v6709_v52 = vsub.f32 1.0, %v6697_v44  ;;  %v6602_v13 = vadd.f32 -0.28449672, %v6590_v45  ;;  %v6559_v29 = vadd.f32 -1.4531521, %v6547_v16  ;;  %v6732_v33 = vsub.f32 0.0, %v6708_v54 }
 0xcbe   :  { %v6604_v58 = vadd.f32 -0.28449672, %v6592_v59  ;;  %v6582_v47 = vadd.f32 1.4214138, %v6570_v55  ;;  %v6707_v25 = vsub.f32 1.0, %v6695_v22 }
 0xcbf   :  { %v6733_v23 = vsub.f32 0.0, %v6709_v52  ;;  %v6627_v48 = vadd.f32 0.2548296, %v6615_v4  ;;  %v6614_v10 = vmul.f32 %v6602_v13, %v15939_v53  ;;  %v6571_v42 = vmul.f32 %v6559_v29, %v15989_v2 }
 0xcc0   :  { %v6616_v12 = vmul.f32 %v6604_v58, %v15961_v56  ;;  %v6744_v15 = vsel %vm6720_vm13, %v6708_v54, %v6732_v33  ;;  %v6594_v19 = vmul.f32 %v6582_v47, %v15954_v35  ;;  %v6731_v8 = vsub.f32 0.0, %v6707_v25 }
 0xcc1   :  { %v6745_v18 = vsel %vm6721_vm15, %v6709_v52, %v6733_v23  ;;  %v6756_v38 = vadd.f32 1.0, %v6744_v15  ;;  %v6583_v36 = vadd.f32 1.4214138, %v6571_v42  ;;  %v6639_v44 = vmul.f32 %v6627_v48, %v15912_v46 }
 0xcc2   :  { %v6757_v43 = vadd.f32 1.0, %v6745_v18  ;;  %v6628_v32 = vadd.f32 0.2548296, %v6616_v12  ;;  %v6626_v20 = vadd.f32 0.2548296, %v6614_v10  ;;  %v6743_v51 = vsel %vm6719_vm1, %v6707_v25, %v6731_v8  ;;  %v11553_v18 = vpop.eup %11552 }
 0xcc3   :  { %v6606_v0 = vadd.f32 -0.28449672, %v6594_v19  ;;  %v6768_v49 = vmul.f32 %v6756_v38, %v15813_v37  ;;  %v6595_v28 = vmul.f32 %v6583_v36, %v15989_v2  ;;  %v6755_v45 = vadd.f32 1.0, %v6743_v51 }
 0xcc4   :  { %v6769_v60 = vmul.f32 %v6757_v43, %v15932_v30  ;;  %v6640_v59 = vmul.f32 %v6628_v32, %v15961_v56  ;;  %v6699_v52 = vmul.f32 %v15892_v3, %v6639_v44  ;;  %v6638_v16 = vmul.f32 %v6626_v20, %v15939_v53 }
 0xcc5   :  { %6836 = vmatmul.f32.gmra.mxu2 %v6768_v49  ;;  %v6618_v30 = vmul.f32 %v6606_v0, %v15954_v35  ;;  %v6545_v37 = vmul.f32 1.0614054, %v15968_v7  ;;  %v6607_v50 = vadd.f32 -0.28449672, %v6595_v28  ;;  %v6767_v56 = vmul.f32 %v6755_v45, %v15845_v57 }
 0xcc6   :  { %v6700_v46 = vmul.f32 %v15977_v6, %v6640_v59  ;;  %10149 = vmatmul.msk.f32.gmra.mxu3 %vm643_vm2, %v6769_v60  ;;  %v6711_v54 = vsub.f32 1.0, %v6699_v52  ;;  %v6698_v55 = vmul.f32 %v15950_v41, %v6638_v16  ;;  %v6665_v6 = vmul.f32 %v6653_v9, %v15915_v26 }
 0xcc7   :  { %v6630_v53 = vadd.f32 0.2548296, %v6618_v30  ;;  %v6557_v58 = vadd.f32 -1.4531521, %v6545_v37  ;;  %v6619_v22 = vmul.f32 %v6607_v50, %v15989_v2  ;;  %6807 = vmatmul.f32.gmra.mxu1 %v6767_v56  ;;  %v6436_v23 = vmul.f32 0.5, %v15890_v5  ;;  %v10155_v56 = vld [vmem:[%s16707_s5 + $0x78] sm:$0xff] }
 0xcc8   :  { %v6712_v3 = vsub.f32 1.0, %v6700_v46  ;;  %v6735_v4 = vsub.f32 0.0, %v6711_v54  ;;  %v6710_v13 = vsub.f32 1.0, %v6698_v55  ;;  %v6686_v48 = vmul.f32 1.442695, %v6665_v6  ;;  %6932 = vmatpush.msra.mxu0 %v10155_v56 }
 0xcc9   :  { %v6642_v29 = vmul.f32 %v6630_v53, %v15954_v35  ;;  %v6569_v41 = vmul.f32 %v6557_v58, %v15968_v7  ;;  %v6631_v17 = vadd.f32 0.2548296, %v6619_v22  ;;  %v6438_v8 = vmul.f32 0.5, %v15838_v40  ;;  %v10152_v53 = vld [vmem:[%s16707_s5 + $0x60] sm:$0xff] }
 0xcca   :  { %v6736_v57 = vsub.f32 0.0, %v6712_v3  ;;  %v6747_v33 = vsel %vm6723_vm3, %v6711_v54, %v6735_v4  ;;  %v6734_v47 = vsub.f32 0.0, %v6710_v13  ;;  %11554 = vpow2.f32 %v6686_v48  ;;  %6933 = vmatpush.msra.mxu0 %v10154_v21  ;;  %v10267_v48 = vld [vmem:[#allocation2 + $0x3e8] sm:$0xf0]  ;;  %v11132_v56 = vld [vmem:[#allocation2 + $0x31c] sm:$0xf0] }
 0xccb   :  { %v6759_v9 = vadd.f32 1.0, %v6747_v33  ;;  %v6702_v12 = vmul.f32 %v15957_v24, %v6642_v29  ;;  %v6581_v25 = vadd.f32 1.4214138, %v6569_v41  ;;  %v6643_v5 = vmul.f32 %v6631_v17, %v15989_v2  ;;  %v11128_v21 = vld [vmem:[#allocation2 + $0x304] sm:$0xf] }
 0xccc   :  { %v6748_v26 = vsel %vm6724_vm5, %v6712_v3, %v6736_v57  ;;  %v6746_v35 = vsel %vm6722_vm4, %v6710_v13, %v6734_v47  ;;  %v6439_v60 = vmul.f32 0.5, %v15926_v31  ;;  %6934 = vmatpush.msra.mxu0 %v10153_v1  ;;  %v10163_v1 = vld [vmem:[#allocation2 + $0x320] sm:$0xf0] }
 0xccd   :  { %v6760_v10 = vadd.f32 1.0, %v6748_v26  ;;  %v6771_v61 = vmul.f32 %v6759_v9, %v15848_v62  ;;  %v6758_v42 = vadd.f32 1.0, %v6746_v35  ;;  %v6714_v15 = vsub.f32 1.0, %v6702_v12  ;;  %v10265_v26 = vld [vmem:[#allocation2 + $0x3c8] sm:$0xf] }
 0xcce   :  { %v6593_v39 = vmul.f32 %v6581_v25, %v15968_v7  ;;  %v6703_v43 = vmul.f32 %v11553_v18, %v6643_v5  ;;  %6935 = vmatpush.msra.mxu0 %v10152_v53  ;;  %v11157_v9 = vld [vmem:[#allocation2 + $0x3e4] sm:$0xf0]  ;;  %v11153_v12 = vld [vmem:[#allocation2 + $0x3cc] sm:$0xf]  ;;  %v10259_v5 = vld [vmem:[#allocation2 + $0x3e0] sm:$0xf0] }
 0xccf   :  { %v6772_v19 = vmul.f32 %v6760_v10, %v6436_v23  ;;  %6839 = vmatmul.f32.gmra.mxu2 %v6771_v61  ;;  %v6770_v24 = vmul.f32 %v6758_v42, %v15854_v34  ;;  %v6738_v32 = vsub.f32 0.0, %v6714_v15  ;;  %v10266_v25 = vor.u32 %v11157_v9, %v10265_v26  ;;  %v11152_v10 = vld [vmem:[#allocation2 + $0x3c4] sm:$0xf]  ;;  %v10233_v61 = vld [vmem:[#allocation2 + $0x388] sm:$0xf] }
 0xcd0   :  { %v6605_v38 = vadd.f32 -0.28449672, %v6593_v39  ;;  %v6715_v2 = vsub.f32 1.0, %v6703_v43  ;;  %v11555_v49 = vpop.eup %11554  ;;  %v10270_v35 = vor.u32 %v11153_v12, %v10267_v48  ;;  %v10262_v18 = vor.u32 %v11152_v10, %v10259_v5  ;;  %v11149_v42 = vld [vmem:[#allocation2 + $0x3a4] sm:$0xf0] }
 0xcd1   :  { %10150 = vmatmul.msk.f32.gmra.mxu3 %vm643_vm2, %v6772_v19  ;;  %6810 = vmatmul.f32.gmra.mxu1 %v6770_v24  ;;  %v6750_v11 = vsel %vm6726_vm6, %v6714_v15, %v6738_v32  ;;  %v11145_v15 = vld [vmem:[#allocation2 + $0x38c] sm:$0xf]  ;;  %v10234_v39 = vor.u32 %v11149_v42, %v10233_v61  ;;  %v11144_v43 = vld [vmem:[#allocation2 + $0x384] sm:$0xf]  ;;  %v11159_v53 = vld [vmem:[#allocation2 + $0x3f4] sm:$0xf0] }
 0xcd2   :  { %v6617_v62 = vmul.f32 %v6605_v38, %v15968_v7  ;;  %v6739_v36 = vsub.f32 0.0, %v6715_v2  ;;  %v6762_v44 = vadd.f32 1.0, %v6750_v11  ;;  %7186 = vmatpush.bf16.msrb.mxu2 %v10266_v25  ;;  %v10235_v19 = vld [vmem:[#allocation2 + $0x3a8] sm:$0xf0]  ;;  %v10227_v24 = vld [vmem:[#allocation2 + $0x3a0] sm:$0xf0]  ;;  %7199 = vmatpush.bf16.msrb.mxu3 %v10270_v35 }
 0xcd3   :  { %7173 = vmatpush.bf16.msrb.mxu1 %v10262_v18  ;;  %v10238_v32 = vor.u32 %v11145_v15, %v10235_v19  ;;  %v10230_v38 = vor.u32 %v11144_v43, %v10227_v24  ;;  %v11141_v11 = vld [vmem:[#allocation2 + $0x364] sm:$0xf0]  ;;  %v10241_v26 = vld [vmem:[#allocation2 + $0x390] sm:$0xf]  ;;  %v11146_v48 = vld [vmem:[#allocation2 + $0x394] sm:$0xf] }
 0xcd4   :  { %v6629_v20 = vadd.f32 0.2548296, %v6617_v62  ;;  %v6751_v34 = vsel %vm6727_vm7, %v6715_v2, %v6739_v36  ;;  %v6774_v0 = vmul.f32 %v6762_v44, %v6438_v8  ;;  %v10201_v2 = vld [vmem:[#allocation2 + $0x348] sm:$0xf]  ;;  %v10257_v62 = vld [vmem:[#allocation2 + $0x3c0] sm:$0xf] }
 0xcd5   :  { %v6763_v14 = vadd.f32 1.0, %v6751_v34  ;;  %v11156_v8 = vld [vmem:[#allocation2 + $0x3dc] sm:$0xf0]  ;;  %v11137_v36 = vld [vmem:[#allocation2 + $0x34c] sm:$0xf] }
 0xcd6   :  { %v6641_v59 = vmul.f32 %v6629_v20, %v15968_v7  ;;  %v10203_v44 = vld [vmem:[#allocation2 + $0x368] sm:$0xf0]  ;;  %v10258_v20 = vor.u32 %v11156_v8, %v10257_v62  ;;  %v10225_v34 = vld [vmem:[#allocation2 + $0x380] sm:$0xf]  ;;  %7187 = vmatpush.bf16.msrb.mxu2 %v10234_v39  ;;  %7200 = vmatpush.bf16.msrb.mxu3 %v10238_v32  ;;  %v11150_v9 = vld [vmem:[#allocation2 + $0x3ac] sm:$0xf0] }
 0xcd7   :  { %v6775_v51 = vmul.f32 %v6763_v14, %v6439_v60  ;;  %6842 = vmatmul.f32.gmra.mxu2 %v6774_v0  ;;  %v11148_v0 = vld [vmem:[#allocation2 + $0x39c] sm:$0xf0]  ;;  %v11136_v60 = vld [vmem:[#allocation2 + $0x344] sm:$0xf]  ;;  %v10202_v14 = vor.u32 %v11141_v11, %v10201_v2  ;;  %7174 = vmatpush.bf16.msrb.mxu1 %v10230_v38  ;;  %v10242_v25 = vor.u32 %v11150_v9, %v10241_v26  ;;  %v10243_v10 = vld [vmem:[#allocation2 + $0x3b0] sm:$0xf0] }
 0xcd8   :  { %v6701_v28 = vmul.f32 %v11555_v49, %v6641_v59  ;;  %v10195_v59 = vld [vmem:[#allocation2 + $0x360] sm:$0xf0]  ;;  %v10206_v49 = vor.u32 %v11137_v36, %v10203_v44  ;;  %7160 = vmatpush.bf16.msrb.mxu0 %v10258_v20  ;;  %v11147_v5 = vld [vmem:[#allocation2 + $0x39c] sm:$0xf]  ;;  %v10246_v35 = vor.u32 %v11146_v48, %v10243_v10  ;;  %v10217_v61 = vld [vmem:[#allocation2 + $0x358] sm:$0xf] }
 0xcd9   :  { %10151 = vmatmul.msk.f32.gmra.mxu3 %vm643_vm2, %v6775_v51  ;;  %v10198_v51 = vor.u32 %v11136_v60, %v10195_v59  ;;  %v10251_v18 = vld [vmem:[#allocation2 + $0x3b8] sm:$0xf0]  ;;  %v11143_v42 = vld [vmem:[#allocation2 + $0x374] sm:$0xf0]  ;;  %v10209_v39 = vld [vmem:[#allocation2 + $0x350] sm:$0xf] }
 0xcda   :  { %v6713_v45 = vsub.f32 1.0, %v6701_v28  ;;  %v10169_v28 = vld [vmem:[#allocation2 + $0x308] sm:$0xf]  ;;  %7188 = vmatpush.bf16.msrb.mxu2 %v10202_v14  ;;  %7201 = vmatpush.bf16.msrb.mxu3 %v10206_v49  ;;  %v10254_v15 = vor.u32 %v11147_v5, %v10251_v18  ;;  %v11142_v19 = vld [vmem:[#allocation2 + $0x36c] sm:$0xf0]  ;;  %v10218_v24 = vor.u32 %v11143_v42, %v10217_v61 }
 0xcdb   :  { %7175 = vmatpush.bf16.msrb.mxu1 %v10198_v51  ;;  %v11138_v43 = vld [vmem:[#allocation2 + $0x354] sm:$0xf]  ;;  %v11139_v38 = vld [vmem:[#allocation2 + $0x35c] sm:$0xf]  ;;  %v10210_v11 = vor.u32 %v11142_v19, %v10209_v39  ;;  %v10185_v8 = vld [vmem:[#allocation2 + $0x318] sm:$0xf] }
 0xcdc   :  { %v6737_v40 = vsub.f32 0.0, %v6713_v45  ;;  %v10211_v32 = vld [vmem:[#allocation2 + $0x370] sm:$0xf0]  ;;  %v10219_v2 = vld [vmem:[#allocation2 + $0x378] sm:$0xf0] }
 0xcdd   :  { %v10214_v62 = vor.u32 %v11138_v43, %v10211_v32  ;;  %v11135_v36 = vld [vmem:[#allocation2 + $0x334] sm:$0xf0]  ;;  %v10177_v44 = vld [vmem:[#allocation2 + $0x310] sm:$0xf]  ;;  %v10222_v20 = vor.u32 %v11139_v38, %v10219_v2  ;;  %v10179_v60 = vld [vmem:[#allocation2 + $0x330] sm:$0xf0] }
 0xcde   :  { %v6749_v52 = vsel %vm6725_vm8, %v6713_v45, %v6737_v40  ;;  %v11133_v45 = vld [vmem:[#allocation2 + $0x324] sm:$0xf0]  ;;  %v10226_v40 = vor.u32 %v11148_v0, %v10225_v34  ;;  %v11134_v34 = vld [vmem:[#allocation2 + $0x32c] sm:$0xf0]  ;;  %v11130_v0 = vld [vmem:[#allocation2 + $0x314] sm:$0xf]  ;;  %v10186_v49 = vor.u32 %v11135_v36, %v10185_v8 }
 0xcdf   :  { %v6761_v16 = vadd.f32 1.0, %v6749_v52  ;;  %v11129_v52 = vld [vmem:[#allocation2 + $0x30c] sm:$0xf]  ;;  %v11131_v14 = vld [vmem:[#allocation2 + $0x31c] sm:$0xf]  ;;  %v10178_v51 = vor.u32 %v11134_v34, %v10177_v44 }
 0xce0   :  { %7161 = vmatpush.bf16.msrb.mxu0 %v10226_v40  ;;  %v10187_v59 = vld [vmem:[#allocation2 + $0x338] sm:$0xf0]  ;;  %v11267_v40 = vld [vmem:[%s16708_s6 + $0x3] ss:$0 sm:$0xff] }
 0xce1   :  { %v6773_v46 = vmul.f32 %v6761_v16, %v6437_v27  ;;  %v10171_v27 = vld [vmem:[#allocation2 + $0x328] sm:$0xf0]  ;;  %v10193_v16 = vld [vmem:[#allocation2 + $0x340] sm:$0xf] }
 0xce3   :  { %6813 = vmatmul.f32.gmra.mxu1 %v6773_v46  ;;  %v11140_v46 = vld [vmem:[#allocation2 + $0x35c] sm:$0xf0] }
 0xd25   :  { %v6805_v31 = vpop.f32.mrf.mxu1 }
 0xd26   :  { %v6834_v30 = vpop.f32.mrf.mxu2 }
 0xd27   :  { %v6835_v37 = vadd.f32 %v6834_v30, %v6805_v31  ;;  %v10170_v31 = vor.u32 %v11133_v45, %v10169_v28  ;;  %v10174_v30 = vor.u32 %v11129_v52, %v10171_v27  ;;  %v10182_v28 = vor.u32 %v11130_v0, %v10179_v60 }
 0xd28   :  { %v10190_v45 = vor.u32 %v11131_v14, %v10187_v59 }
 0xd29   :  { %7189 = vmatpush.bf16.msrb.mxu2 %v10170_v31  ;;  %7202 = vmatpush.bf16.msrb.mxu3 %v10174_v30 }
 0xd3f   :  { %v6863_v7 = vpop.f32.mrf.mxu3 }
 0xd40   :  { %v6864_v50 = vadd.f32 %v6863_v7, %v6835_v37  ;;  %v10194_v37 = vor.u32 %v11140_v46, %v10193_v16  ;;  %v16080_v46 = vld [vmem:[%s16710_s8 + $0x18] sm:$0xff] }
 0xd41   :  { %v6977_v31 = vperm.slane %v16080_v46, 0  ;;  %v6978_v30 = vperm.slane %v16080_v46, 1  ;;  %v6983_v59 = vperm.slane %v16080_v46, 6 }
 0xd42   :  { %6875 = vxpose.xlu0.b32.start [1/4] (short) (narrow) %v6864_v50, 8  ;;  %7162 = vmatpush.bf16.msrb.mxu0 %v10194_v37  ;;  %v10161_v50 = vld [vmem:[#allocation2 + $0x300] sm:$0xf] }
 0xd44   :  { %v6808_v54 = vpop.f32.mrf.mxu1 }
 0xd48   :  { %v6837_v55 = vpop.f32.mrf.mxu2 }
 0xd49   :  { %v6866_v3 = vpop.f32.mrf.mxu3  ;;  %v6838_v58 = vadd.f32 %v6837_v55, %v6808_v54  ;;  %v10162_v54 = vor.u32 %v11132_v56, %v10161_v50  ;;  %v10166_v55 = vor.u32 %v11128_v21, %v10163_v1  ;;  %v6979_v1 = vperm.slane %v16080_v46, 2 }
 0xd4b   :  { %v6867_v6 = vadd.f32 %v6866_v3, %v6838_v58  ;;  %7163 = vmatpush.bf16.msrb.mxu0 %v10162_v54  ;;  %v10281_v3 = vld [vmem:[#allocation2 + $0x3d8] sm:$0xf]  ;;  %v10273_v58 = vld [vmem:[#allocation2 + $0x3d0] sm:$0xf]  ;;  %7176 = vmatpush.bf16.msrb.mxu1 %v10166_v55  ;;  %v6980_v55 = vperm.slane %v16080_v46, 3 }
 0xd4d   :  { %6876 = vxpose.xlu0.b32.cont [2/4] (short) (narrow) %v6867_v6, 8  ;;  %v10282_v6 = vor.u32 %v11159_v53, %v10281_v3 }
 0xd4e   :  { %v6811_v22 = vpop.f32.mrf.mxu1 }
 0xd4f   :  { %7238 = vmatpush.bf16.msra.mxu2 %v10282_v6 }
 0xd52   :  { %v6840_v4 = vpop.f32.mrf.mxu2 }
 0xd53   :  { %v6841_v13 = vadd.f32 %v6840_v4, %v6811_v22  ;;  %v11158_v22 = vld [vmem:[#allocation2 + $0x3ec] sm:$0xf0]  ;;  %v11154_v4 = vld [vmem:[#allocation2 + $0x3d4] sm:$0xf] }
 0xd54   :  { %v6869_v23 = vpop.f32.mrf.mxu3 }
 0xd55   :  { %v6870_v57 = vadd.f32 %v6869_v23, %v6841_v13  ;;  %v10275_v13 = vld [vmem:[#allocation2 + $0x3f0] sm:$0xf0]  ;;  %v10274_v23 = vor.u32 %v11158_v22, %v10273_v58 }
 0xd57   :  { %6877 = vxpose.xlu0.b32.cont [3/4] (short) (narrow) %v6870_v57, 8  ;;  %v10278_v57 = vor.u32 %v11154_v4, %v10275_v13 }
 0xd59   :  { %7225 = vmatpush.bf16.msra.mxu1 %v10278_v57 }
 0xd5a   :  { %v6843_v29 = vpop.f32.mrf.mxu2 }
 0xd5c   :  { %v6872_v17 = vpop.f32.mrf.mxu3 }
 0xd5d   :  { %7226 = vmatpush.bf16.msra.mxu1 %v10246_v35 }
 0xd60   :  { %v6814_v41 = vpop.f32.mrf.mxu1 }
 0xd61   :  { %v6844_v33 = vadd.f32 %v6843_v29, %v6814_v41  ;;  %v11155_v29 = vld [vmem:[#allocation2 + $0x3dc] sm:$0xf]  ;;  %7227 = vmatpush.bf16.msra.mxu1 %v10214_v62 }
 0xd62   :  { %v10283_v41 = vld [vmem:[#allocation2 + $0x3f8] sm:$0xf0] }
 0xd63   :  { %v6873_v47 = vadd.f32 %v6872_v17, %v6844_v33  ;;  %v10249_v17 = vld [vmem:[#allocation2 + $0x398] sm:$0xf]  ;;  %v10286_v33 = vor.u32 %v11155_v29, %v10283_v41 }
 0xd65   :  { %6878 = vxpose.xlu0.b32.end [4/4] (short) (narrow) %v6873_v47, 8  ;;  %v11151_v47 = vld [vmem:[#allocation2 + $0x3b4] sm:$0xf0]  ;;  %7251 = vmatpush.bf16.msra.mxu3 %v10286_v33 }
 0xd66   :  { %v10250_v12 = vor.u32 %v11151_v47, %v10249_v17  ;;  %7228 = vmatpush.bf16.msra.mxu1 %v10182_v28 }
 0xd68   :  { %7239 = vmatpush.bf16.msra.mxu2 %v10250_v12  ;;  %v6981_v12 = vperm.slane %v16080_v46, 4 }
 0xd69   :  { %7252 = vmatpush.bf16.msra.mxu3 %v10254_v15 }
 0xd6c   :  { %7240 = vmatpush.bf16.msra.mxu2 %v10218_v24 }
 0xd6d   :  { %7253 = vmatpush.bf16.msra.mxu3 %v10222_v20 }
 0xd70   :  { %7241 = vmatpush.bf16.msra.mxu2 %v10186_v49 }
 0xd71   :  { %7254 = vmatpush.bf16.msra.mxu3 %v10190_v45 }
 0xdf1   :  { %v6891_v7 = vpop.trf.xlu0 }
 0xdf2   :  { %10157 = vmatmul.msk.f32.vlgmr.msra.gmra.mxu0 %vm195_vm0, %v6891_v7 }
 0xdf3   :  { %7212 = vmatpush.bf16.msra.mxu0 %v10274_v23 }
 0xdf7   :  { %7213 = vmatpush.bf16.msra.mxu0 %v10242_v25  ;;  %v6982_v25 = vperm.slane %v16080_v46, 5 }
 0xdfb   :  { %7214 = vmatpush.bf16.msra.mxu0 %v10210_v11 }
 0xdff   :  { %7215 = vmatpush.bf16.msra.mxu0 %v10178_v51 }
 0xe6f   :  { %v6937_v52 = vpop.f32.mrf.mxu0 }
 0xe70   :  { %v6938_v27 = vadd.f32 %v11267_v40, %v6937_v52  ;;  %v6984_v40 = vperm.slane %v16080_v46, 7 }
 0xe72   :  { %v6940_v16 = vpack.c.bf16 %v6938_v27, %v6938_v27 }
 0xe74   :  { %10287 = vmatmul.msk.bf16.vlgmr.msrb.gmra.mxu0 %vm1017_vm14, %v6940_v16  ;;  %10288 = vmatmul.msk.bf16.vlgmr.msrb.gmra.mxu1 %vm1017_vm14, %v6940_v16 }
 0xe75   :  { %10289 = vmatmul.msk.bf16.vlgmr.msrb.gmra.mxu2 %vm1017_vm14, %v6940_v16  ;;  %10290 = vmatmul.msk.bf16.vlgmr.msrb.gmra.mxu3 %vm1017_vm14, %v6940_v16 }
 0xe84   :  { %10291 = vmatmul.msk.bf16.vlgmr.msra.gmra.mxu0 %vm1017_vm14, %v6940_v16  ;;  %10292 = vmatmul.msk.bf16.vlgmr.msra.gmra.mxu1 %vm1017_vm14, %v6940_v16 }
 0xe85   :  { %10293 = vmatmul.msk.bf16.vlgmr.msra.gmra.mxu2 %vm1017_vm14, %v6940_v16  ;;  %10294 = vmatmul.msk.bf16.vlgmr.msra.gmra.mxu3 %vm1017_vm14, %v6940_v16 }
 0xef1   :  { %v7165_v37 = vpop.f32.mrf.mxu0  ;;  %v7178_v7 = vpop.f32.mrf.mxu1 }
 0xef2   :  { %v7166_v50 = vadd.f32 %v7165_v37, %v6977_v31  ;;  %v7179_v56 = vadd.f32 %v7178_v7, %v6978_v30 }
 0xef4   :  { %v16084_v21 = vmul.f32 0.70710677, %v7166_v50  ;;  %v16086_v54 = vmul.f32 0.70710677, %v7179_v56  ;;  %v16116_v44 = vmul.f32 0.5, %v7166_v50  ;;  %v16123_v60 = vmul.f32 0.5, %v7179_v56 }
 0xef6   :  { %v7276_v3 = vand.u32 2147483647, %v16084_v21  ;;  %v7277_v53 = vand.u32 2147483647, %v16086_v54  ;;  %vm7452_vm0 = vcmp.ge.f32.partialorder %v16084_v21, 0.0  ;;  %vm7453_vm11 = vcmp.ge.f32.partialorder %v16086_v54, 0.0 }
 0xef7   :  { %v10442_v21 = vld [vmem:[%s16711_s9 + $0x6a0] sm:$0xf]  ;;  %v11189_v54 = vld [vmem:[%s16711_s9 + $0x6ec] sm:$0xf] }
 0xef8   :  { %v7284_v58 = vmul.f32 0.3275911, %v7276_v3  ;;  %v7285_v6 = vmul.f32 0.3275911, %v7277_v53  ;;  %v7191_v22 = vpop.f32.mrf.mxu2  ;;  %v7204_v4 = vpop.f32.mrf.mxu3  ;;  %v7404_v18 = vsub.f32 0.0, %v7276_v3  ;;  %v7405_v8 = vsub.f32 0.0, %v7277_v53 }
 0xef9   :  { %v7192_v13 = vadd.f32 %v7191_v22, %v6979_v1  ;;  %v16092_v23 = vadd.f32 %v7204_v4, %v6980_v55  ;;  %v7167_v57 = vpop.f32.mrf.mxu0  ;;  %v7180_v29 = vpop.f32.mrf.mxu1 }
 0xefa   :  { %v7292_v41 = vadd.f32 1.0, %v7284_v58  ;;  %v7293_v17 = vadd.f32 1.0, %v7285_v6  ;;  %v7412_v62 = vmul.f32 %v7404_v18, %v7276_v3  ;;  %v7413_v30 = vmul.f32 %v7405_v8, %v7277_v53  ;;  %v11190_v18 = vld [vmem:[%s16711_s9 + $0x6ec] sm:$0xf0] }
 0xefb   :  { %v16094_v33 = vmul.f32 0.70710677, %v7192_v13  ;;  %v16097_v47 = vmul.f32 0.70710677, %v16092_v23  ;;  %v16131_v51 = vmul.f32 0.5, %v7192_v13 }
 0xefc   :  { %11556 = vrcp.f32 %v7292_v41  ;;  %v7420_v31 = vmul.f32 1.442695, %v7412_v62 }
 0xefd   :  { %11558 = vrcp.f32 %v7293_v17  ;;  %v16100_v26 = vand.u32 2147483647, %v16094_v33  ;;  %v16103_v9 = vand.u32 2147483647, %v16097_v47  ;;  %vm7454_vm2 = vcmp.ge.f32.partialorder %v16094_v33, 0.0 }
 0xefe   :  { %vm7455_vm9 = vcmp.ge.f32.partialorder %v16097_v47, 0.0 }
 0xeff   :  { %v7286_v48 = vmul.f32 0.3275911, %v16100_v26  ;;  %v7287_v10 = vmul.f32 0.3275911, %v16103_v9  ;;  %v7406_v3 = vsub.f32 0.0, %v16100_v26  ;;  %v7407_v4 = vsub.f32 0.0, %v16103_v9 }
 0xf00   :  { %v7193_v5 = vpop.f32.mrf.mxu2  ;;  %v7206_v35 = vpop.f32.mrf.mxu3 }
 0xf01   :  { %v7294_v61 = vadd.f32 1.0, %v7286_v48  ;;  %v7295_v42 = vadd.f32 1.0, %v7287_v10  ;;  %v7217_v15 = vpop.f32.mrf.mxu0  ;;  %v7230_v39 = vpop.f32.mrf.mxu1  ;;  %v7414_v5 = vmul.f32 %v7406_v3, %v16100_v26  ;;  %v10474_v35 = vld [vmem:[%s16711_s9 + $0x6e0] sm:$0xf]  ;;  %v11222_v26 = vld [vmem:[%s16711_s9 + $0x7ec] sm:$0xf0] }
 0xf02   :  { %v11557_v19 = vpop.eup %11556  ;;  %v16109_v43 = vadd.f32 %v7217_v15, %v6981_v12  ;;  %v16111_v24 = vadd.f32 %v7230_v39, %v6982_v25  ;;  %v7422_v12 = vmul.f32 1.442695, %v7413_v30  ;;  %v7415_v15 = vmul.f32 %v7407_v4, %v16103_v9  ;;  %v10602_v39 = vld [vmem:[%s16711_s9 + $0x7e0] sm:$0xf] }
 0xf03   :  { %v11559_v32 = vpop.eup %11558  ;;  %v7308_v38 = vmul.f32 %v11557_v19, %v7292_v41  ;;  %11560 = vrcp.f32 %v7294_v61  ;;  %v10475_v8 = vor.u32 %v11190_v18, %v10474_v35 }
 0xf04   :  { %v7309_v2 = vmul.f32 %v11559_v32, %v7293_v17  ;;  %11562 = vrcp.f32 %v7295_v42  ;;  %v16114_v36 = vmul.f32 0.70710677, %v16109_v43  ;;  %v16119_v34 = vmul.f32 0.70710677, %v16111_v24 }
 0xf05   :  { %v7316_v11 = vsub.f32 2.0, %v7308_v38  ;;  %7898 = vmatpush.bf16.msrb.mxu0 %v10475_v8 }
 0xf06   :  { %v7317_v20 = vsub.f32 2.0, %v7309_v2  ;;  %v16126_v14 = vand.u32 2147483647, %v16114_v36  ;;  %v16134_v28 = vand.u32 2147483647, %v16119_v34  ;;  %vm7456_vm14 = vcmp.ge.f32.partialorder %v16114_v36, 0.0 }
 0xf07   :  { %v16121_v0 = vmul.f32 %v11557_v19, %v7316_v11  ;;  %v10540_v36 = vld [vmem:[%s16711_s9 + $0x770] sm:$0xf0]  ;;  %vm7457_vm12 = vcmp.ge.f32.partialorder %v16119_v34, 0.0 }
 0xf08   :  { %v16129_v49 = vmul.f32 %v11559_v32, %v7317_v20  ;;  %v7243_v45 = vpop.f32.mrf.mxu2  ;;  %v16137_v52 = vpop.f32.mrf.mxu3  ;;  %v7288_v37 = vmul.f32 0.3275911, %v16126_v14  ;;  %v7289_v58 = vmul.f32 0.3275911, %v16134_v28  ;;  %v7408_v35 = vsub.f32 0.0, %v16126_v14 }
 0xf09   :  { %v11561_v27 = vpop.eup %11560  ;;  %v7332_v16 = vmul.f32 1.0614054, %v16121_v0  ;;  %v7219_v7 = vpop.f32.mrf.mxu0  ;;  %v16145_v41 = vadd.f32 %v7243_v45, %v6983_v59  ;;  %v7424_v45 = vmul.f32 1.442695, %v7414_v5 }
 0xf0a   :  { %v7232_v50 = vpop.f32.mrf.mxu1  ;;  %v11563_v56 = vpop.eup %11562  ;;  %v7333_v1 = vmul.f32 1.0614054, %v16129_v49  ;;  %v7310_v55 = vmul.f32 %v11561_v27, %v7294_v61  ;;  %v7296_v13 = vadd.f32 1.0, %v7288_v37  ;;  %v7297_v53 = vadd.f32 1.0, %v7289_v58 }
 0xf0b   :  { %v7340_v6 = vadd.f32 -1.4531521, %v7332_v16  ;;  %v7311_v22 = vmul.f32 %v11563_v56, %v7295_v42  ;;  %v16169_v38 = vmul.f32 0.70710677, %v16145_v41  ;;  %v7426_v37 = vmul.f32 1.442695, %v7415_v15 }
 0xf0c   :  { %v7341_v57 = vadd.f32 -1.4531521, %v7333_v1  ;;  %v7318_v29 = vsub.f32 2.0, %v7310_v55  ;;  %11564 = vrcp.f32 %v7296_v13  ;;  %v10603_v7 = vor.u32 %v11222_v26, %v10602_v39 }
 0xf0d   :  { %v7348_v17 = vmul.f32 %v7340_v6, %v16121_v0  ;;  %v7319_v25 = vsub.f32 2.0, %v7311_v22  ;;  %11566 = vrcp.f32 %v7297_v53  ;;  %v16182_v22 = vmul.f32 0.5, %v16109_v43 }
 0xf0e   :  { %v7349_v48 = vmul.f32 %v7341_v57, %v16129_v49  ;;  %v16149_v10 = vmul.f32 %v11561_v27, %v7318_v29  ;;  %11568 = vpow2.f32 %v7420_v31  ;;  %v16175_v27 = vand.u32 2147483647, %v16169_v38  ;;  %7911 = vmatpush.bf16.msrb.mxu1 %v10603_v7 }
 0xf0f   :  { %v7356_v61 = vadd.f32 1.4214138, %v7348_v17  ;;  %v16158_v42 = vmul.f32 %v11563_v56, %v7319_v25  ;;  %11570 = vpow2.f32 %v7422_v12  ;;  %v16187_v25 = vadd.f32 %v16137_v52, %v6984_v40 }
 0xf10   :  { %v7357_v19 = vadd.f32 1.4214138, %v7349_v48  ;;  %v7334_v32 = vmul.f32 1.0614054, %v16149_v10  ;;  %v7245_v2 = vpop.f32.mrf.mxu2  ;;  %v7258_v11 = vpop.f32.mrf.mxu3  ;;  %v7290_v3 = vmul.f32 0.3275911, %v16175_v27 }
 0xf11   :  { %v7364_v62 = vmul.f32 %v7356_v61, %v16121_v0  ;;  %v7335_v9 = vmul.f32 1.0614054, %v16158_v42  ;;  %v7409_v40 = vsub.f32 0.0, %v16134_v28  ;;  %v7416_v2 = vmul.f32 %v7408_v35, %v16126_v14 }
 0xf12   :  { %v7365_v20 = vmul.f32 %v7357_v19, %v16129_v49  ;;  %v7342_v59 = vadd.f32 -1.4531521, %v7334_v32  ;;  %v11565_v16 = vpop.eup %11564  ;;  %v7298_v12 = vadd.f32 1.0, %v7290_v3  ;;  %v16201_v19 = vmul.f32 0.70710677, %v16187_v25 }
 0xf13   :  { %v7372_v31 = vadd.f32 -0.28449672, %v7364_v62  ;;  %v7343_v30 = vadd.f32 -1.4531521, %v7335_v9  ;;  %v11567_v50 = vpop.eup %11566  ;;  %v7312_v55 = vmul.f32 %v11565_v16, %v7296_v13  ;;  %vm7458_vm10 = vcmp.ge.f32.partialorder %v16169_v38, 0.0 }
 0xf14   :  { %v7373_v56 = vadd.f32 -0.28449672, %v7365_v20  ;;  %v7350_v1 = vmul.f32 %v7342_v59, %v16149_v10  ;;  %v7313_v4 = vmul.f32 %v11567_v50, %v7297_v53  ;;  %v11569_v57 = vpop.eup %11568  ;;  %11572 = vrcp.f32 %v7298_v12 }
 0xf15   :  { %v7380_v58 = vmul.f32 %v7372_v31, %v16121_v0  ;;  %v7351_v6 = vmul.f32 %v7343_v30, %v16158_v42  ;;  %v7320_v17 = vsub.f32 2.0, %v7312_v55  ;;  %v11571_v13 = vpop.eup %11570  ;;  %11574 = vpow2.f32 %v7424_v45 }
 0xf16   :  { %v7358_v29 = vadd.f32 1.4214138, %v7350_v1  ;;  %v7321_v18 = vsub.f32 2.0, %v7313_v4  ;;  %v7381_v43 = vmul.f32 %v7373_v56, %v16129_v49  ;;  %11576 = vpow2.f32 %v7426_v37 }
 0xf17   :  { %v7388_v48 = vadd.f32 0.2548296, %v7380_v58  ;;  %v7359_v5 = vadd.f32 1.4214138, %v7351_v6  ;;  %v16192_v61 = vmul.f32 %v11565_v16, %v7320_v17  ;;  %v16207_v8 = vand.u32 2147483647, %v16201_v19 }
 0xf18   :  { %v7366_v53 = vmul.f32 %v7358_v29, %v16149_v10  ;;  %v16196_v39 = vmul.f32 %v11567_v50, %v7321_v18  ;;  %v7417_v16 = vmul.f32 %v7409_v40, %v16134_v28  ;;  %v7410_v37 = vsub.f32 0.0, %v16175_v27 }
 0xf19   :  { %v7396_v15 = vmul.f32 %v7388_v48, %v16121_v0  ;;  %v7367_v46 = vmul.f32 %v7359_v5, %v16158_v42  ;;  %v7336_v26 = vmul.f32 1.0614054, %v16192_v61  ;;  %v7389_v0 = vadd.f32 0.2548296, %v7381_v43  ;;  %v10476_v43 = vld [vmem:[%s16711_s9 + $0x6f0] sm:$0xf0] }
 0xf1a   :  { %v7374_v52 = vadd.f32 -0.28449672, %v7366_v53  ;;  %v7337_v11 = vmul.f32 1.0614054, %v16196_v39  ;;  %v11573_v31 = vpop.eup %11572  ;;  %v7291_v7 = vmul.f32 0.3275911, %v16207_v8 }
 0xf1b   :  { %v7375_v32 = vadd.f32 -0.28449672, %v7367_v46  ;;  %v7344_v9 = vadd.f32 -1.4531521, %v7336_v26  ;;  %v16209_v20 = vmul.f32 %v11569_v57, %v7396_v15  ;;  %v7428_v56 = vmul.f32 1.442695, %v7416_v2  ;;  %v11575_v3 = vpop.eup %11574 }
 0xf1c   :  { %v7382_v62 = vmul.f32 %v7374_v52, %v16149_v10  ;;  %v7345_v45 = vadd.f32 -1.4531521, %v7337_v11  ;;  %v7314_v55 = vmul.f32 %v11573_v31, %v7298_v12  ;;  %v7397_v58 = vmul.f32 %v7389_v0, %v16129_v49  ;;  %v11577_v57 = vpop.eup %11576  ;;  %v11220_v15 = vld [vmem:[%s16711_s9 + $0x7e4] sm:$0xf]  ;;  %v10458_v46 = vld [vmem:[%s16711_s9 + $0x6c0] sm:$0xf] }
 0xf1d   :  { %v7383_v59 = vmul.f32 %v7375_v32, %v16158_v42  ;;  %v7352_v14 = vmul.f32 %v7344_v9, %v16192_v61  ;;  %v16220_v4 = vadd.f32 1.0, %v7291_v7  ;;  %v7444_v29 = vsub.f32 1.0, %v16209_v20  ;;  %v11186_v32 = vld [vmem:[%s16711_s9 + $0x6cc] sm:$0xf0] }
 0xf1e   :  { %v7390_v30 = vadd.f32 0.2548296, %v7382_v62  ;;  %v7353_v1 = vmul.f32 %v7345_v45, %v16196_v39  ;;  %v7322_v5 = vsub.f32 2.0, %v7314_v55  ;;  %v7430_v18 = vmul.f32 1.442695, %v7417_v16 }
 0xf1f   :  { %v7391_v50 = vadd.f32 0.2548296, %v7383_v59  ;;  %v7360_v6 = vadd.f32 1.4214138, %v7352_v14  ;;  %v7418_v49 = vmul.f32 %v7410_v37, %v16175_v27  ;;  %11578 = vpow2.f32 %v7428_v56  ;;  %v10604_v27 = vld [vmem:[%s16711_s9 + $0x7f0] sm:$0xf0] }
 0xf20   :  { %v7398_v28 = vmul.f32 %v7390_v30, %v16149_v10  ;;  %v7361_v48 = vadd.f32 1.4214138, %v7353_v1  ;;  %v11188_v10 = vld [vmem:[%s16711_s9 + $0x6e4] sm:$0xf]  ;;  %v16234_v53 = vmul.f32 %v11573_v31, %v7322_v5  ;;  %v16245_v40 = vmul.f32 %v11571_v13, %v7397_v58  ;;  %v10586_v13 = vld [vmem:[%s16711_s9 + $0x7c0] sm:$0xf] }
 0xf21   :  { %v7399_v17 = vmul.f32 %v7391_v50, %v16158_v42  ;;  %v7368_v12 = vmul.f32 %v7360_v6, %v16192_v61  ;;  %11580 = vrcp.f32 %v16220_v4  ;;  %v7460_v2 = vsub.f32 0.0, %v7444_v29  ;;  %v11218_v45 = vld [vmem:[%s16711_s9 + $0x7cc] sm:$0xf0]  ;;  %v11184_v37 = vld [vmem:[%s16711_s9 + $0x6c4] sm:$0xf] }
 0xf22   :  { %v7438_v35 = vmul.f32 %v11575_v3, %v7398_v28  ;;  %v7369_v42 = vmul.f32 %v7361_v48, %v16196_v39  ;;  %v7338_v62 = vmul.f32 1.0614054, %v16234_v53  ;;  %v7432_v20 = vmul.f32 1.442695, %v7418_v49  ;;  %v10460_v1 = vld [vmem:[%s16711_s9 + $0x6d0] sm:$0xf0] }
 0xf23   :  { %v7376_v26 = vadd.f32 -0.28449672, %v7368_v12  ;;  %v16251_v11 = vmul.f32 %v11577_v57, %v7399_v17  ;;  %v10479_v59 = vor.u32 %v11188_v10, %v10476_v43  ;;  %v10607_v14 = vor.u32 %v11220_v15, %v10604_v27  ;;  %v11216_v57 = vld [vmem:[%s16711_s9 + $0x7c4] sm:$0xf]  ;;  %v10588_v17 = vld [vmem:[%s16711_s9 + $0x7d0] sm:$0xf0] }
 0xf24   :  { %v7446_v52 = vsub.f32 1.0, %v7438_v35  ;;  %v7377_v0 = vadd.f32 -0.28449672, %v7369_v42  ;;  %v7346_v30 = vadd.f32 -1.4531521, %v7338_v62  ;;  %v7445_v7 = vsub.f32 1.0, %v16245_v40 }
 0xf25   :  { %v7384_v9 = vmul.f32 %v7376_v26, %v16192_v61  ;;  %11582 = vpow2.f32 %v7430_v18  ;;  %7924 = vmatpush.bf16.msrb.mxu2 %v10479_v59  ;;  %v10459_v56 = vor.u32 %v11186_v32, %v10458_v46  ;;  %v11579_v55 = vpop.eup %11578  ;;  %v7468_v3 = vsel %vm7452_vm0, %v7444_v29, %v7460_v2  ;;  %7937 = vmatpush.bf16.msrb.mxu3 %v10607_v14  ;;  %v11182_v35 = vld [vmem:[%s16711_s9 + $0x6ac] sm:$0xf0]  ;;  %v10570_v12 = vld [vmem:[%s16711_s9 + $0x7a0] sm:$0xf]  ;;  %v11180_v42 = vld [vmem:[%s16711_s9 + $0x6a4] sm:$0xf] }
 0xf26   :  { %v7462_v16 = vsub.f32 0.0, %v7446_v52  ;;  %v7385_v31 = vmul.f32 %v7377_v0, %v16196_v39  ;;  %v7447_v58 = vsub.f32 1.0, %v16251_v11  ;;  %v7354_v28 = vmul.f32 %v7346_v30, %v16234_v53  ;;  %v11214_v18 = vld [vmem:[%s16711_s9 + $0x7ac] sm:$0xf0]  ;;  %v10444_v15 = vld [vmem:[%s16711_s9 + $0x6b0] sm:$0xf0] }
 0xf27   :  { %v7392_v50 = vadd.f32 0.2548296, %v7384_v9  ;;  %v7411_v6 = vsub.f32 0.0, %v16207_v8  ;;  %v11581_v29 = vpop.eup %11580  ;;  %11584 = vpow2.f32 %v7432_v20  ;;  %7899 = vmatpush.bf16.msrb.mxu0 %v10459_v56  ;;  %v10587_v5 = vor.u32 %v11218_v45, %v10586_v13  ;;  %v10572_v26 = vld [vmem:[%s16711_s9 + $0x7b0] sm:$0xf0] }
 0xf28   :  { %v7470_v49 = vsel %vm7454_vm2, %v7446_v52, %v7462_v16  ;;  %v7362_v10 = vadd.f32 1.4214138, %v7354_v28  ;;  %v7315_v43 = vmul.f32 %v11581_v29, %v16220_v4  ;;  %v16303_v27 = vadd.f32 1.0, %v7468_v3  ;;  %v11212_v4 = vld [vmem:[%s16711_s9 + $0x7a4] sm:$0xf] }
 0xf29   :  { %v7400_v48 = vmul.f32 %v7392_v50, %v16192_v61  ;;  %v7393_v61 = vadd.f32 0.2548296, %v7385_v31  ;;  %v16307_v33 = vsub.f32 0.0, %v7445_v7  ;;  %7912 = vmatpush.bf16.msrb.mxu1 %v10587_v5  ;;  %v10463_v52 = vor.u32 %v11184_v37, %v10460_v1  ;;  %v10426_v9 = vld [vmem:[%s16711_s9 + $0x680] sm:$0xf] }
 0xf2a   :  { %v16317_v32 = vsub.f32 0.0, %v7447_v58  ;;  %v7370_v2 = vmul.f32 %v7362_v10, %v16234_v53  ;;  %v7323_v0 = vsub.f32 2.0, %v7315_v43  ;;  %v7419_v62 = vmul.f32 %v7411_v6, %v16207_v8  ;;  %v11178_v20 = vld [vmem:[%s16711_s9 + $0x68c] sm:$0xf0]  ;;  %v10554_v30 = vld [vmem:[%s16711_s9 + $0x780] sm:$0xf] }
 0xf2b   :  { %v7440_v46 = vmul.f32 %v11579_v55, %v7400_v48  ;;  %v11583_v59 = vpop.eup %11582  ;;  %v16327_v13 = vadd.f32 1.0, %v7470_v49  ;;  %7925 = vmatpush.bf16.msrb.mxu2 %v10463_v52  ;;  %v10591_v16 = vor.u32 %v11216_v57, %v10588_v17  ;;  %v10443_v31 = vor.u32 %v11182_v35, %v10442_v21  ;;  %v11210_v8 = vld [vmem:[%s16711_s9 + $0x78c] sm:$0xf0]  ;;  %v11176_v1 = vld [vmem:[%s16711_s9 + $0x684] sm:$0xf] }
 0xf2c   :  { %v7401_v14 = vmul.f32 %v7393_v61, %v16196_v39  ;;  %v7378_v37 = vadd.f32 -0.28449672, %v7370_v2  ;;  %v16336_v50 = vmul.f32 %v11581_v29, %v7323_v0  ;;  %v10571_v56 = vor.u32 %v11214_v18, %v10570_v12  ;;  %v10428_v55 = vld [vmem:[%s16711_s9 + $0x690] sm:$0xf0]  ;;  %v11208_v39 = vld [vmem:[%s16711_s9 + $0x784] sm:$0xf] }
 0xf2d   :  { %v7448_v45 = vsub.f32 1.0, %v7440_v46  ;;  %v11585_v3 = vpop.eup %11584  ;;  %7938 = vmatpush.bf16.msrb.mxu3 %v10591_v16  ;;  %7900 = vmatpush.bf16.msrb.mxu0 %v10443_v31  ;;  %v10447_v6 = vor.u32 %v11180_v42, %v10444_v15  ;;  %v10575_v57 = vor.u32 %v11212_v4, %v10572_v26  ;;  %v10427_v17 = vor.u32 %v11178_v20, %v10426_v9  ;;  %v10556_v21 = vld [vmem:[%s16711_s9 + $0x790] sm:$0xf0]  ;;  %v10410_v35 = vld [vmem:[%s16711_s9 + $0x660] sm:$0xf] }
 0xf2e   :  { %v7386_v29 = vmul.f32 %v7378_v37, %v16234_v53  ;;  %v7339_v48 = vmul.f32 1.0614054, %v16336_v50  ;;  %7913 = vmatpush.bf16.msrb.mxu1 %v10571_v56  ;;  %v10555_v5 = vor.u32 %v11210_v8, %v10554_v30  ;;  %v11174_v12 = vld [vmem:[%s16711_s9 + $0x66c] sm:$0xf0]  ;;  %v10431_v18 = vor.u32 %v11176_v1, %v10428_v55  ;;  %v10538_v49 = vld [vmem:[%s16711_s9 + $0x760] sm:$0xf] }
 0xf2f   :  { %v7464_v28 = vsub.f32 0.0, %v7448_v45  ;;  %7926 = vmatpush.bf16.msrb.mxu2 %v10447_v6  ;;  %v11206_v61 = vld [vmem:[%s16711_s9 + $0x76c] sm:$0xf0]  ;;  %v11172_v10 = vld [vmem:[%s16711_s9 + $0x664] sm:$0xf]  ;;  %v16368_v43 = vmul.f32 %v11583_v59, %v7401_v14  ;;  %v10559_v26 = vor.u32 %v11208_v39, %v10556_v21  ;;  %v10411_v2 = vor.u32 %v11174_v12, %v10410_v35 }
 0xf30   :  { %v7394_v42 = vadd.f32 0.2548296, %v7386_v29  ;;  %v7347_v15 = vadd.f32 -1.4531521, %v7339_v48  ;;  %v10412_v46 = vld [vmem:[%s16711_s9 + $0x670] sm:$0xf0]  ;;  %v10539_v59 = vor.u32 %v11206_v61, %v10538_v49  ;;  %v7484_v35 = vmul.f32 %v16303_v27, %v16116_v44 }
 0xf31   :  { %v7472_v52 = vsel %vm7456_vm14, %v7448_v45, %v7464_v28  ;;  %v7434_v4 = vmul.f32 1.442695, %v7419_v62  ;;  %7939 = vmatpush.bf16.msrb.mxu3 %v10575_v57  ;;  %7901 = vmatpush.bf16.msrb.mxu0 %v10427_v17  ;;  %v11204_v0 = vld [vmem:[%s16711_s9 + $0x764] sm:$0xf]  ;;  %v10394_v62 = vld [vmem:[%s16711_s9 + $0x640] sm:$0xf]  ;;  %v7486_v17 = vmul.f32 %v16327_v13, %v16131_v51 }
 0xf32   :  { %v7402_v9 = vmul.f32 %v7394_v42, %v16234_v53  ;;  %v7355_v20 = vmul.f32 %v7347_v15, %v16336_v50  ;;  %7914 = vmatpush.bf16.msrb.mxu1 %v10555_v5  ;;  %v11170_v45 = vld [vmem:[%s16711_s9 + $0x64c] sm:$0xf0]  ;;  %v10415_v53 = vor.u32 %v11172_v10, %v10412_v46  ;;  %v10522_v16 = vld [vmem:[%s16711_s9 + $0x740] sm:$0xf]  ;;  %v11168_v30 = vld [vmem:[%s16711_s9 + $0x644] sm:$0xf]  ;;  %v10543_v55 = vor.u32 %v11204_v0, %v10540_v36 }
 0xf33   :  { %7927 = vmatpush.bf16.msrb.mxu2 %v10431_v18  ;;  %v11202_v31 = vld [vmem:[%s16711_s9 + $0x74c] sm:$0xf0]  ;;  %v7480_v8 = vadd.f32 1.0, %v7472_v52  ;;  %v7449_v14 = vsub.f32 1.0, %v16368_v43  ;;  %v10396_v1 = vld [vmem:[%s16711_s9 + $0x650] sm:$0xf0]  ;;  %v10395_v28 = vor.u32 %v11170_v45, %v10394_v62  ;;  %v7471_v15 = vsel %vm7455_vm9, %v7447_v58, %v16317_v32 }
 0xf34   :  { %v7442_v37 = vmul.f32 %v11585_v3, %v7402_v9  ;;  %v7363_v56 = vadd.f32 1.4214138, %v7355_v20  ;;  %v11200_v6 = vld [vmem:[%s16711_s9 + $0x744] sm:$0xf]  ;;  %v10524_v57 = vld [vmem:[%s16711_s9 + $0x750] sm:$0xf0]  ;;  %v10523_v29 = vor.u32 %v11202_v31, %v10522_v16  ;;  %v10399_v12 = vor.u32 %v11168_v30, %v10396_v1 }
 0xf35   :  { %7940 = vmatpush.bf16.msrb.mxu3 %v10559_v26  ;;  %7902 = vmatpush.bf16.msrb.mxu0 %v10411_v2  ;;  %v10378_v3 = vld [vmem:[%s16711_s9 + $0x620] sm:$0xf]  ;;  %v11166_v48 = vld [vmem:[%s16711_s9 + $0x62c] sm:$0xf0]  ;;  %v11164_v13 = vld [vmem:[%s16711_s9 + $0x624] sm:$0xf]  ;;  %v7488_v49 = vmul.f32 %v7480_v8, %v16182_v22  ;;  %11586 = vpow2.f32 %v7434_v4  ;;  %v10527_v22 = vor.u32 %v11200_v6, %v10524_v57  ;;  %v7492_v2 = vadd.f32 %v7486_v17, %v7484_v35 }
 0xf36   :  { %v7450_v39 = vsub.f32 1.0, %v7442_v37  ;;  %v7371_v21 = vmul.f32 %v7363_v56, %v16336_v50  ;;  %7915 = vmatpush.bf16.msrb.mxu1 %v10539_v59  ;;  %v10506_v5 = vld [vmem:[%s16711_s9 + $0x720] sm:$0xf]  ;;  %v11198_v51 = vld [vmem:[%s16711_s9 + $0x72c] sm:$0xf0]  ;;  %v7465_v61 = vsub.f32 0.0, %v7449_v14  ;;  %v10379_v46 = vor.u32 %v11166_v48, %v10378_v3 }
 0xf37   :  { %7928 = vmatpush.bf16.msrb.mxu2 %v10415_v53  ;;  %v10380_v18 = vld [vmem:[%s16711_s9 + $0x630] sm:$0xf0]  ;;  %v11196_v10 = vld [vmem:[%s16711_s9 + $0x724] sm:$0xf]  ;;  %v10362_v52 = vld [vmem:[%s16711_s9 + $0x600] sm:$0xf]  ;;  %v10507_v32 = vor.u32 %v11198_v51, %v10506_v5  ;;  %v7469_v45 = vsel %vm7453_vm11, %v7445_v7, %v16307_v33  ;;  %v7494_v53 = vadd.f32 %v7492_v2, %v7488_v49 }
 0xf38   :  { %v7466_v44 = vsub.f32 0.0, %v7450_v39  ;;  %v7379_v27 = vadd.f32 -0.28449672, %v7371_v21  ;;  %v10508_v42 = vld [vmem:[%s16711_s9 + $0x730] sm:$0xf0]  ;;  %v7266_v20 = vmul.f32 0.5, %v16145_v41  ;;  %v10383_v59 = vor.u32 %v11164_v13, %v10380_v18 }
 0xf39   :  { %7941 = vmatpush.bf16.msrb.mxu3 %v10543_v55  ;;  %7903 = vmatpush.bf16.msrb.mxu0 %v10395_v28  ;;  %v11162_v26 = vld [vmem:[%s16711_s9 + $0x60c] sm:$0xf0]  ;;  %v10490_v11 = vld [vmem:[%s16711_s9 + $0x700] sm:$0xf]  ;;  %v11160_v0 = vld [vmem:[%s16711_s9 + $0x604] sm:$0xf]  ;;  %v10511_v37 = vor.u32 %v11196_v10, %v10508_v42  ;;  %v7473_v7 = vsel %vm7457_vm12, %v7449_v14, %v7465_v61 }
 0xf3a   :  { %v7474_v47 = vsel %vm7458_vm10, %v7450_v39, %v7466_v44  ;;  %v7387_v58 = vmul.f32 %v7379_v27, %v16336_v50  ;;  %7916 = vmatpush.bf16.msrb.mxu1 %v10523_v29  ;;  %v11194_v4 = vld [vmem:[%s16711_s9 + $0x70c] sm:$0xf0]  ;;  %v10364_v9 = vld [vmem:[%s16711_s9 + $0x610] sm:$0xf0]  ;;  %v10482_v36 = vld [vmem:[%s16711_s9 + $0x6e8] sm:$0xf]  ;;  %v10363_v56 = vor.u32 %v11162_v26, %v10362_v52 }
 0xf3b   :  { %v7482_v38 = vadd.f32 1.0, %v7474_v47  ;;  %7929 = vmatpush.bf16.msrb.mxu2 %v10399_v12  ;;  %v11191_v62 = vld [vmem:[%s16711_s9 + $0x6f4] sm:$0xf0]  ;;  %v10610_v41 = vld [vmem:[%s16711_s9 + $0x7e8] sm:$0xf]  ;;  %v7479_v30 = vadd.f32 1.0, %v7471_v15  ;;  %v10491_v1 = vor.u32 %v11194_v4, %v10490_v11  ;;  %v11587_v57 = vpop.eup %11586  ;;  %v10367_v14 = vor.u32 %v11160_v0, %v10364_v9 }
 0xf3c   :  { %v7395_v16 = vadd.f32 0.2548296, %v7387_v58  ;;  %v11223_v31 = vld [vmem:[%s16711_s9 + $0x7f4] sm:$0xf0]  ;;  %v10484_v40 = vld [vmem:[%s16711_s9 + $0x6f8] sm:$0xf0]  ;;  %v10483_v6 = vor.u32 %v11191_v62, %v10482_v36 }
 0xf3d   :  { %v7490_v8 = vmul.f32 %v7482_v38, %v7266_v20  ;;  %7942 = vmatpush.bf16.msrb.mxu3 %v10527_v22  ;;  %7904 = vmatpush.bf16.msrb.mxu0 %v10379_v46  ;;  %v11192_v55 = vld [vmem:[%s16711_s9 + $0x704] sm:$0xf]  ;;  %v10492_v28 = vld [vmem:[%s16711_s9 + $0x710] sm:$0xf0]  ;;  %v11221_v43 = vld [vmem:[%s16711_s9 + $0x7ec] sm:$0xf]  ;;  %v10487_v5 = vor.u32 %v11189_v54, %v10484_v40 }
 0xf3e   :  { %v7403_v33 = vmul.f32 %v7395_v16, %v16336_v50  ;;  %7917 = vmatpush.bf16.msrb.mxu1 %v10507_v32  ;;  %v10611_v50 = vor.u32 %v11223_v31, %v10610_v41  ;;  %v10612_v3 = vld [vmem:[%s16711_s9 + $0x7f8] sm:$0xf0]  ;;  %v10466_v17 = vld [vmem:[%s16711_s9 + $0x6c8] sm:$0xf]  ;;  %v11187_v39 = vld [vmem:[%s16711_s9 + $0x6d4] sm:$0xf0]  ;;  %v10495_v18 = vor.u32 %v11192_v55, %v10492_v28 }
 0xf3f   :  { %v7496_v34 = vadd.f32 %v7494_v53, %v7490_v8  ;;  %7930 = vmatpush.bf16.msrb.mxu2 %v10383_v59  ;;  %v7477_v21 = vadd.f32 1.0, %v7469_v45  ;;  %v7263_v29 = vmul.f32 0.5, %v16092_v23  ;;  %v10594_v35 = vld [vmem:[%s16711_s9 + $0x7c8] sm:$0xf]  ;;  %v11219_v12 = vld [vmem:[%s16711_s9 + $0x7d4] sm:$0xf0]  ;;  %v10615_v27 = vor.u32 %v11221_v43, %v10612_v3 }
 0xf40   :  { %v7443_v48 = vmul.f32 %v11587_v57, %v7403_v33  ;;  %v7481_v51 = vadd.f32 1.0, %v7473_v7  ;;  %v11185_v49 = vld [vmem:[%s16711_s9 + $0x6cc] sm:$0xf]  ;;  %v10468_v23 = vld [vmem:[%s16711_s9 + $0x6d8] sm:$0xf0]  ;;  %v7265_v61 = vmul.f32 0.5, %v16111_v24  ;;  %v10467_v10 = vor.u32 %v11187_v39, %v10466_v17 }
 0xf41   :  { %v7498_v13 = vmul.f32 0.25, %v7496_v34  ;;  %7943 = vmatpush.bf16.msrb.mxu3 %v10511_v37  ;;  %7905 = vmatpush.bf16.msrb.mxu0 %v10363_v56  ;;  %v11217_v42 = vld [vmem:[%s16711_s9 + $0x7cc] sm:$0xf]  ;;  %v7487_v15 = vmul.f32 %v7479_v30, %v7263_v29  ;;  %v10595_v46 = vor.u32 %v11219_v12, %v10594_v35  ;;  %v10596_v52 = vld [vmem:[%s16711_s9 + $0x7d8] sm:$0xf0]  ;;  %v10471_v2 = vor.u32 %v11185_v49, %v10468_v23 }
 0xf42   :  { %v7451_v44 = vsub.f32 1.0, %v7443_v48  ;;  %7918 = vmatpush.bf16.msrb.mxu1 %v10491_v1  ;;  %v10450_v24 = vld [vmem:[%s16711_s9 + $0x6a8] sm:$0xf]  ;;  %v11183_v26 = vld [vmem:[%s16711_s9 + $0x6b4] sm:$0xf0]  ;;  %v7485_v32 = vmul.f32 %v7477_v21, %v16123_v60  ;;  %v7489_v4 = vmul.f32 %v7481_v51, %v7265_v61  ;;  %vm7459_vm13 = vcmp.ge.f32.partialorder %v16201_v19, 0.0 }
 0xf43   :  { %v16533_v22 = vpack.c.bf16 %v7498_v13, %v7498_v13  ;;  %7931 = vmatpush.bf16.msrb.mxu2 %v10367_v14  ;;  %v10578_v47 = vld [vmem:[%s16711_s9 + $0x7a8] sm:$0xf]  ;;  %v11215_v58 = vld [vmem:[%s16711_s9 + $0x7b4] sm:$0xf0]  ;;  %v11181_v0 = vld [vmem:[%s16711_s9 + $0x6ac] sm:$0xf]  ;;  %v10599_v38 = vor.u32 %v11217_v42, %v10596_v52  ;;  %v10451_v59 = vor.u32 %v11183_v26, %v10450_v24 }
 0xf44   :  { %v7467_v11 = vsub.f32 0.0, %v7451_v44  ;;  %v10452_v9 = vld [vmem:[%s16711_s9 + $0x6b8] sm:$0xf0]  ;;  %v11213_v60 = vld [vmem:[%s16711_s9 + $0x7ac] sm:$0xf]  ;;  %v7493_v36 = vadd.f32 %v7487_v15, %v7485_v32  ;;  %v7267_v62 = vmul.f32 0.5, %v16187_v25  ;;  %v10579_v53 = vor.u32 %v11215_v58, %v10578_v47 }
 0xf45   :  { %7950 = vmatpush.bf16.msra.mxu0 %v10483_v6  ;;  %7944 = vmatpush.bf16.msrb.mxu3 %v10495_v18  ;;  %v10580_v19 = vld [vmem:[%s16711_s9 + $0x7b8] sm:$0xf0]  ;;  %v10434_v16 = vld [vmem:[%s16711_s9 + $0x688] sm:$0xf]  ;;  %v11179_v41 = vld [vmem:[%s16711_s9 + $0x694] sm:$0xf0]  ;;  %v10455_v31 = vor.u32 %v11181_v0, %v10452_v9 }
 0xf46   :  { %7963 = vmatpush.bf16.msra.mxu1 %v10611_v50  ;;  %7906 = vmatmul.bf16.vlgmr.msrb.gmra.mxu0 %v16533_v22  ;;  %v7475_v20 = vsel %vm7459_vm13, %v7451_v44, %v7467_v11  ;;  %v10562_v30 = vld [vmem:[%s16711_s9 + $0x788] sm:$0xf]  ;;  %v11211_v25 = vld [vmem:[%s16711_s9 + $0x794] sm:$0xf0]  ;;  %v7495_v8 = vadd.f32 %v7493_v36, %v7489_v4  ;;  %v11177_v56 = vld [vmem:[%s16711_s9 + $0x68c] sm:$0xf]  ;;  %v10583_v40 = vor.u32 %v11213_v60, %v10580_v19 }
 0xf47   :  { %7976 = vmatpush.bf16.msra.mxu2 %v10487_v5  ;;  %v7483_v45 = vadd.f32 1.0, %v7475_v20  ;;  %v10436_v54 = vld [vmem:[%s16711_s9 + $0x698] sm:$0xf0]  ;;  %v10435_v7 = vor.u32 %v11179_v41, %v10434_v16  ;;  %v11209_v33 = vld [vmem:[%s16711_s9 + $0x78c] sm:$0xf]  ;;  %v10563_v55 = vor.u32 %v11211_v25, %v10562_v30 }
 0xf48   :  { %7932 = vmatmul.bf16.vlgmr.msrb.gmra.mxu2 %v16533_v22  ;;  %v10564_v28 = vld [vmem:[%s16711_s9 + $0x798] sm:$0xf0]  ;;  %v10418_v6 = vld [vmem:[%s16711_s9 + $0x668] sm:$0xf]  ;;  %v11175_v43 = vld [vmem:[%s16711_s9 + $0x674] sm:$0xf0]  ;;  %v10439_v57 = vor.u32 %v11177_v56, %v10436_v54 }
 0xf49   :  { %7989 = vmatpush.bf16.msra.mxu3 %v10615_v27  ;;  %7951 = vmatpush.bf16.msra.mxu0 %v10467_v10  ;;  %v7491_v37 = vmul.f32 %v7483_v45, %v7267_v62  ;;  %v10546_v34 = vld [vmem:[%s16711_s9 + $0x768] sm:$0xf]  ;;  %v11207_v14 = vld [vmem:[%s16711_s9 + $0x774] sm:$0xf0]  ;;  %v11173_v3 = vld [vmem:[%s16711_s9 + $0x66c] sm:$0xf]  ;;  %v10567_v39 = vor.u32 %v11209_v33, %v10564_v28  ;;  %v10419_v21 = vor.u32 %v11175_v43, %v10418_v6 }
 0xf4a   :  { %7964 = vmatpush.bf16.msra.mxu1 %v10595_v46  ;;  %v10420_v17 = vld [vmem:[%s16711_s9 + $0x678] sm:$0xf0]  ;;  %v11205_v29 = vld [vmem:[%s16711_s9 + $0x76c] sm:$0xf]  ;;  %v10547_v5 = vor.u32 %v11207_v14, %v10546_v34  ;;  %v10402_v12 = vld [vmem:[%s16711_s9 + $0x648] sm:$0xf] }
 0xf4b   :  { %7977 = vmatpush.bf16.msra.mxu2 %v10471_v2  ;;  %v7497_v1 = vadd.f32 %v7495_v8, %v7491_v37  ;;  %v10548_v35 = vld [vmem:[%s16711_s9 + $0x778] sm:$0xf0]  ;;  %v11171_v51 = vld [vmem:[%s16711_s9 + $0x654] sm:$0xf0]  ;;  %v10423_v13 = vor.u32 %v11173_v3, %v10420_v17  ;;  %v10530_v18 = vld [vmem:[%s16711_s9 + $0x748] sm:$0xf] }
 0xf4c   :  { %v11203_v49 = vld [vmem:[%s16711_s9 + $0x754] sm:$0xf0]  ;;  %v11169_v23 = vld [vmem:[%s16711_s9 + $0x64c] sm:$0xf]  ;;  %v10404_v61 = vld [vmem:[%s16711_s9 + $0x658] sm:$0xf0]  ;;  %v10551_v44 = vor.u32 %v11205_v29, %v10548_v35  ;;  %v10403_v27 = vor.u32 %v11171_v51, %v10402_v12 }
 0xf4d   :  { %7990 = vmatpush.bf16.msra.mxu3 %v10599_v38  ;;  %7952 = vmatpush.bf16.msra.mxu0 %v10451_v59  ;;  %v7499_v50 = vmul.f32 0.25, %v7497_v1  ;;  %v11201_v10 = vld [vmem:[%s16711_s9 + $0x74c] sm:$0xf]  ;;  %v10531_v42 = vor.u32 %v11203_v49, %v10530_v18  ;;  %v10532_v15 = vld [vmem:[%s16711_s9 + $0x758] sm:$0xf0]  ;;  %v10407_v24 = vor.u32 %v11169_v23, %v10404_v61  ;;  %v11230_v54 = vld [vmem:[#allocation4 + $0x330] sm:$0xff] }
 0xf4e   :  { %7965 = vmatpush.bf16.msra.mxu1 %v10579_v53  ;;  %v10386_v46 = vld [vmem:[%s16711_s9 + $0x628] sm:$0xf]  ;;  %v11167_v52 = vld [vmem:[%s16711_s9 + $0x634] sm:$0xf0]  ;;  %v11165_v2 = vld [vmem:[%s16711_s9 + $0x62c] sm:$0xf]  ;;  %v10535_v58 = vor.u32 %v11201_v10, %v10532_v15 }
 0xf4f   :  { %7978 = vmatpush.bf16.msra.mxu2 %v10455_v31  ;;  %v16612_v48 = vpack.c.bf16 %v7499_v50, %v7499_v50  ;;  %v10514_v26 = vld [vmem:[%s16711_s9 + $0x728] sm:$0xf]  ;;  %v11199_v11 = vld [vmem:[%s16711_s9 + $0x734] sm:$0xf0]  ;;  %v10388_v47 = vld [vmem:[%s16711_s9 + $0x638] sm:$0xf0]  ;;  %v10387_v32 = vor.u32 %v11167_v52, %v10386_v46 }
 0xf50   :  { %v11197_v4 = vld [vmem:[%s16711_s9 + $0x72c] sm:$0xf]  ;;  %v10515_v0 = vor.u32 %v11199_v11, %v10514_v26  ;;  %v10516_v9 = vld [vmem:[%s16711_s9 + $0x738] sm:$0xf0]  ;;  %v10370_v20 = vld [vmem:[%s16711_s9 + $0x608] sm:$0xf]  ;;  %v10391_v59 = vor.u32 %v11165_v2, %v10388_v47 }
 0xf51   :  { %7991 = vmatpush.bf16.msra.mxu3 %v10583_v40  ;;  %7953 = vmatpush.bf16.msra.mxu0 %v10435_v7  ;;  %v11163_v38 = vld [vmem:[%s16711_s9 + $0x614] sm:$0xf0]  ;;  %v10498_v60 = vld [vmem:[%s16711_s9 + $0x708] sm:$0xf]  ;;  %v11161_v36 = vld [vmem:[%s16711_s9 + $0x60c] sm:$0xf]  ;;  %v10519_v45 = vor.u32 %v11197_v4, %v10516_v9 }
 0xf52   :  { %7966 = vmatpush.bf16.msra.mxu1 %v10563_v55  ;;  %7945 = vmatmul.bf16.vlgmr.msrb.gmra.mxu3 %v16612_v48  ;;  %v11195_v19 = vld [vmem:[%s16711_s9 + $0x714] sm:$0xf0]  ;;  %v10372_v62 = vld [vmem:[%s16711_s9 + $0x618] sm:$0xf0]  ;;  %v10371_v53 = vor.u32 %v11163_v38, %v10370_v20  ;;  %v11193_v41 = vld [vmem:[%s16711_s9 + $0x70c] sm:$0xf] }
 0xf53   :  { %7979 = vmatpush.bf16.msra.mxu2 %v10439_v57  ;;  %7919 = vmatmul.bf16.vlgmr.msrb.gmra.mxu1 %v16612_v48  ;;  %v10499_v16 = vor.u32 %v11195_v19, %v10498_v60  ;;  %v10500_v31 = vld [vmem:[%s16711_s9 + $0x718] sm:$0xf0]  ;;  %v10375_v25 = vor.u32 %v11161_v36, %v10372_v62  ;;  %v11238_v40 = vld [vmem:[#allocation4 + $0x370] sm:$0xff]  ;;  %v11229_v1 = vld [vmem:[#allocation4 + $0x328] sm:$0xff] }
 0xf54   :  { %v11231_v30 = vld [vmem:[#allocation4 + $0x338] sm:$0xff]  ;;  %v10503_v56 = vor.u32 %v11193_v41, %v10500_v31  ;;  %v11246_v33 = vld [vmem:[#allocation4 + $0x3b0] sm:$0xff]  ;;  %v11237_v55 = vld [vmem:[#allocation4 + $0x368] sm:$0xff] }
 0xf55   :  { %7992 = vmatpush.bf16.msra.mxu3 %v10567_v39  ;;  %7954 = vmatpush.bf16.msra.mxu0 %v10419_v21  ;;  %v11239_v8 = vld [vmem:[#allocation4 + $0x378] sm:$0xff]  ;;  %v11228_v28 = vld [vmem:[#allocation4 + $0x320] sm:$0xff]  ;;  %v11226_v34 = vld [vmem:[#allocation4 + $0x310] sm:$0xff] }
 0xf56   :  { %7967 = vmatpush.bf16.msra.mxu1 %v10547_v5  ;;  %v11247_v37 = vld [vmem:[#allocation4 + $0x3b8] sm:$0xff]  ;;  %v11236_v6 = vld [vmem:[#allocation4 + $0x360] sm:$0xff]  ;;  %v11245_v14 = vld [vmem:[#allocation4 + $0x3a8] sm:$0xff] }
 0xf57   :  { %7980 = vmatpush.bf16.msra.mxu2 %v10423_v13  ;;  %v11255_v7 = vld [vmem:[#allocation4 + $0x3f8] sm:$0xff]  ;;  %v11234_v50 = vld [vmem:[#allocation4 + $0x350] sm:$0xff]  ;;  %v11224_v17 = vld [vmem:[#allocation4 + $0x300] sm:$0xff] }
 0xf58   :  { %v11227_v43 = vld [vmem:[#allocation4 + $0x318] sm:$0xff]  ;;  %v11254_v3 = vld [vmem:[#allocation4 + $0x3f0] sm:$0xff]  ;;  %v11244_v39 = vld [vmem:[#allocation4 + $0x3a0] sm:$0xff] }
 0xf59   :  { %7993 = vmatpush.bf16.msra.mxu3 %v10551_v44  ;;  %7955 = vmatpush.bf16.msra.mxu0 %v10403_v27  ;;  %v11235_v57 = vld [vmem:[#allocation4 + $0x358] sm:$0xff]  ;;  %v11233_v21 = vld [vmem:[#allocation4 + $0x348] sm:$0xff]  ;;  %v11232_v5 = vld [vmem:[#allocation4 + $0x340] sm:$0xff] }
 0xf5a   :  { %7968 = vmatpush.bf16.msra.mxu1 %v10531_v42  ;;  %v11253_v29 = vld [vmem:[#allocation4 + $0x3e8] sm:$0xff]  ;;  %v11252_v35 = vld [vmem:[#allocation4 + $0x3e0] sm:$0xff]  ;;  %v11242_v12 = vld [vmem:[#allocation4 + $0x390] sm:$0xff] }
 0xf5b   :  { %7981 = vmatpush.bf16.msra.mxu2 %v10407_v24  ;;  %v11251_v51 = vld [vmem:[#allocation4 + $0x3d8] sm:$0xff]  ;;  %v11241_v18 = vld [vmem:[#allocation4 + $0x388] sm:$0xff]  ;;  %v11250_v49 = vld [vmem:[#allocation4 + $0x3d0] sm:$0xff] }
 0xf5c   :  { %v10359_v23 = vld [vmem:[%s16712_s10 + $0xc] sm:$0xf]  ;;  %v11240_v61 = vld [vmem:[#allocation4 + $0x380] sm:$0xff] }
 0xf5d   :  { %7994 = vmatpush.bf16.msra.mxu3 %v10535_v58  ;;  %7956 = vmatpush.bf16.msra.mxu0 %v10387_v32  ;;  %v7570_v44 = vperm.slane %v10359_v23, 0  ;;  %v11249_v27 = vld [vmem:[#allocation4 + $0x3c8] sm:$0xff]  ;;  %v11248_v46 = vld [vmem:[#allocation4 + $0x3c0] sm:$0xff]  ;;  %v7571_v52 = vperm.slane %v10359_v23, 1  ;;  %v7572_v9 = vperm.slane %v10359_v23, 2  ;;  %v7573_v62 = vperm.slane %v10359_v23, 3 }
 0xf5e   :  { %7969 = vmatpush.bf16.msra.mxu1 %v10515_v0 }
 0xf5f   :  { %7982 = vmatpush.bf16.msra.mxu2 %v10391_v59 }
 0xf61   :  { %7995 = vmatpush.bf16.msra.mxu3 %v10519_v45  ;;  %7957 = vmatpush.bf16.msra.mxu0 %v10371_v53 }
 0xf62   :  { %7970 = vmatpush.bf16.msra.mxu1 %v10499_v16 }
 0xf63   :  { %7983 = vmatpush.bf16.msra.mxu2 %v10375_v25 }
 0xf64   :  { %7958 = vmatmul.bf16.vlgmr.msra.gmra.mxu0 %v16533_v22 }
 0xf65   :  { %8263 = vmatpush.bf16.msrb.mxu0 %v11231_v30  ;;  %7996 = vmatpush.bf16.msra.mxu3 %v10503_v56 }
 0xf66   :  { %8276 = vmatpush.bf16.msrb.mxu1 %v11239_v8  ;;  %7984 = vmatmul.bf16.vlgmr.msra.gmra.mxu2 %v16533_v22  ;;  %v11225_v22 = vld [vmem:[#allocation4 + $0x308] sm:$0xff] }
 0xf67   :  { %8289 = vmatpush.bf16.msrb.mxu2 %v11247_v37  ;;  %7971 = vmatmul.bf16.vlgmr.msra.gmra.mxu1 %v16612_v48 }
 0xf68   :  { %7997 = vmatmul.bf16.vlgmr.msra.gmra.mxu3 %v16612_v48  ;;  %v11243_v48 = vld [vmem:[#allocation4 + $0x398] sm:$0xff] }
 0xf69   :  { %8264 = vmatpush.bf16.msrb.mxu0 %v11230_v54  ;;  %8302 = vmatpush.bf16.msrb.mxu3 %v11255_v7 }
 0xf6a   :  { %8277 = vmatpush.bf16.msrb.mxu1 %v11238_v40 }
 0xf6b   :  { %8290 = vmatpush.bf16.msrb.mxu2 %v11246_v33 }
 0xf6d   :  { %8265 = vmatpush.bf16.msrb.mxu0 %v11229_v1  ;;  %8303 = vmatpush.bf16.msrb.mxu3 %v11254_v3 }
 0xf6e   :  { %8278 = vmatpush.bf16.msrb.mxu1 %v11237_v55 }
 0xf6f   :  { %8291 = vmatpush.bf16.msrb.mxu2 %v11245_v14 }
 0xf71   :  { %8266 = vmatpush.bf16.msrb.mxu0 %v11228_v28  ;;  %8304 = vmatpush.bf16.msrb.mxu3 %v11253_v29 }
 0xf72   :  { %8279 = vmatpush.bf16.msrb.mxu1 %v11236_v6 }
 0xf73   :  { %8292 = vmatpush.bf16.msrb.mxu2 %v11244_v39 }
 0xf75   :  { %8267 = vmatpush.bf16.msrb.mxu0 %v11227_v43  ;;  %8305 = vmatpush.bf16.msrb.mxu3 %v11252_v35 }
 0xf76   :  { %8280 = vmatpush.bf16.msrb.mxu1 %v11235_v57 }
 0xf77   :  { %8293 = vmatpush.bf16.msrb.mxu2 %v11243_v48 }
 0xf79   :  { %8268 = vmatpush.bf16.msrb.mxu0 %v11226_v34  ;;  %8306 = vmatpush.bf16.msrb.mxu3 %v11251_v51 }
 0xf7a   :  { %8281 = vmatpush.bf16.msrb.mxu1 %v11234_v50 }
 0xf7b   :  { %8294 = vmatpush.bf16.msrb.mxu2 %v11242_v12 }
 0xf7d   :  { %8269 = vmatpush.bf16.msrb.mxu0 %v11225_v22  ;;  %8307 = vmatpush.bf16.msrb.mxu3 %v11250_v49 }
 0xf7e   :  { %8282 = vmatpush.bf16.msrb.mxu1 %v11233_v21 }
 0xf7f   :  { %8295 = vmatpush.bf16.msrb.mxu2 %v11241_v18 }
 0xf81   :  { %8270 = vmatpush.bf16.msrb.mxu0 %v11224_v17  ;;  %8308 = vmatpush.bf16.msrb.mxu3 %v11249_v27 }
 0xf82   :  { %8283 = vmatpush.bf16.msrb.mxu1 %v11232_v5 }
 0xf83   :  { %8296 = vmatpush.bf16.msrb.mxu2 %v11240_v61 }
 0xf85   :  { %8309 = vmatpush.bf16.msrb.mxu3 %v11248_v46 }
 0xfc3   :  { %v7907_v13 = vpop.f32.mrf.mxu0 }
 0xfc4   :  { %v7908_v15 = vadd.f32 %v7907_v13, %v7570_v44 }
 0xfcb   :  { %v7933_v10 = vpop.f32.mrf.mxu2  ;;  %v7909_v42 = vpop.f32.mrf.mxu0 }
 0xfcc   :  { %v7934_v2 = vadd.f32 %v7933_v10, %v7571_v52 }
 0xfd0   :  { %v7920_v24 = vpop.f32.mrf.mxu1 }
 0xfd1   :  { %v7921_v26 = vadd.f32 %v7920_v24, %v7908_v15 }
 0xfd3   :  { %v8002_v11 = vpack.c.bf16 %v7921_v26, %v7921_v26  ;;  %v7935_v47 = vpop.f32.mrf.mxu2 }
 0xfd5   :  { %8271 = vmatmul.bf16.vlgmr.msrb.gmra.mxu0 %v8002_v11  ;;  %v7946_v58 = vpop.f32.mrf.mxu3 }
 0xfd6   :  { %v7947_v32 = vadd.f32 %v7946_v58, %v7934_v2 }
 0xfd8   :  { %v7922_v4 = vpop.f32.mrf.mxu1  ;;  %v8003_v0 = vpack.c.bf16 %v7947_v32, %v7947_v32 }
 0xfda   :  { %8284 = vmatmul.bf16.vlgmr.msrb.gmra.mxu1 %v8003_v0 }
 0xfdd   :  { %v7948_v20 = vpop.f32.mrf.mxu3 }
 0xfe1   :  { %v7959_v38 = vpop.f32.mrf.mxu0 }
 0xfe2   :  { %v7960_v59 = vadd.f32 %v7959_v38, %v7572_v9 }
 0xfe4   :  { %v7972_v60 = vpop.f32.mrf.mxu1 }
 0xfe5   :  { %v7973_v19 = vadd.f32 %v7972_v60, %v7960_v59 }
 0xfe7   :  { %v8004_v36 = vpack.c.bf16 %v7973_v19, %v7973_v19 }
 0xfe9   :  { %8297 = vmatmul.bf16.vlgmr.msrb.gmra.mxu2 %v8004_v36  ;;  %v7985_v45 = vpop.f32.mrf.mxu2  ;;  %v7961_v53 = vpop.f32.mrf.mxu0 }
 0xfea   :  { %v7986_v16 = vadd.f32 %v7985_v45, %v7573_v62 }
 0xfeb   :  { %v7998_v31 = vpop.f32.mrf.mxu3 }
 0xfec   :  { %v7974_v41 = vpop.f32.mrf.mxu1  ;;  %v7999_v30 = vadd.f32 %v7998_v31, %v7986_v16 }
 0xfee   :  { %v8005_v25 = vpack.c.bf16 %v7999_v30, %v7999_v30 }
 0xff0   :  { %8310 = vmatmul.bf16.vlgmr.msrb.gmra.mxu3 %v8005_v25 }
 0xff1   :  { %v7987_v8 = vpop.f32.mrf.mxu2 }
 0xff3   :  { %v8000_v37 = vpop.f32.mrf.mxu3 }
0x1052   :  { %v8272_v56 = vpop.f32.mrf.mxu0 }
0x1057   :  { %v8285_v54 = vpop.f32.mrf.mxu1 }
0x1058   :  { %v8286_v1 = vadd.f32 %v8285_v54, %v8272_v56 }
0x105a   :  { %v8274_v40 = vpop.f32.mrf.mxu0 }
0x105f   :  { %v8287_v7 = vpop.f32.mrf.mxu1 }
0x106c   :  { %v8298_v33 = vpop.f32.mrf.mxu2 }
0x106d   :  { %v8299_v55 = vadd.f32 %v8298_v33, %v8286_v1 }
0x1073   :  { %v8311_v28 = vpop.f32.mrf.mxu3 }
0x1074   :  { %v8300_v6 = vpop.f32.mrf.mxu2  ;;  %v8312_v43 = vadd.f32 %v8311_v28, %v8299_v55 }
0x1076   :  { %v8315_v57 = vadd.f32 %v8312_v43, %v15792_v63 }
0x1078   :  { %8316 = vst [vmem:[%s16715_s13] sm:$0xff] %v8315_v57 }
0x107b   :  { %v8313_v34 = vpop.f32.mrf.mxu3 }
0x107c   :  { %8321 = vsyncpa [#allocation3], 1 }
0x107d   :  { %8322 = vsyncpa [#allocation5], 1 }

</bundles_post_ra>
